<compile_context>
chip_gen: v7x
topology: tpu7x:2x2x1
jax: 0.10.0
libtpu: 0.0.40
codegen_flags: <defaults>
</compile_context>

<pallas_src>
import functools
import math

import jax
import jax.numpy as jnp
from jax import lax
from jax.experimental import pallas as pl
from jax.experimental.pallas import tpu as pltpu


def _pick_q_tile(S):
    for t in (128, 64, 32, 16, 8):
        if S % t == 0:
            return t
    return S  # fall back to a single full-sequence tile


def _attention_kernel(x_ref, wq_ref, bq_ref, wkv_ref, bkv_ref, wo_ref, bo_ref,
                      mask_ref, o_ref, kv_scr, att_scr, *, n_head, head_dim,
                      q_tile):
    # x_ref   : (1, S, D)   full sequence for this batch element
    # wq_ref  : (D, D)      Wq^T   (so x @ wq == x @ Wq^T)
    # bq_ref  : (1, D)
    # wkv_ref : (D, 2D)     [Wk^T | Wv^T]
    # bkv_ref : (1, 2D)
    # wo_ref  : (D, D)      Wo^T
    # bo_ref  : (1, D)
    # mask_ref: (tq, S)     additive float mask rows for this q tile
    # o_ref   : (1, tq, D)
    # kv_scr  : (S, 2D)     VMEM: K|V for all heads, lane-dense, persists
    #                       across the q tiles of one batch element
    # att_scr : (tq, D)     VMEM: per-head attention outputs (pre-Wo)
    qt = pl.program_id(1)
    S, D = x_ref.shape[1], x_ref.shape[2]
    tq = q_tile
    hd = head_dim
    scale = 1.0 / math.sqrt(hd)

    # ---- K/V projection for the full sequence, once per batch element -----
    # Lane-dense (tq, D) @ (D, 2D) matmuls (full MXU width), chunked over rows
    # to bound the live f32 result size.
    @pl.when(qt == 0)
    def _fill_kv():
        bkv = bkv_ref[...].astype(jnp.float32)
        for st in range(S // tq):                    # static, fully unrolled
            x_blk = x_ref[0, pl.ds(st * tq, tq), :]                  # (tq, D)
            kv = jnp.dot(x_blk, wkv_ref[...],
                         preferred_element_type=jnp.float32) + bkv   # (tq, 2D)
            kv_scr[pl.ds(st * tq, tq), :] = kv.astype(kv_scr.dtype)

    # ---- Q projection for this q tile: all heads at once (N = D) ----------
    q_start = pl.multiple_of(qt * tq, tq)
    x_q = x_ref[0, pl.ds(q_start, tq), :]                            # (tq, D)
    q_all = jnp.dot(x_q, wq_ref[...], preferred_element_type=jnp.float32)
    q_all = (q_all + bq_ref[...].astype(jnp.float32)) * scale
    q_all = q_all.astype(kv_scr.dtype)                               # (tq, D)

    mask = mask_ref[...].astype(jnp.float32)                         # (tq, S)

    # ---- per-head attention; heads fully unrolled (n_head is static) ------
    for h in range(n_head):
        q_h = q_all[:, h * hd:(h + 1) * hd]                          # (tq, hd)
        k_h = kv_scr[:, h * hd:(h + 1) * hd]                         # (S, hd)
        v_h = kv_scr[:, D + h * hd:D + (h + 1) * hd]                 # (S, hd)

        # scores: contract the head dims directly (no explicit k.T relayout)
        s = lax.dot_general(q_h, k_h, (((1,), (1,)), ((), ())),
                            preferred_element_type=jnp.float32)      # (tq, S)
        s = s + mask

        # numerically-stable softmax; normalization deferred past P @ V
        m = jnp.max(s, axis=-1, keepdims=True)
        p = jnp.exp(s - m)
        denom = jnp.sum(p, axis=-1, keepdims=True)

        o_h = jnp.dot(p.astype(v_h.dtype), v_h,
                      preferred_element_type=jnp.float32)            # (tq, hd)
        o_h = o_h * pl.reciprocal(denom, approx=True)                # EUP slot
        # 64-lane column store into the lane-dense pre-Wo scratch.
        att_scr[:, h * hd:(h + 1) * hd] = o_h.astype(att_scr.dtype)

    # ---- output projection: one full-depth/width (tq, D) @ (D, D) ---------
    y = jnp.dot(att_scr[...], wo_ref[...], preferred_element_type=jnp.float32)
    y = y + bo_ref[...].astype(jnp.float32)
    o_ref[0] = y.astype(o_ref.dtype)


def attention_forward(x, wqkv_w, wqkv_b, wo_w, wo_b, mask, *, n_head):
    """Pallas implementation of Attention.forward (no KV cache).

    x:      (B, S, D)
    wqkv_w: (3D, D)  torch nn.Linear weight
    wqkv_b: (3D,)
    wo_w:   (D, D)   torch nn.Linear weight
    wo_b:   (D,)
    mask:   (S, S)   additive float mask (0 where allowed, -inf/-1e30 masked)
    """
    B, S, D = x.shape
    assert D % n_head == 0
    hd = D // n_head
    tq = _pick_q_tile(S)
    nqt = S // tq

    # PyTorch nn.Linear weights are (out, in); pre-transpose once so the
    # kernel does plain x @ W with lane-dense (D, D) / (D, 2D) slabs.
    wq = jnp.transpose(wqkv_w[:D]).astype(x.dtype)                   # (D, D)
    wkv = jnp.transpose(wqkv_w[D:]).astype(x.dtype)                  # (D, 2D)
    bq = wqkv_b[:D].reshape(1, D).astype(jnp.float32)
    bkv = wqkv_b[D:].reshape(1, 2 * D).astype(jnp.float32)
    wo = jnp.transpose(wo_w).astype(x.dtype)                         # (D, D)
    bo = wo_b.reshape(1, D).astype(jnp.float32)

    kernel = functools.partial(_attention_kernel, n_head=n_head,
                               head_dim=hd, q_tile=tq)

    # VMEM working-set estimate (pipelined blocks double-buffered) + headroom.
    xi = x.dtype.itemsize
    mi = mask.dtype.itemsize
    est = (2 * S * D * xi               # x (full-seq block)
           + 2 * D * D * xi             # wq
           + 2 * D * 2 * D * xi         # wkv
           + 2 * D * D * xi             # wo
           + 2 * 3 * 8 * 2 * D * 4      # biases (sublane-padded, f32)
           + 2 * tq * S * mi            # mask block
           + 2 * tq * D * xi            # output block
           + S * 2 * D * xi             # K|V scratch
           + tq * D * xi)               # pre-Wo scratch
    vmem_limit = min(128 * 1024 * 1024,
                     max(32 * 1024 * 1024, int(est * 1.25) + (8 << 20)))

    grid_spec = pltpu.PrefetchScalarGridSpec(
        num_scalar_prefetch=0,
        grid=(B, nqt),
        in_specs=[
            pl.BlockSpec((1, S, D), lambda b, q: (b, 0, 0)),    # x (full seq)
            pl.BlockSpec((D, D), lambda b, q: (0, 0)),          # wq
            pl.BlockSpec((1, D), lambda b, q: (0, 0)),          # bq
            pl.BlockSpec((D, 2 * D), lambda b, q: (0, 0)),      # wkv
            pl.BlockSpec((1, 2 * D), lambda b, q: (0, 0)),      # bkv
            pl.BlockSpec((D, D), lambda b, q: (0, 0)),          # wo
            pl.BlockSpec((1, D), lambda b, q: (0, 0)),          # bo
            pl.BlockSpec((tq, S), lambda b, q: (q, 0)),         # mask rows
        ],
        out_specs=pl.BlockSpec((1, tq, D), lambda b, q: (b, q, 0)),
        scratch_shapes=[
            pltpu.VMEM((S, 2 * D), x.dtype),    # K | V, all heads, lane-dense
            pltpu.VMEM((tq, D), x.dtype),       # per-head outputs (pre-Wo)
        ],
    )

    return pl.pallas_call(
        kernel,
        out_shape=jax.ShapeDtypeStruct((B, S, D), x.dtype),
        grid_spec=grid_spec,
        compiler_params=pltpu.CompilerParams(
            dimension_semantics=("parallel", "arbitrary"),
            vmem_limit_bytes=vmem_limit,
        ),
    )(x, wq, bq, wkv, bkv, wo, bo, mask)


def attention_reference(x, wqkv_w, wqkv_b, wo_w, wo_b, mask, *, n_head):
    """Pure-JAX reference replicating the PyTorch forward."""
    B, S, D = x.shape
    hd = D // n_head
    qkv = x @ wqkv_w.T + wqkv_b
    q, k, v = qkv[..., :D], qkv[..., D:2 * D], qkv[..., 2 * D:]

    def split_heads(t):
        return t.reshape(B, S, n_head, hd).transpose(0, 2, 1, 3)    # (B,H,S,hd)

    q, k, v = map(split_heads, (q, k, v))
    s = jnp.einsum('bhqd,bhkd->bhqk', q, k) / math.sqrt(hd)
    s = s + mask[None, None]
    p = jax.nn.softmax(s, axis=-1)
    y = jnp.einsum('bhqk,bhkd->bhqd', p, v)
    y = y.transpose(0, 2, 1, 3).reshape(B, S, D)
    return y @ wo_w.T + wo_b


if __name__ == "__main__":
    # Small ModelArgs-consistent config (dim divisible by n_head, head_dim=64).
    B, S, DIM, N_HEAD = 2, 256, 256, 4

    key = jax.random.PRNGKey(0)
    kx, kw1, kb1, kw2, kb2 = jax.random.split(key, 5)

    x = jax.random.normal(kx, (B, S, DIM), dtype=jnp.float32)

    bound = 1.0 / math.sqrt(DIM)
    wqkv_w = jax.random.uniform(kw1, (3 * DIM, DIM), jnp.float32, -bound, bound)
    wqkv_b = jax.random.uniform(kb1, (3 * DIM,), jnp.float32, -bound, bound)
    wo_w = jax.random.uniform(kw2, (DIM, DIM), jnp.float32, -bound, bound)
    wo_b = jax.random.uniform(kb2, (DIM,), jnp.float32, -bound, bound)

    # Causal additive float mask (0 where allowed, -1e30 where masked).
    causal = jnp.tril(jnp.ones((S, S), dtype=jnp.bool_))
    mask = jnp.where(causal, 0.0, -1e30).astype(jnp.float32)

    y = attention_forward(x, wqkv_w, wqkv_b, wo_w, wo_b, mask, n_head=N_HEAD)
    y = jax.block_until_ready(y)

    y_ref = attention_reference(x, wqkv_w, wqkv_b, wo_w, wo_b, mask,
                                n_head=N_HEAD)
    max_err = float(jnp.max(jnp.abs(y - y_ref)))
    assert jnp.allclose(y, y_ref, atol=2e-2, rtol=2e-2), max_err

    print("KERNEL_OK")
</pallas_src>

<mosaic_0001>
module attributes {stable_mosaic.version = 11 : i64} {
  func.func @_attention_kernel(%arg0: i32, %arg1: i32, %arg2: memref<1x256x256xf32, #tpu.memory_space<vmem>>, %arg3: memref<256x256xf32, #tpu.memory_space<vmem>>, %arg4: memref<1x256xf32, #tpu.memory_space<vmem>>, %arg5: memref<256x512xf32, #tpu.memory_space<vmem>>, %arg6: memref<1x512xf32, #tpu.memory_space<vmem>>, %arg7: memref<256x256xf32, #tpu.memory_space<vmem>>, %arg8: memref<1x256xf32, #tpu.memory_space<vmem>>, %arg9: memref<128x256xf32, #tpu.memory_space<vmem>>, %arg10: memref<1x128x256xf32, #tpu.memory_space<vmem>>, %arg11: memref<256x512xf32, #tpu.memory_space<vmem>>, %arg12: memref<128x256xf32, #tpu.memory_space<vmem>>) attributes {dimension_semantics = [#tpu.dimension_semantics<parallel>, #tpu.dimension_semantics<arbitrary>], iteration_bounds = array<i64: 2, 2>, scalar_prefetch = 0 : i64, scratch_operands = 2 : i64, tpu.core_type = #tpu.core_type<tc>, window_params = [{transform_indices = @transform_0, window_bounds = array<i64: 1, 256, 256>}, {pipeline_mode = #tpu.pipeline_mode<synchronous>, transform_indices = @transform_1, window_bounds = array<i64: 256, 256>}, {pipeline_mode = #tpu.pipeline_mode<synchronous>, transform_indices = @transform_2, window_bounds = array<i64: 1, 256>}, {pipeline_mode = #tpu.pipeline_mode<synchronous>, transform_indices = @transform_3, window_bounds = array<i64: 256, 512>}, {pipeline_mode = #tpu.pipeline_mode<synchronous>, transform_indices = @transform_4, window_bounds = array<i64: 1, 512>}, {pipeline_mode = #tpu.pipeline_mode<synchronous>, transform_indices = @transform_5, window_bounds = array<i64: 256, 256>}, {pipeline_mode = #tpu.pipeline_mode<synchronous>, transform_indices = @transform_6, window_bounds = array<i64: 1, 256>}, {transform_indices = @transform_7, window_bounds = array<i64: 128, 256>}, {transform_indices = @transform_8, window_bounds = array<i64: 1, 128, 256>}]} {
    %c0_i32 = arith.constant 0 : i32
    %0 = arith.cmpi eq, %arg1, %c0_i32 : i32
    %1 = arith.extui %0 : i1 to i32
    %c0_i32_0 = arith.constant 0 : i32
    %2 = arith.cmpi ne, %1, %c0_i32_0 : i32
    scf.if %2 {
      %c0_52 = arith.constant 0 : index
      %c0_53 = arith.constant 0 : index
      %93 = vector.load %arg6[%c0_52, %c0_53] : memref<1x512xf32, #tpu.memory_space<vmem>>, vector<1x512xf32>
      %c0_54 = arith.constant 0 : index
      %c0_55 = arith.constant 0 : index
      %c0_56 = arith.constant 0 : index
      %94 = vector.load %arg2[%c0_54, %c0_55, %c0_56] : memref<1x256x256xf32, #tpu.memory_space<vmem>>, vector<1x128x256xf32>
      %95 = vector.shape_cast %94 : vector<1x128x256xf32> to vector<128x256xf32>
      %c0_57 = arith.constant 0 : index
      %c0_58 = arith.constant 0 : index
      %96 = vector.load %arg5[%c0_57, %c0_58] : memref<256x512xf32, #tpu.memory_space<vmem>>, vector<256x512xf32>
      %cst_59 = arith.constant dense<0.000000e+00> : vector<128x512xf32>
      %97 = tpu.matmul %95, %96, %cst_59 {dimension_numbers = #tpu.dot_dimension_numbers<[1], [0], [0], [1], [0, 0, 1, 1], [], []>} : vector<128x256xf32>, vector<256x512xf32>, vector<128x512xf32> -> vector<128x512xf32>
      %98 = vector.broadcast %93 : vector<1x512xf32> to vector<128x512xf32>
      %99 = arith.addf %97, %98 : vector<128x512xf32>
      %c0_60 = arith.constant 0 : index
      %c0_61 = arith.constant 0 : index
      %100 = vector.load %arg11[%c0_60, %c0_61] : memref<256x512xf32, #tpu.memory_space<vmem>>, vector<128x512xf32>
      tpu.vector_store %arg11[%c0_60, %c0_61], %99 {strides = array<i32>} : memref<256x512xf32, #tpu.memory_space<vmem>>, vector<128x512xf32>,
      %c0_62 = arith.constant 0 : index
      %c128_63 = arith.constant 128 : index
      %c0_64 = arith.constant 0 : index
      %101 = vector.load %arg2[%c0_62, %c128_63, %c0_64] : memref<1x256x256xf32, #tpu.memory_space<vmem>>, vector<1x128x256xf32>
      %102 = vector.shape_cast %101 : vector<1x128x256xf32> to vector<128x256xf32>
      %c0_65 = arith.constant 0 : index
      %c0_66 = arith.constant 0 : index
      %103 = vector.load %arg5[%c0_65, %c0_66] : memref<256x512xf32, #tpu.memory_space<vmem>>, vector<256x512xf32>
      %cst_67 = arith.constant dense<0.000000e+00> : vector<128x512xf32>
      %104 = tpu.matmul %102, %103, %cst_67 {dimension_numbers = #tpu.dot_dimension_numbers<[1], [0], [0], [1], [0, 0, 1, 1], [], []>} : vector<128x256xf32>, vector<256x512xf32>, vector<128x512xf32> -> vector<128x512xf32>
      %105 = vector.broadcast %93 : vector<1x512xf32> to vector<128x512xf32>
      %106 = arith.addf %104, %105 : vector<128x512xf32>
      %c128_68 = arith.constant 128 : index
      %c0_69 = arith.constant 0 : index
      %107 = vector.load %arg11[%c128_68, %c0_69] : memref<256x512xf32, #tpu.memory_space<vmem>>, vector<128x512xf32>
      tpu.vector_store %arg11[%c128_68, %c0_69], %106 {strides = array<i32>} : memref<256x512xf32, #tpu.memory_space<vmem>>, vector<128x512xf32>,
    } else {
    }
    %c128_i32 = arith.constant 128 : i32
    %3 = arith.muli %arg1, %c128_i32 : i32
    %4 = tpu.assume_multiple %3, 128 : i32
    %c0 = arith.constant 0 : index
    %5 = arith.index_cast %4 : i32 to index
    %c0_1 = arith.constant 0 : index
    %6 = vector.load %arg2[%c0, %5, %c0_1] : memref<1x256x256xf32, #tpu.memory_space<vmem>>, vector<1x128x256xf32>
    %7 = vector.shape_cast %6 : vector<1x128x256xf32> to vector<128x256xf32>
    %c0_2 = arith.constant 0 : index
    %c0_3 = arith.constant 0 : index
    %8 = vector.load %arg3[%c0_2, %c0_3] : memref<256x256xf32, #tpu.memory_space<vmem>>, vector<256x256xf32>
    %cst = arith.constant dense<0.000000e+00> : vector<128x256xf32>
    %9 = tpu.matmul %7, %8, %cst {dimension_numbers = #tpu.dot_dimension_numbers<[1], [0], [0], [1], [0, 0, 1, 1], [], []>} : vector<128x256xf32>, vector<256x256xf32>, vector<128x256xf32> -> vector<128x256xf32>
    %c0_4 = arith.constant 0 : index
    %c0_5 = arith.constant 0 : index
    %10 = vector.load %arg4[%c0_4, %c0_5] : memref<1x256xf32, #tpu.memory_space<vmem>>, vector<1x256xf32>
    %11 = vector.broadcast %10 : vector<1x256xf32> to vector<128x256xf32>
    %12 = arith.addf %9, %11 : vector<128x256xf32>
    %cst_6 = arith.constant 1.250000e-01 : f32
    %13 = vector.broadcast %cst_6 : f32 to vector<128x256xf32>
    %14 = arith.mulf %12, %13 : vector<128x256xf32>
    %c0_7 = arith.constant 0 : index
    %c0_8 = arith.constant 0 : index
    %15 = vector.load %arg9[%c0_7, %c0_8] : memref<128x256xf32, #tpu.memory_space<vmem>>, vector<128x256xf32>
    %16 = vector.extract_strided_slice %14 {offsets = [0, 0], sizes = [128, 64], strides = [1, 1]} : vector<128x256xf32> to vector<128x64xf32>
    %c0_9 = arith.constant 0 : index
    %c0_10 = arith.constant 0 : index
    %17 = vector.load %arg11[%c0_9, %c0_10] : memref<256x512xf32, #tpu.memory_space<vmem>>, vector<256x64xf32>
    %c0_11 = arith.constant 0 : index
    %c256 = arith.constant 256 : index
    %18 = vector.load %arg11[%c0_11, %c256] : memref<256x512xf32, #tpu.memory_space<vmem>>, vector<256x64xf32>
    %cst_12 = arith.constant dense<0.000000e+00> : vector<128x256xf32>
    %19 = tpu.matmul %16, %17, %cst_12 {dimension_numbers = #tpu.dot_dimension_numbers<[1], [1], [0], [0], [0, 0, 1, 0], [], []>} : vector<128x64xf32>, vector<256x64xf32>, vector<128x256xf32> -> vector<128x256xf32>
    %20 = arith.addf %19, %15 : vector<128x256xf32>
    %cst_13 = arith.constant dense<0xFF800000> : vector<128xf32>
    %21 = vector.multi_reduction <maximumf>, %20, %cst_13 [1] : vector<128x256xf32> to vector<128xf32>
    %22 = vector.shape_cast %21 : vector<128xf32> to vector<128x1xf32>
    %23 = vector.broadcast %22 : vector<128x1xf32> to vector<128x256xf32>
    %24 = arith.subf %20, %23 : vector<128x256xf32>
    %25 = math.exp %24 : vector<128x256xf32>
    %cst_14 = arith.constant dense<0.000000e+00> : vector<128xf32>
    %26 = vector.multi_reduction <add>, %25, %cst_14 [1] : vector<128x256xf32> to vector<128xf32>
    %27 = vector.shape_cast %26 : vector<128xf32> to vector<128x1xf32>
    %cst_15 = arith.constant dense<0.000000e+00> : vector<128x64xf32>
    %28 = tpu.matmul %25, %18, %cst_15 {dimension_numbers = #tpu.dot_dimension_numbers<[1], [0], [0], [1], [0, 0, 1, 1], [], []>} : vector<128x256xf32>, vector<256x64xf32>, vector<128x64xf32> -> vector<128x64xf32>
    %29 = tpu.reciprocal %27 {approx = true} : vector<128x1xf32> -> vector<128x1xf32>
    %30 = vector.broadcast %29 : vector<128x1xf32> to vector<128x64xf32>
    %31 = arith.mulf %28, %30 : vector<128x64xf32>
    %c0_16 = arith.constant 0 : index
    %c0_17 = arith.constant 0 : index
    %32 = vector.load %arg12[%c0_16, %c0_17] : memref<128x256xf32, #tpu.memory_space<vmem>>, vector<128x64xf32>
    tpu.vector_store %arg12[%c0_16, %c0_17], %31 {strides = array<i32>} : memref<128x256xf32, #tpu.memory_space<vmem>>, vector<128x64xf32>,
    %33 = vector.extract_strided_slice %14 {offsets = [0, 64], sizes = [128, 64], strides = [1, 1]} : vector<128x256xf32> to vector<128x64xf32>
    %c0_18 = arith.constant 0 : index
    %c64 = arith.constant 64 : index
    %34 = vector.load %arg11[%c0_18, %c64] : memref<256x512xf32, #tpu.memory_space<vmem>>, vector<256x64xf32>
    %c0_19 = arith.constant 0 : index
    %c320 = arith.constant 320 : index
    %35 = vector.load %arg11[%c0_19, %c320] : memref<256x512xf32, #tpu.memory_space<vmem>>, vector<256x64xf32>
    %cst_20 = arith.constant dense<0.000000e+00> : vector<128x256xf32>
    %36 = tpu.matmul %33, %34, %cst_20 {dimension_numbers = #tpu.dot_dimension_numbers<[1], [1], [0], [0], [0, 0, 1, 0], [], []>} : vector<128x64xf32>, vector<256x64xf32>, vector<128x256xf32> -> vector<128x256xf32>
    %37 = arith.addf %36, %15 : vector<128x256xf32>
    %cst_21 = arith.constant dense<0xFF800000> : vector<128xf32>
    %38 = vector.multi_reduction <maximumf>, %37, %cst_21 [1] : vector<128x256xf32> to vector<128xf32>
    %39 = vector.shape_cast %38 : vector<128xf32> to vector<128x1xf32>
    %40 = vector.broadcast %39 : vector<128x1xf32> to vector<128x256xf32>
    %41 = arith.subf %37, %40 : vector<128x256xf32>
    %42 = math.exp %41 : vector<128x256xf32>
    %cst_22 = arith.constant dense<0.000000e+00> : vector<128xf32>
    %43 = vector.multi_reduction <add>, %42, %cst_22 [1] : vector<128x256xf32> to vector<128xf32>
    %44 = vector.shape_cast %43 : vector<128xf32> to vector<128x1xf32>
    %cst_23 = arith.constant dense<0.000000e+00> : vector<128x64xf32>
    %45 = tpu.matmul %42, %35, %cst_23 {dimension_numbers = #tpu.dot_dimension_numbers<[1], [0], [0], [1], [0, 0, 1, 1], [], []>} : vector<128x256xf32>, vector<256x64xf32>, vector<128x64xf32> -> vector<128x64xf32>
    %46 = tpu.reciprocal %44 {approx = true} : vector<128x1xf32> -> vector<128x1xf32>
    %47 = vector.broadcast %46 : vector<128x1xf32> to vector<128x64xf32>
    %48 = arith.mulf %45, %47 : vector<128x64xf32>
    %c0_24 = arith.constant 0 : index
    %c64_25 = arith.constant 64 : index
    %49 = vector.load %arg12[%c0_24, %c64_25] : memref<128x256xf32, #tpu.memory_space<vmem>>, vector<128x64xf32>
    tpu.vector_store %arg12[%c0_24, %c64_25], %48 {strides = array<i32>} : memref<128x256xf32, #tpu.memory_space<vmem>>, vector<128x64xf32>,
    %50 = vector.extract_strided_slice %14 {offsets = [0, 128], sizes = [128, 64], strides = [1, 1]} : vector<128x256xf32> to vector<128x64xf32>
    %c0_26 = arith.constant 0 : index
    %c128 = arith.constant 128 : index
    %51 = vector.load %arg11[%c0_26, %c128] : memref<256x512xf32, #tpu.memory_space<vmem>>, vector<256x64xf32>
    %c0_27 = arith.constant 0 : index
    %c384 = arith.constant 384 : index
    %52 = vector.load %arg11[%c0_27, %c384] : memref<256x512xf32, #tpu.memory_space<vmem>>, vector<256x64xf32>
    %cst_28 = arith.constant dense<0.000000e+00> : vector<128x256xf32>
    %53 = tpu.matmul %50, %51, %cst_28 {dimension_numbers = #tpu.dot_dimension_numbers<[1], [1], [0], [0], [0, 0, 1, 0], [], []>} : vector<128x64xf32>, vector<256x64xf32>, vector<128x256xf32> -> vector<128x256xf32>
    %54 = arith.addf %53, %15 : vector<128x256xf32>
    %cst_29 = arith.constant dense<0xFF800000> : vector<128xf32>
    %55 = vector.multi_reduction <maximumf>, %54, %cst_29 [1] : vector<128x256xf32> to vector<128xf32>
    %56 = vector.shape_cast %55 : vector<128xf32> to vector<128x1xf32>
    %57 = vector.broadcast %56 : vector<128x1xf32> to vector<128x256xf32>
    %58 = arith.subf %54, %57 : vector<128x256xf32>
    %59 = math.exp %58 : vector<128x256xf32>
    %cst_30 = arith.constant dense<0.000000e+00> : vector<128xf32>
    %60 = vector.multi_reduction <add>, %59, %cst_30 [1] : vector<128x256xf32> to vector<128xf32>
    %61 = vector.shape_cast %60 : vector<128xf32> to vector<128x1xf32>
    %cst_31 = arith.constant dense<0.000000e+00> : vector<128x64xf32>
    %62 = tpu.matmul %59, %52, %cst_31 {dimension_numbers = #tpu.dot_dimension_numbers<[1], [0], [0], [1], [0, 0, 1, 1], [], []>} : vector<128x256xf32>, vector<256x64xf32>, vector<128x64xf32> -> vector<128x64xf32>
    %63 = tpu.reciprocal %61 {approx = true} : vector<128x1xf32> -> vector<128x1xf32>
    %64 = vector.broadcast %63 : vector<128x1xf32> to vector<128x64xf32>
    %65 = arith.mulf %62, %64 : vector<128x64xf32>
    %c0_32 = arith.constant 0 : index
    %c128_33 = arith.constant 128 : index
    %66 = vector.load %arg12[%c0_32, %c128_33] : memref<128x256xf32, #tpu.memory_space<vmem>>, vector<128x64xf32>
    tpu.vector_store %arg12[%c0_32, %c128_33], %65 {strides = array<i32>} : memref<128x256xf32, #tpu.memory_space<vmem>>, vector<128x64xf32>,
    %67 = vector.extract_strided_slice %14 {offsets = [0, 192], sizes = [128, 64], strides = [1, 1]} : vector<128x256xf32> to vector<128x64xf32>
    %c0_34 = arith.constant 0 : index
    %c192 = arith.constant 192 : index
    %68 = vector.load %arg11[%c0_34, %c192] : memref<256x512xf32, #tpu.memory_space<vmem>>, vector<256x64xf32>
    %c0_35 = arith.constant 0 : index
    %c448 = arith.constant 448 : index
    %69 = vector.load %arg11[%c0_35, %c448] : memref<256x512xf32, #tpu.memory_space<vmem>>, vector<256x64xf32>
    %cst_36 = arith.constant dense<0.000000e+00> : vector<128x256xf32>
    %70 = tpu.matmul %67, %68, %cst_36 {dimension_numbers = #tpu.dot_dimension_numbers<[1], [1], [0], [0], [0, 0, 1, 0], [], []>} : vector<128x64xf32>, vector<256x64xf32>, vector<128x256xf32> -> vector<128x256xf32>
    %71 = arith.addf %70, %15 : vector<128x256xf32>
    %cst_37 = arith.constant dense<0xFF800000> : vector<128xf32>
    %72 = vector.multi_reduction <maximumf>, %71, %cst_37 [1] : vector<128x256xf32> to vector<128xf32>
    %73 = vector.shape_cast %72 : vector<128xf32> to vector<128x1xf32>
    %74 = vector.broadcast %73 : vector<128x1xf32> to vector<128x256xf32>
    %75 = arith.subf %71, %74 : vector<128x256xf32>
    %76 = math.exp %75 : vector<128x256xf32>
    %cst_38 = arith.constant dense<0.000000e+00> : vector<128xf32>
    %77 = vector.multi_reduction <add>, %76, %cst_38 [1] : vector<128x256xf32> to vector<128xf32>
    %78 = vector.shape_cast %77 : vector<128xf32> to vector<128x1xf32>
    %cst_39 = arith.constant dense<0.000000e+00> : vector<128x64xf32>
    %79 = tpu.matmul %76, %69, %cst_39 {dimension_numbers = #tpu.dot_dimension_numbers<[1], [0], [0], [1], [0, 0, 1, 1], [], []>} : vector<128x256xf32>, vector<256x64xf32>, vector<128x64xf32> -> vector<128x64xf32>
    %80 = tpu.reciprocal %78 {approx = true} : vector<128x1xf32> -> vector<128x1xf32>
    %81 = vector.broadcast %80 : vector<128x1xf32> to vector<128x64xf32>
    %82 = arith.mulf %79, %81 : vector<128x64xf32>
    %c0_40 = arith.constant 0 : index
    %c192_41 = arith.constant 192 : index
    %83 = vector.load %arg12[%c0_40, %c192_41] : memref<128x256xf32, #tpu.memory_space<vmem>>, vector<128x64xf32>
    tpu.vector_store %arg12[%c0_40, %c192_41], %82 {strides = array<i32>} : memref<128x256xf32, #tpu.memory_space<vmem>>, vector<128x64xf32>,
    %c0_42 = arith.constant 0 : index
    %c0_43 = arith.constant 0 : index
    %84 = vector.load %arg12[%c0_42, %c0_43] : memref<128x256xf32, #tpu.memory_space<vmem>>, vector<128x256xf32>
    %c0_44 = arith.constant 0 : index
    %c0_45 = arith.constant 0 : index
    %85 = vector.load %arg7[%c0_44, %c0_45] : memref<256x256xf32, #tpu.memory_space<vmem>>, vector<256x256xf32>
    %cst_46 = arith.constant dense<0.000000e+00> : vector<128x256xf32>
    %86 = tpu.matmul %84, %85, %cst_46 {dimension_numbers = #tpu.dot_dimension_numbers<[1], [0], [0], [1], [0, 0, 1, 1], [], []>} : vector<128x256xf32>, vector<256x256xf32>, vector<128x256xf32> -> vector<128x256xf32>
    %c0_47 = arith.constant 0 : index
    %c0_48 = arith.constant 0 : index
    %87 = vector.load %arg8[%c0_47, %c0_48] : memref<1x256xf32, #tpu.memory_space<vmem>>, vector<1x256xf32>
    %88 = vector.broadcast %87 : vector<1x256xf32> to vector<128x256xf32>
    %89 = arith.addf %86, %88 : vector<128x256xf32>
    %c0_49 = arith.constant 0 : index
    %c0_50 = arith.constant 0 : index
    %c0_51 = arith.constant 0 : index
    %90 = vector.load %arg10[%c0_49, %c0_50, %c0_51] : memref<1x128x256xf32, #tpu.memory_space<vmem>>, vector<1x128x256xf32>
    %91 = vector.shape_cast %90 : vector<1x128x256xf32> to vector<128x256xf32>
    %92 = vector.shape_cast %89 : vector<128x256xf32> to vector<1x128x256xf32>
    tpu.vector_store %arg10[%c0_49, %c0_50, %c0_51], %92 {strides = array<i32>} : memref<1x128x256xf32, #tpu.memory_space<vmem>>, vector<1x128x256xf32>,
    return
  }
  func.func @transform_0(%arg0: i32, %arg1: i32) -> (i32, i32, i32) {
    %c0_i32 = arith.constant 0 : i32
    %c0_i32_0 = arith.constant 0 : i32
    %c0_i32_1 = arith.constant 0 : i32
    return %arg0, %c0_i32, %c0_i32_0 : i32, i32, i32
  }
  func.func @transform_1(%arg0: i32, %arg1: i32) -> (i32, i32) {
    %c0_i32 = arith.constant 0 : i32
    %c0_i32_0 = arith.constant 0 : i32
    %c0_i32_1 = arith.constant 0 : i32
    return %c0_i32, %c0_i32_0 : i32, i32
  }
  func.func @transform_2(%arg0: i32, %arg1: i32) -> (i32, i32) {
    %c0_i32 = arith.constant 0 : i32
    %c0_i32_0 = arith.constant 0 : i32
    %c0_i32_1 = arith.constant 0 : i32
    return %c0_i32, %c0_i32_0 : i32, i32
  }
  func.func @transform_3(%arg0: i32, %arg1: i32) -> (i32, i32) {
    %c0_i32 = arith.constant 0 : i32
    %c0_i32_0 = arith.constant 0 : i32
    %c0_i32_1 = arith.constant 0 : i32
    return %c0_i32, %c0_i32_0 : i32, i32
  }
  func.func @transform_4(%arg0: i32, %arg1: i32) -> (i32, i32) {
    %c0_i32 = arith.constant 0 : i32
    %c0_i32_0 = arith.constant 0 : i32
    %c0_i32_1 = arith.constant 0 : i32
    return %c0_i32, %c0_i32_0 : i32, i32
  }
  func.func @transform_5(%arg0: i32, %arg1: i32) -> (i32, i32) {
    %c0_i32 = arith.constant 0 : i32
    %c0_i32_0 = arith.constant 0 : i32
    %c0_i32_1 = arith.constant 0 : i32
    return %c0_i32, %c0_i32_0 : i32, i32
  }
  func.func @transform_6(%arg0: i32, %arg1: i32) -> (i32, i32) {
    %c0_i32 = arith.constant 0 : i32
    %c0_i32_0 = arith.constant 0 : i32
    %c0_i32_1 = arith.constant 0 : i32
    return %c0_i32, %c0_i32_0 : i32, i32
  }
  func.func @transform_7(%arg0: i32, %arg1: i32) -> (i32, i32) {
    %c0_i32 = arith.constant 0 : i32
    %c0_i32_0 = arith.constant 0 : i32
    return %arg1, %c0_i32 : i32, i32
  }
  func.func @transform_8(%arg0: i32, %arg1: i32) -> (i32, i32, i32) {
    %c0_i32 = arith.constant 0 : i32
    %c0_i32_0 = arith.constant 0 : i32
    return %arg0, %arg1, %c0_i32 : i32, i32, i32
  }
}

</mosaic_0001>

<bundles_post_ra>
// kernel: tpu_custom_call.1
= control target key start
LH: loop header
LB: loop body
LE: loop exit
PB: predicated region body
PF: predicated region fallthrough
CT: control target
= control target key end

     0   :  { %s11949_s0 = inlined_call_operand.hbm [shape: f32[2,256,256], index: 0, kind: input, shape index: {}]   ;;  %s11950_s1 = inlined_call_operand.hbm [shape: f32[256,256], index: 1, kind: input, shape index: {}]   ;;  %s11951_s2 = inlined_call_operand.vmem [shape: f32[1,256], index: 2, kind: input, shape index: {}]   ;;  %s11952_s3 = inlined_call_operand.hbm [shape: f32[256,512], index: 3, kind: input, shape index: {}]   ;;  %s11953_s4 = inlined_call_operand.vmem [shape: f32[1,512], index: 4, kind: input, shape index: {}]   ;;  %s11954_s5 = inlined_call_operand.hbm [shape: f32[256,256], index: 5, kind: input, shape index: {}]   ;;  %s11955_s6 = inlined_call_operand.vmem [shape: f32[1,256], index: 6, kind: input, shape index: {}]   ;;  %s11956_s7 = inlined_call_operand.hbm [shape: f32[256,256], index: 7, kind: input, shape index: {}]   ;;  %s11957_s8 = inlined_call_operand.hbm [shape: f32[2,256,256], index: 8, kind: output, shape index: {}]  }
   0x1   :  { %12092 = sst [smem:[#allocation117_spill]] %s11949_s0 }
   0x2   :  { %12093 = sst [smem:[#allocation118_spill]] %s11950_s1 }
   0x3   :  { %12094 = sst [smem:[#allocation119_spill]] %s11951_s2 }
   0x4   :  { %12095 = sst [smem:[#allocation120_spill]] %s11952_s3 }
   0x5   :  { %12096 = sst [smem:[#allocation121_spill]] %s11953_s4 }
   0x6   :  { %12097 = sst [smem:[#allocation122_spill]] %s11954_s5 }
   0x7   :  { %12098 = sst [smem:[#allocation123_spill]] %s11955_s6 }
   0x8   :  { %12099 = sst [smem:[#allocation124_spill]] %s11957_s8 }
   0x9   :  { %13 = vsyncpa [#allocation5], 0 }
   0xa   :  { %15 = vsyncpa [#allocation5 + $0x1], 0 }
   0xb   :  { %16 = vsyncpa [#allocation8], 0 }
   0xc   :  { %17 = vsyncpa [#allocation11], 0 }
   0xd   :  { %18 = vsyncpa [#allocation6], 0 }
   0xe   :  { %20 = vsyncpa [#allocation6 + $0x1], 0  ;;  %s8675_s27 = smov 0   ;;  %s8677_s28 = smov 0  }
   0xf   :  { %s8679_s29 = smov 0   ;;  %s8681_s30 = smov 0  }
  0x10   :  { %s8683_s9 = smov 0   ;;  %s8685_s10 = smov 0  }
  0x11   :  { %s8687_s11 = smov 0   ;;  %s8689_s12 = smov 0  }
  0x12   :  { %s8691_s13 = smov 0   ;;  %s8693_s14 = smov 0  }
  0x13   :  { %s8695_s15 = smov 0   ;;  %s8697_s16 = smov 0  }
  0x14   :  { %s8699_s17 = smov 0   ;;  %s8701_s18 = smov 0  }
  0x15 LB: > { %12100 = sst [smem:[#allocation19_spill]] %s8563_s27  ;;  %s8742_s19 = sadd.s32 4294967295, %s8615_s18   ;;  %s8615_s18 = sphi %s8701_s18, %s26_s18   ;;  %s8611_s17 = sphi %s8699_s17, %s12426_s17   ;;  %s8607_s16 = sphi %s8697_s16, %s12425_s16   ;;  %s8603_s15 = sphi %s8695_s15, %s12424_s15   ;;  %s8599_s14 = sphi %s8693_s14, %s12423_s14   ;;  %s8595_s13 = sphi %s8691_s13, %s12422_s13   ;;  %s8591_s12 = sphi %s8689_s12, %s12421_s12   ;;  %s8587_s11 = sphi %s8687_s11, %s12420_s11   ;;  %s8583_s10 = sphi %s8685_s10, %s12419_s10   ;;  %s8579_s9 = sphi %s8683_s9, %s12418_s9   ;;  %s8575_s30 = sphi %s8681_s30, %s12417_s30   ;;  %s8571_s29 = sphi %s8679_s29, %s12416_s29   ;;  %s8567_s28 = sphi %s8677_s28, %s12415_s28   ;;  %s8563_s27 = sphi %s8675_s27, %s12411_s27  }
  0x16   : > { %12101 = sst [smem:[#allocation20_spill]] %s8567_s28  ;;  %s5898_s20 = sadd.s32 4294967294, %s8615_s18  }
  0x17   : > { %12102 = sst [smem:[#allocation21_spill]] %s8599_s14  ;;  %p58_p0 = scmp.ne.s32.totalorder %s8591_s12, %s8587_s11 }
  0x18   : > { %12103 = sst [smem:[#allocation22_spill]] %s8603_s15  ;;  %p11963_p1 = scmp.eq.s32.totalorder %s8742_s19, 0 }
  0x19   : > { %p210_p2 = scmp.ne.s32.totalorder %s8579_s9, %s8575_s30  ;;  %p235_p3 = scmp.ne.s32.totalorder %s8571_s29, %s8567_s28 }
  0x1a   : > { %p8752_p4 = por %p11963_p1, %p58_p0  ;;  %p236_p5 = scmp.eq.s32.totalorder %s8742_s19, 3 }
  0x1b   : > { %p8759_p6 = por %p210_p2, %p11963_p1  ;;  %p241_p7 = scmp.ne.s32.totalorder %s8567_s28, %s8563_s27 }
  0x1c   : > { %s12104_s21 = scalar_select %p8752_p4, 1, 0 }
  0x1d   : > { %s12106_s22 = scalar_select %p8759_p6, 1, 0 }
  0x1e   : > { %12105 = sst [smem:[#allocation23_spill]] %s12104_s21  ;;  %p8765_p8 = por %p236_p5, %p235_p3 }
  0x1f   : > { %12107 = sst [smem:[#allocation24_spill]] %s12106_s22  ;;  %p242_p9 = scmp.eq.s32.totalorder %s5898_s20, 3 }
  0x20   : > { %s12108_s23 = scalar_select %p8765_p8, 1, 0 }
  0x21   : > { %p5899_p10 = scmp.ge.s32.totalorder %s8615_s18, 1  ;;  %p249_p11 = scmp.lt.s32.totalorder %s8615_s18, 5 }
  0x22   : > { %12109 = sst [smem:[#allocation25_spill]] %s12108_s23  ;;  %p8771_p12 = por %p242_p9, %p241_p7 }
  0x23   : > { %p8775_p13 = pnand %p5899_p10, %p249_p11  ;;  %s8617_s26 = smov [#allocation7]  }
  0x24   : > { %s12110_s24 = scalar_select %p8771_p12, 1, 0 }
  0x25   : > { %s12112_s25 = scalar_select %p8775_p13, 1, 0 }
  0x26   : > { %12111 = sst [smem:[#allocation26_spill]] %s12110_s24  ;;  %s261_s30 = sshll.u32 %s8617_s26, 4  ;;  %s262_s30 = int_to_ptr.vmem [resolvable:$true] %s261_s30 }
  0x27   : > { %p7424_p0 = pneg %p8775_p13  ;;  %s12114_s1 = sld [smem:[#allocation118_spill]] }
  0x29   : > { %p8783_p2 = pnand %p7424_p0, %p11963_p1 }
  0x2b   : > { %s12113_s11 = scalar_select %p8783_p2, 1, 0 }
  0x2c   : > { %p8795_p5 = pneg %p8783_p2 }
  0x2d   : > { %s8313_s24 = scalar_lea.hbm %s12114_s1, 8192 }
  0x2e   : > { %p8314_p3 = scmp.ne.s32.totalorder %s12114_s1, %s8313_s24  ;;  %p8320_p10 = scmp.lt.u32.totalorder %s8313_s24, %s12114_s1 }
  0x30   : > { %p8316_p7 = pnand %p8795_p5, %p8314_p3 }
  0x32   : > { %p8317_p9 = pneg %p8316_p7 }
  0x34   : > { %p8322_p11 = pnand %p8320_p10, %p8317_p9 }
  0x36   : > { %8325 = shalt.err (!%p8322_p11)
}
  0x37   : > { %s8326_s27 = scalar_lea.vmem %s262_s30, 8192  ;;  %p8334_p8 = scmp.lt.s32.totalorder %s262_s30, %s262_s30 }
  0x38   : > { %p8327_p0 = scmp.ne.s32.totalorder %s262_s30, %s8326_s27  ;;  %p8335_p6 = scmp.lt.s32.totalorder %s8326_s27, %s8326_s27 }
  0x3a   : > { %p8329_p1 = pnand %p8327_p0, %p8795_p5  ;;  %p8336_p4 = por %p8335_p6, %p8334_p8 }
  0x3c   : > { %p8330_p12 = pneg %p8329_p1 }
  0x3e   : > { %p8337_p13 = pnand %p8336_p4, %p8330_p12 }
  0x40   : > { %8340 = shalt.err (!%p8337_p13)
}
  0x41   : > { %s11975_s8 = smov 256   ;;  %s11981_s6 = smov 16  }
  0x42   : > { %7427 = dma.hbm_to_vmem [thread:$0]  (!%p8783_p2), %s12114_s1, 8192, %s262_s30, [#allocation8], %s11975_s8, %s11975_s8, %s11981_s6  }
  0x43   : > { %p52_p1 = scmp.ne.s32.totalorder %s8595_s13, %s8591_s12  ;;  %p11978_p4 = scmp.eq.s32.totalorder %s8615_s18, 0 }
  0x44   : > { %p11977_p6 = scmp.lt.s32.totalorder %s8615_s18, 4  ;;  %s310_s27 = sand.u32 1, %s8615_s18  }
  0x45   : > { %p54_p8 = por %p11978_p4, %p52_p1  ;;  %s312_s2 = sand.u32 1, %s8595_s13  }
  0x46   : > { %s6121_s4 = sshll.u32 %s8611_s17, 13  ;;  %s5904_s14 = sshll.u32 %s312_s2, 9 }
  0x47   : > { %s12116_s0 = sld [smem:[#allocation117_spill]]  ;;  %p8832_p12 = pnand %p11977_p6, %p54_p8 }
  0x48   : > { %s314_s15 = scalar_lea.vmem [#allocation4], %s5904_s14  ;;  %s8838_s2 = scalar_lea.sflag [#allocation5], %s310_s27 }
  0x49   : > { %s321_s23 = sshll.u32 %s314_s15, 4  ;;  %p8343_p3 = pneg %p8832_p12  ;;  %s8836_s23 = int_to_ptr.vmem [resolvable:$true] %s321_s23 }
  0x4d   : > { %s8828_s21 = scalar_lea.hbm %s12116_s0, %s6121_s4  ;;  %s8346_s20 = scalar_lea.hbm %s12116_s0, 16384 }
  0x4e   : > { %s8341_s28 = scalar_lea.hbm %s8828_s21, 8192  ;;  %p8347_p10 = scmp.lt.u32.totalorder %s8828_s21, %s12116_s0 }
  0x4f   : > { %p8342_p13 = scmp.ne.s32.totalorder %s8828_s21, %s8341_s28  ;;  %p8348_p11 = scmp.lt.u32.totalorder %s8346_s20, %s8341_s28 }
  0x50   : > { %p8350_p1 = scmp.lt.u32.totalorder %s8341_s28, %s8828_s21 }
  0x51   : > { %p8344_p7 = pnand %p8343_p3, %p8342_p13  ;;  %p8349_p0 = por %p8348_p11, %p8347_p10 }
  0x53   : > { %p8345_p9 = pneg %p8344_p7  ;;  %p8351_p8 = por %p8350_p1, %p8349_p0 }
  0x55   : > { %p8352_p6 = pnand %p8351_p8, %p8345_p9 }
  0x57   : > { %8355 = shalt.err (!%p8352_p6)
}
  0x58   : > { %s8356_s14 = scalar_lea.vmem %s8836_s23, 8192  ;;  %s8620_s27 = smov [#allocation4]  }
  0x59   : > { %p8357_p13 = scmp.ne.s32.totalorder %s8836_s23, %s8356_s14  ;;  %s8361_s15 = sshll.u32 %s8620_s27, 4  ;;  %s8362_s15 = int_to_ptr.vmem [resolvable:$false] %s8361_s15 }
  0x5a   : > { %s8363_s8 = scalar_lea.vmem %s8362_s15, 16384  ;;  %p8364_p2 = scmp.lt.s32.totalorder %s8836_s23, %s8362_s15 }
  0x5b   : > { %p8359_p7 = pnand %p8357_p13, %p8343_p3  ;;  %p8365_p10 = scmp.lt.s32.totalorder %s8363_s8, %s8356_s14 }
  0x5d   : > { %p8360_p4 = pneg %p8359_p7  ;;  %p8366_p11 = por %p8365_p10, %p8364_p2 }
  0x5f   : > { %p8367_p0 = pnand %p8366_p11, %p8360_p4 }
  0x61   : > { %8370 = shalt.err (!%p8367_p0)
}
  0x62   : > { %s12118_s24 = smov 256   ;;  %s8621_s20 = smov [#allocation9]  }
  0x63   : > { %7437 = dma.hbm_to_vmem [thread:$0]  (!%p8832_p12), %s8828_s21, 8192, %s8836_s23, %s8838_s2, %s12118_s24, %s12118_s24, %s11981_s6  }
  0x64   : > { %s277_s28 = sshll.u32 %s8621_s20, 4  ;;  %s12119_s3 = sld [smem:[#allocation120_spill]]  ;;  %s278_s28 = int_to_ptr.vmem [resolvable:$true] %s277_s28 }
  0x6a   : > { %s8371_s14 = scalar_lea.hbm %s12119_s3, 16384 }
  0x6b   : > { %p8372_p2 = scmp.ne.s32.totalorder %s12119_s3, %s8371_s14  ;;  %p8378_p3 = scmp.lt.u32.totalorder %s8371_s14, %s12119_s3 }
  0x6d   : > { %p8374_p4 = pnand %p8372_p2, %p8795_p5 }
  0x6f   : > { %p8375_p6 = pneg %p8374_p4 }
  0x71   : > { %p8380_p9 = pnand %p8378_p3, %p8375_p6 }
  0x73   : > { %8383 = shalt.err (!%p8380_p9)
}
  0x74   : > { %s8384_s21 = scalar_lea.vmem %s278_s28, 16384  ;;  %p8392_p13 = scmp.lt.s32.totalorder %s278_s28, %s278_s28 }
  0x75   : > { %p8385_p12 = scmp.ne.s32.totalorder %s278_s28, %s8384_s21  ;;  %p8393_p7 = scmp.lt.s32.totalorder %s8384_s21, %s8384_s21 }
  0x77   : > { %p8387_p1 = pnand %p8385_p12, %p8795_p5  ;;  %p8394_p10 = por %p8393_p7, %p8392_p13 }
  0x79   : > { %p8388_p8 = pneg %p8387_p1 }
  0x7b   : > { %p8395_p11 = pnand %p8394_p10, %p8388_p8 }
  0x7d   : > { %8398 = shalt.err (!%p8395_p11)
}
  0x7e   : > { %s8622_s23 = smov 512   ;;  %s8623_s20 = smov 32  }
  0x7f   : > { %p12120_p0 = scmp.ne.s32.totalorder %s12113_s11, 0  ;;  %s8624_s14 = smov [#allocation10]  }
  0x80   : > { %s293_s27 = sshll.u32 %s8624_s14, 4  ;;  %s12121_s5 = sld [smem:[#allocation122_spill]]  ;;  %s294_s27 = int_to_ptr.vmem [resolvable:$true] %s293_s27 }
  0x81   : > { %7430 = dma.hbm_to_vmem [thread:$0]  (!%p12120_p0), %s12119_s3, 16384, %s278_s28, [#allocation8], %s8622_s23, %s8622_s23, %s8623_s20  }
  0x86   : > { %s8399_s8 = scalar_lea.hbm %s12121_s5, 8192 }
  0x87   : > { %p8400_p2 = scmp.ne.s32.totalorder %s12121_s5, %s8399_s8  ;;  %p8406_p3 = scmp.lt.u32.totalorder %s8399_s8, %s12121_s5 }
  0x89   : > { %p8402_p4 = pnand %p8400_p2, %p8795_p5 }
  0x8b   : > { %p8403_p6 = pneg %p8402_p4 }
  0x8d   : > { %p8408_p9 = pnand %p8406_p3, %p8403_p6 }
  0x8f   : > { %8411 = shalt.err (!%p8408_p9)
}
  0x90   : > { %s8412_s28 = scalar_lea.vmem %s294_s27, 8192  ;;  %p8420_p13 = scmp.lt.s32.totalorder %s294_s27, %s294_s27 }
  0x91   : > { %p8413_p12 = scmp.ne.s32.totalorder %s294_s27, %s8412_s28  ;;  %p8421_p7 = scmp.lt.s32.totalorder %s8412_s28, %s8412_s28 }
  0x93   : > { %p8415_p1 = pnand %p8413_p12, %p8795_p5  ;;  %p8422_p10 = por %p8421_p7, %p8420_p13 }
  0x95   : > { %p8416_p8 = pneg %p8415_p1 }
  0x97   : > { %p8423_p11 = pnand %p8422_p10, %p8416_p8 }
  0x99   : > { %8426 = shalt.err (!%p8423_p11)
}
  0x9a   : > { %s12122_s6 = smov 16   ;;  %s35_s11 = sadd.s32 1, %s8607_s16 }
  0x9b   : > { %7433 = dma.hbm_to_vmem [thread:$0]  (!%p12120_p0), %s12121_s5, 8192, %s294_s27, [#allocation11], %s12118_s24, %s12118_s24, %s12122_s6  }
  0x9c   : > { %p36_p5 = scmp.ge.s32.totalorder %s35_s11, 2  ;;  %s197_s26 = sadd.s32 1, %s8583_s10 }
  0x9d   : > { %p204_p2 = scmp.ne.s32.totalorder %s8583_s10, %s8579_s9  ;;  %s225_s23 = sadd.s32 1, %s8571_s29 }
  0x9e   : > { %s12428_s11 = smov (%p36_p5, %s35_s11), 0  ;;  %s12124_s20 = sadd.s32 1, %s8611_s17 }
  0x9f   : > { %12123 = sst [smem:[#allocation27_spill]] %s12428_s11  ;;  %s12430_s20 = smov (!%p36_p5, %s12124_s20), %s8611_s17 }
  0xa0   : > { %s194_s4 = ssub.s32 %s8607_s16, %s12428_s11  ;;  %p12125_p4 = scmp.eq.s32.totalorder %s8615_s18, 0 }
  0xa1   : > { %p40_p0 = scmp.ge.s32.totalorder %s12430_s20, 2  ;;  %p195_p3 = scmp.eq.s32.totalorder %s194_s4, 0 }
  0xa2   : > { %p8922_p6 = por %p204_p2, %p12125_p4  ;;  %s333_s14 = sand.u32 1, %s8583_s10  }
  0xa3   : > { %s6123_s27 = sshll.u32 %s8607_s16, 12  ;;  %s12432_s20 = smov (%p40_p0, %s12430_s20), 0 }
  0xa4   : > { %12127 = sst [smem:[#allocation28_spill]] %s12432_s20  ;;  %s42_s30 = ssub.s32 %s8611_s17, %s12432_s20 }
  0xa5   : > { %s8931_s15 = scalar_select %p195_p3, %s8583_s10, %s197_s26  }
  0xa6   : > { %s5907_s8 = sshll.u32 %s333_s14, 8  ;;  %p43_p9 = scmp.eq.s32.totalorder %s42_s30, 0 }
  0xa7   : > { %s222_s21 = sor.u32 %s194_s4, %s42_s30  ;;  %s12128_s28 = sadd.s32 1, %s8595_s13 }
  0xa8   : > { %p223_p12 = scmp.eq.s32.totalorder %s222_s21, 0  ;;  %s8946_s11 = scalar_lea.hbm %s11956_s7, %s6123_s27 }
  0xa9   : > { %s8938_s0 = scalar_select %p43_p9, %s8595_s13, %s12128_s28  }
  0xaa   : > { %s8941_s1 = scalar_select %p223_p12, %s8571_s29, %s225_s23  }
  0xab   : > { %s335_s26 = scalar_lea.vmem [#allocation12], %s5907_s8  ;;  %p12129_p1 = scmp.lt.s32.totalorder %s8615_s18, 4 }
  0xac   : > { %s343_s20 = sshll.u32 %s335_s26, 4  ;;  %s8427_s23 = scalar_lea.hbm %s8946_s11, 4096  ;;  %s8948_s20 = int_to_ptr.vmem [resolvable:$true] %s343_s20 }
  0xad   : > { %p8954_p8 = pnand %p12129_p1, %p8922_p6  ;;  %p8428_p13 = scmp.ne.s32.totalorder %s8946_s11, %s8427_s23 }
  0xae   : > { %s8432_s14 = scalar_lea.hbm %s11956_s7, 8192  ;;  %p8433_p5 = scmp.lt.u32.totalorder %s8946_s11, %s11956_s7 }
  0xaf   : > { %p8429_p7 = pneg %p8954_p8  ;;  %p8434_p2 = scmp.lt.u32.totalorder %s8432_s14, %s8427_s23 }
  0xb0   : > { %p8436_p6 = scmp.lt.u32.totalorder %s8427_s23, %s8946_s11 }
  0xb1   : > { %p8430_p10 = pnand %p8429_p7, %p8428_p13  ;;  %p8435_p4 = por %p8434_p2, %p8433_p5 }
  0xb3   : > { %p8431_p11 = pneg %p8430_p10  ;;  %p8437_p0 = por %p8436_p6, %p8435_p4 }
  0xb5   : > { %p8438_p3 = pnand %p8437_p0, %p8431_p11 }
  0xb7   : > { %8441 = shalt.err (!%p8438_p3)
}
  0xb8   : > { %s8442_s30 = scalar_lea.vmem %s8948_s20, 4096  ;;  %s8625_s8 = smov [#allocation12]  }
  0xb9   : > { %p8443_p9 = scmp.ne.s32.totalorder %s8948_s20, %s8442_s30  ;;  %s8447_s21 = sshll.u32 %s8625_s8, 4  ;;  %s8448_s21 = int_to_ptr.vmem [resolvable:$false] %s8447_s21 }
  0xba   : > { %s8449_s28 = scalar_lea.vmem %s8448_s21, 8192  ;;  %p8450_p13 = scmp.lt.s32.totalorder %s8948_s20, %s8448_s21 }
  0xbb   : > { %p8445_p12 = pnand %p8443_p9, %p8429_p7  ;;  %p8451_p10 = scmp.lt.s32.totalorder %s8449_s28, %s8442_s30 }
  0xbd   : > { %p8446_p1 = pneg %p8445_p12  ;;  %p8452_p5 = por %p8451_p10, %p8450_p13 }
  0xbf   : > { %p8453_p2 = pnand %p8452_p5, %p8446_p1 }
  0xc1   : > { %8456 = shalt.err (!%p8453_p2)
}
  0xc2   : > { %7440 = dma.hbm_to_vmem [thread:$0]  (!%p8954_p8), %s8946_s11, 4096, %s8948_s20, %s8838_s2, %s12118_s24, %s12118_s24, %s12122_s6  }
  0xc3   : > { %p12131_p7 = scmp.ne.s32.totalorder %s12112_s25, 0 }
  0xc5   : > { %355 = sbr.rel (%p12131_p7) target bundleno = 2294 (0x8f6), region = 52 }
  0xcc   : > { %s12132_s26 = sld [smem:[#allocation23_spill]]  ;;  %s357_s23 = sand.u32 1, %s8742_s19  }
  0xcd   : > { %s359_s3 = sand.u32 1, %s8591_s12   ;;  %s358_s14 = scalar_lea.sflag [#allocation5], %s357_s23 }
  0xce   : > { %s5912_s5 = sshll.u32 %s359_s3, 9 }
  0xcf   : > { %s8991_s22 = scalar_lea.vmem [#allocation4], %s5912_s5 }
  0xd2   : > { %p12133_p11 = scmp.ne.s32.totalorder %s12132_s26, 0 }
  0xd4   : > { %8542 = dma.done.wait (%p12133_p11), %s358_s14, 8192  }
  0xd5   : > { %8544 = vsyncadd (%p12133_p11), %s358_s14, 4294959104  ;;  %p12134_p4 = scmp.eq.s32.totalorder %s8742_s19, 0 }
  0xd7   : > { %8546 = dma.done.wait (%p12134_p4), [#allocation8], 24576   ;;  %p12135_p8 = pmov %p12134_p4 }
  0xd8   : > { %p12136_p6 = pmov %p12134_p4 }
  0xd9   : > { %8548 = vsyncadd (%p12135_p8), [#allocation8], 4294942720 }
  0xda   : > { %8550 = dma.done.wait (%p12136_p6), [#allocation11], 8192   ;;  %p12137_p0 = pmov %p12134_p4 }
  0xdb   : > { %s12138_s25 = sld [smem:[#allocation24_spill]]  ;;  %s380_s2 = sand.u32 1, %s8579_s9  }
  0xdc   : > { %8552 = vsyncadd (%p12137_p0), [#allocation11], 4294959104  ;;  %s5916_s24 = sshll.u32 %s380_s2, 8 }
  0xdd   : > { %s9006_s6 = scalar_lea.vmem [#allocation12], %s5916_s24 }
  0xe1   : > { %p12139_p3 = scmp.ne.s32.totalorder %s12138_s25, 0 }
  0xe3   : > { %8554 = dma.done.wait (%p12139_p3), %s358_s14, 4096  }
  0xe4   : > { %8556 = vsyncadd (%p12139_p3), %s358_s14, 4294963200  ;;  %s12140_s11 = sld [smem:[#allocation20_spill]]  ;;  %s12141_s19 = sld [smem:[#allocation21_spill]] }
  0xea   : > { %s417_s20 = sand.u32 1, %s12140_s11   ;;  %p5918_p9 = scmp.ne.s32.totalorder %s12141_s19, 0 }
  0xeb   : > { %s5917_s4 = sshll.u32 %s417_s20, 8 }
  0xec   : > { %s9015_s27 = scalar_lea.vmem [#allocation13], %s5917_s4  ;;  %425 = sbr.rel (%p5918_p9) target bundleno = 652 (0x28c), region = 76 }
  0xf3   : > { %v460_v0 = vld [vmem:[#allocation9 + $0x8] sm:$0xff]  ;;  %v462_v2 = vld [vmem:[#allocation9 + $0x18] sm:$0xff]  ;;  %v459_v5 = vld [vmem:[#allocation9] sm:$0xff]  ;;  %s12162_s21 = sld [smem:[#allocation121_spill]] }
  0xf4   : > { %v464_v1 = vld [vmem:[#allocation9 + $0x28] sm:$0xff]  ;;  %v466_v4 = vld [vmem:[#allocation9 + $0x38] sm:$0xff]  ;;  %v463_v6 = vld [vmem:[#allocation9 + $0x20] sm:$0xff] }
  0xf5   : > { %v9018_v3 = vpack.c.bf16 %v464_v1, %v460_v0  ;;  %v9020_v7 = vpack.c.bf16 %v466_v4, %v462_v2  ;;  %v9022_v8 = vpack.c.bf16 %v463_v6, %v459_v5  ;;  %v461_v9 = vld [vmem:[#allocation9 + $0x10] sm:$0xff]  ;;  %v468_v11 = vld [vmem:[#allocation9 + $0x48] sm:$0xff]  ;;  %v470_v14 = vld [vmem:[#allocation9 + $0x58] sm:$0xff] }
  0xf6   : > { %v465_v10 = vld [vmem:[#allocation9 + $0x30] sm:$0xff]  ;;  %v472_v13 = vld [vmem:[#allocation9 + $0x68] sm:$0xff]  ;;  %v474_v15 = vld [vmem:[#allocation9 + $0x78] sm:$0xff] }
  0xf7   : > { %6703 = vmatprep.subr.bf16.mxu0 %v9018_v3  ;;  %v9025_v12 = vpack.c.bf16 %v465_v10, %v461_v9  ;;  %6767 = vmatprep.subr.bf16.mxu1 %v9020_v7  ;;  %v9029_v16 = vpack.c.bf16 %v472_v13, %v468_v11  ;;  %v9031_v17 = vpack.c.bf16 %v474_v15, %v470_v14  ;;  %v467_v18 = vld [vmem:[#allocation9 + $0x40] sm:$0xff]  ;;  %v469_v20 = vld [vmem:[#allocation9 + $0x50] sm:$0xff]  ;;  %v476_v23 = vld [vmem:[#allocation9 + $0x88] sm:$0xff] }
  0xf8   : > { %6705 = vmatpush1.bf16.msra.mxu0 %v9022_v8  ;;  %v471_v19 = vld [vmem:[#allocation9 + $0x60] sm:$0xff]  ;;  %v473_v22 = vld [vmem:[#allocation9 + $0x70] sm:$0xff]  ;;  %v480_v24 = vld [vmem:[#allocation9 + $0xa8] sm:$0xff] }
  0xf9   : > { %6769 = vmatpush1.bf16.msra.mxu1 %v9025_v12  ;;  %v9034_v21 = vpack.c.bf16 %v471_v19, %v467_v18  ;;  %6707 = vmatprep.subr.bf16.mxu0 %v9029_v16  ;;  %v9038_v25 = vpack.c.bf16 %v473_v22, %v469_v20  ;;  %v9040_v26 = vpack.c.bf16 %v480_v24, %v476_v23  ;;  %v478_v27 = vld [vmem:[#allocation9 + $0x98] sm:$0xff]  ;;  %v475_v29 = vld [vmem:[#allocation9 + $0x80] sm:$0xff]  ;;  %v477_v32 = vld [vmem:[#allocation9 + $0x90] sm:$0xff] }
  0xfa   : > { %6771 = vmatprep.subr.bf16.mxu1 %v9031_v17  ;;  %v482_v28 = vld [vmem:[#allocation9 + $0xb8] sm:$0xff]  ;;  %v479_v31 = vld [vmem:[#allocation9 + $0xa0] sm:$0xff]  ;;  %v481_v33 = vld [vmem:[#allocation9 + $0xb0] sm:$0xff] }
  0xfb   : > { %v9042_v30 = vpack.c.bf16 %v482_v28, %v478_v27  ;;  %v9045_v34 = vpack.c.bf16 %v479_v31, %v475_v29  ;;  %v484_v35 = vld [vmem:[#allocation9 + $0xc8] sm:$0xff]  ;;  %v486_v37 = vld [vmem:[#allocation9 + $0xd8] sm:$0xff]  ;;  %v9049_v38 = vpack.c.bf16 %v481_v33, %v477_v32  ;;  %v483_v41 = vld [vmem:[#allocation9 + $0xc0] sm:$0xff] }
  0xfc   : > { %6709 = vmatpush1.bf16.msra.mxu0 %v9034_v21  ;;  %v488_v36 = vld [vmem:[#allocation9 + $0xe8] sm:$0xff]  ;;  %v490_v40 = vld [vmem:[#allocation9 + $0xf8] sm:$0xff]  ;;  %v487_v42 = vld [vmem:[#allocation9 + $0xe0] sm:$0xff] }
  0xfd   : > { %6773 = vmatpush1.bf16.msra.mxu1 %v9038_v25  ;;  %6711 = vmatprep.subr.bf16.mxu0 %v9040_v26  ;;  %v9051_v39 = vpack.c.bf16 %v488_v36, %v484_v35  ;;  %v9054_v43 = vpack.c.bf16 %v490_v40, %v486_v37  ;;  %v485_v44 = vld [vmem:[#allocation9 + $0xd0] sm:$0xff]  ;;  %v492_v46 = vld [vmem:[#allocation9 + $0x108] sm:$0xff]  ;;  %v494_v48 = vld [vmem:[#allocation9 + $0x118] sm:$0xff]  ;;  %v9057_v50 = vpack.c.bf16 %v487_v42, %v483_v41 }
  0xfe   : > { %6775 = vmatprep.subr.bf16.mxu1 %v9042_v30  ;;  %v489_v45 = vld [vmem:[#allocation9 + $0xf0] sm:$0xff]  ;;  %v496_v47 = vld [vmem:[#allocation9 + $0x128] sm:$0xff]  ;;  %v498_v49 = vld [vmem:[#allocation9 + $0x138] sm:$0xff] }
  0xff   : > { %v9061_v51 = vpack.c.bf16 %v489_v45, %v485_v44  ;;  %v9063_v52 = vpack.c.bf16 %v496_v47, %v492_v46  ;;  %v491_v53 = vld [vmem:[#allocation9 + $0x100] sm:$0xff]  ;;  %v493_v55 = vld [vmem:[#allocation9 + $0x110] sm:$0xff]  ;;  %v9066_v56 = vpack.c.bf16 %v498_v49, %v494_v48  ;;  %v500_v58 = vld [vmem:[#allocation9 + $0x148] sm:$0xff] }
 0x100   : > { %6713 = vmatpush1.bf16.msra.mxu0 %v9045_v34  ;;  %v495_v54 = vld [vmem:[#allocation9 + $0x120] sm:$0xff]  ;;  %v497_v57 = vld [vmem:[#allocation9 + $0x130] sm:$0xff]  ;;  %v504_v59 = vld [vmem:[#allocation9 + $0x168] sm:$0xff] }
 0x101   : > { %6777 = vmatpush1.bf16.msra.mxu1 %v9049_v38  ;;  %6715 = vmatprep.subr.bf16.mxu0 %v9051_v39  ;;  %v502_v60 = vld [vmem:[#allocation9 + $0x158] sm:$0xff]  ;;  %v9069_v62 = vpack.c.bf16 %v495_v54, %v491_v53  ;;  %v9073_v63 = vpack.c.bf16 %v497_v57, %v493_v55  ;;  %v9075_v0 = vpack.c.bf16 %v504_v59, %v500_v58  ;;  %v499_v1 = vld [vmem:[#allocation9 + $0x140] sm:$0xff]  ;;  %v501_v4 = vld [vmem:[#allocation9 + $0x150] sm:$0xff] }
 0x102   : > { %6779 = vmatprep.subr.bf16.mxu1 %v9054_v43  ;;  %v506_v61 = vld [vmem:[#allocation9 + $0x178] sm:$0xff]  ;;  %v503_v2 = vld [vmem:[#allocation9 + $0x160] sm:$0xff]  ;;  %v505_v6 = vld [vmem:[#allocation9 + $0x170] sm:$0xff] }
 0x103   : > { %v9078_v5 = vpack.c.bf16 %v506_v61, %v502_v60  ;;  %v508_v9 = vld [vmem:[#allocation9 + $0x188] sm:$0xff]  ;;  %v510_v11 = vld [vmem:[#allocation9 + $0x198] sm:$0xff]  ;;  %v9081_v14 = vpack.c.bf16 %v503_v2, %v499_v1  ;;  %v9085_v15 = vpack.c.bf16 %v505_v6, %v501_v4  ;;  %v507_v19 = vld [vmem:[#allocation9 + $0x180] sm:$0xff] }
 0x104   : > { %6717 = vmatpush1.bf16.msra.mxu0 %v9057_v50  ;;  %v512_v10 = vld [vmem:[#allocation9 + $0x1a8] sm:$0xff]  ;;  %v514_v13 = vld [vmem:[#allocation9 + $0x1b8] sm:$0xff]  ;;  %v511_v20 = vld [vmem:[#allocation9 + $0x1a0] sm:$0xff] }
 0x105   : > { %6781 = vmatpush1.bf16.msra.mxu1 %v9061_v51  ;;  %6719 = vmatprep.subr.bf16.mxu0 %v9063_v52  ;;  %v9087_v18 = vpack.c.bf16 %v512_v10, %v508_v9  ;;  %v509_v22 = vld [vmem:[#allocation9 + $0x190] sm:$0xff]  ;;  %v9090_v23 = vpack.c.bf16 %v514_v13, %v510_v11  ;;  %v516_v27 = vld [vmem:[#allocation9 + $0x1c8] sm:$0xff]  ;;  %v518_v29 = vld [vmem:[#allocation9 + $0x1d8] sm:$0xff]  ;;  %v9093_v32 = vpack.c.bf16 %v511_v20, %v507_v19 }
 0x106   : > { %6783 = vmatprep.subr.bf16.mxu1 %v9066_v56  ;;  %v513_v24 = vld [vmem:[#allocation9 + $0x1b0] sm:$0xff]  ;;  %v520_v28 = vld [vmem:[#allocation9 + $0x1e8] sm:$0xff]  ;;  %v522_v31 = vld [vmem:[#allocation9 + $0x1f8] sm:$0xff] }
 0x107   : > { %v9097_v33 = vpack.c.bf16 %v513_v24, %v509_v22  ;;  %v9099_v35 = vpack.c.bf16 %v520_v28, %v516_v27  ;;  %v515_v36 = vld [vmem:[#allocation9 + $0x1c0] sm:$0xff]  ;;  %v517_v40 = vld [vmem:[#allocation9 + $0x1d0] sm:$0xff]  ;;  %v9102_v41 = vpack.c.bf16 %v522_v31, %v518_v29  ;;  %v524_v44 = vld [vmem:[#allocation9 + $0x208] sm:$0xff] }
 0x108   : > { %6721 = vmatpush1.bf16.msra.mxu0 %v9069_v62  ;;  %v519_v37 = vld [vmem:[#allocation9 + $0x1e0] sm:$0xff]  ;;  %v521_v42 = vld [vmem:[#allocation9 + $0x1f0] sm:$0xff]  ;;  %v528_v45 = vld [vmem:[#allocation9 + $0x228] sm:$0xff] }
 0x109   : > { %6785 = vmatpush1.bf16.msra.mxu1 %v9073_v63  ;;  %6723 = vmatprep.subr.bf16.mxu0 %v9075_v0  ;;  %v526_v46 = vld [vmem:[#allocation9 + $0x218] sm:$0xff]  ;;  %v9105_v48 = vpack.c.bf16 %v519_v37, %v515_v36  ;;  %v9109_v49 = vpack.c.bf16 %v521_v42, %v517_v40  ;;  %v9111_v53 = vpack.c.bf16 %v528_v45, %v524_v44  ;;  %v523_v54 = vld [vmem:[#allocation9 + $0x200] sm:$0xff]  ;;  %v525_v57 = vld [vmem:[#allocation9 + $0x210] sm:$0xff] }
 0x10a   : > { %6787 = vmatprep.subr.bf16.mxu1 %v9078_v5  ;;  %v530_v47 = vld [vmem:[#allocation9 + $0x238] sm:$0xff]  ;;  %v527_v55 = vld [vmem:[#allocation9 + $0x220] sm:$0xff]  ;;  %v529_v59 = vld [vmem:[#allocation9 + $0x230] sm:$0xff] }
 0x10b   : > { %v9114_v58 = vpack.c.bf16 %v530_v47, %v526_v46  ;;  %v532_v60 = vld [vmem:[#allocation9 + $0x248] sm:$0xff]  ;;  %v534_v1 = vld [vmem:[#allocation9 + $0x258] sm:$0xff]  ;;  %v9117_v4 = vpack.c.bf16 %v527_v55, %v523_v54  ;;  %v9121_v6 = vpack.c.bf16 %v529_v59, %v525_v57  ;;  %v531_v10 = vld [vmem:[#allocation9 + $0x240] sm:$0xff] }
 0x10c   : > { %6725 = vmatpush1.bf16.msra.mxu0 %v9081_v14  ;;  %v536_v61 = vld [vmem:[#allocation9 + $0x268] sm:$0xff]  ;;  %v538_v2 = vld [vmem:[#allocation9 + $0x278] sm:$0xff]  ;;  %v535_v11 = vld [vmem:[#allocation9 + $0x260] sm:$0xff] }
 0x10d   : > { %6789 = vmatpush1.bf16.msra.mxu1 %v9085_v15  ;;  %6727 = vmatprep.subr.bf16.mxu0 %v9087_v18  ;;  %v9123_v9 = vpack.c.bf16 %v536_v61, %v532_v60  ;;  %v533_v13 = vld [vmem:[#allocation9 + $0x250] sm:$0xff]  ;;  %v9126_v19 = vpack.c.bf16 %v538_v2, %v534_v1  ;;  %v540_v22 = vld [vmem:[#allocation9 + $0x288] sm:$0xff]  ;;  %v542_v27 = vld [vmem:[#allocation9 + $0x298] sm:$0xff]  ;;  %v9129_v29 = vpack.c.bf16 %v535_v11, %v531_v10 }
 0x10e   : > { %6791 = vmatprep.subr.bf16.mxu1 %v9090_v23  ;;  %v537_v20 = vld [vmem:[#allocation9 + $0x270] sm:$0xff]  ;;  %v544_v24 = vld [vmem:[#allocation9 + $0x2a8] sm:$0xff]  ;;  %v546_v28 = vld [vmem:[#allocation9 + $0x2b8] sm:$0xff] }
 0x10f   : > { %v9133_v31 = vpack.c.bf16 %v537_v20, %v533_v13  ;;  %v9135_v36 = vpack.c.bf16 %v544_v24, %v540_v22  ;;  %v539_v37 = vld [vmem:[#allocation9 + $0x280] sm:$0xff]  ;;  %v541_v42 = vld [vmem:[#allocation9 + $0x290] sm:$0xff]  ;;  %v9138_v44 = vpack.c.bf16 %v546_v28, %v542_v27  ;;  %v548_v46 = vld [vmem:[#allocation9 + $0x2c8] sm:$0xff] }
 0x110   : > { %6729 = vmatpush1.bf16.msra.mxu0 %v9093_v32  ;;  %v543_v40 = vld [vmem:[#allocation9 + $0x2a0] sm:$0xff]  ;;  %v545_v45 = vld [vmem:[#allocation9 + $0x2b0] sm:$0xff]  ;;  %v552_v47 = vld [vmem:[#allocation9 + $0x2e8] sm:$0xff] }
 0x111   : > { %6793 = vmatpush1.bf16.msra.mxu1 %v9097_v33  ;;  %6731 = vmatprep.subr.bf16.mxu0 %v9099_v35  ;;  %v550_v54 = vld [vmem:[#allocation9 + $0x2d8] sm:$0xff]  ;;  %v9141_v57 = vpack.c.bf16 %v543_v40, %v539_v37  ;;  %v547_v59 = vld [vmem:[#allocation9 + $0x2c0] sm:$0xff]  ;;  %v9145_v60 = vpack.c.bf16 %v545_v45, %v541_v42  ;;  %v9147_v61 = vpack.c.bf16 %v552_v47, %v548_v46  ;;  %v549_v2 = vld [vmem:[#allocation9 + $0x2d0] sm:$0xff] }
 0x112   : > { %6795 = vmatprep.subr.bf16.mxu1 %v9102_v41  ;;  %v554_v55 = vld [vmem:[#allocation9 + $0x2f8] sm:$0xff]  ;;  %v551_v1 = vld [vmem:[#allocation9 + $0x2e0] sm:$0xff]  ;;  %v553_v10 = vld [vmem:[#allocation9 + $0x2f0] sm:$0xff] }
 0x113   : > { %12142 = vst [vmem:[#allocation29_spill] sm:$0xff] %v9145_v60  ;;  %12143 = vst [vmem:[#allocation30_spill] sm:$0xff] %v9147_v61  ;;  %v9150_v11 = vpack.c.bf16 %v554_v55, %v550_v54  ;;  %v556_v13 = vld [vmem:[#allocation9 + $0x308] sm:$0xff]  ;;  %v558_v24 = vld [vmem:[#allocation9 + $0x318] sm:$0xff]  ;;  %v9154_v28 = vpack.c.bf16 %v551_v1, %v547_v59  ;;  %v9158_v37 = vpack.c.bf16 %v553_v10, %v549_v2 }
 0x114   : > { %6733 = vmatpush1.bf16.msra.mxu0 %v9105_v48  ;;  %v560_v20 = vld [vmem:[#allocation9 + $0x328] sm:$0xff]  ;;  %v562_v27 = vld [vmem:[#allocation9 + $0x338] sm:$0xff]  ;;  %v555_v42 = vld [vmem:[#allocation9 + $0x300] sm:$0xff] }
 0x115   : > { %6797 = vmatpush1.bf16.msra.mxu1 %v9109_v49  ;;  %6735 = vmatprep.subr.bf16.mxu0 %v9111_v53  ;;  %12144 = vst [vmem:[#allocation31_spill] sm:$0xff] %v9150_v11  ;;  %v428_v22 = vld [vmem:[%s8991_s22 + $0x8] sm:$0xff]  ;;  %12145 = vst [vmem:[#allocation32_spill] sm:$0xff] %v9154_v28  ;;  %v9160_v40 = vpack.c.bf16 %v560_v20, %v556_v13  ;;  %v559_v45 = vld [vmem:[#allocation9 + $0x320] sm:$0xff]  ;;  %v9163_v47 = vpack.c.bf16 %v562_v27, %v558_v24 }
 0x116   : > { %6799 = vmatprep.subr.bf16.mxu1 %v9114_v58  ;;  %672 = vmatprep.mubr.f32.mxu0 %v428_v22  ;;  %12146 = vst [vmem:[#allocation33_spill] sm:$0xff] %v9158_v37  ;;  %v557_v46 = vld [vmem:[#allocation9 + $0x310] sm:$0xff]  ;;  %v564_v55 = vld [vmem:[#allocation9 + $0x348] sm:$0xff]  ;;  %v566_v59 = vld [vmem:[#allocation9 + $0x358] sm:$0xff] }
 0x117   : > { %833 = vmatprep.mubr.f32.mxu1 %v428_v22  ;;  %12147 = vst [vmem:[#allocation34_spill] sm:$0xff] %v9160_v40  ;;  %12148 = vst [vmem:[#allocation35_spill] sm:$0xff] %v9163_v47  ;;  %v561_v54 = vld [vmem:[#allocation9 + $0x330] sm:$0xff]  ;;  %v568_v22 = vld [vmem:[#allocation9 + $0x368] sm:$0xff] }
 0x118   : > { %6737 = vmatpush1.bf16.msra.mxu0 %v9117_v4  ;;  %v570_v1 = vld [vmem:[#allocation9 + $0x378] sm:$0xff]  ;;  %v9170_v2 = vpack.c.bf16 %v561_v54, %v557_v46  ;;  %v9172_v10 = vpack.c.bf16 %v568_v22, %v564_v55  ;;  %v563_v13 = vld [vmem:[#allocation9 + $0x340] sm:$0xff]  ;;  %v565_v24 = vld [vmem:[#allocation9 + $0x350] sm:$0xff] }
 0x119   : > { %6801 = vmatpush1.bf16.msra.mxu1 %v9121_v6  ;;  %6739 = vmatprep.subr.bf16.mxu0 %v9123_v9  ;;  %v567_v20 = vld [vmem:[#allocation9 + $0x360] sm:$0xff]  ;;  %v9175_v27 = vpack.c.bf16 %v570_v1, %v566_v59  ;;  %v573_v59 = vld [vmem:[#allocation9 + $0x390] sm:$0xff] }
 0x11a   : > { %6803 = vmatprep.subr.bf16.mxu1 %v9126_v19  ;;  %12150 = vst [vmem:[#allocation37_spill] sm:$0xff] %v9170_v2  ;;  %v571_v55 = vld [vmem:[#allocation9 + $0x380] sm:$0xff] }
 0x11b   : > { %v575_v22 = vld [vmem:[#allocation9 + $0x3a0] sm:$0xff] }
 0x11c   : > { %6741 = vmatpush1.bf16.msra.mxu0 %v9129_v29 }
 0x11d   : > { %6805 = vmatpush1.bf16.msra.mxu1 %v9133_v31  ;;  %6743 = vmatprep.subr.bf16.mxu0 %v9135_v36 }
 0x11e   : > { %6807 = vmatprep.subr.bf16.mxu1 %v9138_v44 }
 0x120   : > { %6745 = vmatpush1.bf16.msra.mxu0 %v9141_v57 }
 0x121   : > { %6809 = vmatpush1.bf16.msra.mxu1 %v9145_v60  ;;  %6747 = vmatprep.subr.bf16.mxu0 %v9147_v61  ;;  %v9166_v60 = vpack.c.bf16 %v559_v45, %v555_v42  ;;  %v572_v61 = vld [vmem:[#allocation9 + $0x388] sm:$0xff]  ;;  %v574_v42 = vld [vmem:[#allocation9 + $0x398] sm:$0xff] }
 0x122   : > { %6811 = vmatprep.subr.bf16.mxu1 %v9150_v11  ;;  %v569_v11 = vld [vmem:[#allocation9 + $0x370] sm:$0xff]  ;;  %v578_v45 = vld [vmem:[#allocation9 + $0x3b8] sm:$0xff] }
 0x123   : > { %12149 = vst [vmem:[#allocation36_spill] sm:$0xff] %v9166_v60  ;;  %v9182_v46 = vpack.c.bf16 %v569_v11, %v565_v24  ;;  %v9187_v1 = vpack.c.bf16 %v578_v45, %v574_v42  ;;  %v583_v24 = vld [vmem:[#allocation9 + $0x3e0] sm:$0xff]  ;;  %v581_v45 = vld [vmem:[#allocation9 + $0x3d0] sm:$0xff] }
 0x124   : > { %6749 = vmatpush1.bf16.msra.mxu0 %v9154_v28  ;;  %v576_v28 = vld [vmem:[#allocation9 + $0x3a8] sm:$0xff] }
 0x125   : > { %6813 = vmatpush1.bf16.msra.mxu1 %v9158_v37  ;;  %6751 = vmatprep.subr.bf16.mxu0 %v9160_v40  ;;  %v9178_v37 = vpack.c.bf16 %v567_v20, %v563_v13  ;;  %v9184_v54 = vpack.c.bf16 %v576_v28, %v572_v61  ;;  %v580_v40 = vld [vmem:[#allocation9 + $0x3c8] sm:$0xff]  ;;  %v582_v13 = vld [vmem:[#allocation9 + $0x3d8] sm:$0xff]  ;;  %v579_v28 = vld [vmem:[#allocation9 + $0x3c0] sm:$0xff] }
 0x126   : > { %6815 = vmatprep.subr.bf16.mxu1 %v9163_v47  ;;  %v577_v47 = vld [vmem:[#allocation9 + $0x3b0] sm:$0xff]  ;;  %v586_v20 = vld [vmem:[#allocation9 + $0x3f8] sm:$0xff] }
 0x127   : > { %12151 = vst [vmem:[#allocation38_spill] sm:$0xff] %v9178_v37  ;;  %v9194_v61 = vpack.c.bf16 %v577_v47, %v573_v59  ;;  %v9199_v42 = vpack.c.bf16 %v586_v20, %v582_v13  ;;  %v430_v47 = vld [vmem:[%s8991_s22 + $0x18] sm:$0xff]  ;;  %v1004_v59 = vld [vmem:[%s8991_s22 + $0x150] sm:$0xff]  ;;  %v1006_v13 = vld [vmem:[%s8991_s22 + $0x160] sm:$0xff] }
 0x128   : > { %6753 = vmatpush1.bf16.msra.mxu0 %v9166_v60  ;;  %v584_v60 = vld [vmem:[#allocation9 + $0x3e8] sm:$0xff]  ;;  %v1009_v20 = vld [vmem:[%s8991_s22 + $0x178] sm:$0xff] }
 0x129   : > { %6817 = vmatpush1.bf16.msra.mxu1 %v9170_v2  ;;  %6755 = vmatprep.subr.bf16.mxu0 %v9172_v10  ;;  %v9190_v2 = vpack.c.bf16 %v575_v22, %v571_v55  ;;  %v9196_v11 = vpack.c.bf16 %v584_v60, %v580_v40  ;;  %v9202_v55 = vpack.c.bf16 %v583_v24, %v579_v28  ;;  %v427_v40 = vld [vmem:[%s8991_s22] sm:$0xff]  ;;  %v432_v22 = vld [vmem:[%s8991_s22 + $0x28] sm:$0xff]  ;;  %v1013_v24 = vld [vmem:[%s8991_s22 + $0x198] sm:$0xff] }
 0x12a   : > { %6819 = vmatprep.subr.bf16.mxu1 %v9175_v27  ;;  %v1010_v28 = vld [vmem:[%s8991_s22 + $0x180] sm:$0xff] }
 0x12c   : > { %6757 = vmatpush1.bf16.msra.mxu0 %v9178_v37  ;;  %v585_v37 = vld [vmem:[#allocation9 + $0x3f0] sm:$0xff] }
 0x12d   : > { %6821 = vmatpush1.bf16.msra.mxu1 %v9182_v46  ;;  %6759 = vmatprep.subr.bf16.mxu0 %v9184_v54  ;;  %v9206_v60 = vpack.c.bf16 %v585_v37, %v581_v45  ;;  %v429_v37 = vld [vmem:[%s8991_s22 + $0x10] sm:$0xff]  ;;  %v1015_v45 = vld [vmem:[%s8991_s22 + $0x1a8] sm:$0xff] }
 0x12e   : > { %6823 = vmatprep.subr.bf16.mxu1 %v9187_v1 }
 0x130   : > { %6761 = vmatpush1.bf16.msra.mxu0 %v9190_v2 }
 0x131   : > { %6825 = vmatpush1.bf16.msra.mxu1 %v9194_v61  ;;  %6763 = vmatprep.subr.bf16.mxu0 %v9196_v11 }
 0x132   : > { %6827 = vmatprep.subr.bf16.mxu1 %v9199_v42 }
 0x134   : > { %6765 = vmatpush1.bf16.msra.mxu0 %v9202_v55 }
 0x135   : > { %6829 = vmatpush1.bf16.msra.mxu1 %v9206_v60  ;;  %6831 = vmatprep.subr.bf16.mxu0 %v9018_v3  ;;  %v431_v3 = vld [vmem:[%s8991_s22 + $0x20] sm:$0xff] }
 0x136   : > { %6895 = vmatprep.subr.bf16.mxu1 %v9020_v7  ;;  %v434_v7 = vld [vmem:[%s8991_s22 + $0x38] sm:$0xff] }
 0x137   : > { %673 = vmatmul.mubr.f32.vlgmr.msra.gmra.mrb[0].mxu0 %v427_v40 }
 0x138   : > { %834 = vmatmul.mubr.f32.vlgmr.msra.gmra.mrb[0].mxu1 %v427_v40  ;;  %6833 = vmatpush1.bf16.msra.mxu0 %v9022_v8  ;;  %v433_v8 = vld [vmem:[%s8991_s22 + $0x30] sm:$0xff] }
 0x139   : > { %6897 = vmatpush1.bf16.msra.mxu1 %v9025_v12  ;;  %678 = vmatprep.mubr.f32.mxu0 %v430_v47  ;;  %v436_v12 = vld [vmem:[%s8991_s22 + $0x48] sm:$0xff]  ;;  %v1016_v40 = vld [vmem:[%s8991_s22 + $0x1b0] sm:$0xff] }
 0x13a   : > { %839 = vmatprep.mubr.f32.mxu1 %v430_v47  ;;  %6835 = vmatprep.subr.bf16.mxu0 %v9029_v16  ;;  %v435_v16 = vld [vmem:[%s8991_s22 + $0x40] sm:$0xff]  ;;  %v1019_v47 = vld [vmem:[%s8991_s22 + $0x1c8] sm:$0xff] }
 0x13b   : > { %679 = vmatmul.mubr.f32.gmra.mrb[2].mxu0 %v429_v37  ;;  %6899 = vmatprep.subr.bf16.mxu1 %v9031_v17  ;;  %v438_v17 = vld [vmem:[%s8991_s22 + $0x58] sm:$0xff] }
 0x13c   : > { %840 = vmatmul.mubr.f32.gmra.mrb[2].mxu1 %v429_v37  ;;  %6837 = vmatpush1.bf16.msra.mxu0 %v9034_v21  ;;  %v437_v21 = vld [vmem:[%s8991_s22 + $0x50] sm:$0xff]  ;;  %v1018_v37 = vld [vmem:[%s8991_s22 + $0x1c0] sm:$0xff] }
 0x13d   : > { %6901 = vmatpush1.bf16.msra.mxu1 %v9038_v25  ;;  %684 = vmatprep.mubr.f32.mxu0 %v432_v22  ;;  %v440_v25 = vld [vmem:[%s8991_s22 + $0x68] sm:$0xff] }
 0x13e   : > { %845 = vmatprep.mubr.f32.mxu1 %v432_v22  ;;  %6839 = vmatprep.subr.bf16.mxu0 %v9040_v26  ;;  %v439_v26 = vld [vmem:[%s8991_s22 + $0x60] sm:$0xff]  ;;  %v1021_v22 = vld [vmem:[%s8991_s22 + $0x1d8] sm:$0xff] }
 0x13f   : > { %685 = vmatmul.mubr.f32.gmra.mrb[4].mxu0 %v431_v3  ;;  %6903 = vmatprep.subr.bf16.mxu1 %v9042_v30  ;;  %v442_v30 = vld [vmem:[%s8991_s22 + $0x78] sm:$0xff] }
 0x140   : > { %846 = vmatmul.mubr.f32.gmra.mrb[4].mxu1 %v431_v3  ;;  %6841 = vmatpush1.bf16.msra.mxu0 %v9045_v34  ;;  %v441_v34 = vld [vmem:[%s8991_s22 + $0x70] sm:$0xff] }
 0x141   : > { %6905 = vmatpush1.bf16.msra.mxu1 %v9049_v38  ;;  %690 = vmatprep.mubr.f32.mxu0 %v434_v7  ;;  %v444_v38 = vld [vmem:[%s8991_s22 + $0x88] sm:$0xff]  ;;  %v1020_v3 = vld [vmem:[%s8991_s22 + $0x1d0] sm:$0xff] }
 0x142   : > { %851 = vmatprep.mubr.f32.mxu1 %v434_v7  ;;  %6843 = vmatprep.subr.bf16.mxu0 %v9051_v39  ;;  %v443_v39 = vld [vmem:[%s8991_s22 + $0x80] sm:$0xff]  ;;  %v1023_v7 = vld [vmem:[%s8991_s22 + $0x1e8] sm:$0xff] }
 0x143   : > { %691 = vmatmul.mubr.f32.gmra.mrb[6].mxu0 %v433_v8  ;;  %6907 = vmatprep.subr.bf16.mxu1 %v9054_v43  ;;  %v446_v43 = vld [vmem:[%s8991_s22 + $0x98] sm:$0xff] }
 0x144   : > { %852 = vmatmul.mubr.f32.gmra.mrb[6].mxu1 %v433_v8  ;;  %6845 = vmatpush1.bf16.msra.mxu0 %v9057_v50  ;;  %v445_v50 = vld [vmem:[%s8991_s22 + $0x90] sm:$0xff]  ;;  %v1022_v8 = vld [vmem:[%s8991_s22 + $0x1e0] sm:$0xff] }
 0x145   : > { %6909 = vmatpush1.bf16.msra.mxu1 %v9061_v51  ;;  %696 = vmatprep.mubr.f32.mxu0 %v436_v12  ;;  %v448_v51 = vld [vmem:[%s8991_s22 + $0xa8] sm:$0xff] }
 0x146   : > { %857 = vmatprep.mubr.f32.mxu1 %v436_v12  ;;  %6847 = vmatprep.subr.bf16.mxu0 %v9063_v52  ;;  %v447_v52 = vld [vmem:[%s8991_s22 + $0xa0] sm:$0xff]  ;;  %v1025_v12 = vld [vmem:[%s8991_s22 + $0x1f8] sm:$0xff] }
 0x147   : > { %697 = vmatmul.mubr.f32.gmra.mrb[8].mxu0 %v435_v16  ;;  %6911 = vmatprep.subr.bf16.mxu1 %v9066_v56  ;;  %v450_v56 = vld [vmem:[%s8991_s22 + $0xb8] sm:$0xff] }
 0x148   : > { %858 = vmatmul.mubr.f32.gmra.mrb[8].mxu1 %v435_v16  ;;  %6849 = vmatpush1.bf16.msra.mxu0 %v9069_v62  ;;  %v449_v62 = vld [vmem:[%s8991_s22 + $0xb0] sm:$0xff] }
 0x149   : > { %6913 = vmatpush1.bf16.msra.mxu1 %v9073_v63  ;;  %702 = vmatprep.mubr.f32.mxu0 %v438_v17  ;;  %v12152_v63 = vld [vmem:[#allocation29_spill] sm:$0xff] }
 0x14a   : > { %863 = vmatprep.mubr.f32.mxu1 %v438_v17  ;;  %6851 = vmatprep.subr.bf16.mxu0 %v9075_v0  ;;  %v12153_v0 = vld [vmem:[#allocation30_spill] sm:$0xff]  ;;  %v1024_v16 = vld [vmem:[%s8991_s22 + $0x1f0] sm:$0xff]  ;;  %v588_v17 = vlaneseq }
 0x14b   : > { %703 = vmatmul.mubr.f32.gmra.mrb[10].mxu0 %v437_v21  ;;  %6915 = vmatprep.subr.bf16.mxu1 %v9078_v5  ;;  %v452_v5 = vld [vmem:[%s8991_s22 + $0xc8] sm:$0xff] }
 0x14c   : > { %864 = vmatmul.mubr.f32.gmra.mrb[10].mxu1 %v437_v21  ;;  %6853 = vmatpush1.bf16.msra.mxu0 %v9081_v14  ;;  %v12154_v14 = vld [vmem:[#allocation31_spill] sm:$0xff]  ;;  %v589_v21 = vshrl.u32 %v588_v17, 7 }
 0x14d   : > { %6917 = vmatpush1.bf16.msra.mxu1 %v9085_v15  ;;  %708 = vmatprep.mubr.f32.mxu0 %v440_v25  ;;  %v12155_v15 = vld [vmem:[#allocation32_spill] sm:$0xff] }
 0x14e   : > { %869 = vmatprep.mubr.f32.mxu1 %v440_v25  ;;  %6855 = vmatprep.subr.bf16.mxu0 %v9087_v18  ;;  %v451_v18 = vld [vmem:[%s8991_s22 + $0xc0] sm:$0xff]  ;;  %v590_v25 = vsub.s32 0, %v589_v21 }
 0x14f   : > { %709 = vmatmul.mubr.f32.gmra.mrb[12].mxu0 %v439_v26  ;;  %6919 = vmatprep.subr.bf16.mxu1 %v9090_v23  ;;  %v12156_v23 = vld [vmem:[#allocation33_spill] sm:$0xff] }
 0x150   : > { %870 = vmatmul.mubr.f32.gmra.mrb[12].mxu1 %v439_v26  ;;  %6857 = vmatpush1.bf16.msra.mxu0 %v9093_v32  ;;  %v12157_v32 = vld [vmem:[#allocation34_spill] sm:$0xff]  ;;  %v426_v26 = vld [vmem:[%s12162_s21] sm:$0xf] }
 0x151   : > { %6921 = vmatpush1.bf16.msra.mxu1 %v9097_v33  ;;  %714 = vmatprep.mubr.f32.mxu0 %v442_v30  ;;  %v454_v33 = vld [vmem:[%s8991_s22 + $0xd8] sm:$0xff] }
 0x152   : > { %875 = vmatprep.mubr.f32.mxu1 %v442_v30  ;;  %6859 = vmatprep.subr.bf16.mxu0 %v9099_v35  ;;  %v12158_v35 = vld [vmem:[#allocation35_spill] sm:$0xff]  ;;  %v598_v30 = vsub.s32 2, %v589_v21 }
 0x153   : > { %715 = vmatmul.mubr.f32.gmra.mrb[14].mxu0 %v441_v34  ;;  %6923 = vmatprep.subr.bf16.mxu1 %v9102_v41  ;;  %v12159_v41 = vld [vmem:[#allocation36_spill] sm:$0xff] }
 0x154   : > { %876 = vmatmul.mubr.f32.gmra.mrb[14].mxu1 %v441_v34  ;;  %6861 = vmatpush1.bf16.msra.mxu0 %v9105_v48  ;;  %v453_v48 = vld [vmem:[%s8991_s22 + $0xd0] sm:$0xff]  ;;  %v594_v34 = vsub.s32 1, %v589_v21 }
 0x155   : > { %6925 = vmatpush1.bf16.msra.mxu1 %v9109_v49  ;;  %720 = vmatprep.mubr.f32.mxu0 %v444_v38  ;;  %v12160_v49 = vld [vmem:[#allocation37_spill] sm:$0xff] }
 0x156   : > { %881 = vmatprep.mubr.f32.mxu1 %v444_v38  ;;  %6863 = vmatprep.subr.bf16.mxu0 %v9111_v53  ;;  %v456_v53 = vld [vmem:[%s8991_s22 + $0xe8] sm:$0xff]  ;;  %v602_v38 = vsub.s32 3, %v589_v21 }
 0x157   : > { %721 = vmatmul.mubr.f32.gmra.mrb[16].mxu0 %v443_v39  ;;  %6927 = vmatprep.subr.bf16.mxu1 %v9114_v58  ;;  %v12161_v58 = vld [vmem:[#allocation38_spill] sm:$0xff] }
 0x158   : > { %882 = vmatmul.mubr.f32.gmra.mrb[16].mxu1 %v443_v39  ;;  %6865 = vmatpush1.bf16.msra.mxu0 %v9117_v4  ;;  %v455_v4 = vld [vmem:[%s8991_s22 + $0xe0] sm:$0xff]  ;;  %v9341_v39 = vrot.slane %v426_v26, %v590_v25 }
 0x159   : > { %6929 = vmatpush1.bf16.msra.mxu1 %v9121_v6  ;;  %726 = vmatprep.mubr.f32.mxu0 %v446_v43  ;;  %v458_v6 = vld [vmem:[%s8991_s22 + $0xf8] sm:$0xff] }
 0x15a   : > { %887 = vmatprep.mubr.f32.mxu1 %v446_v43  ;;  %6867 = vmatprep.subr.bf16.mxu0 %v9123_v9  ;;  %v457_v9 = vld [vmem:[%s8991_s22 + $0xf0] sm:$0xff]  ;;  %v9343_v43 = vrot.slane %v426_v26, %v598_v30 }
 0x15b   : > { %727 = vmatmul.mubr.f32.gmra.mrb[18].mxu0 %v445_v50  ;;  %6931 = vmatprep.subr.bf16.mxu1 %v9126_v19  ;;  %v995_v19 = vld [vmem:[%s8991_s22 + $0x108] sm:$0xff] }
 0x15c   : > { %888 = vmatmul.mubr.f32.gmra.mrb[18].mxu1 %v445_v50  ;;  %6869 = vmatpush1.bf16.msra.mxu0 %v9129_v29  ;;  %v994_v29 = vld [vmem:[%s8991_s22 + $0x100] sm:$0xff]  ;;  %v9345_v50 = vrot.slane %v426_v26, %v594_v34 }
 0x15d   : > { %6933 = vmatpush1.bf16.msra.mxu1 %v9133_v31  ;;  %732 = vmatprep.mubr.f32.mxu0 %v448_v51  ;;  %v997_v31 = vld [vmem:[%s8991_s22 + $0x118] sm:$0xff] }
 0x15e   : > { %893 = vmatprep.mubr.f32.mxu1 %v448_v51  ;;  %6871 = vmatprep.subr.bf16.mxu0 %v9135_v36  ;;  %v996_v36 = vld [vmem:[%s8991_s22 + $0x110] sm:$0xff]  ;;  %v9347_v51 = vrot.slane %v426_v26, %v602_v38 }
 0x15f   : > { %733 = vmatmul.mubr.f32.gmra.mrb[20].mxu0 %v447_v52  ;;  %6935 = vmatprep.subr.bf16.mxu1 %v9138_v44  ;;  %v999_v44 = vld [vmem:[%s8991_s22 + $0x128] sm:$0xff] }
 0x160   : > { %894 = vmatmul.mubr.f32.gmra.mrb[20].mxu1 %v447_v52  ;;  %6873 = vmatpush1.bf16.msra.mxu0 %v9141_v57  ;;  %v998_v57 = vld [vmem:[%s8991_s22 + $0x120] sm:$0xff] }
 0x161   : > { %6937 = vmatpush1.bf16.msra.mxu1 %v12152_v63  ;;  %738 = vmatprep.mubr.f32.mxu0 %v450_v56 }
 0x162   : > { %899 = vmatprep.mubr.f32.mxu1 %v450_v56  ;;  %6875 = vmatprep.subr.bf16.mxu0 %v12153_v0 }
 0x163   : > { %739 = vmatmul.mubr.f32.gmra.mrb[22].mxu0 %v449_v62  ;;  %6939 = vmatprep.subr.bf16.mxu1 %v12154_v14 }
 0x164   : > { %900 = vmatmul.mubr.f32.gmra.mrb[22].mxu1 %v449_v62  ;;  %6877 = vmatpush1.bf16.msra.mxu0 %v12155_v15 }
 0x165   : > { %6941 = vmatpush1.bf16.msra.mxu1 %v12156_v23  ;;  %744 = vmatprep.mubr.f32.mxu0 %v452_v5 }
 0x166   : > { %905 = vmatprep.mubr.f32.mxu1 %v452_v5  ;;  %6879 = vmatprep.subr.bf16.mxu0 %v12157_v32 }
 0x167   : > { %745 = vmatmul.mubr.f32.gmra.mrb[24].mxu0 %v451_v18  ;;  %6943 = vmatprep.subr.bf16.mxu1 %v12158_v35 }
 0x168   : > { %906 = vmatmul.mubr.f32.gmra.mrb[24].mxu1 %v451_v18  ;;  %6881 = vmatpush1.bf16.msra.mxu0 %v12159_v41 }
 0x169   : > { %6945 = vmatpush1.bf16.msra.mxu1 %v12160_v49  ;;  %750 = vmatprep.mubr.f32.mxu0 %v454_v33 }
 0x16a   : > { %911 = vmatprep.mubr.f32.mxu1 %v454_v33  ;;  %6883 = vmatprep.subr.bf16.mxu0 %v9172_v10  ;;  %v1000_v10 = vld [vmem:[%s8991_s22 + $0x130] sm:$0xff] }
 0x16b   : > { %751 = vmatmul.mubr.f32.gmra.mrb[26].mxu0 %v453_v48  ;;  %6947 = vmatprep.subr.bf16.mxu1 %v9175_v27  ;;  %v1003_v27 = vld [vmem:[%s8991_s22 + $0x148] sm:$0xff] }
 0x16c   : > { %912 = vmatmul.mubr.f32.gmra.mrb[26].mxu1 %v453_v48  ;;  %6885 = vmatpush1.bf16.msra.mxu0 %v12161_v58 }
 0x16d   : > { %6949 = vmatpush1.bf16.msra.mxu1 %v9182_v46  ;;  %756 = vmatprep.mubr.f32.mxu0 %v456_v53  ;;  %v1002_v46 = vld [vmem:[%s8991_s22 + $0x140] sm:$0xff] }
 0x16e   : > { %917 = vmatprep.mubr.f32.mxu1 %v456_v53  ;;  %6887 = vmatprep.subr.bf16.mxu0 %v9184_v54  ;;  %v1005_v54 = vld [vmem:[%s8991_s22 + $0x158] sm:$0xff] }
 0x16f   : > { %757 = vmatmul.mubr.f32.gmra.mrb[28].mxu0 %v455_v4  ;;  %6951 = vmatprep.subr.bf16.mxu1 %v9187_v1  ;;  %v1007_v1 = vld [vmem:[%s8991_s22 + $0x168] sm:$0xff] }
 0x170   : > { %918 = vmatmul.mubr.f32.gmra.mrb[28].mxu1 %v455_v4  ;;  %6889 = vmatpush1.bf16.msra.mxu0 %v9190_v2  ;;  %v1001_v2 = vld [vmem:[%s8991_s22 + $0x138] sm:$0xff] }
 0x171   : > { %6953 = vmatpush1.bf16.msra.mxu1 %v9194_v61  ;;  %762 = vmatprep.mubr.f32.mxu0 %v458_v6  ;;  %v1008_v61 = vld [vmem:[%s8991_s22 + $0x170] sm:$0xff] }
 0x172   : > { %923 = vmatprep.mubr.f32.mxu1 %v458_v6  ;;  %6891 = vmatprep.subr.bf16.mxu0 %v9196_v11  ;;  %v1011_v11 = vld [vmem:[%s8991_s22 + $0x188] sm:$0xff] }
 0x173   : > { %763 = vmatmul.mubr.f32.gmra.mrb[30].mxu0 %v457_v9  ;;  %6955 = vmatprep.subr.bf16.mxu1 %v9199_v42  ;;  %v1012_v42 = vld [vmem:[%s8991_s22 + $0x190] sm:$0xff] }
 0x174   : > { %924 = vmatmul.mubr.f32.gmra.mrb[30].mxu1 %v457_v9  ;;  %6893 = vmatpush1.bf16.msra.mxu0 %v9202_v55  ;;  %v1014_v55 = vld [vmem:[%s8991_s22 + $0x1a0] sm:$0xff] }
 0x175   : > { %6957 = vmatpush1.bf16.msra.mxu1 %v9206_v60  ;;  %1218 = vmatprep.mubr.f32.mxu0 %v995_v19  ;;  %v1017_v60 = vld [vmem:[%s8991_s22 + $0x1b8] sm:$0xff] }
 0x176   : > { %1379 = vmatprep.mubr.f32.mxu1 %v995_v19 }
 0x177   : > { %1219 = vmatmul.mubr.f32.vlgmr.msra.gmra.mrb[32].mxu0 %v994_v29 }
 0x178   : > { %1380 = vmatmul.mubr.f32.vlgmr.msra.gmra.mrb[32].mxu1 %v994_v29  ;;  %1224 = vmatprep.mubr.f32.mxu0 %v997_v31 }
 0x179   : > { %1385 = vmatprep.mubr.f32.mxu1 %v997_v31 }
 0x17b   : > { %1225 = vmatmul.mubr.f32.gmra.mrb[34].mxu0 %v996_v36 }
 0x17c   : > { %1386 = vmatmul.mubr.f32.gmra.mrb[34].mxu1 %v996_v36  ;;  %1230 = vmatprep.mubr.f32.mxu0 %v999_v44 }
 0x17d   : > { %1391 = vmatprep.mubr.f32.mxu1 %v999_v44 }
 0x17f   : > { %1231 = vmatmul.mubr.f32.gmra.mrb[36].mxu0 %v998_v57 }
 0x180   : > { %1392 = vmatmul.mubr.f32.gmra.mrb[36].mxu1 %v998_v57  ;;  %1236 = vmatprep.mubr.f32.mxu0 %v1001_v2 }
 0x181   : > { %1397 = vmatprep.mubr.f32.mxu1 %v1001_v2 }
 0x183   : > { %1237 = vmatmul.mubr.f32.gmra.mrb[38].mxu0 %v1000_v10 }
 0x184   : > { %1398 = vmatmul.mubr.f32.gmra.mrb[38].mxu1 %v1000_v10  ;;  %1242 = vmatprep.mubr.f32.mxu0 %v1003_v27 }
 0x185   : > { %1403 = vmatprep.mubr.f32.mxu1 %v1003_v27 }
 0x187   : > { %1243 = vmatmul.mubr.f32.gmra.mrb[40].mxu0 %v1002_v46 }
 0x188   : > { %1404 = vmatmul.mubr.f32.gmra.mrb[40].mxu1 %v1002_v46  ;;  %1248 = vmatprep.mubr.f32.mxu0 %v1005_v54 }
 0x189   : > { %1409 = vmatprep.mubr.f32.mxu1 %v1005_v54 }
 0x18b   : > { %1249 = vmatmul.mubr.f32.gmra.mrb[42].mxu0 %v1004_v59 }
 0x18c   : > { %1410 = vmatmul.mubr.f32.gmra.mrb[42].mxu1 %v1004_v59  ;;  %1254 = vmatprep.mubr.f32.mxu0 %v1007_v1 }
 0x18d   : > { %1415 = vmatprep.mubr.f32.mxu1 %v1007_v1 }
 0x18f   : > { %1255 = vmatmul.mubr.f32.gmra.mrb[44].mxu0 %v1006_v13 }
 0x190   : > { %1416 = vmatmul.mubr.f32.gmra.mrb[44].mxu1 %v1006_v13  ;;  %1260 = vmatprep.mubr.f32.mxu0 %v1009_v20 }
 0x191   : > { %1421 = vmatprep.mubr.f32.mxu1 %v1009_v20 }
 0x193   : > { %1261 = vmatmul.mubr.f32.gmra.mrb[46].mxu0 %v1008_v61 }
 0x194   : > { %1422 = vmatmul.mubr.f32.gmra.mrb[46].mxu1 %v1008_v61  ;;  %1266 = vmatprep.mubr.f32.mxu0 %v1011_v11 }
 0x195   : > { %1427 = vmatprep.mubr.f32.mxu1 %v1011_v11 }
 0x197   : > { %1267 = vmatmul.mubr.f32.gmra.mrb[48].mxu0 %v1010_v28 }
 0x198   : > { %1428 = vmatmul.mubr.f32.gmra.mrb[48].mxu1 %v1010_v28  ;;  %1272 = vmatprep.mubr.f32.mxu0 %v1013_v24 }
 0x199   : > { %1433 = vmatprep.mubr.f32.mxu1 %v1013_v24 }
 0x19b   : > { %1273 = vmatmul.mubr.f32.gmra.mrb[50].mxu0 %v1012_v42 }
 0x19c   : > { %1434 = vmatmul.mubr.f32.gmra.mrb[50].mxu1 %v1012_v42  ;;  %1278 = vmatprep.mubr.f32.mxu0 %v1015_v45 }
 0x19d   : > { %1439 = vmatprep.mubr.f32.mxu1 %v1015_v45 }
 0x19f   : > { %1279 = vmatmul.mubr.f32.gmra.mrb[52].mxu0 %v1014_v55 }
 0x1a0   : > { %1440 = vmatmul.mubr.f32.gmra.mrb[52].mxu1 %v1014_v55  ;;  %1284 = vmatprep.mubr.f32.mxu0 %v1017_v60 }
 0x1a1   : > { %1445 = vmatprep.mubr.f32.mxu1 %v1017_v60 }
 0x1a3   : > { %1285 = vmatmul.mubr.f32.gmra.mrb[54].mxu0 %v1016_v40 }
 0x1a4   : > { %1446 = vmatmul.mubr.f32.gmra.mrb[54].mxu1 %v1016_v40  ;;  %1290 = vmatprep.mubr.f32.mxu0 %v1019_v47 }
 0x1a5   : > { %1451 = vmatprep.mubr.f32.mxu1 %v1019_v47 }
 0x1a7   : > { %1291 = vmatmul.mubr.f32.gmra.mrb[56].mxu0 %v1018_v37 }
 0x1a8   : > { %1452 = vmatmul.mubr.f32.gmra.mrb[56].mxu1 %v1018_v37  ;;  %1296 = vmatprep.mubr.f32.mxu0 %v1021_v22 }
 0x1a9   : > { %1457 = vmatprep.mubr.f32.mxu1 %v1021_v22 }
 0x1ab   : > { %1297 = vmatmul.mubr.f32.gmra.mrb[58].mxu0 %v1020_v3 }
 0x1ac   : > { %1458 = vmatmul.mubr.f32.gmra.mrb[58].mxu1 %v1020_v3  ;;  %1302 = vmatprep.mubr.f32.mxu0 %v1023_v7 }
 0x1ad   : > { %1463 = vmatprep.mubr.f32.mxu1 %v1023_v7 }
 0x1af   : > { %1303 = vmatmul.mubr.f32.gmra.mrb[60].mxu0 %v1022_v8 }
 0x1b0   : > { %1464 = vmatmul.mubr.f32.gmra.mrb[60].mxu1 %v1022_v8  ;;  %1308 = vmatprep.mubr.f32.mxu0 %v1025_v12 }
 0x1b1   : > { %1469 = vmatprep.mubr.f32.mxu1 %v1025_v12 }
 0x1b3   : > { %1309 = vmatmul.mubr.f32.gmra.mrb[62].mxu0 %v1024_v16 }
 0x1b4   : > { %1470 = vmatmul.mubr.f32.gmra.mrb[62].mxu1 %v1024_v16 }
 0x20a   : > { %v674_v52 = vpop.f32.mrb[0].mxu0 }
 0x20b   : > { %v675_v56 = vadd.f32 %v674_v52, %v9341_v39  ;;  %v835_v62 = vpop.f32.mrb[0].mxu1  ;;  %v676_v63 = vpop.f32.mrb[1].mxu0 }
 0x20c   : > { %v836_v0 = vadd.f32 %v835_v62, %v9343_v43  ;;  %v677_v5 = vadd.f32 %v676_v63, %v9345_v50  ;;  %v837_v14 = vpop.f32.mrb[1].mxu1 }
 0x20d   : > { %930 = vst [vmem:[#allocation2] sm:$0xff] %v675_v56  ;;  %v838_v15 = vadd.f32 %v837_v14, %v9347_v51 }
 0x20e   : > { %932 = vst [vmem:[#allocation2 + $0x10] sm:$0xff] %v836_v0  ;;  %931 = vst [vmem:[#allocation2 + $0x8] sm:$0xff] %v677_v5  ;;  %v680_v18 = vpop.f32.mrb[2].mxu0 }
 0x20f   : > { %933 = vst [vmem:[#allocation2 + $0x18] sm:$0xff] %v838_v15  ;;  %v681_v23 = vadd.f32 %v680_v18, %v9341_v39  ;;  %v841_v32 = vpop.f32.mrb[2].mxu1  ;;  %v682_v33 = vpop.f32.mrb[3].mxu0 }
 0x210   : > { %v842_v35 = vadd.f32 %v841_v32, %v9343_v43  ;;  %v683_v41 = vadd.f32 %v682_v33, %v9345_v50  ;;  %v843_v48 = vpop.f32.mrb[3].mxu1 }
 0x211   : > { %934 = vst [vmem:[#allocation2 + $0x20] sm:$0xff] %v681_v23  ;;  %v844_v49 = vadd.f32 %v843_v48, %v9347_v51 }
 0x212   : > { %936 = vst [vmem:[#allocation2 + $0x30] sm:$0xff] %v842_v35  ;;  %935 = vst [vmem:[#allocation2 + $0x28] sm:$0xff] %v683_v41  ;;  %v686_v53 = vpop.f32.mrb[4].mxu0 }
 0x213   : > { %937 = vst [vmem:[#allocation2 + $0x38] sm:$0xff] %v844_v49  ;;  %v687_v58 = vadd.f32 %v686_v53, %v9341_v39  ;;  %v847_v4 = vpop.f32.mrb[4].mxu1  ;;  %v688_v6 = vpop.f32.mrb[5].mxu0 }
 0x214   : > { %v848_v9 = vadd.f32 %v847_v4, %v9343_v43  ;;  %v689_v19 = vadd.f32 %v688_v6, %v9345_v50  ;;  %v849_v29 = vpop.f32.mrb[5].mxu1 }
 0x215   : > { %938 = vst [vmem:[#allocation2 + $0x40] sm:$0xff] %v687_v58  ;;  %v850_v31 = vadd.f32 %v849_v29, %v9347_v51 }
 0x216   : > { %940 = vst [vmem:[#allocation2 + $0x50] sm:$0xff] %v848_v9  ;;  %939 = vst [vmem:[#allocation2 + $0x48] sm:$0xff] %v689_v19  ;;  %v692_v36 = vpop.f32.mrb[6].mxu0 }
 0x217   : > { %941 = vst [vmem:[#allocation2 + $0x58] sm:$0xff] %v850_v31  ;;  %v693_v44 = vadd.f32 %v692_v36, %v9341_v39  ;;  %v853_v57 = vpop.f32.mrb[6].mxu1  ;;  %v694_v2 = vpop.f32.mrb[7].mxu0 }
 0x218   : > { %v854_v10 = vadd.f32 %v853_v57, %v9343_v43  ;;  %v695_v27 = vadd.f32 %v694_v2, %v9345_v50  ;;  %v855_v46 = vpop.f32.mrb[7].mxu1 }
 0x219   : > { %942 = vst [vmem:[#allocation2 + $0x60] sm:$0xff] %v693_v44  ;;  %v856_v54 = vadd.f32 %v855_v46, %v9347_v51 }
 0x21a   : > { %944 = vst [vmem:[#allocation2 + $0x70] sm:$0xff] %v854_v10  ;;  %943 = vst [vmem:[#allocation2 + $0x68] sm:$0xff] %v695_v27  ;;  %v698_v59 = vpop.f32.mrb[8].mxu0 }
 0x21b   : > { %945 = vst [vmem:[#allocation2 + $0x78] sm:$0xff] %v856_v54  ;;  %v699_v1 = vadd.f32 %v698_v59, %v9341_v39  ;;  %v859_v13 = vpop.f32.mrb[8].mxu1  ;;  %v700_v20 = vpop.f32.mrb[9].mxu0 }
 0x21c   : > { %v860_v61 = vadd.f32 %v859_v13, %v9343_v43  ;;  %v701_v11 = vadd.f32 %v700_v20, %v9345_v50  ;;  %v861_v28 = vpop.f32.mrb[9].mxu1 }
 0x21d   : > { %946 = vst [vmem:[#allocation2 + $0x80] sm:$0xff] %v699_v1  ;;  %v862_v24 = vadd.f32 %v861_v28, %v9347_v51 }
 0x21e   : > { %948 = vst [vmem:[#allocation2 + $0x90] sm:$0xff] %v860_v61  ;;  %947 = vst [vmem:[#allocation2 + $0x88] sm:$0xff] %v701_v11  ;;  %v704_v42 = vpop.f32.mrb[10].mxu0 }
 0x21f   : > { %949 = vst [vmem:[#allocation2 + $0x98] sm:$0xff] %v862_v24  ;;  %v705_v45 = vadd.f32 %v704_v42, %v9341_v39  ;;  %v865_v55 = vpop.f32.mrb[10].mxu1  ;;  %v706_v60 = vpop.f32.mrb[11].mxu0 }
 0x220   : > { %v866_v40 = vadd.f32 %v865_v55, %v9343_v43  ;;  %v707_v47 = vadd.f32 %v706_v60, %v9345_v50  ;;  %v867_v37 = vpop.f32.mrb[11].mxu1 }
 0x221   : > { %950 = vst [vmem:[#allocation2 + $0xa0] sm:$0xff] %v705_v45  ;;  %v868_v22 = vadd.f32 %v867_v37, %v9347_v51 }
 0x222   : > { %952 = vst [vmem:[#allocation2 + $0xb0] sm:$0xff] %v866_v40  ;;  %951 = vst [vmem:[#allocation2 + $0xa8] sm:$0xff] %v707_v47  ;;  %v710_v3 = vpop.f32.mrb[12].mxu0 }
 0x223   : > { %953 = vst [vmem:[#allocation2 + $0xb8] sm:$0xff] %v868_v22  ;;  %v711_v7 = vadd.f32 %v710_v3, %v9341_v39  ;;  %v871_v8 = vpop.f32.mrb[12].mxu1  ;;  %v712_v12 = vpop.f32.mrb[13].mxu0 }
 0x224   : > { %v872_v16 = vadd.f32 %v871_v8, %v9343_v43  ;;  %v713_v17 = vadd.f32 %v712_v12, %v9345_v50  ;;  %v873_v21 = vpop.f32.mrb[13].mxu1 }
 0x225   : > { %954 = vst [vmem:[#allocation2 + $0xc0] sm:$0xff] %v711_v7  ;;  %v874_v25 = vadd.f32 %v873_v21, %v9347_v51 }
 0x226   : > { %956 = vst [vmem:[#allocation2 + $0xd0] sm:$0xff] %v872_v16  ;;  %955 = vst [vmem:[#allocation2 + $0xc8] sm:$0xff] %v713_v17  ;;  %v716_v26 = vpop.f32.mrb[14].mxu0 }
 0x227   : > { %957 = vst [vmem:[#allocation2 + $0xd8] sm:$0xff] %v874_v25  ;;  %v717_v30 = vadd.f32 %v716_v26, %v9341_v39  ;;  %v877_v34 = vpop.f32.mrb[14].mxu1  ;;  %v718_v38 = vpop.f32.mrb[15].mxu0 }
 0x228   : > { %v878_v52 = vadd.f32 %v877_v34, %v9343_v43  ;;  %v719_v56 = vadd.f32 %v718_v38, %v9345_v50  ;;  %v879_v62 = vpop.f32.mrb[15].mxu1 }
 0x229   : > { %958 = vst [vmem:[#allocation2 + $0xe0] sm:$0xff] %v717_v30  ;;  %v880_v63 = vadd.f32 %v879_v62, %v9347_v51 }
 0x22a   : > { %960 = vst [vmem:[#allocation2 + $0xf0] sm:$0xff] %v878_v52  ;;  %959 = vst [vmem:[#allocation2 + $0xe8] sm:$0xff] %v719_v56  ;;  %v722_v0 = vpop.f32.mrb[16].mxu0 }
 0x22b   : > { %961 = vst [vmem:[#allocation2 + $0xf8] sm:$0xff] %v880_v63  ;;  %v723_v5 = vadd.f32 %v722_v0, %v9341_v39  ;;  %v883_v14 = vpop.f32.mrb[16].mxu1  ;;  %v724_v15 = vpop.f32.mrb[17].mxu0 }
 0x22c   : > { %v884_v18 = vadd.f32 %v883_v14, %v9343_v43  ;;  %v725_v23 = vadd.f32 %v724_v15, %v9345_v50  ;;  %v885_v32 = vpop.f32.mrb[17].mxu1 }
 0x22d   : > { %962 = vst [vmem:[#allocation2 + $0x100] sm:$0xff] %v723_v5  ;;  %v886_v33 = vadd.f32 %v885_v32, %v9347_v51 }
 0x22e   : > { %964 = vst [vmem:[#allocation2 + $0x110] sm:$0xff] %v884_v18  ;;  %963 = vst [vmem:[#allocation2 + $0x108] sm:$0xff] %v725_v23  ;;  %v728_v35 = vpop.f32.mrb[18].mxu0 }
 0x22f   : > { %965 = vst [vmem:[#allocation2 + $0x118] sm:$0xff] %v886_v33  ;;  %v729_v41 = vadd.f32 %v728_v35, %v9341_v39  ;;  %v889_v48 = vpop.f32.mrb[18].mxu1  ;;  %v730_v49 = vpop.f32.mrb[19].mxu0 }
 0x230   : > { %v890_v53 = vadd.f32 %v889_v48, %v9343_v43  ;;  %v731_v58 = vadd.f32 %v730_v49, %v9345_v50  ;;  %v891_v4 = vpop.f32.mrb[19].mxu1 }
 0x231   : > { %966 = vst [vmem:[#allocation2 + $0x120] sm:$0xff] %v729_v41  ;;  %v892_v6 = vadd.f32 %v891_v4, %v9347_v51 }
 0x232   : > { %968 = vst [vmem:[#allocation2 + $0x130] sm:$0xff] %v890_v53  ;;  %967 = vst [vmem:[#allocation2 + $0x128] sm:$0xff] %v731_v58  ;;  %v734_v9 = vpop.f32.mrb[20].mxu0 }
 0x233   : > { %969 = vst [vmem:[#allocation2 + $0x138] sm:$0xff] %v892_v6  ;;  %v735_v19 = vadd.f32 %v734_v9, %v9341_v39  ;;  %v895_v29 = vpop.f32.mrb[20].mxu1  ;;  %v736_v31 = vpop.f32.mrb[21].mxu0 }
 0x234   : > { %v896_v36 = vadd.f32 %v895_v29, %v9343_v43  ;;  %v737_v44 = vadd.f32 %v736_v31, %v9345_v50  ;;  %v897_v57 = vpop.f32.mrb[21].mxu1 }
 0x235   : > { %970 = vst [vmem:[#allocation2 + $0x140] sm:$0xff] %v735_v19  ;;  %v898_v2 = vadd.f32 %v897_v57, %v9347_v51 }
 0x236   : > { %972 = vst [vmem:[#allocation2 + $0x150] sm:$0xff] %v896_v36  ;;  %971 = vst [vmem:[#allocation2 + $0x148] sm:$0xff] %v737_v44  ;;  %v740_v10 = vpop.f32.mrb[22].mxu0 }
 0x237   : > { %973 = vst [vmem:[#allocation2 + $0x158] sm:$0xff] %v898_v2  ;;  %v741_v27 = vadd.f32 %v740_v10, %v9341_v39  ;;  %v901_v46 = vpop.f32.mrb[22].mxu1  ;;  %v742_v54 = vpop.f32.mrb[23].mxu0 }
 0x238   : > { %v902_v59 = vadd.f32 %v901_v46, %v9343_v43  ;;  %v743_v1 = vadd.f32 %v742_v54, %v9345_v50  ;;  %v903_v13 = vpop.f32.mrb[23].mxu1 }
 0x239   : > { %974 = vst [vmem:[#allocation2 + $0x160] sm:$0xff] %v741_v27  ;;  %v904_v20 = vadd.f32 %v903_v13, %v9347_v51 }
 0x23a   : > { %976 = vst [vmem:[#allocation2 + $0x170] sm:$0xff] %v902_v59  ;;  %975 = vst [vmem:[#allocation2 + $0x168] sm:$0xff] %v743_v1  ;;  %v746_v61 = vpop.f32.mrb[24].mxu0 }
 0x23b   : > { %977 = vst [vmem:[#allocation2 + $0x178] sm:$0xff] %v904_v20  ;;  %v747_v11 = vadd.f32 %v746_v61, %v9341_v39  ;;  %v907_v28 = vpop.f32.mrb[24].mxu1  ;;  %v748_v24 = vpop.f32.mrb[25].mxu0 }
 0x23c   : > { %v908_v42 = vadd.f32 %v907_v28, %v9343_v43  ;;  %v749_v45 = vadd.f32 %v748_v24, %v9345_v50  ;;  %v909_v55 = vpop.f32.mrb[25].mxu1 }
 0x23d   : > { %978 = vst [vmem:[#allocation2 + $0x180] sm:$0xff] %v747_v11  ;;  %v910_v60 = vadd.f32 %v909_v55, %v9347_v51 }
 0x23e   : > { %980 = vst [vmem:[#allocation2 + $0x190] sm:$0xff] %v908_v42  ;;  %979 = vst [vmem:[#allocation2 + $0x188] sm:$0xff] %v749_v45  ;;  %v752_v40 = vpop.f32.mrb[26].mxu0 }
 0x23f   : > { %981 = vst [vmem:[#allocation2 + $0x198] sm:$0xff] %v910_v60  ;;  %v753_v47 = vadd.f32 %v752_v40, %v9341_v39  ;;  %v913_v37 = vpop.f32.mrb[26].mxu1  ;;  %v754_v22 = vpop.f32.mrb[27].mxu0 }
 0x240   : > { %v914_v3 = vadd.f32 %v913_v37, %v9343_v43  ;;  %v755_v7 = vadd.f32 %v754_v22, %v9345_v50  ;;  %v915_v8 = vpop.f32.mrb[27].mxu1 }
 0x241   : > { %982 = vst [vmem:[#allocation2 + $0x1a0] sm:$0xff] %v753_v47  ;;  %v916_v12 = vadd.f32 %v915_v8, %v9347_v51 }
 0x242   : > { %984 = vst [vmem:[#allocation2 + $0x1b0] sm:$0xff] %v914_v3  ;;  %983 = vst [vmem:[#allocation2 + $0x1a8] sm:$0xff] %v755_v7  ;;  %v758_v16 = vpop.f32.mrb[28].mxu0 }
 0x243   : > { %985 = vst [vmem:[#allocation2 + $0x1b8] sm:$0xff] %v916_v12  ;;  %v759_v17 = vadd.f32 %v758_v16, %v9341_v39  ;;  %v919_v21 = vpop.f32.mrb[28].mxu1  ;;  %v760_v25 = vpop.f32.mrb[29].mxu0 }
 0x244   : > { %v920_v26 = vadd.f32 %v919_v21, %v9343_v43  ;;  %v761_v30 = vadd.f32 %v760_v25, %v9345_v50  ;;  %v921_v34 = vpop.f32.mrb[29].mxu1 }
 0x245   : > { %986 = vst [vmem:[#allocation2 + $0x1c0] sm:$0xff] %v759_v17  ;;  %v922_v38 = vadd.f32 %v921_v34, %v9347_v51 }
 0x246   : > { %988 = vst [vmem:[#allocation2 + $0x1d0] sm:$0xff] %v920_v26  ;;  %987 = vst [vmem:[#allocation2 + $0x1c8] sm:$0xff] %v761_v30  ;;  %v764_v52 = vpop.f32.mrb[30].mxu0 }
 0x247   : > { %989 = vst [vmem:[#allocation2 + $0x1d8] sm:$0xff] %v922_v38  ;;  %v765_v56 = vadd.f32 %v764_v52, %v9341_v39  ;;  %v925_v62 = vpop.f32.mrb[30].mxu1  ;;  %v766_v63 = vpop.f32.mrb[31].mxu0 }
 0x248   : > { %v926_v0 = vadd.f32 %v925_v62, %v9343_v43  ;;  %v767_v5 = vadd.f32 %v766_v63, %v9345_v50  ;;  %v927_v14 = vpop.f32.mrb[31].mxu1 }
 0x249   : > { %990 = vst [vmem:[#allocation2 + $0x1e0] sm:$0xff] %v765_v56  ;;  %v928_v15 = vadd.f32 %v927_v14, %v9347_v51 }
 0x24a   : > { %992 = vst [vmem:[#allocation2 + $0x1f0] sm:$0xff] %v926_v0  ;;  %991 = vst [vmem:[#allocation2 + $0x1e8] sm:$0xff] %v767_v5  ;;  %v1220_v18 = vpop.f32.mrb[32].mxu0 }
 0x24b   : > { %993 = vst [vmem:[#allocation2 + $0x1f8] sm:$0xff] %v928_v15  ;;  %v1221_v23 = vadd.f32 %v1220_v18, %v9341_v39  ;;  %v1381_v32 = vpop.f32.mrb[32].mxu1  ;;  %v1222_v33 = vpop.f32.mrb[33].mxu0 }
 0x24c   : > { %v1382_v35 = vadd.f32 %v1381_v32, %v9343_v43  ;;  %v1223_v41 = vadd.f32 %v1222_v33, %v9345_v50  ;;  %v1383_v48 = vpop.f32.mrb[33].mxu1 }
 0x24d   : > { %1476 = vst [vmem:[#allocation2 + $0x200] sm:$0xff] %v1221_v23  ;;  %v1384_v49 = vadd.f32 %v1383_v48, %v9347_v51 }
 0x24e   : > { %1478 = vst [vmem:[#allocation2 + $0x210] sm:$0xff] %v1382_v35  ;;  %1477 = vst [vmem:[#allocation2 + $0x208] sm:$0xff] %v1223_v41  ;;  %v1226_v53 = vpop.f32.mrb[34].mxu0 }
 0x24f   : > { %1479 = vst [vmem:[#allocation2 + $0x218] sm:$0xff] %v1384_v49  ;;  %v1227_v58 = vadd.f32 %v1226_v53, %v9341_v39  ;;  %v1387_v4 = vpop.f32.mrb[34].mxu1  ;;  %v1228_v6 = vpop.f32.mrb[35].mxu0 }
 0x250   : > { %v1388_v9 = vadd.f32 %v1387_v4, %v9343_v43  ;;  %v1229_v19 = vadd.f32 %v1228_v6, %v9345_v50  ;;  %v1389_v29 = vpop.f32.mrb[35].mxu1 }
 0x251   : > { %1480 = vst [vmem:[#allocation2 + $0x220] sm:$0xff] %v1227_v58  ;;  %v1390_v31 = vadd.f32 %v1389_v29, %v9347_v51 }
 0x252   : > { %1482 = vst [vmem:[#allocation2 + $0x230] sm:$0xff] %v1388_v9  ;;  %1481 = vst [vmem:[#allocation2 + $0x228] sm:$0xff] %v1229_v19  ;;  %v1232_v36 = vpop.f32.mrb[36].mxu0 }
 0x253   : > { %1483 = vst [vmem:[#allocation2 + $0x238] sm:$0xff] %v1390_v31  ;;  %v1233_v44 = vadd.f32 %v1232_v36, %v9341_v39  ;;  %v1393_v57 = vpop.f32.mrb[36].mxu1  ;;  %v1234_v2 = vpop.f32.mrb[37].mxu0 }
 0x254   : > { %v1394_v10 = vadd.f32 %v1393_v57, %v9343_v43  ;;  %v1235_v27 = vadd.f32 %v1234_v2, %v9345_v50  ;;  %v1395_v46 = vpop.f32.mrb[37].mxu1 }
 0x255   : > { %1484 = vst [vmem:[#allocation2 + $0x240] sm:$0xff] %v1233_v44  ;;  %v1396_v54 = vadd.f32 %v1395_v46, %v9347_v51 }
 0x256   : > { %1486 = vst [vmem:[#allocation2 + $0x250] sm:$0xff] %v1394_v10  ;;  %1485 = vst [vmem:[#allocation2 + $0x248] sm:$0xff] %v1235_v27  ;;  %v1238_v59 = vpop.f32.mrb[38].mxu0 }
 0x257   : > { %1487 = vst [vmem:[#allocation2 + $0x258] sm:$0xff] %v1396_v54  ;;  %v1239_v1 = vadd.f32 %v1238_v59, %v9341_v39  ;;  %v1399_v13 = vpop.f32.mrb[38].mxu1  ;;  %v1240_v20 = vpop.f32.mrb[39].mxu0 }
 0x258   : > { %v1400_v61 = vadd.f32 %v1399_v13, %v9343_v43  ;;  %v1241_v11 = vadd.f32 %v1240_v20, %v9345_v50  ;;  %v1401_v28 = vpop.f32.mrb[39].mxu1 }
 0x259   : > { %1488 = vst [vmem:[#allocation2 + $0x260] sm:$0xff] %v1239_v1  ;;  %v1402_v24 = vadd.f32 %v1401_v28, %v9347_v51 }
 0x25a   : > { %1490 = vst [vmem:[#allocation2 + $0x270] sm:$0xff] %v1400_v61  ;;  %1489 = vst [vmem:[#allocation2 + $0x268] sm:$0xff] %v1241_v11  ;;  %v1244_v42 = vpop.f32.mrb[40].mxu0 }
 0x25b   : > { %1491 = vst [vmem:[#allocation2 + $0x278] sm:$0xff] %v1402_v24  ;;  %v1245_v45 = vadd.f32 %v1244_v42, %v9341_v39  ;;  %v1405_v55 = vpop.f32.mrb[40].mxu1  ;;  %v1246_v60 = vpop.f32.mrb[41].mxu0 }
 0x25c   : > { %v1406_v40 = vadd.f32 %v1405_v55, %v9343_v43  ;;  %v1247_v47 = vadd.f32 %v1246_v60, %v9345_v50  ;;  %v1407_v37 = vpop.f32.mrb[41].mxu1 }
 0x25d   : > { %1492 = vst [vmem:[#allocation2 + $0x280] sm:$0xff] %v1245_v45  ;;  %v1408_v22 = vadd.f32 %v1407_v37, %v9347_v51 }
 0x25e   : > { %1494 = vst [vmem:[#allocation2 + $0x290] sm:$0xff] %v1406_v40  ;;  %1493 = vst [vmem:[#allocation2 + $0x288] sm:$0xff] %v1247_v47  ;;  %v1250_v3 = vpop.f32.mrb[42].mxu0 }
 0x25f   : > { %1495 = vst [vmem:[#allocation2 + $0x298] sm:$0xff] %v1408_v22  ;;  %v1251_v7 = vadd.f32 %v1250_v3, %v9341_v39  ;;  %v1411_v8 = vpop.f32.mrb[42].mxu1  ;;  %v1252_v12 = vpop.f32.mrb[43].mxu0 }
 0x260   : > { %v1412_v16 = vadd.f32 %v1411_v8, %v9343_v43  ;;  %v1253_v17 = vadd.f32 %v1252_v12, %v9345_v50  ;;  %v1413_v21 = vpop.f32.mrb[43].mxu1 }
 0x261   : > { %1496 = vst [vmem:[#allocation2 + $0x2a0] sm:$0xff] %v1251_v7  ;;  %v1414_v25 = vadd.f32 %v1413_v21, %v9347_v51 }
 0x262   : > { %1498 = vst [vmem:[#allocation2 + $0x2b0] sm:$0xff] %v1412_v16  ;;  %1497 = vst [vmem:[#allocation2 + $0x2a8] sm:$0xff] %v1253_v17  ;;  %v1256_v26 = vpop.f32.mrb[44].mxu0 }
 0x263   : > { %1499 = vst [vmem:[#allocation2 + $0x2b8] sm:$0xff] %v1414_v25  ;;  %v1257_v30 = vadd.f32 %v1256_v26, %v9341_v39  ;;  %v1417_v34 = vpop.f32.mrb[44].mxu1  ;;  %v1258_v38 = vpop.f32.mrb[45].mxu0 }
 0x264   : > { %v1418_v52 = vadd.f32 %v1417_v34, %v9343_v43  ;;  %v1259_v56 = vadd.f32 %v1258_v38, %v9345_v50  ;;  %v1419_v62 = vpop.f32.mrb[45].mxu1 }
 0x265   : > { %1500 = vst [vmem:[#allocation2 + $0x2c0] sm:$0xff] %v1257_v30  ;;  %v1420_v63 = vadd.f32 %v1419_v62, %v9347_v51 }
 0x266   : > { %1502 = vst [vmem:[#allocation2 + $0x2d0] sm:$0xff] %v1418_v52  ;;  %1501 = vst [vmem:[#allocation2 + $0x2c8] sm:$0xff] %v1259_v56  ;;  %v1262_v0 = vpop.f32.mrb[46].mxu0 }
 0x267   : > { %1503 = vst [vmem:[#allocation2 + $0x2d8] sm:$0xff] %v1420_v63  ;;  %v1263_v5 = vadd.f32 %v1262_v0, %v9341_v39  ;;  %v1423_v14 = vpop.f32.mrb[46].mxu1  ;;  %v1264_v15 = vpop.f32.mrb[47].mxu0 }
 0x268   : > { %v1424_v18 = vadd.f32 %v1423_v14, %v9343_v43  ;;  %v1265_v23 = vadd.f32 %v1264_v15, %v9345_v50  ;;  %v1425_v32 = vpop.f32.mrb[47].mxu1 }
 0x269   : > { %1504 = vst [vmem:[#allocation2 + $0x2e0] sm:$0xff] %v1263_v5  ;;  %v1426_v33 = vadd.f32 %v1425_v32, %v9347_v51 }
 0x26a   : > { %1506 = vst [vmem:[#allocation2 + $0x2f0] sm:$0xff] %v1424_v18  ;;  %1505 = vst [vmem:[#allocation2 + $0x2e8] sm:$0xff] %v1265_v23  ;;  %v1268_v35 = vpop.f32.mrb[48].mxu0 }
 0x26b   : > { %1507 = vst [vmem:[#allocation2 + $0x2f8] sm:$0xff] %v1426_v33  ;;  %v1269_v41 = vadd.f32 %v1268_v35, %v9341_v39  ;;  %v1429_v48 = vpop.f32.mrb[48].mxu1  ;;  %v1270_v49 = vpop.f32.mrb[49].mxu0 }
 0x26c   : > { %v1430_v53 = vadd.f32 %v1429_v48, %v9343_v43  ;;  %v1271_v58 = vadd.f32 %v1270_v49, %v9345_v50  ;;  %v1431_v4 = vpop.f32.mrb[49].mxu1 }
 0x26d   : > { %1508 = vst [vmem:[#allocation2 + $0x300] sm:$0xff] %v1269_v41  ;;  %v1432_v6 = vadd.f32 %v1431_v4, %v9347_v51 }
 0x26e   : > { %1510 = vst [vmem:[#allocation2 + $0x310] sm:$0xff] %v1430_v53  ;;  %1509 = vst [vmem:[#allocation2 + $0x308] sm:$0xff] %v1271_v58  ;;  %v1274_v9 = vpop.f32.mrb[50].mxu0 }
 0x26f   : > { %1511 = vst [vmem:[#allocation2 + $0x318] sm:$0xff] %v1432_v6  ;;  %v1275_v19 = vadd.f32 %v1274_v9, %v9341_v39  ;;  %v1435_v29 = vpop.f32.mrb[50].mxu1  ;;  %v1276_v31 = vpop.f32.mrb[51].mxu0 }
 0x270   : > { %v1436_v36 = vadd.f32 %v1435_v29, %v9343_v43  ;;  %v1277_v44 = vadd.f32 %v1276_v31, %v9345_v50  ;;  %v1437_v57 = vpop.f32.mrb[51].mxu1 }
 0x271   : > { %1512 = vst [vmem:[#allocation2 + $0x320] sm:$0xff] %v1275_v19  ;;  %v1438_v2 = vadd.f32 %v1437_v57, %v9347_v51 }
 0x272   : > { %1514 = vst [vmem:[#allocation2 + $0x330] sm:$0xff] %v1436_v36  ;;  %1513 = vst [vmem:[#allocation2 + $0x328] sm:$0xff] %v1277_v44  ;;  %v1280_v10 = vpop.f32.mrb[52].mxu0 }
 0x273   : > { %1515 = vst [vmem:[#allocation2 + $0x338] sm:$0xff] %v1438_v2  ;;  %v1281_v27 = vadd.f32 %v1280_v10, %v9341_v39  ;;  %v1441_v46 = vpop.f32.mrb[52].mxu1  ;;  %v1282_v54 = vpop.f32.mrb[53].mxu0 }
 0x274   : > { %v1442_v59 = vadd.f32 %v1441_v46, %v9343_v43  ;;  %v1283_v1 = vadd.f32 %v1282_v54, %v9345_v50  ;;  %v1443_v13 = vpop.f32.mrb[53].mxu1 }
 0x275   : > { %1516 = vst [vmem:[#allocation2 + $0x340] sm:$0xff] %v1281_v27  ;;  %v1444_v20 = vadd.f32 %v1443_v13, %v9347_v51 }
 0x276   : > { %1518 = vst [vmem:[#allocation2 + $0x350] sm:$0xff] %v1442_v59  ;;  %1517 = vst [vmem:[#allocation2 + $0x348] sm:$0xff] %v1283_v1  ;;  %v1286_v61 = vpop.f32.mrb[54].mxu0 }
 0x277   : > { %1519 = vst [vmem:[#allocation2 + $0x358] sm:$0xff] %v1444_v20  ;;  %v1287_v11 = vadd.f32 %v1286_v61, %v9341_v39  ;;  %v1447_v28 = vpop.f32.mrb[54].mxu1  ;;  %v1288_v24 = vpop.f32.mrb[55].mxu0 }
 0x278   : > { %v1448_v42 = vadd.f32 %v1447_v28, %v9343_v43  ;;  %v1289_v45 = vadd.f32 %v1288_v24, %v9345_v50  ;;  %v1449_v55 = vpop.f32.mrb[55].mxu1 }
 0x279   : > { %1520 = vst [vmem:[#allocation2 + $0x360] sm:$0xff] %v1287_v11  ;;  %v1450_v60 = vadd.f32 %v1449_v55, %v9347_v51 }
 0x27a   : > { %1522 = vst [vmem:[#allocation2 + $0x370] sm:$0xff] %v1448_v42  ;;  %1521 = vst [vmem:[#allocation2 + $0x368] sm:$0xff] %v1289_v45  ;;  %v1292_v40 = vpop.f32.mrb[56].mxu0 }
 0x27b   : > { %1523 = vst [vmem:[#allocation2 + $0x378] sm:$0xff] %v1450_v60  ;;  %v1293_v47 = vadd.f32 %v1292_v40, %v9341_v39  ;;  %v1453_v37 = vpop.f32.mrb[56].mxu1  ;;  %v1294_v22 = vpop.f32.mrb[57].mxu0 }
 0x27c   : > { %v1454_v3 = vadd.f32 %v1453_v37, %v9343_v43  ;;  %v1295_v7 = vadd.f32 %v1294_v22, %v9345_v50  ;;  %v1455_v8 = vpop.f32.mrb[57].mxu1 }
 0x27d   : > { %1524 = vst [vmem:[#allocation2 + $0x380] sm:$0xff] %v1293_v47  ;;  %v1456_v12 = vadd.f32 %v1455_v8, %v9347_v51 }
 0x27e   : > { %1526 = vst [vmem:[#allocation2 + $0x390] sm:$0xff] %v1454_v3  ;;  %1525 = vst [vmem:[#allocation2 + $0x388] sm:$0xff] %v1295_v7  ;;  %v1298_v16 = vpop.f32.mrb[58].mxu0 }
 0x27f   : > { %1527 = vst [vmem:[#allocation2 + $0x398] sm:$0xff] %v1456_v12  ;;  %v1299_v17 = vadd.f32 %v1298_v16, %v9341_v39  ;;  %v1459_v21 = vpop.f32.mrb[58].mxu1  ;;  %v1300_v25 = vpop.f32.mrb[59].mxu0 }
 0x280   : > { %v1460_v26 = vadd.f32 %v1459_v21, %v9343_v43  ;;  %v1301_v30 = vadd.f32 %v1300_v25, %v9345_v50  ;;  %v1461_v34 = vpop.f32.mrb[59].mxu1 }
 0x281   : > { %1528 = vst [vmem:[#allocation2 + $0x3a0] sm:$0xff] %v1299_v17  ;;  %v1462_v38 = vadd.f32 %v1461_v34, %v9347_v51 }
 0x282   : > { %1530 = vst [vmem:[#allocation2 + $0x3b0] sm:$0xff] %v1460_v26  ;;  %1529 = vst [vmem:[#allocation2 + $0x3a8] sm:$0xff] %v1301_v30  ;;  %v1304_v52 = vpop.f32.mrb[60].mxu0 }
 0x283   : > { %1531 = vst [vmem:[#allocation2 + $0x3b8] sm:$0xff] %v1462_v38  ;;  %v1305_v56 = vadd.f32 %v1304_v52, %v9341_v39  ;;  %v1465_v62 = vpop.f32.mrb[60].mxu1  ;;  %v1306_v63 = vpop.f32.mrb[61].mxu0 }
 0x284   : > { %v1466_v0 = vadd.f32 %v1465_v62, %v9343_v43  ;;  %v1307_v5 = vadd.f32 %v1306_v63, %v9345_v50  ;;  %v1467_v14 = vpop.f32.mrb[61].mxu1 }
 0x285   : > { %1532 = vst [vmem:[#allocation2 + $0x3c0] sm:$0xff] %v1305_v56  ;;  %v1468_v15 = vadd.f32 %v1467_v14, %v9347_v51 }
 0x286   : > { %1534 = vst [vmem:[#allocation2 + $0x3d0] sm:$0xff] %v1466_v0  ;;  %1533 = vst [vmem:[#allocation2 + $0x3c8] sm:$0xff] %v1307_v5  ;;  %v1310_v18 = vpop.f32.mrb[62].mxu0 }
 0x287   : > { %1535 = vst [vmem:[#allocation2 + $0x3d8] sm:$0xff] %v1468_v15  ;;  %v1311_v23 = vadd.f32 %v1310_v18, %v9341_v39  ;;  %v1471_v32 = vpop.f32.mrb[62].mxu1  ;;  %v1312_v33 = vpop.f32.mrb[63].mxu0 }
 0x288   : > { %v1472_v35 = vadd.f32 %v1471_v32, %v9343_v43  ;;  %v1313_v41 = vadd.f32 %v1312_v33, %v9345_v50  ;;  %v1473_v48 = vpop.f32.mrb[63].mxu1 }
 0x289   : > { %1536 = vst [vmem:[#allocation2 + $0x3e0] sm:$0xff] %v1311_v23  ;;  %v1474_v49 = vadd.f32 %v1473_v48, %v9347_v51 }
 0x28a   : > { %1538 = vst [vmem:[#allocation2 + $0x3f0] sm:$0xff] %v1472_v35  ;;  %1537 = vst [vmem:[#allocation2 + $0x3e8] sm:$0xff] %v1313_v41 }
 0x28b   : > { %1539 = vst [vmem:[#allocation2 + $0x3f8] sm:$0xff] %v1474_v49 }
 0x28c PF: > { %v1579_v53 = vld [vmem:[#allocation7 + $0x8] sm:$0xff]  ;;  %v1581_v58 = vld [vmem:[#allocation7 + $0x18] sm:$0xff]  ;;  %v1578_v4 = vld [vmem:[#allocation7] sm:$0xff]  ;;  %s12163_s28 = sld [smem:[#allocation21_spill]]  ;;  %vm1943_vm0 = vcmask 523264   ;;  %s8626_s14 = smov 64  }
 0x28d   : > { %v6958_v6 = vpack.c.bf16 %v1581_v58, %v1579_v53  ;;  %v1580_v9 = vld [vmem:[#allocation7 + $0x10] sm:$0xff]  ;;  %v1583_v39 = vld [vmem:[#allocation7 + $0x28] sm:$0xff]  ;;  %v1585_v19 = vld [vmem:[#allocation7 + $0x38] sm:$0xff]  ;;  %s12167_s2 = sld [smem:[#allocation119_spill]]  ;;  %vm3644_vm2 = vcmask 1048064   ;;  %s12397_s11 = sld [smem:[#allocation123_spill]] }
 0x28e   : > { %v6960_v29 = vpack.c.bf16 %v1580_v9, %v1578_v4  ;;  %v6962_v31 = vpack.c.bf16 %v1585_v19, %v1583_v39  ;;  %v1582_v43 = vld [vmem:[#allocation7 + $0x20] sm:$0xff]  ;;  %v1584_v36 = vld [vmem:[#allocation7 + $0x30] sm:$0xff]  ;;  %v1587_v50 = vld [vmem:[#allocation7 + $0x48] sm:$0xff]  ;;  %s12401_s4 = sld [smem:[#allocation22_spill]] }
 0x28f   : > { %6959 = vmatprep.subr.bf16.mxu0 %v6958_v6  ;;  %v1589_v44 = vld [vmem:[#allocation7 + $0x58] sm:$0xff]  ;;  %v6964_v51 = vpack.c.bf16 %v1584_v36, %v1582_v43  ;;  %v1586_v2 = vld [vmem:[#allocation7 + $0x40] sm:$0xff]  ;;  %v1588_v10 = vld [vmem:[#allocation7 + $0x50] sm:$0xff] }
 0x290   : > { %6961 = vmatpush1.bf16.msra.mxu0 %v6960_v29  ;;  %v6966_v57 = vpack.c.bf16 %v1589_v44, %v1587_v50  ;;  %v1591_v27 = vld [vmem:[#allocation7 + $0x68] sm:$0xff]  ;;  %v1593_v46 = vld [vmem:[#allocation7 + $0x78] sm:$0xff]  ;;  %v6968_v54 = vpack.c.bf16 %v1588_v10, %v1586_v2  ;;  %v1590_v1 = vld [vmem:[#allocation7 + $0x60] sm:$0xff] }
 0x291   : > { %6963 = vmatprep.subr.bf16.mxu0 %v6962_v31  ;;  %v6970_v59 = vpack.c.bf16 %v1593_v46, %v1591_v27  ;;  %v1592_v13 = vld [vmem:[#allocation7 + $0x70] sm:$0xff]  ;;  %v1595_v20 = vld [vmem:[#allocation7 + $0x88] sm:$0xff]  ;;  %v1597_v61 = vld [vmem:[#allocation7 + $0x98] sm:$0xff] }
 0x292   : > { %s5919_s26 = sshll.u32 %s12163_s28, 7  ;;  %v6972_v11 = vpack.c.bf16 %v1592_v13, %v1590_v1  ;;  %v6974_v28 = vpack.c.bf16 %v1597_v61, %v1595_v20  ;;  %v1594_v24 = vld [vmem:[#allocation7 + $0x80] sm:$0xff]  ;;  %v1596_v42 = vld [vmem:[#allocation7 + $0x90] sm:$0xff]  ;;  %v1599_v45 = vld [vmem:[#allocation7 + $0xa8] sm:$0xff]  ;;  %s6125_s19 = sshll.u32 %s12163_s28, 5 }
 0x293   : > { %s1541_s23 = sshra.s32 %s5919_s26, 3  ;;  %v1601_v55 = vld [vmem:[#allocation7 + $0xb8] sm:$0xff]  ;;  %v6976_v60 = vpack.c.bf16 %v1596_v42, %v1594_v24  ;;  %v1598_v47 = vld [vmem:[#allocation7 + $0xa0] sm:$0xff]  ;;  %v1600_v37 = vld [vmem:[#allocation7 + $0xb0] sm:$0xff]  ;;  %s12403_s26 = sld [smem:[#allocation25_spill]] }
 0x294   : > { %6965 = vmatpush1.bf16.msra.mxu0 %v6964_v51  ;;  %s6124_s3 = sshll.u32 %s1541_s23, 4  ;;  %v6978_v40 = vpack.c.bf16 %v1601_v55, %v1599_v45  ;;  %v1603_v22 = vld [vmem:[#allocation7 + $0xc8] sm:$0xff]  ;;  %v1605_v3 = vld [vmem:[#allocation7 + $0xd8] sm:$0xff]  ;;  %v6980_v7 = vpack.c.bf16 %v1600_v37, %v1598_v47  ;;  %v1602_v12 = vld [vmem:[#allocation7 + $0xc0] sm:$0xff]  ;;  %s6117_s30 = sshll.u32 %s12401_s4, 6 }
 0x295   : > { %6967 = vmatprep.subr.bf16.mxu0 %v6966_v57  ;;  %s9479_s5 = scalar_lea.vmem %s8991_s22, %s6124_s3 [#allocation4]  ;;  %v6982_v8 = vpack.c.bf16 %v1605_v3, %v1603_v22  ;;  %v1604_v16 = vld [vmem:[#allocation7 + $0xd0] sm:$0xff]  ;;  %v1607_v21 = vld [vmem:[#allocation7 + $0xe8] sm:$0xff]  ;;  %v1609_v25 = vld [vmem:[#allocation7 + $0xf8] sm:$0xff]  ;;  %s5756_s8 = sadd.s32 %s6125_s19, %s6117_s30 }
 0x296   : > { %v1547_v17 = vld [vmem:[%s9479_s5 + $0x8] sm:$0xff]  ;;  %v6984_v26 = vpack.c.bf16 %v1604_v16, %v1602_v12  ;;  %v6986_v30 = vpack.c.bf16 %v1609_v25, %v1607_v21  ;;  %v1606_v34 = vld [vmem:[#allocation7 + $0xe0] sm:$0xff]  ;;  %v1608_v38 = vld [vmem:[#allocation7 + $0xf0] sm:$0xff]  ;;  %s5759_s23 = sshll.u32 %s9015_s27, 4  ;;  %s6118_s3 = sshll.u32 %s5756_s8, 7  ;;  %s11861_s23 = int_to_ptr.vmem [resolvable:$true] %s5759_s23 }
 0x297   : > { %1718 = vmatprep.mubr.f32.mxu0 %v1547_v17  ;;  %v1611_v52 = vld [vmem:[#allocation7 + $0x108] sm:$0xff]  ;;  %v1613_v56 = vld [vmem:[#allocation7 + $0x118] sm:$0xff]  ;;  %v6988_v62 = vpack.c.bf16 %v1608_v38, %v1606_v34  ;;  %v1610_v0 = vld [vmem:[#allocation7 + $0x100] sm:$0xff]  ;;  %s8457_s24 = scalar_lea.vmem %s11861_s23, 4096 }
 0x298   : > { %6969 = vmatpush1.bf16.msra.mxu0 %v6968_v54  ;;  %v6990_v63 = vpack.c.bf16 %v1613_v56, %v1611_v52  ;;  %v1612_v5 = vld [vmem:[#allocation7 + $0x110] sm:$0xff]  ;;  %v1615_v14 = vld [vmem:[#allocation7 + $0x128] sm:$0xff]  ;;  %v1617_v15 = vld [vmem:[#allocation7 + $0x138] sm:$0xff]  ;;  %p8458_p12 = scmp.ne.s32.totalorder %s11861_s23, %s8457_s24 }
 0x299   : > { %6971 = vmatprep.subr.bf16.mxu0 %v6970_v59  ;;  %v1614_v18 = vld [vmem:[#allocation7 + $0x120] sm:$0xff]  ;;  %v1616_v23 = vld [vmem:[#allocation7 + $0x130] sm:$0xff]  ;;  %v6992_v32 = vpack.c.bf16 %v1612_v5, %v1610_v0  ;;  %v1619_v33 = vld [vmem:[#allocation7 + $0x148] sm:$0xff]  ;;  %v6994_v53 = vpack.c.bf16 %v1617_v15, %v1615_v14  ;;  %p12406_p1 = scmp.ne.s32.totalorder %s12403_s26, 0 }
 0x29a   : > { %v1621_v35 = vld [vmem:[#allocation7 + $0x158] sm:$0xff]  ;;  %v2650_v41 = vld [vmem:[#allocation2 + $0x200] sm:$0xff]  ;;  %vm9484_vm1 = vmpackc.low %vm1943_vm0, %vm1943_vm0  ;;  %v6996_v51 = vpack.c.bf16 %v1616_v23, %v1614_v18 }
 0x29b   : > { %v2651_v48 = vld [vmem:[#allocation2 + $0x220] sm:$0xff]  ;;  %v6998_v10 = vpack.c.bf16 %v1621_v35, %v1619_v33  ;;  %v1620_v46 = vld [vmem:[#allocation7 + $0x150] sm:$0xff]  ;;  %v1623_v54 = vld [vmem:[#allocation7 + $0x168] sm:$0xff]  ;;  %p8459_p13 = pnand %p8458_p12, %p12406_p1 }
 0x29c   : > { %6973 = vmatpush1.bf16.msra.mxu0 %v6972_v11  ;;  %v2634_v49 = vld [vmem:[#allocation2] sm:$0xff]  ;;  %v7575_v58 = vpack.i.bf16 %v2651_v48, %v2650_v41  ;;  %v7022_v6 = vpack.c.bf16 %v2651_v48, %v2650_v41  ;;  %v1625_v1 = vld [vmem:[#allocation7 + $0x178] sm:$0xff]  ;;  %v1631_v34 = vld [vmem:[#allocation7 + $0x1a8] sm:$0xff] }
 0x29d   : > { %6975 = vmatprep.subr.bf16.mxu0 %v6974_v28  ;;  %v2635_v4 = vld [vmem:[#allocation2 + $0x20] sm:$0xff]  ;;  %v7002_v45 = vpack.c.bf16 %v1625_v1, %v1623_v54  ;;  %v1629_v37 = vld [vmem:[#allocation7 + $0x198] sm:$0xff]  ;;  %v1632_v23 = vld [vmem:[#allocation7 + $0x1b0] sm:$0xff]  ;;  %p8460_p10 = pneg %p8459_p13 }
 0x29e   : > { %v2652_v39 = vld [vmem:[#allocation2 + $0x240] sm:$0xff]  ;;  %v7025_v29 = vpack.c.bf16 %v2635_v4, %v2634_v49  ;;  %7576 = vrot.lane.b32.xlu0 %v7575_v58, %s8626_s14  ;;  %v7580_v36 = vpack.i.bf16 %v2635_v4, %v2634_v49  ;;  %7024 = vmatprep.subr.msk.bf16.mxu1 %vm9484_vm1, %v7022_v6  ;;  %v1633_v38 = vld [vmem:[#allocation7 + $0x1b8] sm:$0xff]  ;;  %v1635_v33 = vld [vmem:[#allocation7 + $0x1c8] sm:$0xff] }
 0x29f   : > { %v2653_v19 = vld [vmem:[#allocation2 + $0x260] sm:$0xff]  ;;  %v7010_v15 = vpack.c.bf16 %v1633_v38, %v1631_v34  ;;  %v1637_v35 = vld [vmem:[#allocation7 + $0x1d8] sm:$0xff] }
 0x2a0   : > { %6977 = vmatpush1.bf16.msra.mxu0 %v6976_v60  ;;  %v2636_v31 = vld [vmem:[#allocation2 + $0x40] sm:$0xff]  ;;  %v7585_v50 = vpack.i.bf16 %v2653_v19, %v2652_v39  ;;  %v7028_v44 = vpack.c.bf16 %v2653_v19, %v2652_v39  ;;  %7027 = vmatpush3.bf16.xpose.msk.msra.mxu1 %vm9484_vm1, %v7025_v29  ;;  %v1624_v60 = vld [vmem:[#allocation7 + $0x170] sm:$0xff]  ;;  %v7014_v39 = vpack.c.bf16 %v1637_v35, %v1635_v33  ;;  %v1573_v35 = vld [vmem:[%s9479_s5 + $0xd8] sm:$0xff] }
 0x2a1   : > { %6979 = vmatprep.subr.bf16.mxu0 %v6978_v40  ;;  %v2637_v43 = vld [vmem:[#allocation2 + $0x60] sm:$0xff]  ;;  %v1627_v40 = vld [vmem:[#allocation7 + $0x188] sm:$0xff]  ;;  %v1636_v29 = vld [vmem:[#allocation7 + $0x1d0] sm:$0xff] }
 0x2a2   : > { %v2654_v57 = vld [vmem:[#allocation2 + $0x280] sm:$0xff]  ;;  %7586 = vrot.lane.b32.xlu1 %v7585_v50, %s8626_s14  ;;  %v7590_v59 = vpack.i.bf16 %v2637_v43, %v2636_v31  ;;  %7030 = vmatprep.subr.msk.bf16.mxu1 %vm9484_vm1, %v7028_v44  ;;  %v7031_v28 = vpack.c.bf16 %v2637_v43, %v2636_v31  ;;  %v7006_v21 = vpack.c.bf16 %v1629_v37, %v1627_v40  ;;  %v1639_v31 = vld [vmem:[#allocation7 + $0x1e8] sm:$0xff]  ;;  %v1641_v43 = vld [vmem:[#allocation7 + $0x1f8] sm:$0xff] }
 0x2a3   : > { %v2655_v2 = vld [vmem:[#allocation2 + $0x2a0] sm:$0xff]  ;;  %7581 = vrot.lane.b32.xlu0 %v7580_v36, %s8626_s14  ;;  %v1548_v40 = vld [vmem:[%s9479_s5 + $0x10] sm:$0xff] }
 0x2a4   : > { %6981 = vmatpush1.bf16.msra.mxu0 %v6980_v7  ;;  %v1618_v27 = vld [vmem:[#allocation7 + $0x140] sm:$0xff]  ;;  %v7595_v61 = vpack.i.bf16 %v2655_v2, %v2654_v57  ;;  %v7034_v22 = vpack.c.bf16 %v2655_v2, %v2654_v57 }
 0x2a5   : > { %6983 = vmatprep.subr.bf16.mxu0 %v6982_v8  ;;  %v2638_v13 = vld [vmem:[#allocation2 + $0x80] sm:$0xff]  ;;  %v7000_v11 = vpack.c.bf16 %v1620_v46, %v1618_v27  ;;  %v7018_v46 = vpack.c.bf16 %v1641_v43, %v1639_v31 }
 0x2a6   : > { %v2639_v20 = vld [vmem:[#allocation2 + $0xa0] sm:$0xff]  ;;  %7591 = vrot.lane.b32.xlu1 %v7590_v59, %s8626_s14  ;;  %v1640_v59 = vld [vmem:[#allocation7 + $0x1f0] sm:$0xff] }
 0x2a7   : > { %v2656_v24 = vld [vmem:[#allocation2 + $0x2c0] sm:$0xff]  ;;  %v7600_v47 = vpack.i.bf16 %v2639_v20, %v2638_v13  ;;  %7596 = vrot.lane.b32.xlu0 %v7595_v61, %s8626_s14  ;;  %v7037_v0 = vpack.c.bf16 %v2639_v20, %v2638_v13 }
 0x2a8   : > { %6985 = vmatpush1.bf16.msra.mxu0 %v6984_v26  ;;  %v2657_v42 = vld [vmem:[#allocation2 + $0x2e0] sm:$0xff]  ;;  %7033 = vmatpush3.bf16.xpose.msk.msra.mxu1 %vm9484_vm1, %v7031_v28  ;;  %v1628_v26 = vld [vmem:[#allocation7 + $0x190] sm:$0xff] }
 0x2a9   : > { %6987 = vmatprep.subr.bf16.mxu0 %v6986_v30  ;;  %v1622_v55 = vld [vmem:[#allocation7 + $0x160] sm:$0xff]  ;;  %v7605_v8 = vpack.i.bf16 %v2657_v42, %v2656_v24  ;;  %7036 = vmatprep.subr.msk.bf16.mxu1 %vm9484_vm1, %v7034_v22 }
 0x2aa   : > { %v9498_v3 = vld [vmem:[#allocation2 + $0xc0] sm:$0xff]  ;;  %v7004_v12 = vpack.c.bf16 %v1624_v60, %v1622_v55  ;;  %7601 = vrot.lane.b32.xlu1 %v7600_v47, %s8626_s14  ;;  %v1549_v55 = vld [vmem:[%s9479_s5 + $0x18] sm:$0xff]  ;;  %v1551_v47 = vld [vmem:[%s9479_s5 + $0x28] sm:$0xff] }
 0x2ab   : > { %v9500_v7 = vld [vmem:[#allocation2 + $0xe0] sm:$0xff]  ;;  %7606 = vrot.lane.b32.xlu0 %v7605_v8, %s8626_s14  ;;  %v1552_v8 = vld [vmem:[%s9479_s5 + $0x30] sm:$0xff] }
 0x2ac   : > { %6989 = vmatpush1.bf16.msra.mxu0 %v6988_v62  ;;  %v9505_v16 = vld [vmem:[#allocation2 + $0x300] sm:$0xff]  ;;  %v7610_v30 = vpack.i.bf16 %v9500_v7, %v9498_v3  ;;  %v7043_v2 = vpack.c.bf16 %v9500_v7, %v9498_v3  ;;  %v1553_v3 = vld [vmem:[%s9479_s5 + $0x38] sm:$0xff] }
 0x2ad   : > { %6991 = vmatprep.subr.bf16.mxu0 %v6990_v63  ;;  %v9507_v17 = vld [vmem:[#allocation2 + $0x320] sm:$0xff] }
 0x2ae   : > { %v1626_v25 = vld [vmem:[#allocation7 + $0x180] sm:$0xff]  ;;  %v7615_v52 = vpack.i.bf16 %v9507_v17, %v9505_v16  ;;  %7611 = vrot.lane.b32.xlu1 %v7610_v30, %s8626_s14  ;;  %v7046_v1 = vpack.c.bf16 %v9507_v17, %v9505_v16  ;;  %v1559_v30 = vld [vmem:[%s9479_s5 + $0x68] sm:$0xff] }
 0x2af   : > { %v9517_v56 = vld [vmem:[#allocation2 + $0x100] sm:$0xff]  ;;  %v7008_v63 = vpack.c.bf16 %v1628_v26, %v1626_v25  ;;  %v1556_v26 = vld [vmem:[%s9479_s5 + $0x50] sm:$0xff] }
 0x2b0   : > { %6993 = vmatpush1.bf16.msra.mxu0 %v6992_v32  ;;  %v9519_v62 = vld [vmem:[#allocation2 + $0x120] sm:$0xff]  ;;  %v7040_v32 = vpack.c.bf16 %v2657_v42, %v2656_v24  ;;  %7616 = vrot.lane.b32.xlu0 %v7615_v52, %s8626_s14  ;;  %v1561_v52 = vld [vmem:[%s9479_s5 + $0x78] sm:$0xff] }
 0x2b1   : > { %6995 = vmatprep.subr.bf16.mxu0 %v6994_v53  ;;  %v9521_v5 = vld [vmem:[#allocation2 + $0x340] sm:$0xff]  ;;  %v7620_v41 = vpack.i.bf16 %v9519_v62, %v9517_v56  ;;  %7039 = vmatpush3.bf16.xpose.msk.msra.mxu1 %vm9484_vm1, %v7037_v0  ;;  %v1565_v0 = vld [vmem:[%s9479_s5 + $0x98] sm:$0xff] }
 0x2b2   : > { %v9523_v14 = vld [vmem:[#allocation2 + $0x360] sm:$0xff]  ;;  %7042 = vmatprep.subr.msk.bf16.mxu1 %vm9484_vm1, %v7040_v32  ;;  %v1571_v32 = vld [vmem:[%s9479_s5 + $0xc8] sm:$0xff] }
 0x2b3   : > { %v1630_v18 = vld [vmem:[#allocation7 + $0x1a0] sm:$0xff]  ;;  %v7625_v48 = vpack.i.bf16 %v9523_v14, %v9521_v5  ;;  %7621 = vrot.lane.b32.xlu1 %v7620_v41, %s8626_s14  ;;  %v7052_v60 = vpack.c.bf16 %v9523_v14, %v9521_v5  ;;  %v1564_v5 = vld [vmem:[%s9479_s5 + $0x90] sm:$0xff]  ;;  %v1567_v14 = vld [vmem:[%s9479_s5 + $0xa8] sm:$0xff] }
 0x2b4   : > { %6997 = vmatpush1.bf16.msra.mxu0 %v6996_v51  ;;  %v9531_v49 = vld [vmem:[#allocation2 + $0x140] sm:$0xff]  ;;  %v7012_v58 = vpack.c.bf16 %v1632_v23, %v1630_v18  ;;  %v1569_v18 = vld [vmem:[%s9479_s5 + $0xb8] sm:$0xff]  ;;  %v1568_v23 = vld [vmem:[%s9479_s5 + $0xb0] sm:$0xff] }
 0x2b5   : > { %6999 = vmatprep.subr.bf16.mxu0 %v6998_v10  ;;  %v9533_v53 = vld [vmem:[#allocation2 + $0x160] sm:$0xff]  ;;  %7626 = vrot.lane.b32.xlu0 %v7625_v48, %s8626_s14  ;;  %v1572_v41 = vld [vmem:[%s9479_s5 + $0xd0] sm:$0xff]  ;;  %v1575_v48 = vld [vmem:[%s9479_s5 + $0xe8] sm:$0xff] }
 0x2b6   : > { %v9537_v4 = vld [vmem:[#allocation2 + $0x380] sm:$0xff]  ;;  %v7630_v36 = vpack.i.bf16 %v9533_v53, %v9531_v49  ;;  %v7055_v22 = vpack.c.bf16 %v9533_v53, %v9531_v49  ;;  %v1577_v53 = vld [vmem:[%s9479_s5 + $0xf8] sm:$0xff] }
 0x2b7   : > { %v2663_v6 = vld [vmem:[#allocation2 + $0x3a0] sm:$0xff] }
 0x2b8   : > { %7001 = vmatpush1.bf16.msra.mxu0 %v7000_v11  ;;  %v1634_v19 = vld [vmem:[#allocation7 + $0x1c0] sm:$0xff]  ;;  %v7635_v50 = vpack.i.bf16 %v2663_v6, %v9537_v4  ;;  %7631 = vrot.lane.b32.xlu1 %v7630_v36, %s8626_s14  ;;  %v7058_v7 = vpack.c.bf16 %v2663_v6, %v9537_v4 }
 0x2b9   : > { %7003 = vmatprep.subr.bf16.mxu0 %v7002_v45  ;;  %v2646_v44 = vld [vmem:[#allocation2 + $0x180] sm:$0xff]  ;;  %v7016_v57 = vpack.c.bf16 %v1636_v29, %v1634_v19  ;;  %7045 = vmatpush3.bf16.xpose.msk.msra.mxu1 %vm9484_vm1, %v7043_v2  ;;  %v7049_v45 = vpack.c.bf16 %v9519_v62, %v9517_v56  ;;  %v1560_v56 = vld [vmem:[%s9479_s5 + $0x70] sm:$0xff]  ;;  %v1563_v62 = vld [vmem:[%s9479_s5 + $0x88] sm:$0xff]  ;;  %v1644_v29 = vlaneseq }
 0x2ba   : > { %v2647_v51 = vld [vmem:[#allocation2 + $0x1a0] sm:$0xff]  ;;  %7636 = vrot.lane.b32.xlu0 %v7635_v50, %s8626_s14  ;;  %7048 = vmatprep.subr.msk.bf16.mxu1 %vm9484_vm1, %v7046_v1 }
 0x2bb   : > { %v2664_v10 = vld [vmem:[#allocation2 + $0x3c0] sm:$0xff]  ;;  %v7640_v13 = vpack.i.bf16 %v2647_v51, %v2646_v44  ;;  %v7061_v17 = vpack.c.bf16 %v2647_v51, %v2646_v44  ;;  %v9613_v31 = vshrl.u32 %v1644_v29, 7 }
 0x2bc   : > { %7005 = vmatpush1.bf16.msra.mxu0 %v7004_v12  ;;  %v2665_v27 = vld [vmem:[#allocation2 + $0x3e0] sm:$0xff]  ;;  %v1555_v12 = vld [vmem:[%s9479_s5 + $0x48] sm:$0xff] }
 0x2bd   : > { %7007 = vmatprep.subr.bf16.mxu0 %v7006_v21  ;;  %v1638_v54 = vld [vmem:[#allocation7 + $0x1e0] sm:$0xff]  ;;  %v7645_v20 = vpack.i.bf16 %v2665_v27, %v2664_v10  ;;  %7641 = vrot.lane.b32.xlu1 %v7640_v13, %s8626_s14  ;;  %v1557_v21 = vld [vmem:[%s9479_s5 + $0x58] sm:$0xff]  ;;  %v7064_v25 = vpack.c.bf16 %v2665_v27, %v2664_v10  ;;  %12166 = vst [vmem:[#allocation39_spill] sm:$0xff] %v9613_v31  ;;  %v11996_v43 = vsub.s32 0, %v9613_v31 }
 0x2be   : > { %v2648_v61 = vld [vmem:[#allocation2 + $0x1c0] sm:$0xff]  ;;  %v7020_v28 = vpack.c.bf16 %v1640_v59, %v1638_v54 }
 0x2bf   : > { %v2649_v11 = vld [vmem:[#allocation2 + $0x1e0] sm:$0xff]  ;;  %7646 = vrot.lane.b32.xlu0 %v7645_v20, %s8626_s14 }
 0x2c0   : > { %7009 = vmatpush1.bf16.msra.mxu0 %v7008_v63  ;;  %v7650_v24 = vpack.i.bf16 %v2649_v11, %v2648_v61  ;;  %v1546_v42 = vld [vmem:[%s9479_s5] sm:$0xff]  ;;  %v7067_v38 = vpack.c.bf16 %v2649_v11, %v2648_v61 }
 0x2c1   : > { %7011 = vmatprep.subr.bf16.mxu0 %v7010_v15  ;;  %7051 = vmatpush3.bf16.xpose.msk.msra.mxu1 %vm9484_vm1, %v7049_v45  ;;  %v1550_v37 = vld [vmem:[%s9479_s5 + $0x20] sm:$0xff] }
 0x2c2   : > { %7651 = vrot.lane.b32.xlu1 %v7650_v24, %s8626_s14  ;;  %7054 = vmatprep.subr.msk.bf16.mxu1 %vm9484_vm1, %v7052_v60  ;;  %v1554_v16 = vld [vmem:[%s9479_s5 + $0x40] sm:$0xff] }
 0x2c3   : > { %v1558_v34 = vld [vmem:[%s9479_s5 + $0x60] sm:$0xff] }
 0x2c4   : > { %7013 = vmatpush1.bf16.msra.mxu0 %v7012_v58  ;;  %v1562_v63 = vld [vmem:[%s9479_s5 + $0x80] sm:$0xff]  ;;  %v1576_v58 = vld [vmem:[%s9479_s5 + $0xf0] sm:$0xff] }
 0x2c5   : > { %7015 = vmatprep.subr.bf16.mxu0 %v7014_v39  ;;  %v1566_v15 = vld [vmem:[%s9479_s5 + $0xa0] sm:$0xff] }
 0x2c6   : > { %v1570_v33 = vld [vmem:[%s9479_s5 + $0xc0] sm:$0xff] }
 0x2c7   : > { %v1574_v49 = vld [vmem:[%s9479_s5 + $0xe0] sm:$0xff] }
 0x2c8   : > { %7017 = vmatpush1.bf16.msra.mxu0 %v7016_v57  ;;  %v9619_v36 = vld [vmem:[%s12167_s2] sm:$0x3]  ;;  %s11873_s2 = scalar_lea.sflag [#allocation6], %s417_s20 }
 0x2c9   : > { %7019 = vmatprep.subr.bf16.mxu0 %v7018_v46  ;;  %7057 = vmatpush3.bf16.xpose.msk.msra.mxu1 %vm9484_vm1, %v7055_v22  ;;  %v9624_v44 = vrot.slane %v9619_v36, %v11996_v43 }
 0x2ca   : > { %7060 = vmatprep.subr.msk.bf16.mxu1 %vm9484_vm1, %v7058_v7 }
 0x2cc   : > { %7021 = vmatpush1.bf16.msra.mxu0 %v7020_v28 }
 0x2cf   : > { %1719 = vmatmul.mubr.f32.vlgmr.msra.gmra.mrb[0].mxu0 %v1546_v42 }
 0x2d0   : > { %1724 = vmatprep.mubr.f32.mxu0 %v1549_v55 }
 0x2d1   : > { %7063 = vmatpush3.bf16.xpose.msk.msra.mxu1 %vm9484_vm1, %v7061_v17 }
 0x2d2   : > { %7066 = vmatprep.subr.msk.bf16.mxu1 %vm9484_vm1, %v7064_v25 }
 0x2d3   : > { %1725 = vmatmul.mubr.f32.gmra.mrb[2].mxu0 %v1548_v40 }
 0x2d4   : > { %1730 = vmatprep.mubr.f32.mxu0 %v1551_v47 }
 0x2d7   : > { %1731 = vmatmul.mubr.f32.gmra.mrb[4].mxu0 %v1550_v37 }
 0x2d8   : > { %1736 = vmatprep.mubr.f32.mxu0 %v1553_v3 }
 0x2d9   : > { %7069 = vmatpush3.bf16.xpose.msk.msra.mxu1 %vm9484_vm1, %v7067_v38 }
 0x2db   : > { %1737 = vmatmul.mubr.f32.gmra.mrb[6].mxu0 %v1552_v8 }
 0x2dc   : > { %1742 = vmatprep.mubr.f32.mxu0 %v1555_v12 }
 0x2df   : > { %1743 = vmatmul.mubr.f32.gmra.mrb[8].mxu0 %v1554_v16 }
 0x2e0   : > { %1748 = vmatprep.mubr.f32.mxu0 %v1557_v21 }
 0x2e3   : > { %1749 = vmatmul.mubr.f32.gmra.mrb[10].mxu0 %v1556_v26 }
 0x2e4   : > { %1754 = vmatprep.mubr.f32.mxu0 %v1559_v30 }
 0x2e7   : > { %1755 = vmatmul.mubr.f32.gmra.mrb[12].mxu0 %v1558_v34 }
 0x2e8   : > { %1760 = vmatprep.mubr.f32.mxu0 %v1561_v52 }
 0x2eb   : > { %1761 = vmatmul.mubr.f32.gmra.mrb[14].mxu0 %v1560_v56 }
 0x2ec   : > { %1766 = vmatprep.mubr.f32.mxu0 %v1563_v62 }
 0x2ef   : > { %1767 = vmatmul.mubr.f32.gmra.mrb[16].mxu0 %v1562_v63 }
 0x2f0   : > { %1772 = vmatprep.mubr.f32.mxu0 %v1565_v0 }
 0x2f3   : > { %1773 = vmatmul.mubr.f32.gmra.mrb[18].mxu0 %v1564_v5 }
 0x2f4   : > { %1778 = vmatprep.mubr.f32.mxu0 %v1567_v14 }
 0x2f7   : > { %1779 = vmatmul.mubr.f32.gmra.mrb[20].mxu0 %v1566_v15 }
 0x2f8   : > { %1784 = vmatprep.mubr.f32.mxu0 %v1569_v18 }
 0x2fb   : > { %1785 = vmatmul.mubr.f32.gmra.mrb[22].mxu0 %v1568_v23 }
 0x2fc   : > { %1790 = vmatprep.mubr.f32.mxu0 %v1571_v32 }
 0x2ff   : > { %1791 = vmatmul.mubr.f32.gmra.mrb[24].mxu0 %v1570_v33 }
 0x300   : > { %1796 = vmatprep.mubr.f32.mxu0 %v1573_v35 }
 0x303   : > { %1797 = vmatmul.mubr.f32.gmra.mrb[26].mxu0 %v1572_v41 }
 0x304   : > { %1802 = vmatprep.mubr.f32.mxu0 %v1575_v48 }
 0x307   : > { %1803 = vmatmul.mubr.f32.gmra.mrb[28].mxu0 %v1574_v49 }
 0x308   : > { %1808 = vmatprep.mubr.f32.mxu0 %v1577_v53 }
 0x30b   : > { %1809 = vmatmul.mubr.f32.gmra.mrb[30].mxu0 %v1576_v58 }
 0x310   : > { %v7577_v4 = vpop.permute.xlu0 %7576 }
 0x311   : > { %v7579_v6 = vunpack.i.h.bf16 %v7577_v4  ;;  %v7578_v39 = vunpack.i.l.bf16 %v7577_v4 }
 0x313   : > { %v7102_v19 = vpack.c.bf16 %v7579_v6, %v7578_v39 }
 0x314   : > { %v7587_v51 = vpop.permute.xlu1 %7586 }
 0x315   : > { %7104 = vmatprep.subr.msk.bf16.mxu1 %vm9484_vm1, %v7102_v19  ;;  %v7582_v50 = vpop.permute.xlu0 %7581  ;;  %v7589_v27 = vunpack.i.h.bf16 %v7587_v51  ;;  %v7588_v46 = vunpack.i.l.bf16 %v7587_v51 }
 0x316   : > { %v7584_v57 = vunpack.i.h.bf16 %v7582_v50  ;;  %v7583_v2 = vunpack.i.l.bf16 %v7582_v50 }
 0x317   : > { %v7108_v61 = vpack.c.bf16 %v7589_v27, %v7588_v46 }
 0x318   : > { %v7105_v13 = vpack.c.bf16 %v7584_v57, %v7583_v2  ;;  %v7592_v11 = vpop.permute.xlu1 %7591 }
 0x319   : > { %v7597_v42 = vpop.permute.xlu0 %7596  ;;  %v7594_v55 = vunpack.i.h.bf16 %v7592_v11  ;;  %v7593_v60 = vunpack.i.l.bf16 %v7592_v11 }
 0x31a   : > { %v7599_v47 = vunpack.i.h.bf16 %v7597_v42  ;;  %v7598_v37 = vunpack.i.l.bf16 %v7597_v42 }
 0x31b   : > { %v7111_v8 = vpack.c.bf16 %v7594_v55, %v7593_v60 }
 0x31c   : > { %v7114_v16 = vpack.c.bf16 %v7599_v47, %v7598_v37  ;;  %v7602_v17 = vpop.permute.xlu1 %7601 }
 0x31d   : > { %v7607_v26 = vpop.permute.xlu0 %7606  ;;  %v7604_v34 = vunpack.i.h.bf16 %v7602_v17  ;;  %v7603_v38 = vunpack.i.l.bf16 %v7602_v17 }
 0x31e   : > { %v7609_v56 = vunpack.i.h.bf16 %v7607_v26  ;;  %v7608_v62 = vunpack.i.l.bf16 %v7607_v26 }
 0x31f   : > { %v7117_v14 = vpack.c.bf16 %v7604_v34, %v7603_v38 }
 0x320   : > { %v7120_v18 = vpack.c.bf16 %v7609_v56, %v7608_v62  ;;  %v7612_v23 = vpop.permute.xlu1 %7611 }
 0x321   : > { %v7614_v48 = vunpack.i.h.bf16 %v7612_v23  ;;  %v7613_v49 = vunpack.i.l.bf16 %v7612_v23 }
 0x322   : > { %v7617_v35 = vpop.permute.xlu0 %7616 }
 0x323   : > { %v7619_v58 = vunpack.i.h.bf16 %v7617_v35  ;;  %v7618_v4 = vunpack.i.l.bf16 %v7617_v35  ;;  %v7123_v29 = vpack.c.bf16 %v7614_v48, %v7613_v49 }
 0x325   : > { %v7126_v51 = vpack.c.bf16 %v7619_v58, %v7618_v4  ;;  %v7622_v57 = vpop.permute.xlu1 %7621  ;;  %v4432_v58 = vld [vmem:[#allocation2 + $0x228] sm:$0xff] }
 0x327   : > { %v7627_v27 = vpop.permute.xlu0 %7626 }
 0x3a2   : > { %v1720_v10 = vpop.f32.mrb[0].mxu0 }
 0x3a3   : > { %v1721_v54 = vadd.f32 %v1720_v10, %v9624_v44  ;;  %v9627_v59 = vpop.f32.mrb[1].mxu0 }
 0x3a5   : > { %v1815_v1 = vmul.f32 0.125, %v1721_v54  ;;  %v7624_v54 = vunpack.i.h.bf16 %v7622_v57 }
 0x3a6   : > { %v1726_v20 = vpop.f32.mrb[2].mxu0 }
 0x3a7   : > { %v1727_v28 = vadd.f32 %v1726_v20, %v9624_v44  ;;  %v9630_v24 = vpop.f32.mrb[3].mxu0  ;;  %2698 = vrot.lane.b32.xlu0 %v1815_v1, %s8626_s14  ;;  %6158 = vmatprep.mubr.msk.f32.mxu1 %vm1943_vm0, %v1815_v1  ;;  %v7629_v20 = vunpack.i.h.bf16 %v7627_v27 }
 0x3a8   : > { %6159 = vmatmul.mubr.msk.f32.vlgmr.msra.gmra.mrb[0].mxu1 %vm1943_vm0, %v1815_v1  ;;  %v7623_v1 = vunpack.i.l.bf16 %v7622_v57 }
 0x3a9   : > { %v1817_v45 = vmul.f32 0.125, %v1727_v28  ;;  %7107 = vmatpush3.bf16.xpose.msk.msra.mxu1 %vm9484_vm1, %v7105_v13 }
 0x3aa   : > { %v1732_v40 = vpop.f32.mrb[4].mxu0  ;;  %7110 = vmatprep.subr.msk.bf16.mxu1 %vm9484_vm1, %v7108_v61  ;;  %v7628_v61 = vunpack.i.l.bf16 %v7627_v27 }
 0x3ab   : > { %v1733_v22 = vadd.f32 %v1732_v40, %v9624_v44  ;;  %v9640_v3 = vpop.f32.mrb[5].mxu0  ;;  %2700 = vrot.lane.b32.xlu1 %v1817_v45, %s8626_s14  ;;  %6160 = vmatprep.mubr.msk.f32.mxu1 %vm1943_vm0, %v1817_v45  ;;  %v7632_v40 = vpop.permute.xlu1 %7631 }
 0x3ac   : > { %6161 = vmatmul.mubr.msk.f32.gmra.mrb[2].mxu1 %vm1943_vm0, %v1817_v45  ;;  %v7129_v45 = vpack.c.bf16 %v7624_v54, %v7623_v1  ;;  %v7132_v60 = vpack.c.bf16 %v7629_v20, %v7628_v61 }
 0x3ad   : > { %v1819_v7 = vmul.f32 0.125, %v1733_v22  ;;  %v7637_v22 = vpop.permute.xlu0 %7636 }
 0x3ae   : > { %v1738_v12 = vpop.f32.mrb[6].mxu0  ;;  %v7639_v17 = vunpack.i.h.bf16 %v7637_v22 }
 0x3af   : > { %v1739_v21 = vadd.f32 %v1738_v12, %v9624_v44  ;;  %v9646_v25 = vpop.f32.mrb[7].mxu0  ;;  %2702 = vrot.lane.b32.xlu0 %v1819_v7, %s8626_s14  ;;  %6162 = vmatprep.mubr.msk.f32.mxu1 %vm1943_vm0, %v1819_v7  ;;  %v7633_v12 = vunpack.i.l.bf16 %v7632_v40  ;;  %v7642_v62 = vpop.permute.xlu1 %7641 }
 0x3b0   : > { %6163 = vmatmul.mubr.msk.f32.gmra.mrb[4].mxu1 %vm1943_vm0, %v1819_v7  ;;  %v7643_v23 = vunpack.i.l.bf16 %v7642_v62 }
 0x3b1   : > { %v1821_v30 = vmul.f32 0.125, %v1739_v21  ;;  %7113 = vmatpush3.bf16.xpose.msk.msra.mxu1 %vm9484_vm1, %v7111_v8  ;;  %v7634_v8 = vunpack.i.h.bf16 %v7632_v40  ;;  %v7638_v21 = vunpack.i.l.bf16 %v7637_v22 }
 0x3b2   : > { %v1744_v52 = vpop.f32.mrb[8].mxu0  ;;  %7116 = vmatprep.subr.msk.bf16.mxu1 %vm9484_vm1, %v7114_v16 }
 0x3b3   : > { %v1745_v63 = vadd.f32 %v1744_v52, %v9624_v44  ;;  %v9656_v0 = vpop.f32.mrb[9].mxu0  ;;  %2704 = vrot.lane.b32.xlu1 %v1821_v30, %s8626_s14  ;;  %6164 = vmatprep.mubr.msk.f32.mxu1 %vm1943_vm0, %v1821_v30  ;;  %v7135_v38 = vpack.c.bf16 %v7634_v8, %v7633_v12  ;;  %v7138_v56 = vpack.c.bf16 %v7639_v17, %v7638_v21  ;;  %v9757_v8 = vld [vmem:[#allocation2 + $0x8] sm:$0xff] }
 0x3b4   : > { %6165 = vmatmul.mubr.msk.f32.gmra.mrb[6].mxu1 %vm1943_vm0, %v1821_v30  ;;  %v9766_v17 = vld [vmem:[#allocation2 + $0x2a8] sm:$0xff] }
 0x3b5   : > { %v1823_v5 = vmul.f32 0.125, %v1745_v63 }
 0x3b6   : > { %v1750_v15 = vpop.f32.mrb[10].mxu0 }
 0x3b7   : > { %v1751_v32 = vadd.f32 %v1750_v15, %v9624_v44  ;;  %v9662_v33 = vpop.f32.mrb[11].mxu0  ;;  %2706 = vrot.lane.b32.xlu0 %v1823_v5, %s8626_s14  ;;  %6166 = vmatprep.mubr.msk.f32.mxu1 %vm1943_vm0, %v1823_v5 }
 0x3b8   : > { %6167 = vmatmul.mubr.msk.f32.gmra.mrb[8].mxu1 %vm1943_vm0, %v1823_v5 }
 0x3b9   : > { %v1825_v41 = vmul.f32 0.125, %v1751_v32  ;;  %7119 = vmatpush3.bf16.xpose.msk.msra.mxu1 %vm9484_vm1, %v7117_v14  ;;  %v7647_v14 = vpop.permute.xlu0 %7646 }
 0x3ba   : > { %v1756_v53 = vpop.f32.mrb[12].mxu0  ;;  %7122 = vmatprep.subr.msk.bf16.mxu1 %vm9484_vm1, %v7120_v18  ;;  %v7644_v18 = vunpack.i.h.bf16 %v7642_v62  ;;  %v7649_v35 = vunpack.i.h.bf16 %v7647_v14  ;;  %v9784_v62 = vld [vmem:[#allocation2 + $0x2e8] sm:$0xff] }
 0x3bb   : > { %v1757_v6 = vadd.f32 %v1756_v53, %v9624_v44  ;;  %v9672_v39 = vpop.f32.mrb[13].mxu0  ;;  %2708 = vrot.lane.b32.xlu1 %v1825_v41, %s8626_s14  ;;  %6168 = vmatprep.mubr.msk.f32.mxu1 %vm1943_vm0, %v1825_v41  ;;  %v4431_v53 = vld [vmem:[#allocation2 + $0x208] sm:$0xff] }
 0x3bc   : > { %6169 = vmatmul.mubr.msk.f32.gmra.mrb[10].mxu1 %vm1943_vm0, %v1825_v41  ;;  %v7648_v41 = vunpack.i.l.bf16 %v7647_v14  ;;  %v7655_v57 = vpack.i.bf16 %v4432_v58, %v4431_v53 }
 0x3bd   : > { %v1827_v19 = vmul.f32 0.125, %v1757_v6  ;;  %v7141_v6 = vpack.c.bf16 %v7644_v18, %v7643_v23  ;;  %v9797_v18 = vld [vmem:[#allocation2 + $0xa8] sm:$0xff] }
 0x3be   : > { %v1762_v50 = vpop.f32.mrb[14].mxu0  ;;  %v9799_v23 = vld [vmem:[#allocation2 + $0x308] sm:$0xff] }
 0x3bf   : > { %v1763_v2 = vadd.f32 %v1762_v50, %v9624_v44  ;;  %v9678_v10 = vpop.f32.mrb[15].mxu0  ;;  %2710 = vrot.lane.b32.xlu0 %v1827_v19, %s8626_s14  ;;  %6170 = vmatprep.mubr.msk.f32.mxu1 %vm1943_vm0, %v1827_v19 }
 0x3c0   : > { %6171 = vmatmul.mubr.msk.f32.gmra.mrb[12].mxu1 %vm1943_vm0, %v1827_v19 }
 0x3c1   : > { %v1829_v46 = vmul.f32 0.125, %v1763_v2  ;;  %7125 = vmatpush3.bf16.xpose.msk.msra.mxu1 %vm9484_vm1, %v7123_v29  ;;  %v7144_v29 = vpack.c.bf16 %v7649_v35, %v7648_v41  ;;  %v7652_v2 = vpop.permute.xlu1 %7651 }
 0x3c2   : > { %v1768_v13 = vpop.f32.mrb[16].mxu0  ;;  %7128 = vmatprep.subr.msk.bf16.mxu1 %vm9484_vm1, %v7126_v51  ;;  %v7654_v1 = vunpack.i.h.bf16 %v7652_v2 }
 0x3c3   : > { %v1769_v11 = vadd.f32 %v1768_v13, %v9624_v44  ;;  %v9688_v28 = vpop.f32.mrb[17].mxu0  ;;  %2712 = vrot.lane.b32.xlu1 %v1829_v46, %s8626_s14  ;;  %6172 = vmatprep.mubr.msk.f32.mxu1 %vm1943_vm0, %v1829_v46  ;;  %v7653_v13 = vunpack.i.l.bf16 %v7652_v2  ;;  %v9829_v2 = vld [vmem:[#allocation2 + $0x3a8] sm:$0xff] }
 0x3c4   : > { %6173 = vmatmul.mubr.msk.f32.gmra.mrb[14].mxu1 %vm1943_vm0, %v1829_v46  ;;  %v11995_v46 = vsub.s32 1, %v9613_v31 }
 0x3c5   : > { %v1831_v42 = vmul.f32 0.125, %v1769_v11  ;;  %v9742_v11 = vld [vmem:[#allocation2 + $0x248] sm:$0xff]  ;;  %v7147_v40 = vpack.c.bf16 %v7654_v1, %v7653_v13 }
 0x3c6   : > { %v1774_v55 = vpop.f32.mrb[18].mxu0  ;;  %v9837_v1 = vld [vmem:[#allocation2 + $0x148] sm:$0xff] }
 0x3c7   : > { %v1775_v47 = vadd.f32 %v1774_v55, %v9624_v44  ;;  %v9694_v37 = vpop.f32.mrb[19].mxu0  ;;  %2714 = vrot.lane.b32.xlu0 %v1831_v42, %s8626_s14  ;;  %6174 = vmatprep.mubr.msk.f32.mxu1 %vm1943_vm0, %v1831_v42  ;;  %v9750_v55 = vrot.slane %v9619_v36, %v11995_v46  ;;  %v9764_v36 = vld [vmem:[#allocation2 + $0x288] sm:$0xff] }
 0x3c8   : > { %6175 = vmatmul.mubr.msk.f32.gmra.mrb[16].mxu1 %vm1943_vm0, %v1831_v42  ;;  %v9744_v42 = vld [vmem:[#allocation2 + $0x268] sm:$0xff] }
 0x3c9   : > { %v1833_v7 = vmul.f32 0.125, %v1775_v47  ;;  %7131 = vmatpush3.bf16.xpose.msk.msra.mxu1 %vm9484_vm1, %v7129_v45  ;;  %v9839_v13 = vld [vmem:[#allocation2 + $0x168] sm:$0xff] }
 0x3ca   : > { %v1780_v16 = vpop.f32.mrb[20].mxu0  ;;  %7134 = vmatprep.subr.msk.bf16.mxu1 %vm9484_vm1, %v7132_v60 }
 0x3cb   : > { %v1781_v26 = vadd.f32 %v1780_v16, %v9624_v44  ;;  %v9704_v30 = vpop.f32.mrb[21].mxu0  ;;  %2716 = vrot.lane.b32.xlu1 %v1833_v7, %s8626_s14  ;;  %6176 = vmatprep.mubr.msk.f32.mxu1 %vm1943_vm0, %v1833_v7  ;;  %v9762_v16 = vld [vmem:[#allocation2 + $0x28] sm:$0xff] }
 0x3cc   : > { %6177 = vmatmul.mubr.msk.f32.gmra.mrb[18].mxu1 %vm1943_vm0, %v1833_v7  ;;  %v7665_v7 = vpack.i.bf16 %v9744_v42, %v9742_v11 }
 0x3cd   : > { %v1835_v34 = vmul.f32 0.125, %v1781_v26  ;;  %v7660_v26 = vpack.i.bf16 %v9762_v16, %v9757_v8 }
 0x3ce   : > { %v1786_v52 = vpop.f32.mrb[22].mxu0 }
 0x3cf   : > { %v1787_v63 = vadd.f32 %v1786_v52, %v9624_v44  ;;  %v9710_v5 = vpop.f32.mrb[23].mxu0  ;;  %2718 = vrot.lane.b32.xlu0 %v1835_v34, %s8626_s14  ;;  %6178 = vmatprep.mubr.msk.f32.mxu1 %vm1943_vm0, %v1835_v34  ;;  %v9780_v52 = vld [vmem:[#allocation2 + $0x68] sm:$0xff] }
 0x3d0   : > { %6179 = vmatmul.mubr.msk.f32.gmra.mrb[20].mxu1 %vm1943_vm0, %v1835_v34  ;;  %v7675_v34 = vpack.i.bf16 %v9766_v17, %v9764_v36 }
 0x3d1   : > { %v1837_v15 = vmul.f32 0.125, %v1787_v63  ;;  %7137 = vmatpush3.bf16.xpose.msk.msra.mxu1 %vm9484_vm1, %v7135_v38  ;;  %v9777_v38 = vld [vmem:[#allocation2 + $0x48] sm:$0xff] }
 0x3d2   : > { %v1792_v32 = vpop.f32.mrb[24].mxu0  ;;  %7140 = vmatprep.subr.msk.bf16.mxu1 %vm9484_vm1, %v7138_v56  ;;  %v9782_v56 = vld [vmem:[#allocation2 + $0x2c8] sm:$0xff]  ;;  %v7670_v63 = vpack.i.bf16 %v9780_v52, %v9777_v38 }
 0x3d3   : > { %v1793_v48 = vadd.f32 %v1792_v32, %v9624_v44  ;;  %v9720_v49 = vpop.f32.mrb[25].mxu0  ;;  %2720 = vrot.lane.b32.xlu1 %v1837_v15, %s8626_s14  ;;  %6180 = vmatprep.mubr.msk.f32.mxu1 %vm1943_vm0, %v1837_v15  ;;  %v7685_v14 = vpack.i.bf16 %v9784_v62, %v9782_v56  ;;  %v9801_v32 = vld [vmem:[#allocation2 + $0x328] sm:$0xff] }
 0x3d4   : > { %6181 = vmatmul.mubr.msk.f32.gmra.mrb[22].mxu1 %vm1943_vm0, %v1837_v15  ;;  %v9795_v15 = vld [vmem:[#allocation2 + $0x88] sm:$0xff]  ;;  %v7695_v41 = vpack.i.bf16 %v9801_v32, %v9799_v23 }
 0x3d5   : > { %v1839_v4 = vmul.f32 0.125, %v1793_v48  ;;  %v7680_v35 = vpack.i.bf16 %v9797_v18, %v9795_v15  ;;  %v9809_v48 = vld [vmem:[#allocation2 + $0xc8] sm:$0xff] }
 0x3d6   : > { %v1798_v19 = vpop.f32.mrb[26].mxu0 }
 0x3d7   : > { %v1799_v50 = vadd.f32 %v1798_v19, %v9624_v44  ;;  %v9726_v51 = vpop.f32.mrb[27].mxu0  ;;  %2722 = vrot.lane.b32.xlu0 %v1839_v4, %s8626_s14  ;;  %6182 = vmatprep.mubr.msk.f32.mxu1 %vm1943_vm0, %v1839_v4 }
 0x3d8   : > { %6183 = vmatmul.mubr.msk.f32.gmra.mrb[24].mxu1 %vm1943_vm0, %v1839_v4  ;;  %v9815_v4 = vld [vmem:[#allocation2 + $0x368] sm:$0xff] }
 0x3d9   : > { %v1841_v27 = vmul.f32 0.125, %v1799_v50  ;;  %7143 = vmatpush3.bf16.xpose.msk.msra.mxu1 %vm9484_vm1, %v7141_v6  ;;  %v9825_v50 = vld [vmem:[#allocation2 + $0x128] sm:$0xff] }
 0x3da   : > { %v1804_v54 = vpop.f32.mrb[28].mxu0  ;;  %7146 = vmatprep.subr.msk.bf16.mxu1 %vm9484_vm1, %v7144_v29  ;;  %v9823_v29 = vld [vmem:[#allocation2 + $0x108] sm:$0xff] }
 0x3db   : > { %v1805_v20 = vadd.f32 %v1804_v54, %v9624_v44  ;;  %v9737_v61 = vpop.f32.mrb[29].mxu0  ;;  %2724 = vrot.lane.b32.xlu1 %v1841_v27, %s8626_s14  ;;  %7656 = vrot.lane.b32.xlu0 %v7655_v57, %s8626_s14  ;;  %v9827_v57 = vld [vmem:[#allocation2 + $0x388] sm:$0xff] }
 0x3dc   : > { %6184 = vmatprep.mubr.msk.f32.mxu1 %vm1943_vm0, %v1841_v27  ;;  %v7715_v54 = vpack.i.bf16 %v9829_v2, %v9827_v57 }
 0x3dd   : > { %v1843_v45 = vmul.f32 0.125, %v1805_v20  ;;  %6185 = vmatmul.mubr.msk.f32.gmra.mrb[26].mxu1 %vm1943_vm0, %v1841_v27  ;;  %v7700_v27 = vpack.i.bf16 %v9825_v50, %v9823_v29  ;;  %v9841_v20 = vld [vmem:[#allocation2 + $0x3c8] sm:$0xff] }
 0x3de   : > { %v1810_v60 = vpop.f32.mrb[30].mxu0 }
 0x3df   : > { %v1811_v47 = vadd.f32 %v1810_v60, %v9624_v44  ;;  %v1812_v22 = vpop.f32.mrb[31].mxu0  ;;  %2726 = vrot.lane.b32.xlu0 %v1843_v45, %s8626_s14  ;;  %6186 = vmatprep.mubr.msk.f32.mxu1 %vm1943_vm0, %v1843_v45  ;;  %v7182_v44 = vpack.c.bf16 %v4432_v58, %v4431_v53  ;;  %v9811_v53 = vld [vmem:[#allocation2 + $0xe8] sm:$0xff]  ;;  %v7710_v60 = vpack.i.bf16 %v9839_v13, %v9837_v1 }
 0x3e0   : > { %v9760_v12 = vadd.f32 %v1812_v22, %v9750_v55  ;;  %v9813_v58 = vld [vmem:[#allocation2 + $0x348] sm:$0xff]  ;;  %v7690_v6 = vpack.i.bf16 %v9811_v53, %v9809_v48 }
 0x3e1   : > { %v1845_v21 = vmul.f32 0.125, %v1811_v47  ;;  %6187 = vmatmul.mubr.msk.f32.gmra.mrb[28].mxu1 %vm1943_vm0, %v1843_v45  ;;  %v7705_v19 = vpack.i.bf16 %v9815_v4, %v9813_v58  ;;  %v9843_v45 = vld [vmem:[#allocation2 + $0x3e8] sm:$0xff] }
 0x3e2   : > { %7149 = vmatpush3.bf16.xpose.msk.msra.mxu1 %vm9484_vm1, %v7147_v40  ;;  %v7725_v40 = vpack.i.bf16 %v9843_v45, %v9841_v20  ;;  %v9851_v47 = vld [vmem:[#allocation2 + $0x188] sm:$0xff] }
 0x3e3   : > { %2728 = vrot.lane.b32.xlu1 %v1845_v21, %s8626_s14  ;;  %7666 = vrot.lane.b32.xlu0 %v7665_v7, %s8626_s14  ;;  %v9853_v22 = vld [vmem:[#allocation2 + $0x1a8] sm:$0xff]  ;;  %v1723_v7 = vadd.f32 %v9627_v59, %v9750_v55 }
 0x3e4   : > { %6188 = vmatprep.mubr.msk.f32.mxu1 %vm1943_vm0, %v1845_v21  ;;  %7184 = vmatprep.subr.msk.bf16.mxu1 %vm9484_vm1, %v7182_v44  ;;  %v7720_v44 = vpack.i.bf16 %v9853_v22, %v9851_v47 }
 0x3e5   : > { %6189 = vmatmul.mubr.msk.f32.gmra.mrb[30].mxu1 %vm1943_vm0, %v1845_v21  ;;  %v9861_v21 = vld [vmem:[#allocation2 + $0x1c8] sm:$0xff] }
 0x3e7   : > { %7661 = vrot.lane.b32.xlu1 %v7660_v26, %s8626_s14  ;;  %7676 = vrot.lane.b32.xlu0 %v7675_v34, %s8626_s14  ;;  %v9863_v26 = vld [vmem:[#allocation2 + $0x1e8] sm:$0xff]  ;;  %v9865_v34 = vmul.f32 0.125, %v1723_v7  ;;  %v1777_v7 = vadd.f32 %v9694_v37, %v9750_v55  ;;  %v1807_v37 = vadd.f32 %v9737_v61, %v9750_v55  ;;  %v7188_v61 = vpack.c.bf16 %v9744_v42, %v9742_v11 }
 0x3e8   : > { %v7730_v59 = vpack.i.bf16 %v9863_v26, %v9861_v21 }
 0x3eb   : > { %7671 = vrot.lane.b32.xlu1 %v7670_v63, %s8626_s14  ;;  %7686 = vrot.lane.b32.xlu0 %v7685_v14, %s8626_s14  ;;  %v1735_v63 = vadd.f32 %v9640_v3, %v9750_v55  ;;  %v1729_v14 = vadd.f32 %v9630_v24, %v9750_v55  ;;  %v1759_v24 = vadd.f32 %v9672_v39, %v9750_v55 }
 0x3ed   : > { %v9883_v3 = vmul.f32 0.125, %v1729_v14  ;;  %v2667_v14 = vld [vmem:[#allocation2 + $0x30] sm:$0xff] }
 0x3ef   : > { %7681 = vrot.lane.b32.xlu1 %v7680_v35, %s8626_s14  ;;  %7696 = vrot.lane.b32.xlu0 %v7695_v41, %s8626_s14  ;;  %v9876_v35 = vmul.f32 0.125, %v1735_v63  ;;  %v1747_v41 = vadd.f32 %v9656_v0, %v9750_v55  ;;  %v1789_v63 = vadd.f32 %v9710_v5, %v9750_v55 }
 0x3f3   : > { %7691 = vrot.lane.b32.xlu1 %v7690_v6, %s8626_s14  ;;  %7706 = vrot.lane.b32.xlu0 %v7705_v19, %s8626_s14  ;;  %v1741_v6 = vadd.f32 %v9646_v25, %v9750_v55  ;;  %v9887_v19 = vmul.f32 0.125, %v1747_v41  ;;  %v1771_v25 = vadd.f32 %v9688_v28, %v9750_v55  ;;  %v9943_v41 = vmul.f32 0.125, %v1789_v63  ;;  %v9976_v63 = vld [vmem:[#allocation2 + $0x50] sm:$0xff] }
 0x3f5   : > { %v9895_v0 = vmul.f32 0.125, %v1741_v6  ;;  %v1801_v6 = vadd.f32 %v9726_v51, %v9750_v55  ;;  %v2683_v51 = vld [vmem:[#allocation2 + $0x230] sm:$0xff] }
 0x3f7   : > { %7701 = vrot.lane.b32.xlu1 %v7700_v27, %s8626_s14  ;;  %7716 = vrot.lane.b32.xlu0 %v7715_v54, %s8626_s14  ;;  %v1753_v27 = vadd.f32 %v9662_v33, %v9750_v55  ;;  %v9899_v54 = vmul.f32 0.125, %v1759_v24  ;;  %v1783_v33 = vadd.f32 %v9704_v30, %v9750_v55  ;;  %v9931_v30 = vmul.f32 0.125, %v1777_v7 }
 0x3f8   : > { %v9947_v24 = vmul.f32 0.125, %v1807_v37  ;;  %v9978_v37 = vld [vmem:[#allocation2 + $0x70] sm:$0xff] }
 0x3f9   : > { %v9907_v39 = vmul.f32 0.125, %v1753_v27  ;;  %v7185_v27 = vpack.c.bf16 %v9762_v16, %v9757_v8  ;;  %v9963_v8 = vmul.f32 0.125, %v1801_v6  ;;  %v2686_v16 = vld [vmem:[#allocation2 + $0x290] sm:$0xff]  ;;  %v7194_v6 = vpack.c.bf16 %v9766_v17, %v9764_v36 }
 0x3fb   : > { %7711 = vrot.lane.b32.xlu1 %v7710_v60, %s8626_s14  ;;  %7726 = vrot.lane.b32.xlu0 %v7725_v40, %s8626_s14  ;;  %v1765_v60 = vadd.f32 %v9678_v10, %v9750_v55  ;;  %v9911_v40 = vmul.f32 0.125, %v1771_v25  ;;  %v1795_v10 = vadd.f32 %v9720_v49, %v9750_v55  ;;  %v2666_v49 = vld [vmem:[#allocation2 + $0x10] sm:$0xff] }
 0x3fc   : > { %v2682_v25 = vld [vmem:[#allocation2 + $0x210] sm:$0xff] }
 0x3fd   : > { %v9919_v28 = vmul.f32 0.125, %v1765_v60  ;;  %v7740_v60 = vpack.i.bf16 %v2667_v14, %v2666_v49  ;;  %v9959_v55 = vld [vmem:[#allocation2 + $0x250] sm:$0xff]  ;;  %v7735_v42 = vpack.i.bf16 %v2683_v51, %v2682_v25  ;;  %v7191_v14 = vpack.c.bf16 %v9780_v52, %v9777_v38 }
 0x3fe   : > { %v2691_v25 = vld [vmem:[#allocation2 + $0x330] sm:$0xff] }
 0x3ff   : > { %7721 = vrot.lane.b32.xlu1 %v7720_v44, %s8626_s14  ;;  %4479 = vrot.lane.b32.xlu0 %v9865_v34, %s8626_s14  ;;  %v9923_v44 = vmul.f32 0.125, %v1783_v33  ;;  %v9961_v33 = vld [vmem:[#allocation2 + $0x270] sm:$0xff] }
 0x400   : > { %v7745_v7 = vpack.i.bf16 %v9961_v33, %v9959_v55  ;;  %v9992_v38 = vld [vmem:[#allocation2 + $0xb0] sm:$0xff] }
 0x401   : > { %v2674_v52 = vld [vmem:[#allocation2 + $0x110] sm:$0xff] }
 0x403   : > { %7731 = vrot.lane.b32.xlu1 %v7730_v59, %s8626_s14  ;;  %4483 = vrot.lane.b32.xlu0 %v9876_v35, %s8626_s14  ;;  %v9935_v59 = vmul.f32 0.125, %v1795_v10  ;;  %v2687_v10 = vld [vmem:[#allocation2 + $0x2b0] sm:$0xff] }
 0x407   : > { %4481 = vrot.lane.b32.xlu1 %v9883_v3, %s8626_s14  ;;  %4487 = vrot.lane.b32.xlu0 %v9887_v19, %s8626_s14 }
 0x40b   : > { %4485 = vrot.lane.b32.xlu1 %v9895_v0, %s8626_s14  ;;  %4491 = vrot.lane.b32.xlu0 %v9899_v54, %s8626_s14 }
 0x40f   : > { %4489 = vrot.lane.b32.xlu1 %v9907_v39, %s8626_s14  ;;  %4495 = vrot.lane.b32.xlu0 %v9911_v40, %s8626_s14 }
 0x413   : > { %4493 = vrot.lane.b32.xlu1 %v9919_v28, %s8626_s14  ;;  %4499 = vrot.lane.b32.xlu0 %v9923_v44, %s8626_s14 }
 0x417   : > { %4497 = vrot.lane.b32.xlu1 %v9931_v30, %s8626_s14  ;;  %4503 = vrot.lane.b32.xlu0 %v9935_v59, %s8626_s14 }
 0x419   : > { %v2699_v5 = vpop.permute.xlu0 %2698 }
 0x41a   : > { %6302 = vmatprep.mubr.msk.f32.mxu1 %vm1943_vm0, %v2699_v5 }
 0x41b   : > { %4501 = vrot.lane.b32.xlu1 %v9943_v41, %s8626_s14  ;;  %4507 = vrot.lane.b32.xlu0 %v9947_v24, %s8626_s14 }
 0x41c   : > { %6303 = vmatmul.mubr.msk.f32.vlgmr.msra.gmra.mrb[32].mxu1 %vm1943_vm0, %v2699_v5  ;;  %v7755_v5 = vpack.i.bf16 %v2687_v10, %v2686_v16  ;;  %v10006_v16 = vld [vmem:[#allocation2 + $0x2f0] sm:$0xff]  ;;  %v7197_v10 = vpack.c.bf16 %v9797_v18, %v9795_v15 }
 0x41d   : > { %7187 = vmatpush3.bf16.xpose.msk.msra.mxu1 %vm9484_vm1, %v7185_v27  ;;  %v2701_v11 = vpop.permute.xlu1 %2700  ;;  %v2690_v27 = vld [vmem:[#allocation2 + $0x310] sm:$0xff] }
 0x41e   : > { %6304 = vmatprep.mubr.msk.f32.mxu1 %vm1943_vm0, %v2701_v11  ;;  %7190 = vmatprep.subr.msk.bf16.mxu1 %vm9484_vm1, %v7188_v61  ;;  %v7750_v61 = vpack.i.bf16 %v9978_v37, %v9976_v63  ;;  %v7775_v17 = vpack.i.bf16 %v2691_v25, %v2690_v27  ;;  %v2693_v27 = vld [vmem:[#allocation2 + $0x370] sm:$0xff] }
 0x41f   : > { %4505 = vrot.lane.b32.xlu1 %v9963_v8, %s8626_s14  ;;  %7741 = vrot.lane.b32.xlu0 %v7740_v60, %s8626_s14  ;;  %v9990_v60 = vld [vmem:[#allocation2 + $0x90] sm:$0xff] }
 0x420   : > { %6305 = vmatmul.mubr.msk.f32.gmra.mrb[34].mxu1 %vm1943_vm0, %v2701_v11  ;;  %v7760_v51 = vpack.i.bf16 %v9992_v38, %v9990_v60  ;;  %v2675_v11 = vld [vmem:[#allocation2 + $0x130] sm:$0xff] }
 0x421   : > { %v2703_v49 = vpop.permute.xlu0 %2702  ;;  %v10020_v15 = vld [vmem:[#allocation2 + $0xf0] sm:$0xff] }
 0x422   : > { %6306 = vmatprep.mubr.msk.f32.mxu1 %vm1943_vm0, %v2703_v49  ;;  %v2696_v18 = vld [vmem:[#allocation2 + $0x3d0] sm:$0xff] }
 0x423   : > { %7736 = vrot.lane.b32.xlu1 %v7735_v42, %s8626_s14  ;;  %7746 = vrot.lane.b32.xlu0 %v7745_v7, %s8626_s14  ;;  %v10004_v42 = vld [vmem:[#allocation2 + $0x2d0] sm:$0xff] }
 0x424   : > { %6307 = vmatmul.mubr.msk.f32.gmra.mrb[36].mxu1 %vm1943_vm0, %v2703_v49  ;;  %v7200_v49 = vpack.c.bf16 %v9784_v62, %v9782_v56 }
 0x425   : > { %7193 = vmatpush3.bf16.xpose.msk.msra.mxu1 %vm9484_vm1, %v7191_v14  ;;  %v2705_v36 = vpop.permute.xlu1 %2704  ;;  %v7780_v14 = vpack.i.bf16 %v2675_v11, %v2674_v52  ;;  %v10034_v52 = vld [vmem:[#allocation2 + $0x170] sm:$0xff]  ;;  %v7203_v11 = vpack.c.bf16 %v9811_v53, %v9809_v48  ;;  %v4447_v53 = vld [vmem:[#allocation2 + $0x18] sm:$0xff] }
 0x426   : > { %6308 = vmatprep.mubr.msk.f32.mxu1 %vm1943_vm0, %v2705_v36  ;;  %7196 = vmatprep.subr.msk.bf16.mxu1 %vm9484_vm1, %v7194_v6  ;;  %v2692_v6 = vld [vmem:[#allocation2 + $0x350] sm:$0xff] }
 0x427   : > { %7756 = vrot.lane.b32.xlu1 %v7755_v5, %s8626_s14  ;;  %7751 = vrot.lane.b32.xlu0 %v7750_v61, %s8626_s14  ;;  %v7765_v5 = vpack.i.bf16 %v10006_v16, %v10004_v42  ;;  %v10018_v61 = vld [vmem:[#allocation2 + $0xd0] sm:$0xff]  ;;  %v7785_v62 = vpack.i.bf16 %v2693_v27, %v2692_v6 }
 0x428   : > { %6309 = vmatmul.mubr.msk.f32.gmra.mrb[38].mxu1 %vm1943_vm0, %v2705_v36  ;;  %v7770_v25 = vpack.i.bf16 %v10020_v15, %v10018_v61  ;;  %v2697_v36 = vld [vmem:[#allocation2 + $0x3f0] sm:$0xff] }
 0x429   : > { %v2707_v7 = vpop.permute.xlu0 %2706  ;;  %v2681_v6 = vld [vmem:[#allocation2 + $0x1f0] sm:$0xff] }
 0x42a   : > { %6310 = vmatprep.mubr.msk.f32.mxu1 %vm1943_vm0, %v2707_v7  ;;  %v10048_v48 = vld [vmem:[#allocation2 + $0x3b0] sm:$0xff] }
 0x42b   : > { %7776 = vrot.lane.b32.xlu1 %v7775_v17, %s8626_s14  ;;  %7761 = vrot.lane.b32.xlu0 %v7760_v51, %s8626_s14  ;;  %v10032_v17 = vld [vmem:[#allocation2 + $0x150] sm:$0xff] }
 0x42c   : > { %6311 = vmatmul.mubr.msk.f32.gmra.mrb[40].mxu1 %vm1943_vm0, %v2707_v7  ;;  %v7206_v7 = vpack.c.bf16 %v9801_v32, %v9799_v23 }
 0x42d   : > { %7199 = vmatpush3.bf16.xpose.msk.msra.mxu1 %vm9484_vm1, %v7197_v10  ;;  %v2709_v56 = vpop.permute.xlu1 %2708  ;;  %v7805_v10 = vpack.i.bf16 %v2697_v36, %v2696_v18  ;;  %v10062_v18 = vld [vmem:[#allocation2 + $0x1b0] sm:$0xff]  ;;  %v7209_v36 = vpack.c.bf16 %v9825_v50, %v9823_v29  ;;  %v4465_v50 = vld [vmem:[#allocation2 + $0x258] sm:$0xff] }
 0x42e   : > { %6312 = vmatprep.mubr.msk.f32.mxu1 %vm1943_vm0, %v2709_v56  ;;  %7202 = vmatprep.subr.msk.bf16.mxu1 %vm9484_vm1, %v7200_v49  ;;  %v2680_v49 = vld [vmem:[#allocation2 + $0x1d0] sm:$0xff] }
 0x42f   : > { %7781 = vrot.lane.b32.xlu1 %v7780_v14, %s8626_s14  ;;  %7766 = vrot.lane.b32.xlu0 %v7765_v5, %s8626_s14  ;;  %v7790_v14 = vpack.i.bf16 %v10034_v52, %v10032_v17  ;;  %v10046_v5 = vld [vmem:[#allocation2 + $0x390] sm:$0xff]  ;;  %v7810_v32 = vpack.i.bf16 %v2681_v6, %v2680_v49  ;;  %v4468_v49 = vld [vmem:[#allocation2 + $0x2b8] sm:$0xff] }
 0x430   : > { %6313 = vmatmul.mubr.msk.f32.gmra.mrb[42].mxu1 %vm1943_vm0, %v2709_v56  ;;  %v7795_v27 = vpack.i.bf16 %v10048_v48, %v10046_v5  ;;  %v4448_v56 = vld [vmem:[#allocation2 + $0x38] sm:$0xff] }
 0x431   : > { %v2711_v51 = vpop.permute.xlu0 %2710  ;;  %v4464_v6 = vld [vmem:[#allocation2 + $0x238] sm:$0xff] }
 0x432   : > { %6314 = vmatprep.mubr.msk.f32.mxu1 %vm1943_vm0, %v2711_v51 }
 0x433   : > { %7786 = vrot.lane.b32.xlu1 %v7785_v62, %s8626_s14  ;;  %7771 = vrot.lane.b32.xlu0 %v7770_v25, %s8626_s14  ;;  %v10060_v62 = vld [vmem:[#allocation2 + $0x190] sm:$0xff] }
 0x434   : > { %6315 = vmatmul.mubr.msk.f32.gmra.mrb[44].mxu1 %vm1943_vm0, %v2711_v51  ;;  %v7212_v51 = vpack.c.bf16 %v9815_v4, %v9813_v58 }
 0x435   : > { %7205 = vmatpush3.bf16.xpose.msk.msra.mxu1 %vm9484_vm1, %v7203_v11  ;;  %v2713_v23 = vpop.permute.xlu1 %2712  ;;  %v7820_v11 = vpack.i.bf16 %v4448_v56, %v4447_v53  ;;  %v7215_v53 = vpack.c.bf16 %v9839_v13, %v9837_v1 }
 0x436   : > { %6316 = vmatprep.mubr.msk.f32.mxu1 %vm1943_vm0, %v2713_v23  ;;  %7208 = vmatprep.subr.msk.bf16.mxu1 %vm9484_vm1, %v7206_v7  ;;  %v4467_v7 = vld [vmem:[#allocation2 + $0x298] sm:$0xff] }
 0x437   : > { %7806 = vrot.lane.b32.xlu1 %v7805_v10, %s8626_s14  ;;  %7791 = vrot.lane.b32.xlu0 %v7790_v14, %s8626_s14  ;;  %v7800_v10 = vpack.i.bf16 %v10062_v18, %v10060_v62  ;;  %v4463_v14 = vld [vmem:[#allocation2 + $0x218] sm:$0xff]  ;;  %v7835_v58 = vpack.i.bf16 %v4468_v49, %v4467_v7  ;;  %v7224_v7 = vpack.c.bf16 %v9843_v45, %v9841_v20 }
 0x438   : > { %6317 = vmatmul.mubr.msk.f32.gmra.mrb[46].mxu1 %vm1943_vm0, %v2713_v23  ;;  %v7815_v4 = vpack.i.bf16 %v4464_v6, %v4463_v14  ;;  %v4466_v23 = vld [vmem:[#allocation2 + $0x278] sm:$0xff] }
 0x439   : > { %v2715_v25 = vpop.permute.xlu0 %2714  ;;  %v7825_v56 = vpack.i.bf16 %v4466_v23, %v4465_v50  ;;  %v4469_v49 = vld [vmem:[#allocation2 + $0x2d8] sm:$0xff]  ;;  %v7227_v50 = vpack.c.bf16 %v9863_v26, %v9861_v21 }
 0x43a   : > { %6318 = vmatprep.mubr.msk.f32.mxu1 %vm1943_vm0, %v2715_v25  ;;  %v4470_v14 = vld [vmem:[#allocation2 + $0x2f8] sm:$0xff] }
 0x43b   : > { %7811 = vrot.lane.b32.xlu1 %v7810_v32, %s8626_s14  ;;  %7796 = vrot.lane.b32.xlu0 %v7795_v27, %s8626_s14  ;;  %v7218_v27 = vpack.c.bf16 %v9829_v2, %v9827_v57  ;;  %v4451_v2 = vld [vmem:[#allocation2 + $0x98] sm:$0xff]  ;;  %v7845_v20 = vpack.i.bf16 %v4470_v14, %v4469_v49  ;;  %v1931_v14 = vld [vmem:[#allocation2 + $0x290] sm:$0xff] }
 0x43c   : > { %6319 = vmatmul.mubr.msk.f32.gmra.mrb[48].mxu1 %vm1943_vm0, %v2715_v25  ;;  %v4449_v25 = vld [vmem:[#allocation2 + $0x58] sm:$0xff] }
 0x43d   : > { %7211 = vmatpush3.bf16.xpose.msk.msra.mxu1 %vm9484_vm1, %v7209_v36  ;;  %v2717_v29 = vpop.permute.xlu1 %2716  ;;  %v4450_v36 = vld [vmem:[#allocation2 + $0x78] sm:$0xff] }
 0x43e   : > { %6320 = vmatprep.mubr.msk.f32.mxu1 %vm1943_vm0, %v2717_v29  ;;  %7214 = vmatprep.subr.msk.bf16.mxu1 %vm9484_vm1, %v7212_v51  ;;  %v10091_v51 = vmul.f32 0.125, %v9760_v12  ;;  %v7830_v57 = vpack.i.bf16 %v4450_v36, %v4449_v25  ;;  %v4452_v12 = vld [vmem:[#allocation2 + $0xb8] sm:$0xff]  ;;  %v1927_v25 = vld [vmem:[#allocation2 + $0x210] sm:$0xff] }
 0x43f   : > { %7821 = vrot.lane.b32.xlu1 %v7820_v11, %s8626_s14  ;;  %7801 = vrot.lane.b32.xlu0 %v7800_v10, %s8626_s14  ;;  %v7221_v11 = vpack.c.bf16 %v9853_v22, %v9851_v47  ;;  %v7840_v10 = vpack.i.bf16 %v4452_v12, %v4451_v2  ;;  %v4453_v45 = vld [vmem:[#allocation2 + $0xd8] sm:$0xff]  ;;  %v1928_v36 = vld [vmem:[#allocation2 + $0x230] sm:$0xff] }
 0x440   : > { %6321 = vmatmul.mubr.msk.f32.gmra.mrb[50].mxu1 %vm1943_vm0, %v2717_v29  ;;  %v4454_v47 = vld [vmem:[#allocation2 + $0xf8] sm:$0xff]  ;;  %v1912_v12 = vld [vmem:[#allocation2 + $0x30] sm:$0xff] }
 0x441   : > { %v2719_v32 = vpop.permute.xlu0 %2718 }
 0x442   : > { %6322 = vmatprep.mubr.msk.f32.mxu1 %vm1943_vm0, %v2719_v32 }
 0x443   : > { %7836 = vrot.lane.b32.xlu1 %v7835_v58, %s8626_s14  ;;  %7816 = vrot.lane.b32.xlu0 %v7815_v4, %s8626_s14 }
 0x444   : > { %6323 = vmatmul.mubr.msk.f32.gmra.mrb[52].mxu1 %vm1943_vm0, %v2719_v32  ;;  %v7850_v32 = vpack.i.bf16 %v4454_v47, %v4453_v45 }
 0x445   : > { %7217 = vmatpush3.bf16.xpose.msk.msra.mxu1 %vm9484_vm1, %v7215_v53  ;;  %v2721_v1 = vpop.permute.xlu1 %2720 }
 0x446   : > { %6324 = vmatprep.mubr.msk.f32.mxu1 %vm1943_vm0, %v2721_v1  ;;  %7220 = vmatprep.subr.msk.bf16.mxu1 %vm9484_vm1, %v7218_v27 }
 0x447   : > { %4509 = vrot.lane.b32.xlu1 %v10091_v51, %s8626_s14  ;;  %7826 = vrot.lane.b32.xlu0 %v7825_v56, %s8626_s14 }
 0x448   : > { %6325 = vmatmul.mubr.msk.f32.gmra.mrb[54].mxu1 %vm1943_vm0, %v2721_v1  ;;  %v1911_v1 = vld [vmem:[#allocation2 + $0x10] sm:$0xff] }
 0x449   : > { %v2723_v13 = vpop.permute.xlu0 %2722 }
 0x44a   : > { %6326 = vmatprep.mubr.msk.f32.mxu1 %vm1943_vm0, %v2723_v13 }
 0x44b   : > { %7831 = vrot.lane.b32.xlu0 %v7830_v57, %s8626_s14 }
 0x44c   : > { %6327 = vmatmul.mubr.msk.f32.gmra.mrb[56].mxu1 %vm1943_vm0, %v2723_v13 }
 0x44d   : > { %7223 = vmatpush3.bf16.xpose.msk.msra.mxu1 %vm9484_vm1, %v7221_v11  ;;  %v2725_v6 = vpop.permute.xlu1 %2724  ;;  %v7657_v29 = vpop.permute.xlu0 %7656  ;;  %v7070_v11 = vpack.c.bf16 %v1928_v36, %v1927_v25  ;;  %v1919_v25 = vld [vmem:[#allocation2 + $0x110] sm:$0xff] }
 0x44e   : > { %v7659_v58 = vunpack.i.h.bf16 %v7657_v29  ;;  %v7658_v4 = vunpack.i.l.bf16 %v7657_v29  ;;  %6328 = vmatprep.mubr.msk.f32.mxu1 %vm1943_vm0, %v2725_v6  ;;  %7226 = vmatprep.subr.msk.bf16.mxu1 %vm9484_vm1, %v7224_v7  ;;  %v7072_v7 = vpack.c.bf16 %v1912_v12, %v1911_v1 }
 0x44f   : > { %7841 = vrot.lane.b32.xlu0 %v7840_v10, %s8626_s14  ;;  %v7074_v10 = vpack.c.bf16 %v9961_v33, %v9959_v55  ;;  %7071 = vmatprep.subr.bf16.mxu0 %v7070_v11  ;;  %v7076_v55 = vpack.c.bf16 %v9978_v37, %v9976_v63 }
 0x450   : > { %6329 = vmatmul.mubr.msk.f32.gmra.mrb[58].mxu1 %vm1943_vm0, %v2725_v6  ;;  %v7262_v23 = vpack.c.bf16 %v7659_v58, %v7658_v4  ;;  %v1932_v6 = vld [vmem:[#allocation2 + $0x2b0] sm:$0xff]  ;;  %7073 = vmatpush3.bf16.msra.mxu0 %v7072_v7 }
 0x451   : > { %v2727_v22 = vpop.permute.xlu0 %2726  ;;  %7075 = vmatprep.subr.bf16.mxu0 %v7074_v10  ;;  %v7092_v10 = vpack.c.bf16 %v10034_v52, %v10032_v17 }
 0x452   : > { %6330 = vmatprep.mubr.msk.f32.mxu1 %vm1943_vm0, %v2727_v22 }
 0x453   : > { %7846 = vrot.lane.b32.xlu0 %v7845_v20, %s8626_s14 }
 0x454   : > { %6331 = vmatmul.mubr.msk.f32.gmra.mrb[60].mxu1 %vm1943_vm0, %v2727_v22  ;;  %7077 = vmatpush3.bf16.msra.mxu0 %v7076_v55 }
 0x455   : > { %7229 = vmatpush3.bf16.xpose.msk.msra.mxu1 %vm9484_vm1, %v7227_v50  ;;  %v2729_v53 = vpop.permute.xlu1 %2728  ;;  %v7667_v27 = vpop.permute.xlu0 %7666  ;;  %v7080_v50 = vpack.c.bf16 %v9992_v38, %v9990_v60  ;;  %v7082_v60 = vpack.c.bf16 %v10006_v16, %v10004_v42 }
 0x456   : > { %7264 = vmatprep.subr.msk.bf16.mxu1 %vm9484_vm1, %v7262_v23  ;;  %6332 = vmatprep.mubr.msk.f32.mxu1 %vm1943_vm0, %v2729_v53  ;;  %v7669_v56 = vunpack.i.h.bf16 %v7667_v27  ;;  %v7668_v21 = vunpack.i.l.bf16 %v7667_v27 }
 0x457   : > { %7851 = vrot.lane.b32.xlu0 %v7850_v32, %s8626_s14 }
 0x458   : > { %6333 = vmatmul.mubr.msk.f32.gmra.mrb[62].mxu1 %vm1943_vm0, %v2729_v53  ;;  %v7268_v13 = vpack.c.bf16 %v7669_v56, %v7668_v21  ;;  %v1935_v21 = vld [vmem:[#allocation2 + $0x310] sm:$0xff] }
 0x459   : > { %6446 = vmatprep.mubr.msk.f32.mxu1 %vm1943_vm0, %v9865_v34  ;;  %v7662_v26 = vpop.permute.xlu1 %7661  ;;  %v7677_v58 = vpop.permute.xlu0 %7676 }
 0x45a   : > { %v7664_v57 = vunpack.i.h.bf16 %v7662_v26  ;;  %v7663_v2 = vunpack.i.l.bf16 %v7662_v26  ;;  %v7679_v33 = vunpack.i.h.bf16 %v7677_v58  ;;  %v7678_v45 = vunpack.i.l.bf16 %v7677_v58  ;;  %v1936_v26 = vld [vmem:[#allocation2 + $0x330] sm:$0xff] }
 0x45b   : > { %v7086_v1 = vpack.c.bf16 %v1936_v26, %v1935_v21  ;;  %v7096_v58 = vpack.c.bf16 %v10062_v18, %v10060_v62  ;;  %v1925_v18 = vld [vmem:[#allocation2 + $0x1d0] sm:$0xff] }
 0x45c   : > { %v7265_v49 = vpack.c.bf16 %v7664_v57, %v7663_v2  ;;  %6447 = vmatmul.mubr.msk.f32.vlgmr.msra.gmra.mrb[64].mxu1 %vm1943_vm0, %v9865_v34  ;;  %v7078_v34 = vpack.c.bf16 %v1932_v6, %v1931_v14  ;;  %v7274_v63 = vpack.c.bf16 %v7679_v33, %v7678_v45  ;;  %v1920_v57 = vld [vmem:[#allocation2 + $0x130] sm:$0xff]  ;;  %v10203_v33 = vld [vmem:[%s9006_s6] sm:$0xff] }
 0x45d   : > { %6448 = vmatprep.mubr.msk.f32.mxu1 %vm1943_vm0, %v9883_v3  ;;  %v7672_v29 = vpop.permute.xlu1 %7671  ;;  %v7687_v23 = vpop.permute.xlu0 %7686  ;;  %v7088_v42 = vpack.c.bf16 %v1920_v57, %v1919_v25  ;;  %v10247_v57 = vld [vmem:[%s9006_s6 + $0x20] sm:$0xff] }
 0x45e   : > { %v7674_v4 = vunpack.i.h.bf16 %v7672_v29  ;;  %v7673_v20 = vunpack.i.l.bf16 %v7672_v29  ;;  %7267 = vmatpush3.bf16.xpose.msk.msra.mxu1 %vm9484_vm1, %v7265_v49  ;;  %7079 = vmatprep.subr.bf16.mxu0 %v7078_v34  ;;  %v7689_v53 = vunpack.i.h.bf16 %v7687_v23  ;;  %v7688_v27 = vunpack.i.l.bf16 %v7687_v23 }
 0x45f   : > { %7270 = vmatprep.subr.msk.bf16.mxu1 %vm9484_vm1, %v7268_v13  ;;  %7081 = vmatpush3.bf16.msra.mxu0 %v7080_v50  ;;  %v1938_v13 = vld [vmem:[#allocation2 + $0x370] sm:$0xff] }
 0x460   : > { %6449 = vmatmul.mubr.msk.f32.gmra.mrb[66].mxu1 %vm1943_vm0, %v9883_v3  ;;  %v7271_v22 = vpack.c.bf16 %v7674_v4, %v7673_v20  ;;  %7083 = vmatprep.subr.bf16.mxu0 %v7082_v60  ;;  %v7280_v36 = vpack.c.bf16 %v7689_v53, %v7688_v27  ;;  %v1926_v20 = vld [vmem:[#allocation2 + $0x1f0] sm:$0xff] }
 0x461   : > { %6450 = vmatprep.mubr.msk.f32.mxu1 %vm1943_vm0, %v9876_v35  ;;  %v7682_v47 = vpop.permute.xlu1 %7681  ;;  %v7697_v16 = vpop.permute.xlu0 %7696  ;;  %v7100_v45 = vpack.c.bf16 %v1926_v20, %v1925_v18 }
 0x462   : > { %v7684_v3 = vunpack.i.h.bf16 %v7682_v47  ;;  %v7683_v32 = vunpack.i.l.bf16 %v7682_v47  ;;  %v7699_v2 = vunpack.i.h.bf16 %v7697_v16  ;;  %v7698_v12 = vunpack.i.l.bf16 %v7697_v16 }
 0x464   : > { %6451 = vmatmul.mubr.msk.f32.gmra.mrb[68].mxu1 %vm1943_vm0, %v9876_v35  ;;  %v7084_v35 = vpack.c.bf16 %v10020_v15, %v10018_v61  ;;  %v7277_v56 = vpack.c.bf16 %v7684_v3, %v7683_v32  ;;  %v7286_v14 = vpack.c.bf16 %v7699_v2, %v7698_v12  ;;  %v10221_v32 = vld [vmem:[%s9006_s6 + $0x10] sm:$0xff] }
 0x465   : > { %6452 = vmatprep.mubr.msk.f32.mxu1 %vm1943_vm0, %v9895_v0  ;;  %v7692_v37 = vpop.permute.xlu1 %7691  ;;  %v7707_v6 = vpop.permute.xlu0 %7706 }
 0x466   : > { %7273 = vmatpush3.bf16.xpose.msk.msra.mxu1 %vm9484_vm1, %v7271_v22  ;;  %7085 = vmatpush3.bf16.msra.mxu0 %v7084_v35  ;;  %v7694_v61 = vunpack.i.h.bf16 %v7692_v37  ;;  %v7693_v15 = vunpack.i.l.bf16 %v7692_v37  ;;  %v7709_v4 = vunpack.i.h.bf16 %v7707_v6  ;;  %v10206_v22 = vld [vmem:[%s9006_s6 + $0x8] sm:$0xff] }
 0x467   : > { %7276 = vmatprep.subr.msk.bf16.mxu1 %vm9484_vm1, %v7274_v63  ;;  %7087 = vmatprep.subr.bf16.mxu0 %v7086_v1 }
 0x468   : > { %6453 = vmatmul.mubr.msk.f32.gmra.mrb[70].mxu1 %vm1943_vm0, %v9895_v0  ;;  %v7283_v49 = vpack.c.bf16 %v7694_v61, %v7693_v15 }
 0x469   : > { %6454 = vmatprep.mubr.msk.f32.mxu1 %vm1943_vm0, %v9887_v19  ;;  %v7702_v38 = vpop.permute.xlu1 %7701  ;;  %v7717_v47 = vpop.permute.xlu0 %7716 }
 0x46a   : > { %7089 = vmatpush3.bf16.msra.mxu0 %v7088_v42  ;;  %v7704_v17 = vunpack.i.h.bf16 %v7702_v38  ;;  %v7703_v52 = vunpack.i.l.bf16 %v7702_v38  ;;  %v7719_v60 = vunpack.i.h.bf16 %v7717_v47  ;;  %v7718_v35 = vunpack.i.l.bf16 %v7717_v47 }
 0x46c   : > { %6455 = vmatmul.mubr.msk.f32.gmra.mrb[72].mxu1 %vm1943_vm0, %v9887_v19  ;;  %v1937_v19 = vld [vmem:[#allocation2 + $0x350] sm:$0xff]  ;;  %v7289_v34 = vpack.c.bf16 %v7704_v17, %v7703_v52  ;;  %v7298_v16 = vpack.c.bf16 %v7719_v60, %v7718_v35 }
 0x46d   : > { %6456 = vmatprep.mubr.msk.f32.mxu1 %vm1943_vm0, %v9907_v39  ;;  %v10168_v0 = vpop.permute.xlu1 %7711  ;;  %v7090_v11 = vpack.c.bf16 %v1938_v13, %v1937_v19  ;;  %v7727_v21 = vpop.permute.xlu0 %7726  ;;  %v10267_v13 = vld [vmem:[%s9006_s6 + $0x30] sm:$0xff] }
 0x46e   : > { %7279 = vmatpush3.bf16.xpose.msk.msra.mxu1 %vm9484_vm1, %v7277_v56  ;;  %v7714_v53 = vunpack.i.h.bf16 %v10168_v0  ;;  %v7713_v27 = vunpack.i.l.bf16 %v10168_v0  ;;  %v10250_v0 = vld [vmem:[%s9006_s6 + $0x28] sm:$0xff] }
 0x46f   : > { %7282 = vmatprep.subr.msk.bf16.mxu1 %vm9484_vm1, %v7280_v36  ;;  %7091 = vmatprep.subr.bf16.mxu0 %v7090_v11 }
 0x470   : > { %6457 = vmatmul.mubr.msk.f32.gmra.mrb[74].mxu1 %vm1943_vm0, %v9907_v39  ;;  %7093 = vmatpush3.bf16.msra.mxu0 %v7092_v10  ;;  %v7094_v39 = vpack.c.bf16 %v10048_v48, %v10046_v5  ;;  %v1941_v5 = vld [vmem:[#allocation2 + $0x3d0] sm:$0xff]  ;;  %v7295_v42 = vpack.c.bf16 %v7714_v53, %v7713_v27 }
 0x471   : > { %6458 = vmatprep.mubr.msk.f32.mxu1 %vm1943_vm0, %v9899_v54  ;;  %v10178_v7 = vpop.permute.xlu1 %7721  ;;  %v1942_v48 = vld [vmem:[#allocation2 + $0x3f0] sm:$0xff] }
 0x472   : > { %7095 = vmatprep.subr.bf16.mxu0 %v7094_v39  ;;  %v7098_v62 = vpack.c.bf16 %v1942_v48, %v1941_v5  ;;  %v7724_v11 = vunpack.i.h.bf16 %v10178_v7  ;;  %v7723_v10 = vunpack.i.l.bf16 %v10178_v7  ;;  %v10298_v48 = vld [vmem:[%s9006_s6 + $0x48] sm:$0xff] }
 0x474   : > { %6459 = vmatmul.mubr.msk.f32.gmra.mrb[76].mxu1 %vm1943_vm0, %v9899_v54  ;;  %v7708_v54 = vunpack.i.l.bf16 %v7707_v6  ;;  %7097 = vmatpush3.bf16.msra.mxu0 %v7096_v58  ;;  %v7728_v6 = vunpack.i.l.bf16 %v7727_v21  ;;  %v7301_v5 = vpack.c.bf16 %v7724_v11, %v7723_v10 }
 0x475   : > { %6460 = vmatprep.mubr.msk.f32.mxu1 %vm1943_vm0, %v9919_v28  ;;  %v10188_v29 = vpop.permute.xlu1 %7731  ;;  %7099 = vmatprep.subr.bf16.mxu0 %v7098_v62 }
 0x476   : > { %7285 = vmatpush3.bf16.xpose.msk.msra.mxu1 %vm9484_vm1, %v7283_v49  ;;  %v7292_v50 = vpack.c.bf16 %v7709_v4, %v7708_v54  ;;  %v10271_v49 = vpop.permute.xlu0 %4479  ;;  %v10295_v54 = vld [vmem:[%s9006_s6 + $0x40] sm:$0xff]  ;;  %v7733_v53 = vunpack.i.l.bf16 %v10188_v29 }
 0x477   : > { %7288 = vmatprep.subr.msk.bf16.mxu1 %vm9484_vm1, %v7286_v14  ;;  %v7729_v14 = vunpack.i.h.bf16 %v7727_v21  ;;  %v10343_v21 = vld [vmem:[%s9006_s6 + $0x60] sm:$0xff] }
 0x478   : > { %6461 = vmatmul.mubr.msk.f32.gmra.mrb[78].mxu1 %vm1943_vm0, %v9919_v28  ;;  %7101 = vmatpush3.bf16.msra.mxu0 %v7100_v45 }
 0x479   : > { %6462 = vmatprep.mubr.msk.f32.mxu1 %vm1943_vm0, %v9911_v40  ;;  %v10200_v55 = vpop.permute.xlu1 %4481  ;;  %v7304_v62 = vpack.c.bf16 %v7729_v14, %v7728_v6  ;;  %v10363_v14 = vld [vmem:[%s9006_s6 + $0x70] sm:$0xff] }
 0x47a   : > { %v10302_v20 = vpop.permute.xlu0 %4483 }
 0x47b   : > { %v2154_v28 = vpop.f32.mrb[0].mxu1 }
 0x47c   : > { %v10209_v63 = vadd.f32 %v2154_v28, %v10203_v33  ;;  %6463 = vmatmul.mubr.msk.f32.gmra.mrb[80].mxu1 %vm1943_vm0, %v9911_v40  ;;  %v2156_v37 = vpop.f32.mrb[1].mxu1  ;;  %v10228_v40 = vld [vmem:[%s9006_s6 + $0x18] sm:$0xff]  ;;  %v10317_v28 = vld [vmem:[%s9006_s6 + $0x50] sm:$0xff] }
 0x47d   : > { %v10214_v23 = vadd.f32 %v2156_v37, %v10206_v22  ;;  %6464 = vmatprep.mubr.msk.f32.mxu1 %vm1943_vm0, %v9931_v30  ;;  %v10218_v3 = vpop.permute.xlu1 %4485  ;;  %v7734_v37 = vunpack.i.h.bf16 %v10188_v29 }
 0x47e   : > { %7291 = vmatpush3.bf16.xpose.msk.msra.mxu1 %vm9484_vm1, %v7289_v34 }
 0x47f   : > { %v2160_v38 = vpop.f32.mrb[2].mxu1  ;;  %v2249_v56 = vmax.f32 %v10209_v63, %v10214_v23  ;;  %7294 = vmatprep.subr.msk.bf16.mxu1 %vm9484_vm1, %v7292_v50 }
 0x480   : > { %v10235_v26 = vadd.f32 %v2160_v38, %v10221_v32  ;;  %6465 = vmatmul.mubr.msk.f32.gmra.mrb[82].mxu1 %vm1943_vm0, %v9931_v30  ;;  %v2162_v25 = vpop.f32.mrb[3].mxu1 }
 0x481   : > { %v10240_v36 = vadd.f32 %v2162_v25, %v10228_v40  ;;  %6466 = vmatprep.mubr.msk.f32.mxu1 %vm1943_vm0, %v9923_v44  ;;  %v10244_v1 = vpop.permute.xlu1 %4489  ;;  %2250 = vmax.xlane.f32.xlu0 %v2249_v56  ;;  %v7307_v25 = vpack.c.bf16 %v7734_v37, %v7733_v53  ;;  %v10388_v37 = vld [vmem:[%s9006_s6 + $0x88] sm:$0xff] }
 0x483   : > { %v2166_v61 = vpop.f32.mrb[4].mxu1  ;;  %v2252_v30 = vmax.f32 %v10235_v26, %v10240_v36 }
 0x484   : > { %v10255_v15 = vadd.f32 %v2166_v61, %v10247_v57  ;;  %6467 = vmatmul.mubr.msk.f32.gmra.mrb[84].mxu1 %vm1943_vm0, %v9923_v44  ;;  %v2168_v2 = vpop.f32.mrb[5].mxu1  ;;  %v10276_v44 = vld [vmem:[%s9006_s6 + $0x38] sm:$0xff] }
 0x485   : > { %v10260_v12 = vadd.f32 %v2168_v2, %v10250_v0  ;;  %6468 = vmatprep.mubr.msk.f32.mxu1 %vm1943_vm0, %v9943_v41  ;;  %v10264_v19 = vpop.permute.xlu1 %4493  ;;  %2253 = vmax.xlane.f32.xlu1 %v2252_v30 }
 0x486   : > { %7297 = vmatpush3.bf16.xpose.msk.msra.mxu1 %vm9484_vm1, %v7295_v42  ;;  %v10345_v42 = vpop.permute.xlu0 %4487 }
 0x487   : > { %v2172_v39 = vpop.f32.mrb[6].mxu1  ;;  %v2255_v58 = vmax.f32 %v10255_v15, %v10260_v12  ;;  %7300 = vmatprep.subr.msk.bf16.mxu1 %vm9484_vm1, %v7298_v16  ;;  %v10348_v16 = vld [vmem:[%s9006_s6 + $0x68] sm:$0xff] }
 0x488   : > { %v10283_v7 = vadd.f32 %v2172_v39, %v10267_v13  ;;  %6469 = vmatmul.mubr.msk.f32.gmra.mrb[86].mxu1 %vm1943_vm0, %v9943_v41  ;;  %v2174_v17 = vpop.f32.mrb[7].mxu1 }
 0x489   : > { %v10288_v52 = vadd.f32 %v2174_v17, %v10276_v44  ;;  %6470 = vmatprep.mubr.msk.f32.mxu1 %vm1943_vm0, %v9935_v59  ;;  %v10292_v4 = vpop.permute.xlu1 %4497  ;;  %2256 = vmax.xlane.f32.xlu0 %v2255_v58  ;;  %v10368_v58 = vld [vmem:[%s9006_s6 + $0x78] sm:$0xff] }
 0x48b   : > { %v2258_v41 = vmax.f32 %v10283_v7, %v10288_v52  ;;  %v2178_v18 = vpop.f32.mrb[8].mxu1 }
 0x48c   : > { %v10305_v45 = vadd.f32 %v2178_v18, %v10295_v54  ;;  %6471 = vmatmul.mubr.msk.f32.gmra.mrb[88].mxu1 %vm1943_vm0, %v9935_v59  ;;  %v2180_v34 = vpop.f32.mrb[9].mxu1  ;;  %v10324_v59 = vld [vmem:[%s9006_s6 + $0x58] sm:$0xff] }
 0x48d   : > { %v10310_v47 = vadd.f32 %v2180_v34, %v10298_v48  ;;  %6472 = vmatprep.mubr.msk.f32.mxu1 %vm1943_vm0, %v9963_v8  ;;  %v10314_v50 = vpop.permute.xlu1 %4501  ;;  %2259 = vmax.xlane.f32.xlu0 %v2258_v41  ;;  %v10385_v34 = vld [vmem:[%s9006_s6 + $0x80] sm:$0xff] }
 0x48e   : > { %7303 = vmatpush3.bf16.xpose.msk.msra.mxu1 %vm9484_vm1, %v7301_v5  ;;  %v10372_v5 = vpop.permute.xlu0 %4491 }
 0x48f   : > { %v2184_v27 = vpop.f32.mrb[10].mxu1  ;;  %v2261_v60 = vmax.f32 %v10305_v45, %v10310_v47  ;;  %7306 = vmatprep.subr.msk.bf16.mxu1 %vm9484_vm1, %v7304_v62 }
 0x490   : > { %v10331_v35 = vadd.f32 %v2184_v27, %v10317_v28  ;;  %6473 = vmatmul.mubr.msk.f32.gmra.mrb[90].mxu1 %vm1943_vm0, %v9963_v8  ;;  %v2186_v29 = vpop.f32.mrb[11].mxu1 }
 0x491   : > { %v10336_v38 = vadd.f32 %v2186_v29, %v10324_v59  ;;  %6474 = vmatprep.mubr.msk.f32.mxu1 %vm1943_vm0, %v9947_v24  ;;  %v10340_v56 = vpop.permute.xlu1 %4505  ;;  %2262 = vmax.xlane.f32.xlu1 %v2261_v60 }
 0x492   : > { %12168 = vst [vmem:[#allocation40_spill] sm:$0xff] %v10331_v35 }
 0x493   : > { %12169 = vst [vmem:[#allocation41_spill] sm:$0xff] %v10336_v38  ;;  %v2264_v8 = vmax.f32 %v10331_v35, %v10336_v38  ;;  %v2190_v61 = vpop.f32.mrb[12].mxu1  ;;  %v4457_v35 = vld [vmem:[#allocation2 + $0x158] sm:$0xff] }
 0x494   : > { %v10353_v30 = vadd.f32 %v2190_v61, %v10343_v21  ;;  %6475 = vmatmul.mubr.msk.f32.gmra.mrb[92].mxu1 %vm1943_vm0, %v9947_v24  ;;  %v2192_v2 = vpop.f32.mrb[13].mxu1  ;;  %v10408_v61 = vld [vmem:[%s9006_s6 + $0x98] sm:$0xff] }
 0x495   : > { %v10358_v11 = vadd.f32 %v2192_v2, %v10348_v16  ;;  %6476 = vmatprep.mubr.msk.f32.mxu1 %vm1943_vm0, %v10091_v51  ;;  %v7737_v10 = vpop.permute.xlu1 %7736  ;;  %2265 = vmax.xlane.f32.xlu0 %v2264_v8  ;;  %v10403_v8 = vpop.permute.xlu0 %4495 }
 0x496   : > { %12170 = vst [vmem:[#allocation42_spill] sm:$0xff] %v10353_v30  ;;  %v7739_v6 = vunpack.i.h.bf16 %v7737_v10  ;;  %v7738_v39 = vunpack.i.l.bf16 %v7737_v10  ;;  %7309 = vmatpush3.bf16.xpose.msk.msra.mxu1 %vm9484_vm1, %v7307_v25  ;;  %v10401_v25 = vld [vmem:[%s9006_s6 + $0x90] sm:$0xff] }
 0x497   : > { %12171 = vst [vmem:[#allocation43_spill] sm:$0xff] %v10358_v11  ;;  %v2196_v24 = vpop.f32.mrb[14].mxu1  ;;  %v2267_v17 = vmax.f32 %v10353_v30, %v10358_v11  ;;  %v4474_v30 = vld [vmem:[#allocation2 + $0x378] sm:$0xff] }
 0x498   : > { %v10375_v62 = vadd.f32 %v2196_v24, %v10363_v14  ;;  %6477 = vmatmul.mubr.msk.f32.gmra.mrb[94].mxu1 %vm1943_vm0, %v10091_v51  ;;  %v2198_v41 = vpop.f32.mrb[15].mxu1  ;;  %v7150_v18 = vpack.c.bf16 %v7739_v6, %v7738_v39  ;;  %v10421_v24 = vld [vmem:[%s9006_s6 + $0xa0] sm:$0xff] }
 0x499   : > { %v10380_v9 = vadd.f32 %v2198_v41, %v10368_v58  ;;  %6590 = vmatprep.mubr.msk.f32.mxu1 %vm1943_vm0, %v10271_v49  ;;  %2268 = vmax.xlane.f32.xlu1 %v2267_v17  ;;  %v10426_v17 = vld [vmem:[%s9006_s6 + $0xa8] sm:$0xff] }
 0x49a   : > { %12172 = vst [vmem:[#allocation44_spill] sm:$0xff] %v10375_v62  ;;  %7151 = vmatprep.subr.bf16.mxu0 %v7150_v18 }
 0x49b   : > { %12173 = vst [vmem:[#allocation45_spill] sm:$0xff] %v10380_v9  ;;  %v2270_v53 = vmax.f32 %v10375_v62, %v10380_v9  ;;  %v2202_v51 = vpop.f32.mrb[16].mxu1  ;;  %v4472_v9 = vld [vmem:[#allocation2 + $0x338] sm:$0xff] }
 0x49c   : > { %v10393_v27 = vadd.f32 %v2202_v51, %v10385_v34  ;;  %v2204_v60 = vpop.f32.mrb[17].mxu1  ;;  %v4455_v62 = vld [vmem:[#allocation2 + $0x118] sm:$0xff] }
 0x49d   : > { %v10396_v29 = vadd.f32 %v2204_v60, %v10388_v37  ;;  %6591 = vmatmul.mubr.msk.f32.vlgmr.msra.gmra.mrb[96].mxu1 %vm1943_vm0, %v10271_v49  ;;  %2271 = vmax.xlane.f32.xlu0 %v2270_v53  ;;  %v10430_v53 = vpop.permute.xlu0 %4499  ;;  %v10435_v60 = vpop.permute.xlu1 %7756 }
 0x49e   : > { %12174 = vst [vmem:[#allocation46_spill] sm:$0xff] %v10393_v27  ;;  %6592 = vmatprep.mubr.msk.f32.mxu1 %vm1943_vm0, %v10200_v55 }
 0x49f   : > { %12175 = vst [vmem:[#allocation47_spill] sm:$0xff] %v10396_v29  ;;  %v2208_v2 = vpop.f32.mrb[18].mxu1  ;;  %v2273_v10 = vmax.f32 %v10393_v27, %v10396_v29 }
 0x4a0   : > { %v10413_v6 = vadd.f32 %v2208_v2, %v10401_v25  ;;  %v2210_v39 = vpop.f32.mrb[19].mxu1 }
 0x4a1   : > { %v10416_v49 = vadd.f32 %v2210_v39, %v10408_v61  ;;  %6593 = vmatmul.mubr.msk.f32.gmra.mrb[98].mxu1 %vm1943_vm0, %v10200_v55  ;;  %2274 = vmax.xlane.f32.xlu1 %v2273_v10  ;;  %v10443_v10 = vld [vmem:[%s9006_s6 + $0xb0] sm:$0xff]  ;;  %v10448_v39 = vld [vmem:[%s9006_s6 + $0xb8] sm:$0xff] }
 0x4a2   : > { %12176 = vst [vmem:[#allocation48_spill] sm:$0xff] %v10413_v6  ;;  %6594 = vmatprep.mubr.msk.f32.mxu1 %vm1943_vm0, %v10302_v20 }
 0x4a3   : > { %12177 = vst [vmem:[#allocation49_spill] sm:$0xff] %v10416_v49  ;;  %v2276_v41 = vmax.f32 %v10413_v6, %v10416_v49  ;;  %v2214_v18 = vpop.f32.mrb[20].mxu1  ;;  %v10466_v49 = vld [vmem:[%s9006_s6 + $0xc8] sm:$0xff] }
 0x4a4   : > { %v10433_v51 = vadd.f32 %v2214_v18, %v10421_v24  ;;  %v2216_v55 = vpop.f32.mrb[21].mxu1 }
 0x4a5   : > { %v10438_v2 = vadd.f32 %v2216_v55, %v10426_v17  ;;  %6595 = vmatmul.mubr.msk.f32.gmra.mrb[100].mxu1 %vm1943_vm0, %v10302_v20  ;;  %2277 = vmax.xlane.f32.xlu0 %v2276_v41  ;;  %v10461_v20 = vld [vmem:[%s9006_s6 + $0xc0] sm:$0xff]  ;;  %v4504_v41 = vpop.permute.xlu0 %4503 }
 0x4a6   : > { %12178 = vst [vmem:[#allocation50_spill] sm:$0xff] %v10433_v51  ;;  %6596 = vmatprep.mubr.msk.f32.mxu1 %vm1943_vm0, %v10218_v3 }
 0x4a7   : > { %12179 = vst [vmem:[#allocation51_spill] sm:$0xff] %v10438_v2  ;;  %v2220_v18 = vpop.f32.mrb[22].mxu1  ;;  %v2279_v46 = vmax.f32 %v10433_v51, %v10438_v2  ;;  %v10468_v2 = vpop.permute.xlu1 %7776 }
 0x4a8   : > { %v10453_v43 = vadd.f32 %v2220_v18, %v10443_v10  ;;  %v2222_v55 = vpop.f32.mrb[23].mxu1 }
 0x4a9   : > { %v10456_v31 = vadd.f32 %v2222_v55, %v10448_v39  ;;  %6597 = vmatmul.mubr.msk.f32.gmra.mrb[102].mxu1 %vm1943_vm0, %v10218_v3  ;;  %2280 = vmax.xlane.f32.xlu1 %v2279_v46  ;;  %v4508_v29 = vpop.permute.xlu0 %4507 }
 0x4aa   : > { %12180 = vst [vmem:[#allocation52_spill] sm:$0xff] %v10453_v43  ;;  %6598 = vmatprep.mubr.msk.f32.mxu1 %vm1943_vm0, %v10345_v42 }
 0x4ab   : > { %12181 = vst [vmem:[#allocation53_spill] sm:$0xff] %v10456_v31  ;;  %v2282_v18 = vmax.f32 %v10453_v43, %v10456_v31  ;;  %v2226_v51 = vpop.f32.mrb[24].mxu1  ;;  %v10486_v43 = vpop.permute.xlu1 %7781 }
 0x4ac   : > { %v10473_v55 = vadd.f32 %v2226_v51, %v10461_v20  ;;  %v2228_v6 = vpop.f32.mrb[25].mxu1  ;;  %12184 = vst [vmem:[#allocation56_spill] sm:$0xff] %v10486_v43  ;;  %v4456_v43 = vld [vmem:[#allocation2 + $0x138] sm:$0xff] }
 0x4ad   : > { %v10476_v46 = vadd.f32 %v2228_v6, %v10466_v49  ;;  %6599 = vmatmul.mubr.msk.f32.gmra.mrb[104].mxu1 %vm1943_vm0, %v10345_v42  ;;  %2283 = vmax.xlane.f32.xlu0 %v2282_v18  ;;  %v10494_v6 = vpop.permute.xlu0 %7741  ;;  %v7860_v11 = vpack.i.bf16 %v4456_v43, %v4455_v62 }
 0x4ae   : > { %12182 = vst [vmem:[#allocation54_spill] sm:$0xff] %v10473_v55  ;;  %6600 = vmatprep.mubr.msk.f32.mxu1 %vm1943_vm0, %v10244_v1 }
 0x4af   : > { %12183 = vst [vmem:[#allocation55_spill] sm:$0xff] %v10476_v46  ;;  %v2285_v3 = vmax.f32 %v10473_v55, %v10476_v46  ;;  %v10500_v46 = vpop.permute.xlu1 %7786 }
 0x4b0   : > { %v10484_v31 = vpop.f32.mrb[26].mxu1  ;;  %12185 = vst [vmem:[#allocation57_spill] sm:$0xff] %v10500_v46 }
 0x4b1   : > { %v10488_v51 = vpop.f32.mrb[27].mxu1  ;;  %6601 = vmatmul.mubr.msk.f32.gmra.mrb[106].mxu1 %vm1943_vm0, %v10244_v1  ;;  %2286 = vmax.xlane.f32.xlu1 %v2285_v3  ;;  %v10506_v1 = vpop.permute.xlu0 %7746  ;;  %v4471_v3 = vld [vmem:[#allocation2 + $0x318] sm:$0xff] }
 0x4b2   : > { %6602 = vmatprep.mubr.msk.f32.mxu1 %vm1943_vm0, %v10372_v5  ;;  %v7855_v46 = vpack.i.bf16 %v4472_v9, %v4471_v3  ;;  %v4458_v9 = vld [vmem:[#allocation2 + $0x178] sm:$0xff] }
 0x4b4   : > { %v2238_v42 = vpop.f32.mrb[28].mxu1 }
 0x4b5   : > { %v2240_v18 = vpop.f32.mrb[29].mxu1  ;;  %6603 = vmatmul.mubr.msk.f32.gmra.mrb[108].mxu1 %vm1943_vm0, %v10372_v5  ;;  %v10508_v5 = vpop.permute.xlu1 %7806 }
 0x4b6   : > { %6604 = vmatprep.mubr.msk.f32.mxu1 %vm1943_vm0, %v10264_v19  ;;  %12186 = vst [vmem:[#allocation58_spill] sm:$0xff] %v10508_v5  ;;  %v10514_v38 = vpop.permute.xlu0 %7751 }
 0x4b8   : > { %v2244_v55 = vpop.f32.mrb[30].mxu1 }
 0x4b9   : > { %v2246_v27 = vpop.f32.mrb[31].mxu1  ;;  %6605 = vmatmul.mubr.msk.f32.gmra.mrb[110].mxu1 %vm1943_vm0, %v10264_v19  ;;  %v4473_v19 = vld [vmem:[#allocation2 + $0x358] sm:$0xff]  ;;  %v10521_v5 = vpop.permute.xlu1 %7811 }
 0x4ba   : > { %6606 = vmatprep.mubr.msk.f32.mxu1 %vm1943_vm0, %v10403_v8  ;;  %12187 = vst [vmem:[#allocation59_spill] sm:$0xff] %v10521_v5  ;;  %v10528_v43 = vpop.permute.xlu0 %7761 }
 0x4bd   : > { %6607 = vmatmul.mubr.msk.f32.gmra.mrb[112].mxu1 %vm1943_vm0, %v10403_v8  ;;  %v7865_v8 = vpack.i.bf16 %v4474_v30, %v4473_v19  ;;  %v10531_v62 = vpop.permute.xlu1 %7821 }
 0x4be   : > { %6608 = vmatprep.mubr.msk.f32.mxu1 %vm1943_vm0, %v10292_v4  ;;  %12188 = vst [vmem:[#allocation60_spill] sm:$0xff] %v10531_v62  ;;  %v10537_v30 = vpop.permute.xlu0 %7766 }
 0x4c1   : > { %6609 = vmatmul.mubr.msk.f32.gmra.mrb[114].mxu1 %vm1943_vm0, %v10292_v4  ;;  %v7870_v4 = vpack.i.bf16 %v4458_v9, %v4457_v35  ;;  %v10542_v35 = vpop.permute.xlu1 %7836 }
 0x4c2   : > { %6610 = vmatprep.mubr.msk.f32.mxu1 %vm1943_vm0, %v10430_v53  ;;  %7856 = vrot.lane.b32.xlu1 %v7855_v46, %s8626_s14  ;;  %12189 = vst [vmem:[#allocation61_spill] sm:$0xff] %v10542_v35  ;;  %v10558_v46 = vld [vmem:[%s9006_s6 + $0xe8] sm:$0xff]  ;;  %v10587_v35 = vld [vmem:[%s9006_s6 + $0xf0] sm:$0xff] }
 0x4c3   : > { %7861 = vrot.lane.b32.xlu0 %v7860_v11, %s8626_s14  ;;  %v10566_v19 = vadd.f32 %v2240_v18, %v10558_v46  ;;  %v10590_v18 = vld [vmem:[%s9006_s6 + $0xf8] sm:$0xff] }
 0x4c4   : > { %v10598_v5 = vadd.f32 %v2246_v27, %v10590_v18 }
 0x4c5   : > { %6611 = vmatmul.mubr.msk.f32.gmra.mrb[116].mxu1 %vm1943_vm0, %v10430_v53  ;;  %v4510_v11 = vpop.permute.xlu1 %4509  ;;  %12192 = vst [vmem:[#allocation64_spill] sm:$0xff] %v10566_v19 }
 0x4c6   : > { %6612 = vmatprep.mubr.msk.f32.mxu1 %vm1943_vm0, %v10314_v50  ;;  %12196 = vst [vmem:[#allocation68_spill] sm:$0xff] %v10598_v5 }
 0x4c7   : > { %7866 = vrot.lane.b32.xlu0 %v7865_v8, %s8626_s14  ;;  %v10572_v8 = vld [vmem:[%s9006_s6 + $0xd8] sm:$0xff] }
 0x4c9   : > { %6613 = vmatmul.mubr.msk.f32.gmra.mrb[118].mxu1 %vm1943_vm0, %v10314_v50  ;;  %v10547_v50 = vpop.permute.xlu0 %7771 }
 0x4ca   : > { %6614 = vmatprep.mubr.msk.f32.mxu1 %vm1943_vm0, %v4504_v41 }
 0x4cb   : > { %7871 = vrot.lane.b32.xlu0 %v7870_v4, %s8626_s14  ;;  %v10580_v4 = vadd.f32 %v10488_v51, %v10572_v8 }
 0x4cd   : > { %6615 = vmatmul.mubr.msk.f32.gmra.mrb[120].mxu1 %vm1943_vm0, %v4504_v41  ;;  %v10551_v53 = vpop.permute.xlu0 %7791  ;;  %v10555_v41 = vld [vmem:[%s9006_s6 + $0xe0] sm:$0xff]  ;;  %12193 = vst [vmem:[#allocation65_spill] sm:$0xff] %v10580_v4 }
 0x4ce   : > { %6616 = vmatprep.mubr.msk.f32.mxu1 %vm1943_vm0, %v10340_v56  ;;  %v10563_v3 = vadd.f32 %v2238_v42, %v10555_v41 }
 0x4d0   : > { %12191 = vst [vmem:[#allocation63_spill] sm:$0xff] %v10563_v3 }
 0x4d1   : > { %6617 = vmatmul.mubr.msk.f32.gmra.mrb[122].mxu1 %vm1943_vm0, %v10340_v56  ;;  %v10560_v56 = vpop.permute.xlu0 %7796 }
 0x4d2   : > { %6618 = vmatprep.mubr.msk.f32.mxu1 %vm1943_vm0, %v4508_v29  ;;  %12190 = vst [vmem:[#allocation62_spill] sm:$0xff] %v10560_v56 }
 0x4d5   : > { %6619 = vmatmul.mubr.msk.f32.gmra.mrb[124].mxu1 %vm1943_vm0, %v4508_v29  ;;  %v10569_v29 = vld [vmem:[%s9006_s6 + $0xd0] sm:$0xff]  ;;  %v10584_v42 = vpop.permute.xlu0 %7801 }
 0x4d6   : > { %6620 = vmatprep.mubr.msk.f32.mxu1 %vm1943_vm0, %v4510_v11  ;;  %v10576_v9 = vadd.f32 %v10484_v31, %v10569_v29  ;;  %12194 = vst [vmem:[#allocation66_spill] sm:$0xff] %v10584_v42  ;;  %v10595_v31 = vadd.f32 %v2244_v55, %v10587_v35 }
 0x4d8   : > { %v2288_v62 = vmax.f32 %v10576_v9, %v10580_v4  ;;  %12195 = vst [vmem:[#allocation67_spill] sm:$0xff] %v10595_v31 }
 0x4d9   : > { %6621 = vmatmul.mubr.msk.f32.gmra.mrb[126].mxu1 %vm1943_vm0, %v4510_v11  ;;  %v2291_v11 = vmax.f32 %v10563_v3, %v10566_v19  ;;  %v10600_v51 = vpop.permute.xlu0 %7816  ;;  %v2294_v19 = vmax.f32 %v10595_v31, %v10598_v5 }
 0x4da   : > { %12197 = vst [vmem:[#allocation69_spill] sm:$0xff] %v10600_v51 }
 0x4dd   : > { %v10607_v56 = vpop.permute.xlu0 %7826 }
 0x4de   : > { %12198 = vst [vmem:[#allocation70_spill] sm:$0xff] %v10607_v56 }
 0x4e6   : > { %2292 = vmax.xlane.f32.xlu1 %v2291_v11 }
 0x4ea   : > { %2289 = vmax.xlane.f32.xlu0 %v2288_v62 }
 0x4ee   : > { %2295 = vmax.xlane.f32.xlu0 %v2294_v19 }
 0x4ef   : > { %v2988_v3 = vpop.f32.mrb[32].mxu1 }
 0x4f0   : > { %v10605_v42 = vadd.f32 %v2988_v3, %v10203_v33  ;;  %v2990_v11 = vpop.f32.mrb[33].mxu1  ;;  %v10620_v3 = vpop.permute.xlu0 %7831 }
 0x4f1   : > { %v10610_v55 = vadd.f32 %v2990_v11, %v10206_v22  ;;  %12201 = vst [vmem:[#allocation73_spill] sm:$0xff] %v10620_v3 }
 0x4f3   : > { %12199 = vst [vmem:[#allocation71_spill] sm:$0xff] %v10610_v55  ;;  %v3083_v27 = vmax.f32 %v10605_v42, %v10610_v55  ;;  %v2994_v62 = vpop.f32.mrb[34].mxu1 }
 0x4f4   : > { %v10615_v51 = vadd.f32 %v2994_v62, %v10221_v32  ;;  %v2996_v4 = vpop.f32.mrb[35].mxu1  ;;  %v10635_v62 = vpop.permute.xlu0 %7841 }
 0x4f5   : > { %v10618_v19 = vadd.f32 %v2996_v4, %v10228_v40  ;;  %3084 = vmax.xlane.f32.xlu1 %v3083_v27  ;;  %12203 = vst [vmem:[#allocation75_spill] sm:$0xff] %v10635_v62 }
 0x4f7   : > { %12200 = vst [vmem:[#allocation72_spill] sm:$0xff] %v10618_v19  ;;  %v3086_v56 = vmax.f32 %v10615_v51, %v10618_v19  ;;  %v3000_v5 = vpop.f32.mrb[36].mxu1 }
 0x4f8   : > { %v10625_v11 = vadd.f32 %v3000_v5, %v10247_v57  ;;  %v3002_v31 = vpop.f32.mrb[37].mxu1 }
 0x4f9   : > { %v10628_v55 = vadd.f32 %v3002_v31, %v10250_v0  ;;  %3087 = vmax.xlane.f32.xlu0 %v3086_v56 }
 0x4fb   : > { %12202 = vst [vmem:[#allocation74_spill] sm:$0xff] %v10628_v55  ;;  %v3089_v32 = vmax.f32 %v10625_v11, %v10628_v55  ;;  %v3006_v40 = vpop.f32.mrb[38].mxu1 }
 0x4fc   : > { %v10633_v4 = vadd.f32 %v3006_v40, %v10267_v13  ;;  %v3008_v27 = vpop.f32.mrb[39].mxu1  ;;  %v10648_v13 = vpop.permute.xlu0 %7846 }
 0x4fd   : > { %v10638_v3 = vadd.f32 %v3008_v27, %v10276_v44  ;;  %3090 = vmax.xlane.f32.xlu1 %v3089_v32  ;;  %12204 = vst [vmem:[#allocation76_spill] sm:$0xff] %v10648_v13 }
 0x4ff   : > { %v3092_v5 = vmax.f32 %v10633_v4, %v10638_v3  ;;  %v3012_v31 = vpop.f32.mrb[40].mxu1 }
 0x500   : > { %v10643_v56 = vadd.f32 %v3012_v31, %v10295_v54  ;;  %v3014_v19 = vpop.f32.mrb[41].mxu1  ;;  %v10663_v31 = vpop.permute.xlu0 %7851 }
 0x501   : > { %v10646_v55 = vadd.f32 %v3014_v19, %v10298_v48  ;;  %3093 = vmax.xlane.f32.xlu0 %v3092_v5  ;;  %12207 = vst [vmem:[#allocation79_spill] sm:$0xff] %v10663_v31 }
 0x503   : > { %v3095_v40 = vmax.f32 %v10643_v56, %v10646_v55  ;;  %v3018_v44 = vpop.f32.mrb[42].mxu1 }
 0x504   : > { %v10653_v32 = vadd.f32 %v3018_v44, %v10317_v28  ;;  %v3020_v27 = vpop.f32.mrb[43].mxu1 }
 0x505   : > { %v10656_v62 = vadd.f32 %v3020_v27, %v10324_v59  ;;  %3096 = vmax.xlane.f32.xlu0 %v3095_v40 }
 0x507   : > { %12205 = vst [vmem:[#allocation77_spill] sm:$0xff] %v10656_v62  ;;  %v3098_v54 = vmax.f32 %v10653_v32, %v10656_v62  ;;  %v3024_v48 = vpop.f32.mrb[44].mxu1 }
 0x508   : > { %v10661_v19 = vadd.f32 %v3024_v48, %v10343_v21  ;;  %v3026_v5 = vpop.f32.mrb[45].mxu1 }
 0x509   : > { %v10666_v13 = vadd.f32 %v3026_v5, %v10348_v16  ;;  %3099 = vmax.xlane.f32.xlu1 %v3098_v54 }
 0x50a   : > { %12206 = vst [vmem:[#allocation78_spill] sm:$0xff] %v10661_v19 }
 0x50b   : > { %12208 = vst [vmem:[#allocation80_spill] sm:$0xff] %v10666_v13  ;;  %v3101_v28 = vmax.f32 %v10661_v19, %v10666_v13  ;;  %v3030_v59 = vpop.f32.mrb[46].mxu1 }
 0x50c   : > { %v10671_v40 = vadd.f32 %v3030_v59, %v10363_v14  ;;  %v3032_v44 = vpop.f32.mrb[47].mxu1 }
 0x50d   : > { %v10674_v27 = vadd.f32 %v3032_v44, %v10368_v58  ;;  %3102 = vmax.xlane.f32.xlu0 %v3101_v28 }
 0x50e   : > { %12209 = vst [vmem:[#allocation81_spill] sm:$0xff] %v10671_v40  ;;  %v2251_v21 = vpop.xlane.xlu0 %2250 }
 0x50f   : > { %12210 = vst [vmem:[#allocation82_spill] sm:$0xff] %v10674_v27  ;;  %v3104_v48 = vmax.f32 %v10671_v40, %v10674_v27  ;;  %v3036_v31 = vpop.f32.mrb[48].mxu1  ;;  %v2297_v16 = vsub.f32 %v10209_v63, %v2251_v21  ;;  %v2298_v54 = vsub.f32 %v10214_v23, %v2251_v21 }
 0x510   : > { %v10681_v5 = vadd.f32 %v3036_v31, %v10385_v34  ;;  %v3038_v13 = vpop.f32.mrb[49].mxu1 }
 0x511   : > { %v2329_v14 = vmul.f32 1.442695, %v2297_v16  ;;  %v2331_v59 = vmul.f32 1.442695, %v2298_v54  ;;  %v10684_v19 = vadd.f32 %v3038_v13, %v10388_v37  ;;  %3105 = vmax.xlane.f32.xlu1 %v3104_v48 }
 0x512   : > { %12211 = vst [vmem:[#allocation83_spill] sm:$0xff] %v10681_v5  ;;  %v2254_v58 = vpop.xlane.xlu1 %2253 }
 0x513   : > { %12212 = vst [vmem:[#allocation84_spill] sm:$0xff] %v10684_v19  ;;  %7895 = vpow2.f32 %v2329_v14  ;;  %v3107_v28 = vmax.f32 %v10681_v5, %v10684_v19  ;;  %v3042_v44 = vpop.f32.mrb[50].mxu1  ;;  %v2299_v63 = vsub.f32 %v10235_v26, %v2254_v58  ;;  %v2300_v23 = vsub.f32 %v10240_v36, %v2254_v58 }
 0x514   : > { %7897 = vpow2.f32 %v2331_v59  ;;  %v10691_v31 = vadd.f32 %v3042_v44, %v10401_v25  ;;  %v3044_v21 = vpop.f32.mrb[51].mxu1  ;;  %v7744_v44 = vunpack.i.h.bf16 %v10494_v6  ;;  %v7758_v5 = vunpack.i.l.bf16 %v10435_v60 }
 0x515   : > { %v2333_v16 = vmul.f32 1.442695, %v2299_v63  ;;  %v2335_v54 = vmul.f32 1.442695, %v2300_v23  ;;  %v10694_v13 = vadd.f32 %v3044_v21, %v10408_v61  ;;  %3108 = vmax.xlane.f32.xlu0 %v3107_v28  ;;  %v7759_v21 = vunpack.i.h.bf16 %v10435_v60 }
 0x516   : > { %12213 = vst [vmem:[#allocation85_spill] sm:$0xff] %v10691_v31  ;;  %v2257_v48 = vpop.xlane.xlu0 %2256 }
 0x517   : > { %12214 = vst [vmem:[#allocation86_spill] sm:$0xff] %v10694_v13  ;;  %7899 = vpow2.f32 %v2333_v16  ;;  %v3110_v14 = vmax.f32 %v10691_v31, %v10694_v13  ;;  %v3048_v19 = vpop.f32.mrb[52].mxu1  ;;  %v2301_v26 = vsub.f32 %v10255_v15, %v2257_v48  ;;  %v2302_v36 = vsub.f32 %v10260_v12, %v2257_v48 }
 0x518   : > { %7901 = vpow2.f32 %v2335_v54  ;;  %v10701_v59 = vadd.f32 %v3048_v19, %v10421_v24  ;;  %v3050_v58 = vpop.f32.mrb[53].mxu1  ;;  %v7743_v16 = vunpack.i.l.bf16 %v10494_v6  ;;  %v7749_v15 = vunpack.i.h.bf16 %v10506_v1 }
 0x519   : > { %v2337_v63 = vmul.f32 1.442695, %v2301_v26  ;;  %v2339_v23 = vmul.f32 1.442695, %v2302_v36  ;;  %v10705_v28 = vadd.f32 %v3050_v58, %v10426_v17  ;;  %3111 = vmax.xlane.f32.xlu0 %v3110_v14  ;;  %v7748_v12 = vunpack.i.l.bf16 %v10506_v1  ;;  %v4475_v58 = vld [vmem:[#allocation2 + $0x398] sm:$0xff] }
 0x51a   : > { %12215 = vst [vmem:[#allocation87_spill] sm:$0xff] %v10701_v59  ;;  %v2260_v54 = vpop.xlane.xlu0 %2259  ;;  %v4476_v14 = vld [vmem:[#allocation2 + $0x3b8] sm:$0xff]  ;;  %v7754_v13 = vunpack.i.h.bf16 %v10514_v38  ;;  %v7753_v6 = vunpack.i.l.bf16 %v10514_v38 }
 0x51b   : > { %12216 = vst [vmem:[#allocation88_spill] sm:$0xff] %v10705_v28  ;;  %7903 = vpow2.f32 %v2337_v63  ;;  %v3113_v19 = vmax.f32 %v10701_v59, %v10705_v28  ;;  %v3054_v48 = vpop.f32.mrb[54].mxu1  ;;  %v2303_v26 = vsub.f32 %v10283_v7, %v2260_v54  ;;  %v2304_v36 = vsub.f32 %v10288_v52, %v2260_v54 }
 0x51c   : > { %7905 = vpow2.f32 %v2339_v23  ;;  %v10718_v31 = vadd.f32 %v3054_v48, %v10443_v10  ;;  %v3056_v1 = vpop.f32.mrb[55].mxu1  ;;  %v7152_v54 = vpack.c.bf16 %v7744_v44, %v7743_v16  ;;  %v7875_v40 = vpack.i.bf16 %v4476_v14, %v4475_v58 }
 0x51d   : > { %v7896_v63 = vpop.eup %7895  ;;  %v2341_v28 = vmul.f32 1.442695, %v2303_v26  ;;  %v2343_v59 = vmul.f32 1.442695, %v2304_v36  ;;  %v10722_v7 = vadd.f32 %v3056_v1, %v10448_v39  ;;  %3114 = vmax.xlane.f32.xlu0 %v3113_v19  ;;  %v7156_v60 = vpack.c.bf16 %v7754_v13, %v7753_v6  ;;  %v12219_v6 = vld [vmem:[#allocation41_spill] sm:$0xff] }
 0x51e   : > { %v7898_v52 = vpop.eup %7897  ;;  %v2263_v27 = vpop.xlane.xlu1 %2262  ;;  %v7154_v44 = vpack.c.bf16 %v7749_v15, %v7748_v12  ;;  %v7763_v13 = vunpack.i.l.bf16 %v10528_v43 }
 0x51f   : > { %7907 = vpow2.f32 %v2341_v28  ;;  %v3116_v38 = vmax.f32 %v10718_v31, %v10722_v7  ;;  %v3060_v23 = vpop.f32.mrb[56].mxu1  ;;  %v2305_v48 = vsub.f32 %v10305_v45, %v2263_v27  ;;  %v2306_v62 = vsub.f32 %v10310_v47, %v2263_v27  ;;  %2505 = vmatprep.mubr.f32.mxu0 %v7898_v52 }
 0x520   : > { %7909 = vpow2.f32 %v2343_v59  ;;  %v10729_v26 = vadd.f32 %v3060_v23, %v10461_v20  ;;  %2506 = vmatmul.mubr.f32.vlgmr.msra.gmra.mrb[32].mxu0 %v7896_v63  ;;  %v3062_v19 = vpop.f32.mrb[57].mxu1  ;;  %v7158_v45 = vpack.c.bf16 %v7759_v21, %v7758_v5  ;;  %v7764_v27 = vunpack.i.h.bf16 %v10528_v43  ;;  %v12218_v5 = vld [vmem:[#allocation40_spill] sm:$0xff] }
 0x521   : > { %v7900_v16 = vpop.eup %7899  ;;  %v2345_v36 = vmul.f32 1.442695, %v2305_v48  ;;  %v2347_v28 = vmul.f32 1.442695, %v2306_v62  ;;  %v10732_v58 = vadd.f32 %v3062_v19, %v10466_v49  ;;  %7153 = vmatpush3.bf16.msra.mxu0 %v7152_v54  ;;  %3117 = vmax.xlane.f32.xlu0 %v3116_v38  ;;  %v10738_v15 = vadd.f32 %v7898_v52, %v7896_v63 }
 0x522   : > { %v7902_v14 = vpop.eup %7901  ;;  %7155 = vmatprep.subr.bf16.mxu0 %v7154_v44  ;;  %7876 = vrot.lane.b32.xlu1 %v7875_v40, %s8626_s14  ;;  %v2266_v59 = vpop.xlane.xlu0 %2265  ;;  %v7769_v54 = vunpack.i.h.bf16 %v10537_v30  ;;  %v7768_v43 = vunpack.i.l.bf16 %v10537_v30  ;;  %v7778_v38 = vunpack.i.l.bf16 %v10468_v2  ;;  %v7774_v30 = vunpack.i.h.bf16 %v10547_v50 }
 0x523   : > { %12217 = vst [vmem:[#allocation89_spill] sm:$0xff] %v10738_v15  ;;  %7911 = vpow2.f32 %v2345_v36  ;;  %v3119_v62 = vmax.f32 %v10729_v26, %v10732_v58  ;;  %2510 = vmatprep.mubr.f32.mxu0 %v7902_v14  ;;  %v3066_v12 = vpop.f32.mrb[58].mxu1  ;;  %v2307_v21 = vsub.f32 %v12218_v5, %v2266_v59  ;;  %v2308_v1 = vsub.f32 %v12219_v6, %v2266_v59  ;;  %v12221_v6 = vld [vmem:[#allocation42_spill] sm:$0xff] }
 0x524   : > { %7913 = vpow2.f32 %v2347_v28  ;;  %v10747_v40 = vadd.f32 %v3066_v12, %v10569_v29  ;;  %2511 = vmatmul.mubr.f32.gmra.mrb[34].mxu0 %v7900_v16  ;;  %v3068_v63 = vpop.f32.mrb[59].mxu1  ;;  %v7160_v36 = vpack.c.bf16 %v7764_v27, %v7763_v13  ;;  %v7773_v28 = vunpack.i.l.bf16 %v10547_v50 }
 0x525   : > { %v7904_v52 = vpop.eup %7903  ;;  %v2349_v23 = vmul.f32 1.442695, %v2307_v21  ;;  %v2351_v48 = vmul.f32 1.442695, %v2308_v1  ;;  %v10751_v19 = vadd.f32 %v3068_v63, %v10572_v8  ;;  %7157 = vmatpush3.bf16.msra.mxu0 %v7156_v60  ;;  %3120 = vmax.xlane.f32.xlu0 %v3119_v62  ;;  %v10755_v12 = vadd.f32 %v7902_v14, %v7900_v16  ;;  %v12222_v63 = vld [vmem:[#allocation43_spill] sm:$0xff]  ;;  %v12223_v62 = vld [vmem:[#allocation56_spill] sm:$0xff] }
 0x526   : > { %v7906_v44 = vpop.eup %7905  ;;  %7159 = vmatprep.subr.bf16.mxu0 %v7158_v45  ;;  %v2269_v59 = vpop.xlane.xlu1 %2268  ;;  %v7784_v27 = vunpack.i.h.bf16 %v12223_v62  ;;  %v7162_v16 = vpack.c.bf16 %v7769_v54, %v7768_v43  ;;  %v7164_v15 = vpack.c.bf16 %v7774_v30, %v7773_v28  ;;  %v12228_v30 = vunpack.i.h.bf16 %v10468_v2 }
 0x527   : > { %12220 = vst [vmem:[#allocation40_spill] sm:$0xff] %v10755_v12  ;;  %7915 = vpow2.f32 %v2349_v23  ;;  %v3122_v5 = vmax.f32 %v10747_v40, %v10751_v19  ;;  %v3072_v21 = vpop.f32.mrb[60].mxu1  ;;  %v2309_v1 = vsub.f32 %v12221_v6, %v2269_v59  ;;  %v2310_v60 = vsub.f32 %v12222_v63, %v2269_v59  ;;  %2515 = vmatprep.mubr.f32.mxu0 %v7906_v44 }
 0x528   : > { %7917 = vpow2.f32 %v2351_v48  ;;  %v10763_v13 = vadd.f32 %v3072_v21, %v10555_v41  ;;  %2516 = vmatmul.mubr.f32.gmra.mrb[36].mxu0 %v7904_v52  ;;  %v3074_v50 = vpop.f32.mrb[61].mxu1  ;;  %v10768_v6 = vadd.f32 %v7906_v44, %v7904_v52  ;;  %v7783_v63 = vunpack.i.l.bf16 %v12223_v62  ;;  %v12225_v48 = vld [vmem:[#allocation57_spill] sm:$0xff] }
 0x529   : > { %v7908_v45 = vpop.eup %7907  ;;  %v2353_v14 = vmul.f32 1.442695, %v2309_v1  ;;  %v2355_v23 = vmul.f32 1.442695, %v2310_v60  ;;  %v10766_v47 = vadd.f32 %v3074_v50, %v10558_v46  ;;  %7161 = vmatpush3.bf16.msra.mxu0 %v7160_v36  ;;  %3123 = vmax.xlane.f32.xlu0 %v3122_v5  ;;  %v7789_v12 = vunpack.i.h.bf16 %v12225_v48  ;;  %v12226_v36 = vld [vmem:[#allocation44_spill] sm:$0xff]  ;;  %v12227_v52 = vld [vmem:[#allocation45_spill] sm:$0xff] }
 0x52a   : > { %12224 = vst [vmem:[#allocation41_spill] sm:$0xff] %v10768_v6  ;;  %v7910_v59 = vpop.eup %7909  ;;  %v7788_v21 = vunpack.i.l.bf16 %v12225_v48  ;;  %7163 = vmatprep.subr.bf16.mxu0 %v7162_v16  ;;  %v2272_v54 = vpop.xlane.xlu0 %2271  ;;  %v7166_v28 = vpack.c.bf16 %v12228_v30, %v7778_v38 }
 0x52b   : > { %7919 = vpow2.f32 %v2353_v14  ;;  %v3125_v43 = vmax.f32 %v10763_v13, %v10766_v47  ;;  %2520 = vmatprep.mubr.f32.mxu0 %v7910_v59  ;;  %v3078_v1 = vpop.f32.mrb[62].mxu1  ;;  %v2311_v5 = vsub.f32 %v12226_v36, %v2272_v54  ;;  %v2312_v44 = vsub.f32 %v12227_v52, %v2272_v54 }
 0x52c   : > { %7921 = vpow2.f32 %v2355_v23  ;;  %v10778_v60 = vadd.f32 %v3078_v1, %v10587_v35  ;;  %2521 = vmatmul.mubr.f32.gmra.mrb[38].mxu0 %v7908_v45  ;;  %v3080_v62 = vpop.f32.mrb[63].mxu1  ;;  %v10785_v36 = vadd.f32 %v7910_v59, %v7908_v45  ;;  %v7168_v23 = vpack.c.bf16 %v7784_v27, %v7783_v63  ;;  %v12233_v45 = vld [vmem:[#allocation62_spill] sm:$0xff] }
 0x52d   : > { %v7912_v50 = vpop.eup %7911  ;;  %v2357_v16 = vmul.f32 1.442695, %v2311_v5  ;;  %v2359_v14 = vmul.f32 1.442695, %v2312_v44  ;;  %v10783_v48 = vadd.f32 %v3080_v62, %v10590_v18  ;;  %7165 = vmatpush3.bf16.msra.mxu0 %v7164_v15  ;;  %3126 = vmax.xlane.f32.xlu0 %v3125_v43  ;;  %v7794_v1 = vunpack.i.h.bf16 %v10551_v53  ;;  %v12231_v44 = vld [vmem:[#allocation46_spill] sm:$0xff]  ;;  %v12232_v15 = vld [vmem:[#allocation47_spill] sm:$0xff] }
 0x52e   : > { %12230 = vst [vmem:[#allocation43_spill] sm:$0xff] %v10785_v36  ;;  %v7914_v54 = vpop.eup %7913  ;;  %v7793_v52 = vunpack.i.l.bf16 %v10551_v53  ;;  %7167 = vmatprep.subr.bf16.mxu0 %v7166_v28  ;;  %v2275_v6 = vpop.xlane.xlu1 %2274  ;;  %v7170_v2 = vpack.c.bf16 %v7789_v12, %v7788_v21  ;;  %v7799_v59 = vunpack.i.h.bf16 %v12233_v45  ;;  %v7798_v27 = vunpack.i.l.bf16 %v12233_v45 }
 0x52f   : > { %12229 = vst [vmem:[#allocation42_spill] sm:$0xff] %v10783_v48  ;;  %7923 = vpow2.f32 %v2357_v16  ;;  %v3128_v38 = vmax.f32 %v10778_v60, %v10783_v48  ;;  %v3935_v5 = vpop.f32.mrb[64].mxu1  ;;  %v2313_v62 = vsub.f32 %v12231_v44, %v2275_v6  ;;  %v2314_v43 = vsub.f32 %v12232_v15, %v2275_v6  ;;  %2525 = vmatprep.mubr.f32.mxu0 %v7914_v54  ;;  %v12237_v44 = vld [vmem:[#allocation58_spill] sm:$0xff] }
 0x530   : > { %7925 = vpow2.f32 %v2359_v14  ;;  %v10796_v53 = vadd.f32 %v3935_v5, %v10203_v33  ;;  %2526 = vmatmul.mubr.f32.gmra.mrb[40].mxu0 %v7912_v50  ;;  %v3937_v12 = vpop.f32.mrb[65].mxu1  ;;  %v10801_v6 = vadd.f32 %v7914_v54, %v7912_v50  ;;  %v7809_v15 = vunpack.i.h.bf16 %v12237_v44  ;;  %v12238_v14 = vld [vmem:[#allocation66_spill] sm:$0xff]  ;;  %v12240_v54 = vld [vmem:[#allocation49_spill] sm:$0xff] }
 0x531   : > { %v7916_v63 = vpop.eup %7915  ;;  %v2361_v21 = vmul.f32 1.442695, %v2313_v62  ;;  %v2363_v30 = vmul.f32 1.442695, %v2314_v43  ;;  %7169 = vmatpush3.bf16.msra.mxu0 %v7168_v23  ;;  %v10799_v28 = vadd.f32 %v3937_v12, %v10206_v22  ;;  %3129 = vmax.xlane.f32.xlu0 %v3128_v38  ;;  %v7172_v45 = vpack.c.bf16 %v7794_v1, %v7793_v52  ;;  %v12239_v38 = vld [vmem:[#allocation48_spill] sm:$0xff] }
 0x532   : > { %12234 = vst [vmem:[#allocation56_spill] sm:$0xff] %v10796_v53  ;;  %12236 = vst [vmem:[#allocation44_spill] sm:$0xff] %v10801_v6  ;;  %v7918_v16 = vpop.eup %7917  ;;  %v7804_v36 = vunpack.i.h.bf16 %v12238_v14  ;;  %v7803_v33 = vunpack.i.l.bf16 %v12238_v14  ;;  %7171 = vmatprep.subr.bf16.mxu0 %v7170_v2  ;;  %v2278_v5 = vpop.xlane.xlu0 %2277  ;;  %v7808_v43 = vunpack.i.l.bf16 %v12237_v44  ;;  %v7174_v52 = vpack.c.bf16 %v7799_v59, %v7798_v27  ;;  %v12244_v59 = vld [vmem:[#allocation51_spill] sm:$0xff] }
 0x533   : > { %12235 = vst [vmem:[#allocation57_spill] sm:$0xff] %v10799_v28  ;;  %7927 = vpow2.f32 %v2361_v21  ;;  %v4030_v23 = vmax.f32 %v10796_v53, %v10799_v28  ;;  %2530 = vmatprep.mubr.f32.mxu0 %v7918_v16  ;;  %v10808_v22 = vpop.f32.mrb[66].mxu1  ;;  %v2315_v50 = vsub.f32 %v12239_v38, %v2278_v5  ;;  %v2316_v62 = vsub.f32 %v12240_v54, %v2278_v5  ;;  %v12242_v28 = vld [vmem:[#allocation59_spill] sm:$0xff]  ;;  %v12243_v54 = vld [vmem:[#allocation50_spill] sm:$0xff] }
 0x534   : > { %7929 = vpow2.f32 %v2363_v30  ;;  %2531 = vmatmul.mubr.f32.gmra.mrb[42].mxu0 %v7916_v63  ;;  %v10813_v1 = vpop.f32.mrb[67].mxu1  ;;  %v10815_v2 = vadd.f32 %v7918_v16, %v7916_v63  ;;  %v7814_v53 = vunpack.i.h.bf16 %v12242_v28  ;;  %v7813_v38 = vunpack.i.l.bf16 %v12242_v28  ;;  %v3709_v63 = vld [vmem:[#allocation2 + $0x218] sm:$0xff] }
 0x535   : > { %v7920_v12 = vpop.eup %7919  ;;  %v2365_v21 = vmul.f32 1.442695, %v2315_v50  ;;  %v2367_v14 = vmul.f32 1.442695, %v2316_v62  ;;  %7173 = vmatpush3.bf16.msra.mxu0 %v7172_v45  ;;  %4031 = vmax.xlane.f32.xlu0 %v4030_v23  ;;  %v7176_v44 = vpack.c.bf16 %v7804_v36, %v7803_v33  ;;  %v3710_v16 = vld [vmem:[#allocation2 + $0x238] sm:$0xff]  ;;  %v7178_v50 = vpack.c.bf16 %v7809_v15, %v7808_v43 }
 0x536   : > { %12241 = vst [vmem:[#allocation45_spill] sm:$0xff] %v10815_v2  ;;  %v7922_v6 = vpop.eup %7921  ;;  %7175 = vmatprep.subr.bf16.mxu0 %v7174_v52  ;;  %v2281_v5 = vpop.xlane.xlu1 %2280 }
 0x537   : > { %7931 = vpow2.f32 %v2365_v21  ;;  %v3947_v30 = vpop.f32.mrb[68].mxu1  ;;  %v2317_v48 = vsub.f32 %v12243_v54, %v2281_v5  ;;  %v2318_v27 = vsub.f32 %v12244_v59, %v2281_v5  ;;  %2535 = vmatprep.mubr.f32.mxu0 %v7922_v6  ;;  %v10824_v28 = vadd.f32 %v7922_v6, %v7920_v12  ;;  %v12246_v6 = vld [vmem:[#allocation52_spill] sm:$0xff] }
 0x538   : > { %7933 = vpow2.f32 %v2367_v14  ;;  %v10822_v45 = vadd.f32 %v3947_v30, %v10247_v57  ;;  %2536 = vmatmul.mubr.f32.gmra.mrb[44].mxu0 %v7920_v12  ;;  %v3949_v23 = vpop.f32.mrb[69].mxu1  ;;  %v7180_v5 = vpack.c.bf16 %v7814_v53, %v7813_v38  ;;  %v7230_v14 = vpack.c.bf16 %v3710_v16, %v3709_v63  ;;  %v12247_v12 = vld [vmem:[#allocation53_spill] sm:$0xff]  ;;  %v12248_v16 = vld [vmem:[#allocation54_spill] sm:$0xff] }
 0x539   : > { %12245 = vst [vmem:[#allocation46_spill] sm:$0xff] %v10824_v28  ;;  %v7924_v62 = vpop.eup %7923  ;;  %v2369_v36 = vmul.f32 1.442695, %v2317_v48  ;;  %v2371_v33 = vmul.f32 1.442695, %v2318_v27  ;;  %7177 = vmatpush3.bf16.msra.mxu0 %v7176_v44  ;;  %v10827_v52 = vadd.f32 %v3949_v23, %v10250_v0 }
 0x53a   : > { %v7926_v21 = vpop.eup %7925  ;;  %7179 = vmatprep.subr.bf16.mxu0 %v7178_v50  ;;  %v2284_v54 = vpop.xlane.xlu0 %2283  ;;  %v12249_v50 = vld [vmem:[#allocation55_spill] sm:$0xff] }
 0x53b   : > { %7935 = vpow2.f32 %v2369_v36  ;;  %v4036_v57 = vmax.f32 %v10822_v45, %v10827_v52  ;;  %2540 = vmatprep.mubr.f32.mxu0 %v7926_v21  ;;  %v3953_v15 = vpop.f32.mrb[70].mxu1  ;;  %v2319_v43 = vsub.f32 %v12246_v6, %v2284_v54  ;;  %v2320_v48 = vsub.f32 %v12247_v12, %v2284_v54  ;;  %v10852_v54 = vld [vmem:[%s9006_s6 + $0x40] sm:$0xff]  ;;  %v10858_v12 = vld [vmem:[%s9006_s6 + $0x48] sm:$0xff] }
 0x53c   : > { %7937 = vpow2.f32 %v2371_v33  ;;  %2541 = vmatmul.mubr.f32.gmra.mrb[46].mxu0 %v7924_v62  ;;  %v3955_v0 = vpop.f32.mrb[71].mxu1  ;;  %v10833_v44 = vadd.f32 %v7926_v21, %v7924_v62  ;;  %v10838_v62 = vld [vmem:[%s9006_s6 + $0x10] sm:$0xff]  ;;  %v10845_v21 = vld [vmem:[%s9006_s6 + $0x18] sm:$0xff] }
 0x53d   : > { %v7928_v53 = vpop.eup %7927  ;;  %v2373_v38 = vmul.f32 1.442695, %v2319_v43  ;;  %v2375_v30 = vmul.f32 1.442695, %v2320_v48  ;;  %7181 = vmatpush3.bf16.msra.mxu0 %v7180_v5  ;;  %4037 = vmax.xlane.f32.xlu0 %v4036_v57  ;;  %v10842_v33 = vadd.f32 %v10838_v62, %v10808_v22  ;;  %v10849_v5 = vadd.f32 %v10845_v21, %v10813_v1 }
 0x53e   : > { %v7930_v59 = vpop.eup %7929  ;;  %v2287_v27 = vpop.xlane.xlu1 %2286  ;;  %7231 = vmatprep.subr.bf16.mxu0 %v7230_v14 }
 0x53f   : > { %7939 = vpow2.f32 %v2373_v38  ;;  %v3959_v63 = vpop.f32.mrb[72].mxu1  ;;  %v2321_v23 = vsub.f32 %v12248_v16, %v2287_v27  ;;  %v2322_v36 = vsub.f32 %v12249_v50, %v2287_v27  ;;  %2545 = vmatprep.mubr.f32.mxu0 %v7930_v59  ;;  %12250 = vst [vmem:[#allocation47_spill] sm:$0xff] %v10842_v33  ;;  %12251 = vst [vmem:[#allocation62_spill] sm:$0xff] %v10849_v5  ;;  %v10870_v16 = vld [vmem:[%s9006_s6 + $0x30] sm:$0xff]  ;;  %v10876_v50 = vld [vmem:[%s9006_s6 + $0x38] sm:$0xff] }
 0x540   : > { %7941 = vpow2.f32 %v2375_v30  ;;  %v10855_v14 = vadd.f32 %v10852_v54, %v3959_v63  ;;  %2546 = vmatmul.mubr.f32.gmra.mrb[48].mxu0 %v7928_v53  ;;  %v3961_v57 = vpop.f32.mrb[73].mxu1  ;;  %v10863_v1 = vadd.f32 %v7930_v59, %v7928_v53  ;;  %v4033_v63 = vmax.f32 %v10842_v33, %v10849_v5  ;;  %v10924_v33 = vld [vmem:[%s9006_s6 + $0x78] sm:$0xff] }
 0x541   : > { %v7932_v6 = vpop.eup %7931  ;;  %v2377_v43 = vmul.f32 1.442695, %v2321_v23  ;;  %v2379_v22 = vmul.f32 1.442695, %v2322_v36  ;;  %v10861_v48 = vadd.f32 %v10858_v12, %v3961_v57  ;;  %v10873_v23 = vadd.f32 %v10870_v16, %v3953_v15 }
 0x542   : > { %12252 = vst [vmem:[#allocation58_spill] sm:$0xff] %v10855_v14  ;;  %v7934_v38 = vpop.eup %7933  ;;  %v10879_v53 = vadd.f32 %v10876_v50, %v3955_v0  ;;  %v10888_v0 = vld [vmem:[%s9006_s6 + $0x50] sm:$0xff] }
 0x543   : > { %12253 = vst [vmem:[#allocation66_spill] sm:$0xff] %v10861_v48  ;;  %7943 = vpow2.f32 %v2377_v43  ;;  %v4042_v30 = vmax.f32 %v10855_v14, %v10861_v48  ;;  %2550 = vmatprep.mubr.f32.mxu0 %v7934_v38  ;;  %v3965_v27 = vpop.f32.mrb[74].mxu1  ;;  %12254 = vst [vmem:[#allocation48_spill] sm:$0xff] %v10873_v23  ;;  %v10881_v57 = vadd.f32 %v7934_v38, %v7932_v6  ;;  %v10894_v48 = vld [vmem:[%s9006_s6 + $0x58] sm:$0xff]  ;;  %v10900_v38 = vld [vmem:[%s9006_s6 + $0x60] sm:$0xff] }
 0x544   : > { %12255 = vst [vmem:[#allocation49_spill] sm:$0xff] %v10879_v53  ;;  %7945 = vpow2.f32 %v2379_v22  ;;  %2551 = vmatmul.mubr.f32.gmra.mrb[50].mxu0 %v7932_v6  ;;  %v3967_v59 = vpop.f32.mrb[75].mxu1  ;;  %v4039_v2 = vmax.f32 %v10873_v23, %v10879_v53  ;;  %v10891_v22 = vadd.f32 %v10888_v0, %v3965_v27 }
 0x545   : > { %v7936_v36 = vpop.eup %7935  ;;  %4043 = vmax.xlane.f32.xlu0 %v4042_v30  ;;  %12256 = vst [vmem:[#allocation59_spill] sm:$0xff] %v10881_v57  ;;  %v10897_v6 = vadd.f32 %v10894_v48, %v3967_v59 }
 0x546   : > { %v7938_v43 = vpop.eup %7937  ;;  %4034 = vmax.xlane.f32.xlu1 %v4033_v63 }
 0x547   : > { %2555 = vmatprep.mubr.f32.mxu0 %v7938_v43  ;;  %v3971_v15 = vpop.f32.mrb[76].mxu1  ;;  %v10883_v28 = vadd.f32 %v7938_v43, %v7936_v36  ;;  %12258 = vst [vmem:[#allocation51_spill] sm:$0xff] %v10897_v6 }
 0x548   : > { %v10903_v30 = vadd.f32 %v10900_v38, %v3971_v15  ;;  %2556 = vmatmul.mubr.f32.gmra.mrb[52].mxu0 %v7936_v36  ;;  %v3973_v63 = vpop.f32.mrb[77].mxu1  ;;  %v4045_v36 = vmax.f32 %v10891_v22, %v10897_v6  ;;  %v10918_v15 = vld [vmem:[%s9006_s6 + $0x70] sm:$0xff] }
 0x549   : > { %12257 = vst [vmem:[#allocation50_spill] sm:$0xff] %v10883_v28  ;;  %v7940_v43 = vpop.eup %7939  ;;  %v10906_v28 = vld [vmem:[%s9006_s6 + $0x68] sm:$0xff] }
 0x54a   : > { %12259 = vst [vmem:[#allocation52_spill] sm:$0xff] %v10903_v30  ;;  %v10909_v27 = vadd.f32 %v10906_v28, %v3973_v63  ;;  %v7942_v57 = vpop.eup %7941  ;;  %4040 = vmax.xlane.f32.xlu1 %v4039_v2 }
 0x54b   : > { %2560 = vmatprep.mubr.f32.mxu0 %v7942_v57  ;;  %v3977_v14 = vpop.f32.mrb[78].mxu1  ;;  %v10913_v53 = vadd.f32 %v7942_v57, %v7940_v43 }
 0x54c   : > { %12260 = vst [vmem:[#allocation53_spill] sm:$0xff] %v10909_v27  ;;  %v4048_v59 = vmax.f32 %v10903_v30, %v10909_v27  ;;  %v10921_v23 = vadd.f32 %v10918_v15, %v3977_v14  ;;  %2561 = vmatmul.mubr.f32.gmra.mrb[54].mxu0 %v7940_v43  ;;  %v3979_v63 = vpop.f32.mrb[79].mxu1 }
 0x54d   : > { %12261 = vst [vmem:[#allocation54_spill] sm:$0xff] %v10913_v53  ;;  %v7944_v5 = vpop.eup %7943  ;;  %v10927_v2 = vadd.f32 %v10924_v33, %v3979_v63 }
 0x54e   : > { %12262 = vst [vmem:[#allocation55_spill] sm:$0xff] %v10921_v23  ;;  %4049 = vmax.xlane.f32.xlu0 %v4048_v59  ;;  %v7946_v27 = vpop.eup %7945  ;;  %4046 = vmax.xlane.f32.xlu1 %v4045_v36 }
 0x54f   : > { %12263 = vst [vmem:[#allocation90_spill] sm:$0xff] %v10927_v2  ;;  %v4051_v57 = vmax.f32 %v10921_v23, %v10927_v2  ;;  %2565 = vmatprep.mubr.f32.mxu0 %v7946_v27  ;;  %v3983_v53 = vpop.f32.mrb[80].mxu1  ;;  %v10931_v30 = vadd.f32 %v7946_v27, %v7944_v5 }
 0x550   : > { %v10934_v14 = vadd.f32 %v3983_v53, %v10385_v34  ;;  %2566 = vmatmul.mubr.f32.gmra.mrb[56].mxu0 %v7944_v5  ;;  %v3985_v43 = vpop.f32.mrb[81].mxu1 }
 0x551   : > { %12264 = vst [vmem:[#allocation91_spill] sm:$0xff] %v10931_v30  ;;  %v10937_v6 = vadd.f32 %v3985_v43, %v10388_v37 }
 0x552   : > { %12265 = vst [vmem:[#allocation92_spill] sm:$0xff] %v10934_v14  ;;  %4052 = vmax.xlane.f32.xlu1 %v4051_v57 }
 0x553   : > { %12266 = vst [vmem:[#allocation93_spill] sm:$0xff] %v10937_v6  ;;  %v4054_v59 = vmax.f32 %v10934_v14, %v10937_v6  ;;  %v3989_v36 = vpop.f32.mrb[82].mxu1  ;;  %v3701_v6 = vld [vmem:[#allocation2 + $0x118] sm:$0xff] }
 0x554   : > { %v10942_v63 = vadd.f32 %v3989_v36, %v10401_v25  ;;  %v3991_v2 = vpop.f32.mrb[83].mxu1 }
 0x555   : > { %v10945_v27 = vadd.f32 %v3991_v2, %v10408_v61  ;;  %4055 = vmax.xlane.f32.xlu0 %v4054_v59 }
 0x556   : > { %12267 = vst [vmem:[#allocation94_spill] sm:$0xff] %v10942_v63 }
 0x557   : > { %12268 = vst [vmem:[#allocation95_spill] sm:$0xff] %v10945_v27  ;;  %v4057_v34 = vmax.f32 %v10942_v63, %v10945_v27  ;;  %v3995_v5 = vpop.f32.mrb[84].mxu1 }
 0x558   : > { %v10950_v37 = vadd.f32 %v3995_v5, %v10421_v24  ;;  %v3997_v53 = vpop.f32.mrb[85].mxu1 }
 0x559   : > { %v10953_v57 = vadd.f32 %v3997_v53, %v10426_v17  ;;  %4058 = vmax.xlane.f32.xlu1 %v4057_v34 }
 0x55a   : > { %12269 = vst [vmem:[#allocation96_spill] sm:$0xff] %v10950_v37 }
 0x55b   : > { %12270 = vst [vmem:[#allocation97_spill] sm:$0xff] %v10953_v57  ;;  %v4060_v25 = vmax.f32 %v10950_v37, %v10953_v57  ;;  %v4001_v43 = vpop.f32.mrb[86].mxu1  ;;  %v12309_v57 = vld [vmem:[#allocation80_spill] sm:$0xff] }
 0x55c   : > { %v10958_v61 = vadd.f32 %v4001_v43, %v10443_v10  ;;  %v4003_v2 = vpop.f32.mrb[87].mxu1 }
 0x55d   : > { %v10961_v59 = vadd.f32 %v4003_v2, %v10448_v39  ;;  %4061 = vmax.xlane.f32.xlu0 %v4060_v25 }
 0x55e   : > { %12271 = vst [vmem:[#allocation98_spill] sm:$0xff] %v10958_v61 }
 0x55f   : > { %12272 = vst [vmem:[#allocation99_spill] sm:$0xff] %v10961_v59  ;;  %v4063_v24 = vmax.f32 %v10958_v61, %v10961_v59  ;;  %v4007_v36 = vpop.f32.mrb[88].mxu1  ;;  %v12306_v61 = vld [vmem:[#allocation77_spill] sm:$0xff] }
 0x560   : > { %v10966_v17 = vadd.f32 %v4007_v36, %v10461_v20  ;;  %v4009_v34 = vpop.f32.mrb[89].mxu1 }
 0x561   : > { %v10969_v5 = vadd.f32 %v4009_v34, %v10466_v49  ;;  %4064 = vmax.xlane.f32.xlu1 %v4063_v24  ;;  %v10981_v49 = vpop.permute.xlu0 %7861 }
 0x562   : > { %12273 = vst [vmem:[#allocation100_spill] sm:$0xff] %v10966_v17 }
 0x563   : > { %12274 = vst [vmem:[#allocation101_spill] sm:$0xff] %v10969_v5  ;;  %v4066_v10 = vmax.f32 %v10966_v17, %v10969_v5  ;;  %v4013_v53 = vpop.f32.mrb[90].mxu1 }
 0x564   : > { %v10974_v39 = vadd.f32 %v4013_v53, %v10569_v29  ;;  %v4015_v25 = vpop.f32.mrb[91].mxu1 }
 0x565   : > { %v10977_v43 = vadd.f32 %v4015_v25, %v10572_v8  ;;  %4067 = vmax.xlane.f32.xlu0 %v4066_v10  ;;  %v10997_v30 = vpop.permute.xlu0 %7866 }
 0x566   : > { %12275 = vst [vmem:[#allocation102_spill] sm:$0xff] %v10974_v39  ;;  %12281 = vst [vmem:[#allocation108_spill] sm:$0xff] %v10997_v30  ;;  %v3703_v30 = vld [vmem:[#allocation2 + $0x158] sm:$0xff] }
 0x567   : > { %12276 = vst [vmem:[#allocation103_spill] sm:$0xff] %v10977_v43  ;;  %v4069_v20 = vmax.f32 %v10974_v39, %v10977_v43  ;;  %v4019_v2 = vpop.f32.mrb[92].mxu1 }
 0x568   : > { %v10984_v24 = vadd.f32 %v4019_v2, %v10555_v41  ;;  %v4021_v36 = vpop.f32.mrb[93].mxu1  ;;  %v8291_v2 = vld [vmem:[%s9006_s6] sm:$0xff] }
 0x569   : > { %v10987_v34 = vadd.f32 %v4021_v36, %v10558_v46  ;;  %4070 = vmax.xlane.f32.xlu1 %v4069_v20  ;;  %v11001_v46 = vpop.permute.xlu1 %7856 }
 0x56a   : > { %12277 = vst [vmem:[#allocation104_spill] sm:$0xff] %v10984_v24 }
 0x56b   : > { %12278 = vst [vmem:[#allocation105_spill] sm:$0xff] %v10987_v34  ;;  %v4072_v29 = vmax.f32 %v10984_v24, %v10987_v34  ;;  %v4025_v8 = vpop.f32.mrb[94].mxu1  ;;  %v11009_v24 = vpop.permute.xlu0 %7871 }
 0x56c   : > { %v10992_v10 = vadd.f32 %v4025_v8, %v10587_v35  ;;  %v4027_v53 = vpop.f32.mrb[95].mxu1  ;;  %v8292_v35 = vld [vmem:[%s9006_s6 + $0x8] sm:$0xff]  ;;  %12284 = vst [vmem:[#allocation111_spill] sm:$0xff] %v11009_v24  ;;  %v12312_v24 = vld [vmem:[#allocation82_spill] sm:$0xff] }
 0x56d   : > { %v10995_v25 = vadd.f32 %v4027_v53, %v10590_v18  ;;  %4073 = vmax.xlane.f32.xlu0 %v4072_v29  ;;  %v12285_v53 = vld [vmem:[#allocation63_spill] sm:$0xff] }
 0x56e   : > { %12279 = vst [vmem:[#allocation106_spill] sm:$0xff] %v10992_v10 }
 0x56f   : > { %12280 = vst [vmem:[#allocation107_spill] sm:$0xff] %v10995_v25  ;;  %v4075_v41 = vmax.f32 %v10992_v10, %v10995_v25  ;;  %v12286_v25 = vld [vmem:[#allocation64_spill] sm:$0xff] }
 0x570   : > { %v4769_v20 = vpop.f32.mrb[96].mxu1 }
 0x571   : > { %v11004_v36 = vadd.f32 %v8291_v2, %v4769_v20  ;;  %4076 = vmax.xlane.f32.xlu1 %v4075_v41  ;;  %v4771_v34 = vpop.f32.mrb[97].mxu1 }
 0x572   : > { %v11007_v8 = vadd.f32 %v8292_v35, %v4771_v34 }
 0x573   : > { %12282 = vst [vmem:[#allocation109_spill] sm:$0xff] %v11004_v36  ;;  %v2293_v18 = vpop.xlane.xlu1 %2292 }
 0x574   : > { %12283 = vst [vmem:[#allocation110_spill] sm:$0xff] %v11007_v8  ;;  %v4864_v29 = vmax.f32 %v11004_v36, %v11007_v8  ;;  %v2325_v43 = vsub.f32 %v12285_v53, %v2293_v18  ;;  %v2326_v10 = vsub.f32 %v12286_v25, %v2293_v18  ;;  %v4775_v39 = vpop.f32.mrb[98].mxu1  ;;  %v12289_v25 = vld [vmem:[#allocation65_spill] sm:$0xff] }
 0x575   : > { %v11016_v20 = vadd.f32 %v10838_v62, %v4775_v39  ;;  %v4777_v41 = vpop.f32.mrb[99].mxu1  ;;  %v8293_v62 = vld [vmem:[%s9006_s6 + $0x20] sm:$0xff] }
 0x576   : > { %v2385_v2 = vmul.f32 1.442695, %v2325_v43  ;;  %v2387_v34 = vmul.f32 1.442695, %v2326_v10  ;;  %v11019_v35 = vadd.f32 %v10845_v21, %v4777_v41  ;;  %4865 = vmax.xlane.f32.xlu1 %v4864_v29  ;;  %v8294_v21 = vld [vmem:[%s9006_s6 + $0x28] sm:$0xff] }
 0x577   : > { %12287 = vst [vmem:[#allocation63_spill] sm:$0xff] %v11016_v20  ;;  %v2290_v5 = vpop.xlane.xlu0 %2289 }
 0x578   : > { %12288 = vst [vmem:[#allocation64_spill] sm:$0xff] %v11019_v35  ;;  %7947 = vpow2.f32 %v2385_v2  ;;  %v4867_v53 = vmax.f32 %v11016_v20, %v11019_v35  ;;  %v2323_v8 = vsub.f32 %v10576_v9, %v2290_v5  ;;  %v2324_v18 = vsub.f32 %v12289_v25, %v2290_v5  ;;  %v4781_v36 = vpop.f32.mrb[100].mxu1  ;;  %v12292_v9 = vld [vmem:[#allocation67_spill] sm:$0xff]  ;;  %v12293_v5 = vld [vmem:[#allocation68_spill] sm:$0xff] }
 0x579   : > { %7949 = vpow2.f32 %v2387_v34  ;;  %v11026_v39 = vadd.f32 %v8293_v62, %v4781_v36  ;;  %v4783_v43 = vpop.f32.mrb[101].mxu1 }
 0x57a   : > { %v2381_v10 = vmul.f32 1.442695, %v2323_v8  ;;  %v2383_v17 = vmul.f32 1.442695, %v2324_v18  ;;  %v11029_v41 = vadd.f32 %v8294_v21, %v4783_v43  ;;  %4868 = vmax.xlane.f32.xlu0 %v4867_v53 }
 0x57b   : > { %12290 = vst [vmem:[#allocation65_spill] sm:$0xff] %v11026_v39  ;;  %v2296_v29 = vpop.xlane.xlu0 %2295 }
 0x57c   : > { %12291 = vst [vmem:[#allocation112_spill] sm:$0xff] %v11029_v41  ;;  %7951 = vpow2.f32 %v2381_v10  ;;  %v4870_v2 = vmax.f32 %v11026_v39, %v11029_v41  ;;  %v2327_v35 = vsub.f32 %v12292_v9, %v2296_v29  ;;  %v2328_v25 = vsub.f32 %v12293_v5, %v2296_v29  ;;  %v4787_v34 = vpop.f32.mrb[102].mxu1 }
 0x57d   : > { %7953 = vpow2.f32 %v2383_v17  ;;  %v11036_v36 = vadd.f32 %v10870_v16, %v4787_v34  ;;  %v4789_v8 = vpop.f32.mrb[103].mxu1 }
 0x57e   : > { %v2389_v18 = vmul.f32 1.442695, %v2327_v35  ;;  %v2391_v62 = vmul.f32 1.442695, %v2328_v25  ;;  %v11039_v43 = vadd.f32 %v10876_v50, %v4789_v8  ;;  %4871 = vmax.xlane.f32.xlu1 %v4870_v2  ;;  %v12298_v2 = vld [vmem:[#allocation71_spill] sm:$0xff] }
 0x57f   : > { %12294 = vst [vmem:[#allocation67_spill] sm:$0xff] %v11036_v36 }
 0x580   : > { %12295 = vst [vmem:[#allocation68_spill] sm:$0xff] %v11039_v43  ;;  %7955 = vpow2.f32 %v2389_v18  ;;  %v4873_v53 = vmax.f32 %v11036_v36, %v11039_v43  ;;  %v4793_v10 = vpop.f32.mrb[104].mxu1  ;;  %v3696_v43 = vld [vmem:[#allocation2 + $0x78] sm:$0xff] }
 0x581   : > { %7957 = vpow2.f32 %v2391_v62  ;;  %v11044_v21 = vadd.f32 %v10852_v54, %v4793_v10  ;;  %v4795_v17 = vpop.f32.mrb[105].mxu1 }
 0x582   : > { %v7948_v29 = vpop.eup %7947  ;;  %v11047_v16 = vadd.f32 %v10858_v12, %v4795_v17  ;;  %v3085_v35 = vpop.xlane.xlu1 %3084  ;;  %4874 = vmax.xlane.f32.xlu0 %v4873_v53 }
 0x583   : > { %12296 = vst [vmem:[#allocation113_spill] sm:$0xff] %v11044_v21  ;;  %v7950_v9 = vpop.eup %7949  ;;  %v3131_v50 = vsub.f32 %v10605_v42, %v3085_v35  ;;  %v3132_v5 = vsub.f32 %v12298_v2, %v3085_v35  ;;  %v12302_v2 = vld [vmem:[#allocation72_spill] sm:$0xff] }
 0x584   : > { %12297 = vst [vmem:[#allocation114_spill] sm:$0xff] %v11047_v16  ;;  %v4876_v25 = vmax.f32 %v11044_v21, %v11047_v16  ;;  %v4799_v34 = vpop.f32.mrb[106].mxu1  ;;  %v11053_v8 = vadd.f32 %v7950_v9, %v7948_v29 }
 0x585   : > { %v3163_v54 = vmul.f32 1.442695, %v3131_v50  ;;  %v3165_v18 = vmul.f32 1.442695, %v3132_v5  ;;  %v11056_v62 = vadd.f32 %v10888_v0, %v4799_v34  ;;  %v4801_v12 = vpop.f32.mrb[107].mxu1 }
 0x586   : > { %12299 = vst [vmem:[#allocation71_spill] sm:$0xff] %v11053_v8  ;;  %v7952_v10 = vpop.eup %7951  ;;  %v11059_v53 = vadd.f32 %v10894_v48, %v4801_v12  ;;  %v3088_v17 = vpop.xlane.xlu0 %3087  ;;  %4877 = vmax.xlane.f32.xlu1 %v4876_v25 }
 0x587   : > { %12300 = vst [vmem:[#allocation115_spill] sm:$0xff] %v11056_v62  ;;  %v7954_v42 = vpop.eup %7953  ;;  %7959 = vpow2.f32 %v3163_v54  ;;  %v3133_v35 = vsub.f32 %v10615_v51, %v3088_v17  ;;  %v3134_v16 = vsub.f32 %v12302_v2, %v3088_v17  ;;  %v12304_v17 = vld [vmem:[#allocation74_spill] sm:$0xff] }
 0x588   : > { %12301 = vst [vmem:[#allocation116_spill] sm:$0xff] %v11059_v53  ;;  %7961 = vpow2.f32 %v3165_v18  ;;  %v4879_v50 = vmax.f32 %v11056_v62, %v11059_v53  ;;  %2570 = vmatprep.mubr.f32.mxu0 %v7954_v42  ;;  %v11065_v0 = vpop.f32.mrb[108].mxu1  ;;  %v11067_v5 = vadd.f32 %v7954_v42, %v7952_v10 }
 0x589   : > { %v3167_v34 = vmul.f32 1.442695, %v3133_v35  ;;  %v3169_v48 = vmul.f32 1.442695, %v3134_v16  ;;  %2571 = vmatmul.mubr.f32.gmra.mrb[58].mxu0 %v7952_v10  ;;  %v11069_v12 = vpop.f32.mrb[109].mxu1 }
 0x58a   : > { %12303 = vst [vmem:[#allocation72_spill] sm:$0xff] %v11067_v5  ;;  %v7956_v25 = vpop.eup %7955  ;;  %v3091_v54 = vpop.xlane.xlu1 %3090  ;;  %2575 = vmatprep.mubr.f32.mxu0 %v7950_v9  ;;  %4880 = vmax.xlane.f32.xlu0 %v4879_v50  ;;  %v3693_v9 = vld [vmem:[#allocation2 + $0x18] sm:$0xff] }
 0x58b   : > { %v7958_v51 = vpop.eup %7957  ;;  %7963 = vpow2.f32 %v3167_v34  ;;  %v3135_v18 = vsub.f32 %v10625_v11, %v3091_v54  ;;  %v3136_v2 = vsub.f32 %v12304_v17, %v3091_v54  ;;  %v3694_v34 = vld [vmem:[#allocation2 + $0x38] sm:$0xff] }
 0x58c   : > { %7965 = vpow2.f32 %v3169_v48  ;;  %v11073_v8 = vpop.f32.mrb[110].mxu1  ;;  %v11075_v42 = vadd.f32 %v7958_v51, %v7956_v25  ;;  %v11081_v54 = vld [vmem:[#allocation2 + $0x198] sm:$0xff]  ;;  %v7232_v62 = vpack.c.bf16 %v3694_v34, %v3693_v9 }
 0x58d   : > { %v3171_v35 = vmul.f32 1.442695, %v3135_v18  ;;  %v3173_v16 = vmul.f32 1.442695, %v3136_v2  ;;  %2576 = vmatmul.mubr.f32.gmra.mrb[60].mxu0 %v7948_v29  ;;  %v11077_v10 = vpop.f32.mrb[111].mxu1  ;;  %v11083_v48 = vld [vmem:[#allocation2 + $0x1b8] sm:$0xff] }
 0x58e   : > { %12305 = vst [vmem:[#allocation74_spill] sm:$0xff] %v11075_v42  ;;  %2580 = vmatprep.mubr.f32.mxu0 %v7958_v51  ;;  %v3094_v5 = vpop.xlane.xlu0 %3093  ;;  %v3711_v18 = vld [vmem:[#allocation2 + $0x258] sm:$0xff] }
 0x58f   : > { %7967 = vpow2.f32 %v3171_v35  ;;  %v3137_v50 = vsub.f32 %v10633_v4, %v3094_v5  ;;  %v3138_v11 = vsub.f32 %v10638_v3, %v3094_v5  ;;  %v3712_v35 = vld [vmem:[#allocation2 + $0x278] sm:$0xff]  ;;  %v7880_v3 = vpack.i.bf16 %v11083_v48, %v11081_v54 }
 0x590   : > { %7969 = vpow2.f32 %v3173_v16  ;;  %v11085_v17 = vpop.f32.mrb[112].mxu1  ;;  %v3695_v5 = vld [vmem:[#allocation2 + $0x58] sm:$0xff]  ;;  %v7234_v41 = vpack.c.bf16 %v3712_v35, %v3711_v18 }
 0x591   : > { %v7960_v29 = vpop.eup %7959  ;;  %v3175_v2 = vmul.f32 1.442695, %v3137_v50  ;;  %v3177_v42 = vmul.f32 1.442695, %v3138_v11  ;;  %2581 = vmatmul.mubr.f32.gmra.mrb[62].mxu0 %v7956_v25  ;;  %v11087_v51 = vpop.f32.mrb[113].mxu1  ;;  %v3713_v50 = vld [vmem:[#allocation2 + $0x298] sm:$0xff]  ;;  %v7236_v59 = vpack.c.bf16 %v3696_v43, %v3695_v5 }
 0x592   : > { %v7962_v53 = vpop.eup %7961  ;;  %v3097_v4 = vpop.xlane.xlu0 %3096  ;;  %v3714_v11 = vld [vmem:[#allocation2 + $0x2b8] sm:$0xff] }
 0x593   : > { %7971 = vpow2.f32 %v3175_v2  ;;  %3467 = vmatprep.mubr.f32.mxu0 %v7962_v53  ;;  %v3139_v16 = vsub.f32 %v10643_v56, %v3097_v4  ;;  %v3140_v21 = vsub.f32 %v10646_v55, %v3097_v4  ;;  %v11093_v25 = vadd.f32 %v7962_v53, %v7960_v29  ;;  %v3697_v4 = vld [vmem:[#allocation2 + $0x98] sm:$0xff] }
 0x594   : > { %7973 = vpow2.f32 %v3177_v42  ;;  %v11095_v36 = vpop.f32.mrb[114].mxu1  ;;  %v7238_v55 = vpack.c.bf16 %v3714_v11, %v3713_v50  ;;  %v3698_v18 = vld [vmem:[#allocation2 + $0xb8] sm:$0xff] }
 0x595   : > { %v7964_v9 = vpop.eup %7963  ;;  %v3179_v34 = vmul.f32 1.442695, %v3139_v16  ;;  %v3181_v39 = vmul.f32 1.442695, %v3140_v21  ;;  %3468 = vmatmul.mubr.f32.vlgmr.msra.gmra.mrb[64].mxu0 %v7960_v29  ;;  %v11097_v20 = vpop.f32.mrb[115].mxu1  ;;  %v3715_v35 = vld [vmem:[#allocation2 + $0x2d8] sm:$0xff] }
 0x596   : > { %v7966_v2 = vpop.eup %7965  ;;  %7233 = vmatpush3.bf16.msra.mxu0 %v7232_v62  ;;  %v3100_v56 = vpop.xlane.xlu1 %3099  ;;  %v3716_v21 = vld [vmem:[#allocation2 + $0x2f8] sm:$0xff] }
 0x597   : > { %7975 = vpow2.f32 %v3179_v34  ;;  %v3141_v53 = vsub.f32 %v10653_v32, %v3100_v56  ;;  %v3142_v42 = vsub.f32 %v12306_v61, %v3100_v56  ;;  %3472 = vmatprep.mubr.f32.mxu0 %v7966_v2  ;;  %7881 = vrot.lane.b32.xlu1 %v7880_v3, %s8626_s14  ;;  %v11102_v29 = vadd.f32 %v7966_v2, %v7964_v9  ;;  %v11106_v43 = vld [vmem:[#allocation2 + $0x3d8] sm:$0xff] }
 0x598   : > { %7977 = vpow2.f32 %v3181_v39  ;;  %7235 = vmatprep.subr.bf16.mxu0 %v7234_v41  ;;  %v11104_v62 = vpop.f32.mrb[116].mxu1  ;;  %v11110_v61 = vld [vmem:[#allocation2 + $0x3f8] sm:$0xff]  ;;  %v7240_v34 = vpack.c.bf16 %v3698_v18, %v3697_v4  ;;  %v7242_v2 = vpack.c.bf16 %v3716_v21, %v3715_v35 }
 0x599   : > { %12307 = vst [vmem:[#allocation77_spill] sm:$0xff] %v11102_v29  ;;  %v7968_v5 = vpop.eup %7967  ;;  %v3183_v16 = vmul.f32 1.442695, %v3141_v53  ;;  %v3185_v50 = vmul.f32 1.442695, %v3142_v42  ;;  %3473 = vmatmul.mubr.f32.gmra.mrb[66].mxu0 %v7964_v9  ;;  %v11108_v32 = vpop.f32.mrb[117].mxu1 }
 0x59a   : > { %v7970_v3 = vpop.eup %7969  ;;  %7237 = vmatpush3.bf16.msra.mxu0 %v7236_v59  ;;  %v3103_v11 = vpop.xlane.xlu0 %3102  ;;  %v3699_v56 = vld [vmem:[#allocation2 + $0xd8] sm:$0xff]  ;;  %v7885_v59 = vpack.i.bf16 %v11110_v61, %v11106_v43 }
 0x59b   : > { %7979 = vpow2.f32 %v3183_v16  ;;  %3477 = vmatprep.mubr.f32.mxu0 %v7970_v3  ;;  %v12308_v39 = vld [vmem:[#allocation78_spill] sm:$0xff]  ;;  %v3144_v37 = vsub.f32 %v12309_v57, %v3103_v11  ;;  %7239 = vmatprep.subr.bf16.mxu0 %v7238_v55  ;;  %v11114_v27 = vadd.f32 %v7970_v3, %v7968_v5 }
 0x59c   : > { %v3143_v41 = vsub.f32 %v12308_v39, %v3103_v11  ;;  %v3700_v53 = vld [vmem:[#allocation2 + $0xf8] sm:$0xff]  ;;  %7981 = vpow2.f32 %v3185_v50  ;;  %v11116_v63 = vpop.f32.mrb[118].mxu1  ;;  %v12311_v39 = vld [vmem:[#allocation81_spill] sm:$0xff] }
 0x59d   : > { %v3717_v42 = vld [vmem:[#allocation2 + $0x318] sm:$0xff]  ;;  %12310 = vst [vmem:[#allocation78_spill] sm:$0xff] %v11114_v27  ;;  %v7972_v18 = vpop.eup %7971  ;;  %v3189_v21 = vmul.f32 1.442695, %v3144_v37  ;;  %3478 = vmatmul.mubr.f32.gmra.mrb[68].mxu0 %v7968_v5  ;;  %v11122_v16 = vpop.f32.mrb[119].mxu1  ;;  %v7244_v11 = vpack.c.bf16 %v3700_v53, %v3699_v56 }
 0x59e   : > { %v3718_v9 = vld [vmem:[#allocation2 + $0x338] sm:$0xff]  ;;  %v3187_v35 = vmul.f32 1.442695, %v3143_v41  ;;  %v7974_v55 = vpop.eup %7973  ;;  %7241 = vmatpush3.bf16.msra.mxu0 %v7240_v34  ;;  %v3106_v3 = vpop.xlane.xlu1 %3105 }
 0x59f   : > { %v11120_v4 = vld [vmem:[#allocation2 + $0x1d8] sm:$0xff]  ;;  %v7246_v50 = vpack.c.bf16 %v3718_v9, %v3717_v42  ;;  %v3145_v23 = vsub.f32 %v12311_v39, %v3106_v3  ;;  %v3146_v27 = vsub.f32 %v12312_v24, %v3106_v3  ;;  %3482 = vmatprep.mubr.f32.mxu0 %v7974_v55  ;;  %7243 = vmatprep.subr.bf16.mxu0 %v7242_v2 }
 0x5a0   : > { %v11124_v57 = vld [vmem:[#allocation2 + $0x1f8] sm:$0xff]  ;;  %7983 = vpow2.f32 %v3187_v35  ;;  %v11128_v37 = vadd.f32 %v7974_v55, %v7972_v18  ;;  %v11130_v5 = vpop.f32.mrb[120].mxu1  ;;  %7886 = vrot.lane.b32.xlu0 %v7885_v59, %s8626_s14  ;;  %v12315_v59 = vld [vmem:[#allocation84_spill] sm:$0xff] }
 0x5a1   : > { %v3702_v41 = vld [vmem:[#allocation2 + $0x138] sm:$0xff]  ;;  %7985 = vpow2.f32 %v3189_v21  ;;  %v7890_v34 = vpack.i.bf16 %v11124_v57, %v11120_v4  ;;  %v7976_v42 = vpop.eup %7975  ;;  %v3191_v9 = vmul.f32 1.442695, %v3145_v23  ;;  %v3193_v35 = vmul.f32 1.442695, %v3146_v27  ;;  %3483 = vmatmul.mubr.f32.gmra.mrb[70].mxu0 %v7972_v18  ;;  %v11135_v24 = vpop.f32.mrb[121].mxu1 }
 0x5a2   : > { %12313 = vst [vmem:[#allocation80_spill] sm:$0xff] %v11128_v37  ;;  %v3719_v56 = vld [vmem:[#allocation2 + $0x358] sm:$0xff]  ;;  %v7978_v2 = vpop.eup %7977  ;;  %7245 = vmatpush3.bf16.msra.mxu0 %v7244_v11  ;;  %v3109_v55 = vpop.xlane.xlu0 %3108  ;;  %v7248_v3 = vpack.c.bf16 %v3702_v41, %v3701_v6  ;;  %v12314_v21 = vld [vmem:[#allocation83_spill] sm:$0xff] }
 0x5a3   : > { %v3720_v53 = vld [vmem:[#allocation2 + $0x378] sm:$0xff]  ;;  %7987 = vpow2.f32 %v3191_v9  ;;  %3487 = vmatprep.mubr.f32.mxu0 %v7978_v2  ;;  %v3147_v39 = vsub.f32 %v12314_v21, %v3109_v55  ;;  %v3148_v37 = vsub.f32 %v12315_v59, %v3109_v55  ;;  %7247 = vmatprep.subr.bf16.mxu0 %v7246_v50  ;;  %v11142_v27 = vadd.f32 %v7978_v2, %v7976_v42 }
 0x5a4   : > { %v7250_v14 = vpack.c.bf16 %v3720_v53, %v3719_v56  ;;  %v3704_v29 = vld [vmem:[#allocation2 + $0x178] sm:$0xff]  ;;  %7989 = vpow2.f32 %v3193_v35  ;;  %v11139_v23 = vpop.f32.mrb[122].mxu1  ;;  %7891 = vrot.lane.b32.xlu0 %v7890_v34, %s8626_s14  ;;  %v12317_v35 = vld [vmem:[#allocation85_spill] sm:$0xff] }
 0x5a5   : > { %12316 = vst [vmem:[#allocation81_spill] sm:$0xff] %v11142_v27  ;;  %v7980_v18 = vpop.eup %7979  ;;  %v3195_v11 = vmul.f32 1.442695, %v3147_v39  ;;  %v3197_v6 = vmul.f32 1.442695, %v3148_v37  ;;  %3488 = vmatmul.mubr.f32.gmra.mrb[72].mxu0 %v7976_v42  ;;  %v11144_v41 = vpop.f32.mrb[123].mxu1  ;;  %v7252_v50 = vpack.c.bf16 %v3704_v29, %v3703_v30 }
 0x5a6   : > { %v7982_v9 = vpop.eup %7981  ;;  %7249 = vmatpush3.bf16.msra.mxu0 %v7248_v3  ;;  %v3112_v55 = vpop.xlane.xlu0 %3111  ;;  %v8295_v56 = vld [vmem:[#allocation2 + $0x398] sm:$0xff] }
 0x5a7   : > { %v8296_v53 = vld [vmem:[#allocation2 + $0x3b8] sm:$0xff]  ;;  %7991 = vpow2.f32 %v3195_v11  ;;  %3492 = vmatprep.mubr.f32.mxu0 %v7982_v9  ;;  %v3149_v59 = vsub.f32 %v12317_v35, %v3112_v55  ;;  %7251 = vmatprep.subr.bf16.mxu0 %v7250_v14  ;;  %v11148_v27 = vadd.f32 %v7982_v9, %v7980_v18  ;;  %v7258_v14 = vpack.c.bf16 %v11110_v61, %v11106_v43 }
 0x5a8   : > { %v7254_v21 = vpack.c.bf16 %v8296_v53, %v8295_v56  ;;  %v12318_v34 = vld [vmem:[#allocation86_spill] sm:$0xff]  ;;  %7993 = vpow2.f32 %v3197_v6  ;;  %v11150_v37 = vpop.f32.mrb[124].mxu1  ;;  %v7256_v56 = vpack.c.bf16 %v11083_v48, %v11081_v54  ;;  %v12319_v6 = vld [vmem:[#allocation87_spill] sm:$0xff] }
 0x5a9   : > { %v3150_v2 = vsub.f32 %v12318_v34, %v3112_v55  ;;  %v3199_v39 = vmul.f32 1.442695, %v3149_v59  ;;  %3493 = vmatmul.mubr.f32.gmra.mrb[74].mxu0 %v7980_v18  ;;  %v11152_v30 = vpop.f32.mrb[125].mxu1  ;;  %v12320_v55 = vld [vmem:[#allocation88_spill] sm:$0xff]  ;;  %v12321_v59 = vld [vmem:[#allocation69_spill] sm:$0xff] }
 0x5aa   : > { %v7984_v42 = vpop.eup %7983  ;;  %7253 = vmatpush3.bf16.msra.mxu0 %v7252_v50  ;;  %v3115_v11 = vpop.xlane.xlu0 %3114  ;;  %v7819_v34 = vunpack.i.h.bf16 %v12321_v59  ;;  %v7818_v54 = vunpack.i.l.bf16 %v12321_v59 }
 0x5ab   : > { %v3201_v3 = vmul.f32 1.442695, %v3150_v2  ;;  %v7986_v29 = vpop.eup %7985  ;;  %7995 = vpow2.f32 %v3199_v39  ;;  %v3151_v9 = vsub.f32 %v12319_v6, %v3115_v11  ;;  %v3152_v53 = vsub.f32 %v12320_v55, %v3115_v11  ;;  %7255 = vmatprep.subr.bf16.mxu0 %v7254_v21 }
 0x5ac   : > { %3497 = vmatprep.mubr.f32.mxu0 %v7986_v29  ;;  %v11160_v35 = vadd.f32 %v7986_v29, %v7984_v42  ;;  %v11162_v18 = vpop.f32.mrb[126].mxu1  ;;  %v7260_v21 = vpack.c.bf16 %v11124_v57, %v11120_v4  ;;  %v7310_v55 = vpack.c.bf16 %v7819_v34, %v7818_v54 }
 0x5ad   : > { %7997 = vpow2.f32 %v3201_v3  ;;  %v7988_v50 = vpop.eup %7987  ;;  %v3203_v48 = vmul.f32 1.442695, %v3151_v9  ;;  %v3205_v2 = vmul.f32 1.442695, %v3152_v53  ;;  %3498 = vmatmul.mubr.f32.gmra.mrb[76].mxu0 %v7984_v42  ;;  %v11166_v43 = vpop.f32.mrb[127].mxu1 }
 0x5ae   : > { %v7990_v61 = vpop.eup %7989  ;;  %7257 = vmatpush3.bf16.msra.mxu0 %v7256_v56  ;;  %v3118_v39 = vpop.xlane.xlu0 %3117 }
 0x5af   : > { %7999 = vpow2.f32 %v3203_v48  ;;  %3502 = vmatprep.mubr.f32.mxu0 %v7990_v61  ;;  %v3153_v3 = vsub.f32 %v10718_v31, %v3118_v39  ;;  %v3154_v29 = vsub.f32 %v10722_v7, %v3118_v39  ;;  %7259 = vmatprep.subr.bf16.mxu0 %v7258_v14  ;;  %v11172_v11 = vadd.f32 %v7990_v61, %v7988_v50  ;;  %v8297_v61 = vld [vmem:[%s9006_s6 + $0x80] sm:$0xff] }
 0x5b0   : > { %8001 = vpow2.f32 %v3205_v2  ;;  %v11180_v14 = vadd.f32 %v10900_v38, %v11065_v0  ;;  %v11192_v38 = vadd.f32 %v8297_v61, %v11085_v17  ;;  %v8298_v0 = vld [vmem:[%s9006_s6 + $0x88] sm:$0xff] }
 0x5b1   : > { %v7992_v6 = vpop.eup %7991  ;;  %v3207_v42 = vmul.f32 1.442695, %v3153_v3  ;;  %v3209_v9 = vmul.f32 1.442695, %v3154_v29  ;;  %3503 = vmatmul.mubr.f32.gmra.mrb[78].mxu0 %v7988_v50  ;;  %v11184_v50 = vadd.f32 %v10906_v28, %v11069_v12  ;;  %v11196_v28 = vadd.f32 %v8298_v0, %v11087_v51 }
 0x5b2   : > { %v7994_v56 = vpop.eup %7993  ;;  %7261 = vmatpush3.bf16.msra.mxu0 %v7260_v21  ;;  %v3121_v53 = vpop.xlane.xlu0 %3120 }
 0x5b3   : > { %8003 = vpow2.f32 %v3207_v42  ;;  %3507 = vmatprep.mubr.f32.mxu0 %v7994_v56  ;;  %7311 = vmatprep.subr.bf16.mxu0 %v7310_v55  ;;  %v3155_v4 = vsub.f32 %v10729_v26, %v3121_v53  ;;  %v3156_v31 = vsub.f32 %v10732_v58, %v3121_v53  ;;  %v11176_v7 = vadd.f32 %v7994_v56, %v7992_v6  ;;  %v8300_v56 = vld [vmem:[%s9006_s6 + $0x98] sm:$0xff] }
 0x5b4   : > { %8005 = vpow2.f32 %v3209_v9  ;;  %v4882_v39 = vmax.f32 %v11180_v14, %v11184_v50  ;;  %v8299_v9 = vld [vmem:[%s9006_s6 + $0x90] sm:$0xff]  ;;  %v11212_v53 = vadd.f32 %v8300_v56, %v11097_v20  ;;  %v12322_v20 = vld [vmem:[#allocation42_spill] sm:$0xff] }
 0x5b5   : > { %v7996_v57 = vpop.eup %7995  ;;  %v3211_v59 = vmul.f32 1.442695, %v3155_v4  ;;  %v3213_v34 = vmul.f32 1.442695, %v3156_v31  ;;  %3508 = vmatmul.mubr.f32.gmra.mrb[80].mxu0 %v7992_v6  ;;  %v4888_v6 = vmax.f32 %v11192_v38, %v11196_v28  ;;  %v11208_v55 = vadd.f32 %v8299_v9, %v11095_v36  ;;  %v8306_v9 = vld [vmem:[%s9006_s6 + $0xb8] sm:$0xff] }
 0x5b6   : > { %v3124_v54 = vpop.xlane.xlu0 %3123  ;;  %v11216_v31 = vadd.f32 %v10918_v15, %v11073_v8  ;;  %v8302_v8 = vld [vmem:[%s9006_s6 + $0xa8] sm:$0xff]  ;;  %v11258_v56 = vadd.f32 %v8306_v9, %v11122_v16 }
 0x5b7   : > { %v7998_v26 = vpop.eup %7997  ;;  %8007 = vpow2.f32 %v3211_v59  ;;  %v3157_v58 = vsub.f32 %v10747_v40, %v3124_v54  ;;  %v3158_v48 = vsub.f32 %v10751_v19, %v3124_v54  ;;  %v8301_v54 = vld [vmem:[%s9006_s6 + $0xa0] sm:$0xff] }
 0x5b8   : > { %3512 = vmatprep.mubr.f32.mxu0 %v7998_v26  ;;  %v11188_v2 = vadd.f32 %v7998_v26, %v7996_v57  ;;  %8009 = vpow2.f32 %v3213_v34  ;;  %v11228_v15 = vadd.f32 %v8301_v54, %v11104_v62  ;;  %v8308_v54 = vld [vmem:[%s9006_s6 + $0xc8] sm:$0xff] }
 0x5b9   : > { %v8000_v12 = vpop.eup %7999  ;;  %v3215_v21 = vmul.f32 1.442695, %v3157_v58  ;;  %v3217_v40 = vmul.f32 1.442695, %v3158_v48  ;;  %3513 = vmatmul.mubr.f32.gmra.mrb[82].mxu0 %v7996_v57  ;;  %v11220_v57 = vadd.f32 %v10924_v33, %v11077_v10  ;;  %v11232_v33 = vadd.f32 %v8302_v8, %v11108_v32  ;;  %v8304_v32 = vld [vmem:[%s9006_s6 + $0xe8] sm:$0xff] }
 0x5ba   : > { %v8002_v19 = vpop.eup %8001  ;;  %v3127_v3 = vpop.xlane.xlu0 %3126  ;;  %v11272_v8 = vadd.f32 %v8308_v54, %v11135_v24 }
 0x5bb   : > { %8011 = vpow2.f32 %v3215_v21  ;;  %3517 = vmatprep.mubr.f32.mxu0 %v8002_v19  ;;  %v3159_v17 = vsub.f32 %v10763_v13, %v3127_v3  ;;  %v3160_v29 = vsub.f32 %v10766_v47, %v3127_v3  ;;  %4883 = vmax.xlane.f32.xlu1 %v4882_v39  ;;  %v11202_v51 = vadd.f32 %v8002_v19, %v8000_v12  ;;  %v12324_v3 = vld [vmem:[#allocation57_spill] sm:$0xff] }
 0x5bc   : > { %8013 = vpow2.f32 %v3217_v40  ;;  %v4885_v0 = vmax.f32 %v11216_v31, %v11220_v57  ;;  %v11244_v39 = vadd.f32 %v8304_v32, %v11152_v30  ;;  %v12323_v40 = vld [vmem:[#allocation56_spill] sm:$0xff]  ;;  %v11287_v32 = vpop.permute.xlu1 %7876 }
 0x5bd   : > { %v8004_v42 = vpop.eup %8003  ;;  %v3219_v13 = vmul.f32 1.442695, %v3159_v17  ;;  %v3221_v47 = vmul.f32 1.442695, %v3160_v29  ;;  %3518 = vmatmul.mubr.f32.gmra.mrb[84].mxu0 %v8000_v12  ;;  %v8303_v12 = vld [vmem:[%s9006_s6 + $0xe0] sm:$0xff] }
 0x5be   : > { %v8006_v4 = vpop.eup %8005  ;;  %v3130_v36 = vpop.xlane.xlu0 %3129  ;;  %v11240_v62 = vadd.f32 %v8303_v12, %v11150_v37 }
 0x5bf   : > { %8015 = vpow2.f32 %v3219_v13  ;;  %3522 = vmatprep.mubr.f32.mxu0 %v8006_v4  ;;  %v3161_v59 = vsub.f32 %v10778_v60, %v3130_v36  ;;  %v3162_v34 = vsub.f32 %v12322_v20, %v3130_v36  ;;  %4889 = vmax.xlane.f32.xlu1 %v4888_v6  ;;  %v11224_v26 = vadd.f32 %v8006_v4, %v8004_v42  ;;  %v8307_v20 = vld [vmem:[%s9006_s6 + $0xc0] sm:$0xff] }
 0x5c0   : > { %8017 = vpow2.f32 %v3221_v47  ;;  %v4891_v60 = vmax.f32 %v11208_v55, %v11212_v53  ;;  %v4894_v6 = vmax.f32 %v11228_v15, %v11232_v33  ;;  %v4906_v36 = vmax.f32 %v11240_v62, %v11244_v39 }
 0x5c1   : > { %v8008_v10 = vpop.eup %8007  ;;  %v3223_v58 = vmul.f32 1.442695, %v3161_v59  ;;  %v3225_v48 = vmul.f32 1.442695, %v3162_v34  ;;  %3523 = vmatmul.mubr.f32.gmra.mrb[86].mxu0 %v8004_v42  ;;  %v8305_v42 = vld [vmem:[%s9006_s6 + $0xb0] sm:$0xff]  ;;  %v11268_v34 = vadd.f32 %v8307_v20, %v11130_v5 }
 0x5c2   : > { %v8010_v61 = vpop.eup %8009  ;;  %v4032_v21 = vpop.xlane.xlu0 %4031  ;;  %v11254_v30 = vadd.f32 %v8305_v42, %v11116_v63  ;;  %v8311_v42 = vld [vmem:[%s9006_s6 + $0xf0] sm:$0xff] }
 0x5c3   : > { %8019 = vpow2.f32 %v3223_v58  ;;  %3527 = vmatprep.mubr.f32.mxu0 %v8010_v61  ;;  %v4078_v19 = vsub.f32 %v12323_v40, %v4032_v21  ;;  %v4079_v17 = vsub.f32 %v12324_v3, %v4032_v21  ;;  %4892 = vmax.xlane.f32.xlu1 %v4891_v60  ;;  %v11248_v29 = vadd.f32 %v8010_v61, %v8008_v10  ;;  %v8309_v61 = vld [vmem:[%s9006_s6 + $0xd0] sm:$0xff]  ;;  %v12325_v21 = vld [vmem:[#allocation60_spill] sm:$0xff] }
 0x5c4   : > { %8021 = vpow2.f32 %v3225_v48  ;;  %4886 = vmax.xlane.f32.xlu0 %v4885_v0  ;;  %v4897_v16 = vmax.f32 %v11254_v30, %v11258_v56  ;;  %v4900_v48 = vmax.f32 %v11268_v34, %v11272_v8  ;;  %v11281_v5 = vadd.f32 %v8309_v61, %v11139_v23  ;;  %v8310_v0 = vld [vmem:[%s9006_s6 + $0xd8] sm:$0xff] }
 0x5c5   : > { %v8012_v37 = vpop.eup %8011  ;;  %v4110_v13 = vmul.f32 1.442695, %v4078_v19  ;;  %v4112_v47 = vmul.f32 1.442695, %v4079_v17  ;;  %3528 = vmatmul.mubr.f32.gmra.mrb[88].mxu0 %v8008_v10  ;;  %v11285_v24 = vadd.f32 %v8310_v0, %v11144_v41  ;;  %v7824_v40 = vunpack.i.h.bf16 %v12325_v21  ;;  %v12326_v23 = vld [vmem:[#allocation70_spill] sm:$0xff] }
 0x5c6   : > { %v8014_v4 = vpop.eup %8013  ;;  %v7823_v19 = vunpack.i.l.bf16 %v12325_v21  ;;  %v7829_v3 = vunpack.i.h.bf16 %v12326_v23  ;;  %v11300_v9 = vadd.f32 %v8311_v42, %v11162_v18  ;;  %v12329_v0 = vld [vmem:[#allocation62_spill] sm:$0xff] }
 0x5c7   : > { %8023 = vpow2.f32 %v4110_v13  ;;  %3532 = vmatprep.mubr.f32.mxu0 %v8014_v4  ;;  %4895 = vmax.xlane.f32.xlu1 %v4894_v6  ;;  %v11262_v59 = vadd.f32 %v8014_v4, %v8012_v37  ;;  %v7828_v6 = vunpack.i.l.bf16 %v12326_v23  ;;  %v8312_v13 = vld [vmem:[%s9006_s6 + $0xf8] sm:$0xff]  ;;  %s8627_s6 = smov [#allocation13]  }
 0x5c8   : > { %8025 = vpow2.f32 %v4112_v47  ;;  %4907 = vmax.xlane.f32.xlu0 %v4906_v36  ;;  %v11304_v47 = vadd.f32 %v8312_v13, %v11166_v43  ;;  %v12327_v36 = vld [vmem:[#allocation73_spill] sm:$0xff] }
 0x5c9   : > { %v8016_v63 = vpop.eup %8015  ;;  %3533 = vmatmul.mubr.f32.gmra.mrb[90].mxu0 %v8012_v37  ;;  %v4903_v37 = vmax.f32 %v11281_v5, %v11285_v24 }
 0x5ca   : > { %v8018_v10 = vpop.eup %8017  ;;  %v4038_v17 = vpop.xlane.xlu0 %4037  ;;  %v4909_v23 = vmax.f32 %v11300_v9, %v11304_v47 }
 0x5cb   : > { %3537 = vmatprep.mubr.f32.mxu0 %v8018_v10  ;;  %4898 = vmax.xlane.f32.xlu1 %v4897_v16  ;;  %v11274_v60 = vadd.f32 %v8018_v10, %v8016_v63  ;;  %v4082_v16 = vsub.f32 %v10822_v45, %v4038_v17  ;;  %v7312_v10 = vpack.c.bf16 %v7824_v40, %v7823_v19  ;;  %v12331_v19 = vld [vmem:[#allocation75_spill] sm:$0xff] }
 0x5cc   : > { %2415 = vadd.xlane.f32.xlu0 %v10833_v44  ;;  %v4083_v18 = vsub.f32 %v10827_v52, %v4038_v17  ;;  %v7314_v45 = vpack.c.bf16 %v7829_v3, %v7828_v6  ;;  %v7844_v52 = vunpack.i.h.bf16 %v12331_v19 }
 0x5cd   : > { %v8020_v58 = vpop.eup %8019  ;;  %3538 = vmatmul.mubr.f32.gmra.mrb[92].mxu0 %v8016_v63  ;;  %v7834_v63 = vunpack.i.h.bf16 %v12327_v36  ;;  %v4118_v17 = vmul.f32 1.442695, %v4082_v16 }
 0x5ce   : > { %v8022_v12 = vpop.eup %8021 }
 0x5cf   : > { %3542 = vmatprep.mubr.f32.mxu0 %v8022_v12  ;;  %4901 = vmax.xlane.f32.xlu1 %v4900_v48  ;;  %v11289_v44 = vadd.f32 %v8022_v12, %v8020_v58  ;;  %v12328_v48 = vld [vmem:[#allocation47_spill] sm:$0xff]  ;;  %v12330_v12 = vld [vmem:[#allocation61_spill] sm:$0xff] }
 0x5d0   : > { %2418 = vadd.xlane.f32.xlu0 %v10863_v1  ;;  %v7833_v1 = vunpack.i.l.bf16 %v12327_v36  ;;  %v7838_v21 = vunpack.i.l.bf16 %v12330_v12  ;;  %v4120_v36 = vmul.f32 1.442695, %v4083_v18 }
 0x5d1   : > { %v8024_v41 = vpop.eup %8023  ;;  %3543 = vmatmul.mubr.f32.gmra.mrb[94].mxu0 %v8020_v58  ;;  %v7839_v58 = vunpack.i.h.bf16 %v12330_v12  ;;  %v12333_v12 = vld [vmem:[#allocation49_spill] sm:$0xff] }
 0x5d2   : > { %v8026_v4 = vpop.eup %8025  ;;  %v7316_v40 = vpack.c.bf16 %v7834_v63, %v7833_v1  ;;  %v12335_v1 = vld [vmem:[#allocation79_spill] sm:$0xff] }
 0x5d3   : > { %4286 = vmatprep.mubr.f32.mxu0 %v8026_v4  ;;  %v4035_v20 = vpop.xlane.xlu1 %4034  ;;  %4904 = vmax.xlane.f32.xlu1 %v4903_v37  ;;  %v4174_v54 = vadd.f32 %v8026_v4, %v8024_v41  ;;  %v7843_v4 = vunpack.i.l.bf16 %v12331_v19  ;;  %v7318_v63 = vpack.c.bf16 %v7839_v58, %v7838_v21  ;;  %v7853_v16 = vunpack.i.l.bf16 %v12335_v1  ;;  %v12337_v19 = vld [vmem:[#allocation66_spill] sm:$0xff] }
 0x5d4   : > { %v4080_v61 = vsub.f32 %v12328_v48, %v4035_v20  ;;  %v4081_v43 = vsub.f32 %v12329_v0, %v4035_v20  ;;  %v4044_v20 = vpop.xlane.xlu0 %4043  ;;  %v12332_v48 = vld [vmem:[#allocation48_spill] sm:$0xff]  ;;  %v7859_v58 = vunpack.i.h.bf16 %v11001_v46  ;;  %v7858_v21 = vunpack.i.l.bf16 %v11001_v46 }
 0x5d5   : > { %4175 = vadd.xlane.f32.xlu0 %v4174_v54  ;;  %4287 = vmatmul.mubr.f32.vlgmr.msra.gmra.mrb[96].mxu0 %v8024_v41  ;;  %v12334_v41 = vld [vmem:[#allocation76_spill] sm:$0xff] }
 0x5d6   : > { %v4114_v42 = vmul.f32 1.442695, %v4080_v61  ;;  %v4116_v37 = vmul.f32 1.442695, %v4081_v43  ;;  %7313 = vmatpush3.bf16.msra.mxu0 %v7312_v10  ;;  %v7849_v3 = vunpack.i.h.bf16 %v12334_v41  ;;  %v7848_v6 = vunpack.i.l.bf16 %v12334_v41  ;;  %v12336_v61 = vld [vmem:[#allocation58_spill] sm:$0xff] }
 0x5d7   : > { %7315 = vmatprep.subr.bf16.mxu0 %v7314_v45  ;;  %v4041_v13 = vpop.xlane.xlu1 %4040  ;;  %4910 = vmax.xlane.f32.xlu1 %v4909_v23  ;;  %v7854_v10 = vunpack.i.h.bf16 %v12335_v1  ;;  %v4086_v18 = vsub.f32 %v12336_v61, %v4044_v20  ;;  %v7320_v45 = vpack.c.bf16 %v7844_v52, %v7843_v4  ;;  %v12339_v4 = vld [vmem:[#allocation77_spill] sm:$0xff] }
 0x5d8   : > { %v4084_v0 = vsub.f32 %v12332_v48, %v4041_v13  ;;  %v4085_v54 = vsub.f32 %v12333_v12, %v4041_v13  ;;  %8027 = vpow2.f32 %v4114_v42  ;;  %v4087_v13 = vsub.f32 %v12337_v19, %v4044_v20  ;;  %v12338_v12 = vld [vmem:[#allocation51_spill] sm:$0xff]  ;;  %v12344_v19 = vld [vmem:[#allocation93_spill] sm:$0xff] }
 0x5d9   : > { %8029 = vpow2.f32 %v4116_v37  ;;  %v7863_v48 = vunpack.i.l.bf16 %v10981_v49  ;;  %v4126_v52 = vmul.f32 1.442695, %v4086_v18 }
 0x5da   : > { %7317 = vmatpush3.bf16.msra.mxu0 %v7316_v40  ;;  %8031 = vpow2.f32 %v4118_v17  ;;  %v4122_v43 = vmul.f32 1.442695, %v4084_v0  ;;  %v4124_v42 = vmul.f32 1.442695, %v4085_v54  ;;  %v7322_v40 = vpack.c.bf16 %v7849_v3, %v7848_v6 }
 0x5db   : > { %7319 = vmatprep.subr.bf16.mxu0 %v7318_v63  ;;  %v4047_v23 = vpop.xlane.xlu1 %4046  ;;  %3228 = vadd.xlane.f32.xlu1 %v11093_v25  ;;  %8033 = vpow2.f32 %v4120_v36  ;;  %v7864_v17 = vunpack.i.h.bf16 %v10981_v49  ;;  %v4050_v0 = vpop.xlane.xlu0 %4049  ;;  %v7324_v25 = vpack.c.bf16 %v7854_v10, %v7853_v16  ;;  %v12340_v36 = vld [vmem:[#allocation108_spill] sm:$0xff]  ;;  %v7326_v3 = vpack.c.bf16 %v7859_v58, %v7858_v21  ;;  %v12342_v16 = vld [vmem:[#allocation53_spill] sm:$0xff]  ;;  %v12346_v58 = vld [vmem:[#allocation111_spill] sm:$0xff] }
 0x5dc   : > { %v4088_v37 = vsub.f32 %v10891_v22, %v4047_v23  ;;  %v4089_v41 = vsub.f32 %v12338_v12, %v4047_v23  ;;  %8035 = vpow2.f32 %v4122_v43  ;;  %v7869_v20 = vunpack.i.h.bf16 %v12340_v36  ;;  %v12341_v49 = vld [vmem:[#allocation52_spill] sm:$0xff] }
 0x5dd   : > { %v7868_v46 = vunpack.i.l.bf16 %v12340_v36  ;;  %v4128_v22 = vmul.f32 1.442695, %v4087_v13  ;;  %8037 = vpow2.f32 %v4124_v42  ;;  %v7328_v6 = vpack.c.bf16 %v7864_v17, %v7863_v48  ;;  %v12343_v23 = vld [vmem:[#allocation92_spill] sm:$0xff]  ;;  %v12345_v13 = vld [vmem:[#allocation78_spill] sm:$0xff]  ;;  %v12347_v36 = vld [vmem:[#allocation55_spill] sm:$0xff] }
 0x5de   : > { %7321 = vmatpush3.bf16.msra.mxu0 %v7320_v45  ;;  %v4130_v54 = vmul.f32 1.442695, %v4088_v37  ;;  %v4090_v63 = vsub.f32 %v12341_v49, %v4050_v0  ;;  %v4132_v1 = vmul.f32 1.442695, %v4089_v41  ;;  %8039 = vpow2.f32 %v4126_v52 }
 0x5df   : > { %7323 = vmatprep.subr.bf16.mxu0 %v7322_v40  ;;  %3231 = vadd.xlane.f32.xlu1 %v12339_v4  ;;  %v4091_v18 = vsub.f32 %v12342_v16, %v4050_v0  ;;  %v4053_v43 = vpop.xlane.xlu1 %4052  ;;  %v7874_v21 = vunpack.i.h.bf16 %v12346_v58  ;;  %v7873_v37 = vunpack.i.l.bf16 %v12346_v58  ;;  %8041 = vpow2.f32 %v4128_v22  ;;  %v12348_v16 = vld [vmem:[#allocation90_spill] sm:$0xff] }
 0x5e0   : > { %v7330_v17 = vpack.c.bf16 %v7869_v20, %v7868_v46  ;;  %8043 = vpow2.f32 %v4130_v54  ;;  %v7879_v52 = vunpack.i.h.bf16 %v11287_v32  ;;  %v4134_v4 = vmul.f32 1.442695, %v4090_v63  ;;  %v12349_v46 = vld [vmem:[#allocation80_spill] sm:$0xff] }
 0x5e1   : > { %8045 = vpow2.f32 %v4132_v1  ;;  %v7878_v49 = vunpack.i.l.bf16 %v11287_v32  ;;  %v4093_v22 = vsub.f32 %v12348_v16, %v4053_v43 }
 0x5e2   : > { %7325 = vmatpush3.bf16.msra.mxu0 %v7324_v25  ;;  %v4056_v61 = vpop.xlane.xlu0 %4055  ;;  %v8028_v10 = vpop.eup %8027 }
 0x5e3   : > { %7327 = vmatprep.subr.bf16.mxu0 %v7326_v3  ;;  %v4094_v45 = vsub.f32 %v12343_v23, %v4056_v61  ;;  %v4095_v40 = vsub.f32 %v12344_v19, %v4056_v61  ;;  %3234 = vadd.xlane.f32.xlu1 %v12345_v13  ;;  %v8030_v42 = vpop.eup %8029  ;;  %v4092_v3 = vsub.f32 %v12347_v36, %v4053_v43  ;;  %v4136_v61 = vmul.f32 1.442695, %v4091_v18  ;;  %v12350_v18 = vld [vmem:[#allocation94_spill] sm:$0xff]  ;;  %v12352_v13 = vld [vmem:[#allocation81_spill] sm:$0xff] }
 0x5e4   : > { %v8032_v48 = vpop.eup %8031  ;;  %4291 = vmatprep.mubr.f32.mxu0 %v8030_v42  ;;  %v4177_v0 = vadd.f32 %v8030_v42, %v8028_v10  ;;  %v7332_v23 = vpack.c.bf16 %v7874_v21, %v7873_v37  ;;  %v4140_v32 = vmul.f32 1.442695, %v4093_v22  ;;  %v7334_v19 = vpack.c.bf16 %v7879_v52, %v7878_v49  ;;  %v12353_v37 = vld [vmem:[#allocation96_spill] sm:$0xff]  ;;  %v12355_v36 = vld [vmem:[#allocation98_spill] sm:$0xff] }
 0x5e5   : > { %v4142_v12 = vmul.f32 1.442695, %v4094_v45  ;;  %v4144_v41 = vmul.f32 1.442695, %v4095_v40  ;;  %v8034_v25 = vpop.eup %8033  ;;  %4292 = vmatmul.mubr.f32.gmra.mrb[98].mxu0 %v8028_v10  ;;  %v4138_v10 = vmul.f32 1.442695, %v4092_v3 }
 0x5e6   : > { %4178 = vadd.xlane.f32.xlu0 %v4177_v0  ;;  %4296 = vmatprep.mubr.f32.mxu0 %v8034_v25  ;;  %v4059_v20 = vpop.xlane.xlu1 %4058  ;;  %v8036_v54 = vpop.eup %8035  ;;  %v4180_v63 = vadd.f32 %v8034_v25, %v8032_v48  ;;  %v12354_v0 = vld [vmem:[#allocation97_spill] sm:$0xff] }
 0x5e7   : > { %8047 = vpow2.f32 %v4142_v12  ;;  %7329 = vmatpush3.bf16.msra.mxu0 %v7328_v6  ;;  %3237 = vadd.xlane.f32.xlu1 %v12349_v46  ;;  %v8038_v1 = vpop.eup %8037  ;;  %v4096_v43 = vsub.f32 %v12350_v18, %v4059_v20  ;;  %v12351_v6 = vld [vmem:[#allocation95_spill] sm:$0xff] }
 0x5e8   : > { %8049 = vpow2.f32 %v4144_v41  ;;  %7331 = vmatprep.subr.bf16.mxu0 %v7330_v17  ;;  %v4097_v40 = vsub.f32 %v12351_v6, %v4059_v20  ;;  %v8040_v42 = vpop.eup %8039  ;;  %v4183_v58 = vadd.f32 %v8038_v1, %v8036_v54  ;;  %v12356_v20 = vld [vmem:[#allocation99_spill] sm:$0xff] }
 0x5e9   : > { %8051 = vpow2.f32 %v4134_v4  ;;  %4297 = vmatmul.mubr.f32.gmra.mrb[100].mxu0 %v8032_v48  ;;  %v8042_v21 = vpop.eup %8041  ;;  %v4146_v41 = vmul.f32 1.442695, %v4096_v43  ;;  %v12357_v43 = vld [vmem:[#allocation100_spill] sm:$0xff] }
 0x5ea   : > { %8053 = vpow2.f32 %v4136_v61  ;;  %4301 = vmatprep.mubr.f32.mxu0 %v8038_v1  ;;  %4181 = vadd.xlane.f32.xlu0 %v4180_v63  ;;  %v4062_v45 = vpop.xlane.xlu0 %4061  ;;  %v8044_v12 = vpop.eup %8043  ;;  %v4148_v4 = vmul.f32 1.442695, %v4097_v40  ;;  %v4186_v61 = vadd.f32 %v8042_v21, %v8040_v42 }
 0x5eb   : > { %7333 = vmatpush3.bf16.msra.mxu0 %v7332_v23  ;;  %3240 = vadd.xlane.f32.xlu1 %v12352_v13  ;;  %8055 = vpow2.f32 %v4138_v10  ;;  %v4098_v17 = vsub.f32 %v12353_v37, %v4062_v45  ;;  %v4099_v25 = vsub.f32 %v12354_v0, %v4062_v45  ;;  %v8046_v52 = vpop.eup %8045  ;;  %v12358_v13 = vld [vmem:[#allocation101_spill] sm:$0xff] }
 0x5ec   : > { %7335 = vmatprep.subr.bf16.mxu0 %v7334_v19  ;;  %8057 = vpow2.f32 %v4140_v32  ;;  %v4189_v6 = vadd.f32 %v8046_v52, %v8044_v12 }
 0x5ed   : > { %4302 = vmatmul.mubr.f32.gmra.mrb[102].mxu0 %v8036_v54  ;;  %v4150_v22 = vmul.f32 1.442695, %v4098_v17  ;;  %8059 = vpow2.f32 %v4146_v41  ;;  %v4152_v63 = vmul.f32 1.442695, %v4099_v25  ;;  %v12360_v17 = vld [vmem:[#allocation103_spill] sm:$0xff] }
 0x5ee   : > { %v4065_v48 = vpop.xlane.xlu1 %4064  ;;  %4184 = vadd.xlane.f32.xlu0 %v4183_v58  ;;  %4306 = vmatprep.mubr.f32.mxu0 %v8042_v21  ;;  %8061 = vpow2.f32 %v4148_v4  ;;  %v12359_v21 = vld [vmem:[#allocation102_spill] sm:$0xff] }
 0x5ef   : > { %v4100_v3 = vsub.f32 %v12355_v36, %v4065_v48  ;;  %3243 = vadd.xlane.f32.xlu1 %v11148_v27  ;;  %v4101_v46 = vsub.f32 %v12356_v20, %v4065_v48  ;;  %8063 = vpow2.f32 %v4150_v22  ;;  %v12361_v20 = vld [vmem:[#allocation104_spill] sm:$0xff] }
 0x5f0   : > { %8065 = vpow2.f32 %v4152_v63 }
 0x5f1   : > { %v11355_v49 = vpop.eup %8047  ;;  %4307 = vmatmul.mubr.f32.gmra.mrb[104].mxu0 %v8040_v42  ;;  %v4154_v10 = vmul.f32 1.442695, %v4100_v3  ;;  %v4156_v40 = vmul.f32 1.442695, %v4101_v46 }
 0x5f2   : > { %v11357_v16 = vpop.eup %8049  ;;  %v4068_v54 = vpop.xlane.xlu0 %4067  ;;  %4311 = vmatprep.mubr.f32.mxu0 %v8046_v52  ;;  %4187 = vadd.xlane.f32.xlu0 %v4186_v61 }
 0x5f3   : > { %v6222_v1 = vpop.f32.mrb[32].mxu0  ;;  %v11362_v23 = vadd.f32 %v11357_v16, %v11355_v49  ;;  %v8052_v27 = vpop.eup %8051  ;;  %3246 = vadd.xlane.f32.xlu1 %v11160_v35  ;;  %v4102_v45 = vsub.f32 %v12357_v43, %v4068_v54  ;;  %v4103_v42 = vsub.f32 %v12358_v13, %v4068_v54  ;;  %8067 = vpow2.f32 %v4154_v10  ;;  %v12362_v54 = vld [vmem:[#allocation105_spill] sm:$0xff]  ;;  %v12364_v13 = vld [vmem:[#allocation106_spill] sm:$0xff] }
 0x5f4   : > { %v6223_v32 = vpop.f32.mrb[33].mxu0  ;;  %v8054_v18 = vpop.eup %8053  ;;  %8069 = vpow2.f32 %v4156_v40  ;;  %v12363_v10 = vld [vmem:[#allocation89_spill] sm:$0xff] }
 0x5f5   : > { %v11366_v19 = vadd.f32 %v6223_v32, %v6222_v1  ;;  %4312 = vmatmul.mubr.f32.gmra.mrb[106].mxu0 %v8044_v12  ;;  %v8056_v41 = vpop.eup %8055  ;;  %v4192_v25 = vadd.f32 %v8054_v18, %v8052_v27  ;;  %v4158_v4 = vmul.f32 1.442695, %v4102_v45  ;;  %v4160_v61 = vmul.f32 1.442695, %v4103_v42 }
 0x5f6   : > { %v4071_v58 = vpop.xlane.xlu1 %4070  ;;  %4190 = vadd.xlane.f32.xlu0 %v4189_v6  ;;  %4316 = vmatprep.mubr.f32.mxu0 %v8054_v18  ;;  %v8058_v52 = vpop.eup %8057 }
 0x5f7   : > { %v4104_v37 = vsub.f32 %v12359_v21, %v4071_v58  ;;  %v4105_v48 = vsub.f32 %v12360_v17, %v4071_v58  ;;  %v6225_v35 = vpop.f32.mrb[34].mxu0  ;;  %3249 = vadd.xlane.f32.xlu1 %v11172_v11  ;;  %v4195_v32 = vadd.f32 %v8058_v52, %v8056_v41  ;;  %v8060_v18 = vpop.eup %8059  ;;  %v12365_v58 = vld [vmem:[#allocation107_spill] sm:$0xff] }
 0x5f8   : > { %v6226_v0 = vpop.f32.mrb[35].mxu0 }
 0x5f9   : > { %v4162_v36 = vmul.f32 1.442695, %v4104_v37  ;;  %v4164_v3 = vmul.f32 1.442695, %v4105_v48  ;;  %v11372_v12 = vadd.f32 %v6226_v0, %v6225_v35  ;;  %4317 = vmatmul.mubr.f32.gmra.mrb[108].mxu0 %v8052_v27  ;;  %v8062_v27 = vpop.eup %8061  ;;  %v12366_v35 = vld [vmem:[#allocation40_spill] sm:$0xff] }
 0x5fa   : > { %v4074_v22 = vpop.xlane.xlu0 %4073  ;;  %4321 = vmatprep.mubr.f32.mxu0 %v8058_v52  ;;  %4193 = vadd.xlane.f32.xlu0 %v4192_v25  ;;  %v8064_v17 = vpop.eup %8063 }
 0x5fb   : > { %8071 = vpow2.f32 %v4162_v36  ;;  %v4106_v46 = vsub.f32 %v12361_v20, %v4074_v22  ;;  %v4107_v63 = vsub.f32 %v12362_v54, %v4074_v22  ;;  %v6228_v1 = vpop.f32.mrb[36].mxu0  ;;  %2394 = vadd.xlane.f32.xlu1 %v12363_v10  ;;  %v8066_v0 = vpop.eup %8065  ;;  %v12367_v22 = vld [vmem:[#allocation109_spill] sm:$0xff] }
 0x5fc   : > { %8073 = vpow2.f32 %v4164_v3  ;;  %v6229_v11 = vpop.f32.mrb[37].mxu0 }
 0x5fd   : > { %8075 = vpow2.f32 %v4158_v4  ;;  %v4166_v43 = vmul.f32 1.442695, %v4106_v46  ;;  %v4168_v45 = vmul.f32 1.442695, %v4107_v63  ;;  %v11377_v6 = vadd.f32 %v6229_v11, %v6228_v1  ;;  %4322 = vmatmul.mubr.f32.gmra.mrb[110].mxu0 %v8056_v41  ;;  %v8068_v36 = vpop.eup %8067  ;;  %v12368_v46 = vld [vmem:[#allocation110_spill] sm:$0xff]  ;;  %v12369_v1 = vld [vmem:[#allocation41_spill] sm:$0xff] }
 0x5fe   : > { %8077 = vpow2.f32 %v4160_v61  ;;  %v4077_v40 = vpop.xlane.xlu1 %4076  ;;  %4196 = vadd.xlane.f32.xlu0 %v4195_v32  ;;  %4326 = vmatprep.mubr.f32.mxu0 %v11357_v16  ;;  %v4201_v41 = vadd.f32 %v8062_v27, %v8060_v18  ;;  %v8070_v61 = vpop.eup %8069  ;;  %v4204_v32 = vadd.f32 %v8066_v0, %v8064_v17 }
 0x5ff   : > { %8079 = vpow2.f32 %v4166_v43  ;;  %v4108_v42 = vsub.f32 %v12364_v13, %v4077_v40  ;;  %v4109_v21 = vsub.f32 %v12365_v58, %v4077_v40  ;;  %v6231_v37 = vpop.f32.mrb[38].mxu0  ;;  %2397 = vadd.xlane.f32.xlu1 %v12366_v35 }
 0x600   : > { %8081 = vpow2.f32 %v4168_v45  ;;  %v6232_v48 = vpop.f32.mrb[39].mxu0 }
 0x601   : > { %v4170_v25 = vmul.f32 1.442695, %v4108_v42  ;;  %v4172_v52 = vmul.f32 1.442695, %v4109_v21  ;;  %v11383_v4 = vadd.f32 %v6232_v48, %v6231_v37  ;;  %4327 = vmatmul.mubr.f32.gmra.mrb[112].mxu0 %v11355_v49  ;;  %v12371_v37 = vld [vmem:[#allocation43_spill] sm:$0xff] }
 0x602   : > { %4202 = vadd.xlane.f32.xlu0 %v4201_v41  ;;  %4331 = vmatprep.mubr.f32.mxu0 %v8062_v27  ;;  %v12372_v48 = vld [vmem:[#allocation63_spill] sm:$0xff] }
 0x603   : > { %8083 = vpow2.f32 %v4170_v25  ;;  %v6234_v16 = vpop.f32.mrb[40].mxu0  ;;  %v4866_v3 = vpop.xlane.xlu1 %4865  ;;  %2400 = vadd.xlane.f32.xlu1 %v12369_v1  ;;  %v12373_v25 = vld [vmem:[#allocation64_spill] sm:$0xff] }
 0x604   : > { %8085 = vpow2.f32 %v4172_v52  ;;  %v4912_v20 = vsub.f32 %v12367_v22, %v4866_v3  ;;  %v4913_v54 = vsub.f32 %v12368_v46, %v4866_v3  ;;  %v6235_v63 = vpop.f32.mrb[41].mxu0 }
 0x605   : > { %v11389_v11 = vpop.eup %8071  ;;  %v11391_v10 = vadd.f32 %v6235_v63, %v6234_v16  ;;  %4332 = vmatmul.mubr.f32.gmra.mrb[114].mxu0 %v8060_v18  ;;  %v12375_v63 = vld [vmem:[#allocation65_spill] sm:$0xff] }
 0x606   : > { %v8074_v49 = vpop.eup %8073  ;;  %v4944_v43 = vmul.f32 1.442695, %v4912_v20  ;;  %v4946_v45 = vmul.f32 1.442695, %v4913_v54  ;;  %4336 = vmatprep.mubr.f32.mxu0 %v8066_v0  ;;  %4205 = vadd.xlane.f32.xlu0 %v4204_v32  ;;  %v4207_v0 = vadd.f32 %v8070_v61, %v8068_v36  ;;  %v12376_v32 = vld [vmem:[#allocation112_spill] sm:$0xff] }
 0x607   : > { %v8076_v27 = vpop.eup %8075  ;;  %v6237_v40 = vpop.f32.mrb[42].mxu0  ;;  %v11394_v42 = vadd.f32 %v8074_v49, %v11389_v11  ;;  %2403 = vadd.xlane.f32.xlu1 %v12371_v37 }
 0x608   : > { %v4869_v13 = vpop.xlane.xlu0 %4868  ;;  %v8078_v58 = vpop.eup %8077  ;;  %8087 = vpow2.f32 %v4944_v43 }
 0x609   : > { %12370 = vst [vmem:[#allocation82_spill] sm:$0xff] %v11394_v42  ;;  %v6238_v21 = vpop.f32.mrb[43].mxu0  ;;  %v4914_v35 = vsub.f32 %v12372_v48, %v4869_v13  ;;  %v4915_v52 = vsub.f32 %v12373_v25, %v4869_v13  ;;  %v11399_v41 = vpop.eup %8079  ;;  %8089 = vpow2.f32 %v4946_v45  ;;  %4337 = vmatmul.mubr.f32.gmra.mrb[116].mxu0 %v8064_v17 }
 0x60a   : > { %v11401_v18 = vadd.f32 %v6238_v21, %v6237_v40  ;;  %v8082_v16 = vpop.eup %8081  ;;  %4341 = vmatprep.mubr.f32.mxu0 %v8070_v61  ;;  %4208 = vadd.xlane.f32.xlu0 %v4207_v0  ;;  %v12377_v40 = vld [vmem:[#allocation44_spill] sm:$0xff]  ;;  %v4210_v61 = vadd.f32 %v8078_v58, %v8076_v27 }
 0x60b   : > { %v4948_v3 = vmul.f32 1.442695, %v4914_v35  ;;  %v4950_v22 = vmul.f32 1.442695, %v4915_v52  ;;  %v6240_v20 = vpop.f32.mrb[44].mxu0  ;;  %v4872_v46 = vpop.xlane.xlu1 %4871  ;;  %v11404_v54 = vadd.f32 %v8082_v16, %v11399_v41  ;;  %2406 = vadd.xlane.f32.xlu1 %v12377_v40 }
 0x60c   : > { %v4916_v1 = vsub.f32 %v12375_v63, %v4872_v46  ;;  %v4917_v43 = vsub.f32 %v12376_v32, %v4872_v46  ;;  %v6241_v45 = vpop.f32.mrb[45].mxu0  ;;  %v12380_v46 = vld [vmem:[#allocation67_spill] sm:$0xff] }
 0x60d   : > { %12374 = vst [vmem:[#allocation83_spill] sm:$0xff] %v11404_v54  ;;  %8091 = vpow2.f32 %v4948_v3  ;;  %v11409_v13 = vpop.eup %8083  ;;  %v11411_v17 = vadd.f32 %v6241_v45, %v6240_v20  ;;  %4342 = vmatmul.mubr.f32.gmra.mrb[118].mxu0 %v8068_v36  ;;  %v12379_v3 = vld [vmem:[#allocation45_spill] sm:$0xff]  ;;  %v12381_v20 = vld [vmem:[#allocation68_spill] sm:$0xff]  ;;  %v12384_v54 = vld [vmem:[#allocation46_spill] sm:$0xff] }
 0x60e   : > { %8093 = vpow2.f32 %v4950_v22  ;;  %v8086_v21 = vpop.eup %8085  ;;  %v4952_v37 = vmul.f32 1.442695, %v4916_v1  ;;  %v4954_v48 = vmul.f32 1.442695, %v4917_v43  ;;  %4346 = vmatprep.mubr.f32.mxu0 %v8078_v58  ;;  %4211 = vadd.xlane.f32.xlu0 %v4210_v61  ;;  %v12382_v61 = vld [vmem:[#allocation113_spill] sm:$0xff] }
 0x60f   : > { %v6243_v35 = vpop.f32.mrb[46].mxu0  ;;  %v4875_v25 = vpop.xlane.xlu0 %4874  ;;  %v11414_v52 = vadd.f32 %v8086_v21, %v11409_v13  ;;  %2409 = vadd.xlane.f32.xlu1 %v12379_v3  ;;  %v12383_v3 = vld [vmem:[#allocation114_spill] sm:$0xff] }
 0x610   : > { %8095 = vpow2.f32 %v4952_v37  ;;  %v6244_v0 = vpop.f32.mrb[47].mxu0  ;;  %v4918_v22 = vsub.f32 %v12380_v46, %v4875_v25  ;;  %v4919_v63 = vsub.f32 %v12381_v20, %v4875_v25 }
 0x611   : > { %12378 = vst [vmem:[#allocation84_spill] sm:$0xff] %v11414_v52  ;;  %8097 = vpow2.f32 %v4954_v48  ;;  %v11419_v32 = vadd.f32 %v6244_v0, %v6243_v35  ;;  %4347 = vmatmul.mubr.f32.gmra.mrb[120].mxu0 %v8076_v27 }
 0x612   : > { %v11421_v1 = vpop.eup %8087  ;;  %v4956_v36 = vmul.f32 1.442695, %v4918_v22  ;;  %v4958_v58 = vmul.f32 1.442695, %v4919_v63  ;;  %4351 = vmatprep.mubr.f32.mxu0 %v8074_v49 }
 0x613   : > { %v8090_v43 = vpop.eup %8089  ;;  %v6246_v45 = vpop.f32.mrb[48].mxu0  ;;  %2412 = vadd.xlane.f32.xlu1 %v12384_v54 }
 0x614   : > { %v4878_v40 = vpop.xlane.xlu1 %4877  ;;  %8099 = vpow2.f32 %v4956_v36  ;;  %v6247_v46 = vpop.f32.mrb[49].mxu0  ;;  %v5008_v48 = vadd.f32 %v8090_v43, %v11421_v1 }
 0x615   : > { %v4920_v37 = vsub.f32 %v12382_v61, %v4878_v40  ;;  %v4921_v52 = vsub.f32 %v12383_v3, %v4878_v40  ;;  %8101 = vpow2.f32 %v4958_v58  ;;  %v11427_v35 = vadd.f32 %v6247_v46, %v6246_v45  ;;  %4352 = vmatmul.mubr.f32.gmra.mrb[122].mxu0 %v11389_v11  ;;  %v12385_v40 = vld [vmem:[#allocation59_spill] sm:$0xff] }
 0x616   : > { %5009 = vadd.xlane.f32.xlu0 %v5008_v48  ;;  %4356 = vmatprep.mubr.f32.mxu0 %v8082_v16  ;;  %v12386_v11 = vld [vmem:[#allocation115_spill] sm:$0xff] }
 0x617   : > { %v11429_v27 = vpop.eup %8091  ;;  %v4960_v25 = vmul.f32 1.442695, %v4920_v37  ;;  %v4962_v0 = vmul.f32 1.442695, %v4921_v52  ;;  %v6249_v22 = vpop.f32.mrb[50].mxu0  ;;  %2421 = vadd.xlane.f32.xlu1 %v12385_v40  ;;  %v12387_v37 = vld [vmem:[#allocation116_spill] sm:$0xff] }
 0x618   : > { %v11432_v49 = vpop.eup %8093  ;;  %v7882_v20 = vpop.permute.xlu1 %7881 }
 0x619   : > { %8103 = vpow2.f32 %v4960_v25  ;;  %v7884_v63 = vunpack.i.h.bf16 %v7882_v20  ;;  %v7883_v54 = vunpack.i.l.bf16 %v7882_v20  ;;  %v6250_v36 = vpop.f32.mrb[51].mxu0  ;;  %v4881_v58 = vpop.xlane.xlu0 %4880  ;;  %v5011_v45 = vadd.f32 %v11432_v49, %v11429_v27  ;;  %4357 = vmatmul.mubr.f32.gmra.mrb[124].mxu0 %v11399_v41 }
 0x61a   : > { %8105 = vpow2.f32 %v4962_v0  ;;  %v11437_v52 = vadd.f32 %v6250_v36, %v6249_v22  ;;  %v4922_v61 = vsub.f32 %v12386_v11, %v4881_v58  ;;  %v4923_v3 = vsub.f32 %v12387_v37, %v4881_v58  ;;  %v8096_v16 = vpop.eup %8095  ;;  %4361 = vmatprep.mubr.f32.mxu0 %v8086_v21 }
 0x61b   : > { %v7336_v46 = vpack.c.bf16 %v7884_v63, %v7883_v54  ;;  %5012 = vadd.xlane.f32.xlu0 %v5011_v45  ;;  %v8098_v48 = vpop.eup %8097  ;;  %v6252_v40 = vpop.f32.mrb[52].mxu0  ;;  %3252 = vadd.xlane.f32.xlu1 %v11176_v7 }
 0x61c   : > { %v4964_v25 = vmul.f32 1.442695, %v4922_v61  ;;  %v4966_v20 = vmul.f32 1.442695, %v4923_v3  ;;  %v6253_v42 = vpop.f32.mrb[53].mxu0  ;;  %v5014_v22 = vadd.f32 %v8098_v48, %v8096_v16 }
 0x61d   : > { %v7887_v0 = vpop.permute.xlu0 %7886  ;;  %7337 = vmatpush3.bf16.msra.mxu0 %v7336_v46  ;;  %v11443_v36 = vadd.f32 %v6253_v42, %v6252_v40 }
 0x61e   : > { %8107 = vpow2.f32 %v4964_v25  ;;  %v7889_v58 = vunpack.i.h.bf16 %v7887_v0  ;;  %v7888_v11 = vunpack.i.l.bf16 %v7887_v0  ;;  %v8100_v63 = vpop.eup %8099  ;;  %4362 = vmatmul.mubr.f32.gmra.mrb[126].mxu0 %v11409_v13 }
 0x61f   : > { %8109 = vpow2.f32 %v4966_v20  ;;  %5015 = vadd.xlane.f32.xlu0 %v5014_v22  ;;  %v8102_v41 = vpop.eup %8101  ;;  %5248 = vmatprep.mubr.f32.mxu0 %v8090_v43  ;;  %v6255_v21 = vpop.f32.mrb[54].mxu0 }
 0x620   : > { %v7338_v54 = vpack.c.bf16 %v7889_v58, %v7888_v11  ;;  %v6256_v45 = vpop.f32.mrb[55].mxu0  ;;  %3255 = vadd.xlane.f32.xlu1 %v11188_v2  ;;  %v5017_v61 = vadd.f32 %v8102_v41, %v8100_v63 }
 0x621   : > { %v7892_v7 = vpop.permute.xlu0 %7891  ;;  %v11447_v37 = vadd.f32 %v6256_v45, %v6255_v21 }
 0x622   : > { %v7894_v42 = vunpack.i.h.bf16 %v7892_v7  ;;  %v7893_v3 = vunpack.i.l.bf16 %v7892_v7  ;;  %7339 = vmatprep.subr.bf16.mxu0 %v7338_v54 }
 0x623   : > { %v8104_v46 = vpop.eup %8103  ;;  %5018 = vadd.xlane.f32.xlu0 %v5017_v61  ;;  %v6258_v13 = vpop.f32.mrb[56].mxu0 }
 0x624   : > { %v8106_v25 = vpop.eup %8105  ;;  %v7340_v20 = vpack.c.bf16 %v7894_v42, %v7893_v3  ;;  %v6259_v40 = vpop.f32.mrb[57].mxu0  ;;  %3258 = vadd.xlane.f32.xlu1 %v11202_v51  ;;  %v12388_v51 = vld [vmem:[#allocation50_spill] sm:$0xff] }
 0x625   : > { %v5020_v43 = vadd.f32 %v8106_v25, %v8104_v46  ;;  %v11450_v0 = vadd.f32 %v6259_v40, %v6258_v13 }
 0x626   : > { %7341 = vmatpush3.bf16.msra.mxu0 %v7340_v20 }
 0x627   : > { %5021 = vadd.xlane.f32.xlu0 %v5020_v43 }
 0x628   : > { %v8108_v2 = vpop.eup %8107  ;;  %3261 = vadd.xlane.f32.xlu1 %v11224_v26  ;;  %v12389_v26 = vld [vmem:[#allocation54_spill] sm:$0xff] }
 0x629   : > { %v8110_v22 = vpop.eup %8109  ;;  %5249 = vmatmul.mubr.f32.vlgmr.msra.gmra.mrb[128].mxu0 %v11421_v1 }
 0x62a   : > { %5253 = vmatprep.mubr.f32.mxu0 %v11432_v49  ;;  %v5023_v58 = vadd.f32 %v8110_v22, %v8108_v2 }
 0x62c   : > { %5024 = vadd.xlane.f32.xlu0 %v5023_v58  ;;  %3264 = vadd.xlane.f32.xlu1 %v11248_v29  ;;  %v12390_v29 = vld [vmem:[#allocation91_spill] sm:$0xff] }
 0x62d   : > { %5254 = vmatmul.mubr.f32.gmra.mrb[130].mxu0 %v11429_v27 }
 0x62e   : > { %5258 = vmatprep.mubr.f32.mxu0 %v8098_v48 }
 0x630   : > { %3267 = vadd.xlane.f32.xlu1 %v11262_v59 }
 0x631   : > { %5259 = vmatmul.mubr.f32.gmra.mrb[132].mxu0 %v8096_v16 }
 0x632   : > { %5263 = vmatprep.mubr.f32.mxu0 %v8102_v41 }
 0x634   : > { %3270 = vadd.xlane.f32.xlu1 %v11274_v60 }
 0x635   : > { %5264 = vmatmul.mubr.f32.gmra.mrb[134].mxu0 %v8100_v63 }
 0x636   : > { %5268 = vmatprep.mubr.f32.mxu0 %v8106_v25 }
 0x638   : > { %3273 = vadd.xlane.f32.xlu1 %v11289_v44 }
 0x639   : > { %5269 = vmatmul.mubr.f32.gmra.mrb[136].mxu0 %v8104_v46 }
 0x63a   : > { %5273 = vmatprep.mubr.f32.mxu0 %v8110_v22 }
 0x63c   : > { %4199 = vadd.xlane.f32.xlu1 %v11362_v23 }
 0x63d   : > { %5274 = vmatmul.mubr.f32.gmra.mrb[138].mxu0 %v8108_v2 }
 0x640   : > { %2424 = vadd.xlane.f32.xlu1 %v12388_v51 }
 0x644   : > { %2427 = vadd.xlane.f32.xlu1 %v12389_v26 }
 0x648   : > { %2430 = vadd.xlane.f32.xlu1 %v12390_v29  ;;  %v4884_v59 = vpop.xlane.xlu1 %4883 }
 0x649   : > { %v4924_v1 = vsub.f32 %v11180_v14, %v4884_v59  ;;  %v4925_v60 = vsub.f32 %v11184_v50, %v4884_v59 }
 0x64b   : > { %v4968_v27 = vmul.f32 1.442695, %v4924_v1  ;;  %v4970_v49 = vmul.f32 1.442695, %v4925_v60 }
 0x64c   : > { %v4890_v16 = vpop.xlane.xlu1 %4889 }
 0x64d   : > { %8111 = vpow2.f32 %v4968_v27  ;;  %v4928_v23 = vsub.f32 %v11192_v38, %v4890_v16  ;;  %v4929_v11 = vsub.f32 %v11196_v28, %v4890_v16 }
 0x64e   : > { %8113 = vpow2.f32 %v4970_v49 }
 0x64f   : > { %v4976_v45 = vmul.f32 1.442695, %v4928_v23  ;;  %v4978_v61 = vmul.f32 1.442695, %v4929_v11 }
 0x650   : > { %v4893_v44 = vpop.xlane.xlu1 %4892 }
 0x651   : > { %v4887_v48 = vpop.xlane.xlu0 %4886  ;;  %v4930_v50 = vsub.f32 %v11208_v55, %v4893_v44  ;;  %v4931_v42 = vsub.f32 %v11212_v53, %v4893_v44 }
 0x652   : > { %v4926_v63 = vsub.f32 %v11216_v31, %v4887_v48  ;;  %v4927_v41 = vsub.f32 %v11220_v57, %v4887_v48 }
 0x653   : > { %v4980_v31 = vmul.f32 1.442695, %v4930_v50  ;;  %v4982_v20 = vmul.f32 1.442695, %v4931_v42 }
 0x654   : > { %v4972_v21 = vmul.f32 1.442695, %v4926_v63  ;;  %v4974_v54 = vmul.f32 1.442695, %v4927_v41  ;;  %v4896_v14 = vpop.xlane.xlu1 %4895 }
 0x655   : > { %v11471_v7 = vpop.xlane.xlu0 %4907  ;;  %v4932_v57 = vsub.f32 %v11228_v15, %v4896_v14  ;;  %v4933_v55 = vsub.f32 %v11232_v33, %v4896_v14 }
 0x656   : > { %8115 = vpow2.f32 %v4972_v21 }
 0x657   : > { %v8112_v3 = vpop.eup %8111  ;;  %8117 = vpow2.f32 %v4974_v54  ;;  %v4984_v40 = vmul.f32 1.442695, %v4932_v57  ;;  %v4986_v58 = vmul.f32 1.442695, %v4933_v55 }
 0x658   : > { %v8114_v38 = vpop.eup %8113  ;;  %v4899_v28 = vpop.xlane.xlu1 %4898  ;;  %8119 = vpow2.f32 %v4976_v45 }
 0x659   : > { %v2416_v46 = vpop.xlane.xlu0 %2415  ;;  %5278 = vmatprep.mubr.f32.mxu0 %v8114_v38  ;;  %v5026_v25 = vadd.f32 %v8114_v38, %v8112_v3  ;;  %8121 = vpow2.f32 %v4978_v61  ;;  %v4934_v43 = vsub.f32 %v11254_v30, %v4899_v28  ;;  %v4935_v15 = vsub.f32 %v11258_v56, %v4899_v28 }
 0x65a   : > { %5279 = vmatmul.mubr.f32.gmra.mrb[140].mxu0 %v8112_v3  ;;  %8123 = vpow2.f32 %v4980_v31  ;;  %v4940_v38 = vsub.f32 %v11240_v62, %v11471_v7  ;;  %v4941_v28 = vsub.f32 %v11244_v39, %v11471_v7 }
 0x65b   : > { %5027 = vadd.xlane.f32.xlu0 %v5026_v25  ;;  %8125 = vpow2.f32 %v4982_v20  ;;  %v4988_v59 = vmul.f32 1.442695, %v4934_v43  ;;  %v4990_v30 = vmul.f32 1.442695, %v4935_v15 }
 0x65c   : > { %v6261_v13 = vpop.f32.mrb[58].mxu0  ;;  %v4902_v53 = vpop.xlane.xlu1 %4901  ;;  %8127 = vrcp.f32 %v2416_v46  ;;  %v5000_v7 = vmul.f32 1.442695, %v4940_v38 }
 0x65d   : > { %v6262_v2 = vpop.f32.mrb[59].mxu0  ;;  %v2419_v22 = vpop.xlane.xlu0 %2418  ;;  %v4936_v1 = vsub.f32 %v11268_v34, %v4902_v53  ;;  %v4937_v49 = vsub.f32 %v11272_v8, %v4902_v53 }
 0x65e   : > { %v11478_v51 = vadd.f32 %v6262_v2, %v6261_v13  ;;  %8129 = vrcp.f32 %v2419_v22 }
 0x65f   : > { %8131 = vpow2.f32 %v4984_v40  ;;  %v4992_v41 = vmul.f32 1.442695, %v4936_v1  ;;  %v4994_v21 = vmul.f32 1.442695, %v4937_v49 }
 0x660   : > { %v6264_v26 = vpop.f32.mrb[60].mxu0  ;;  %v4905_v33 = vpop.xlane.xlu1 %4904  ;;  %8133 = vpow2.f32 %v4986_v58 }
 0x661   : > { %v8116_v29 = vpop.eup %8115  ;;  %v6265_v60 = vpop.f32.mrb[61].mxu0  ;;  %v4938_v48 = vsub.f32 %v11281_v5, %v4905_v33  ;;  %8135 = vpow2.f32 %v4988_v59  ;;  %v4939_v8 = vsub.f32 %v11285_v24, %v4905_v33 }
 0x662   : > { %v8118_v27 = vpop.eup %8117  ;;  %v11482_v16 = vadd.f32 %v6265_v60, %v6264_v26  ;;  %8137 = vpow2.f32 %v4990_v30 }
 0x663   : > { %v8120_v56 = vpop.eup %8119  ;;  %5283 = vmatprep.mubr.f32.mxu0 %v8118_v27  ;;  %v5029_v44 = vadd.f32 %v8118_v27, %v8116_v29  ;;  %v4996_v61 = vmul.f32 1.442695, %v4938_v48  ;;  %8139 = vpow2.f32 %v4992_v41  ;;  %v4998_v57 = vmul.f32 1.442695, %v4939_v8 }
 0x664   : > { %v8122_v23 = vpop.eup %8121  ;;  %5284 = vmatmul.mubr.f32.gmra.mrb[142].mxu0 %v8116_v29  ;;  %v6267_v11 = vpop.f32.mrb[62].mxu0  ;;  %8141 = vpow2.f32 %v4994_v21 }
 0x665   : > { %v4911_v63 = vpop.xlane.xlu1 %4910  ;;  %5030 = vadd.xlane.f32.xlu0 %v5029_v44  ;;  %5288 = vmatprep.mubr.f32.mxu0 %v8122_v23  ;;  %v6268_v34 = vpop.f32.mrb[63].mxu0  ;;  %v5032_v45 = vadd.f32 %v8122_v23, %v8120_v56  ;;  %8143 = vpow2.f32 %v4996_v61 }
 0x666   : > { %v11486_v54 = vadd.f32 %v6268_v34, %v6267_v11  ;;  %v8124_v14 = vpop.eup %8123  ;;  %v4942_v40 = vsub.f32 %v11300_v9, %v4911_v63 }
 0x667   : > { %v8126_v50 = vpop.eup %8125 }
 0x668   : > { %5289 = vmatmul.mubr.f32.gmra.mrb[144].mxu0 %v8120_v56  ;;  %v6366_v5 = vpop.f32.mrb[64].mxu0  ;;  %v8128_v3 = vpop.eup %8127  ;;  %v5035_v55 = vadd.f32 %v8126_v50, %v8124_v14  ;;  %v5004_v9 = vmul.f32 1.442695, %v4942_v40 }
 0x669   : > { %v11488_v42 = vpop.xlane.xlu1 %3228  ;;  %5033 = vadd.xlane.f32.xlu0 %v5032_v45  ;;  %5293 = vmatprep.mubr.f32.mxu0 %v8126_v50  ;;  %v6367_v24 = vpop.f32.mrb[65].mxu0  ;;  %v2609_v25 = vmul.f32 %v8128_v3, %v11419_v32  ;;  %v5002_v32 = vmul.f32 1.442695, %v4941_v28 }
 0x66a   : > { %v8130_v31 = vpop.eup %8129  ;;  %v11494_v46 = vadd.f32 %v6367_v24, %v6366_v5 }
 0x66b   : > { %v8132_v20 = vpop.eup %8131  ;;  %v2610_v13 = vmul.f32 %v8130_v31, %v11427_v35  ;;  %2625 = vst.msk [vmem:[#allocation3 + $0x70] sm:$0xff] %vm1943_vm0, %v2609_v25  ;;  %v4943_v35 = vsub.f32 %v11304_v47, %v4911_v63 }
 0x66c   : > { %v8134_v53 = vpop.eup %8133  ;;  %5294 = vmatmul.mubr.f32.gmra.mrb[146].mxu0 %v8124_v14  ;;  %v6369_v62 = vpop.f32.mrb[66].mxu0 }
 0x66d   : > { %v3232_v39 = vpop.xlane.xlu1 %3231  ;;  %5036 = vadd.xlane.f32.xlu0 %v5035_v55  ;;  %5298 = vmatprep.mubr.f32.mxu0 %v8134_v53  ;;  %v6370_v43 = vpop.f32.mrb[67].mxu0  ;;  %2626 = vst.msk [vmem:[#allocation3 + $0x80] sm:$0xff] %vm1943_vm0, %v2610_v13  ;;  %v5038_v58 = vadd.f32 %v8134_v53, %v8132_v20  ;;  %v5006_v59 = vmul.f32 1.442695, %v4943_v35 }
 0x66e   : > { %8145 = vrcp.f32 %v3232_v39  ;;  %v6371_v2 = vadd.f32 %v6370_v43, %v6369_v62  ;;  %v8136_v22 = vpop.eup %8135  ;;  %v4176_v43 = vpop.xlane.xlu0 %4175 }
 0x66f   : > { %8147 = vpow2.f32 %v4998_v57  ;;  %v8138_v15 = vpop.eup %8137 }
 0x670   : > { %5299 = vmatmul.mubr.f32.gmra.mrb[148].mxu0 %v8132_v20  ;;  %v6372_v26 = vpop.f32.mrb[68].mxu0  ;;  %8149 = vpow2.f32 %v5000_v7  ;;  %v8140_v60 = vpop.eup %8139  ;;  %v5041_v27 = vadd.f32 %v8138_v15, %v8136_v22 }
 0x671   : > { %v11502_v33 = vpop.xlane.xlu1 %3234  ;;  %5039 = vadd.xlane.f32.xlu0 %v5038_v58  ;;  %5303 = vmatprep.mubr.f32.mxu0 %v8138_v15  ;;  %v6373_v29 = vpop.f32.mrb[69].mxu0  ;;  %8151 = vpow2.f32 %v5002_v32 }
 0x672   : > { %v11504_v1 = vadd.f32 %v6373_v29, %v6372_v26  ;;  %v8142_v47 = vpop.eup %8141  ;;  %8153 = vpow2.f32 %v5004_v9 }
 0x673   : > { %v8144_v44 = vpop.eup %8143  ;;  %8155 = vpow2.f32 %v5006_v59  ;;  %v5044_v11 = vadd.f32 %v8142_v47, %v8140_v60  ;;  %v11522_v15 = vpop.xlane.xlu0 %4178 }
 0x674   : > { %5304 = vmatmul.mubr.f32.gmra.mrb[150].mxu0 %v8136_v22  ;;  %v6375_v30 = vpop.f32.mrb[70].mxu0 }
 0x675   : > { %5042 = vadd.xlane.f32.xlu0 %v5041_v27  ;;  %5308 = vmatprep.mubr.f32.mxu0 %v8142_v47  ;;  %v6376_v49 = vpop.f32.mrb[71].mxu0  ;;  %v11506_v56 = vpop.xlane.xlu1 %3237 }
 0x676   : > { %v11508_v23 = vadd.f32 %v6376_v49, %v6375_v30 }
 0x678   : > { %v8146_v48 = vpop.eup %8145  ;;  %5309 = vmatmul.mubr.f32.gmra.mrb[152].mxu0 %v8140_v60  ;;  %v6378_v41 = vpop.f32.mrb[72].mxu0 }
 0x679   : > { %v8148_v63 = vpop.eup %8147  ;;  %v3565_v34 = vmul.f32 %v8146_v48, %v6371_v2  ;;  %5045 = vadd.xlane.f32.xlu0 %v5044_v11  ;;  %v6379_v21 = vpop.f32.mrb[73].mxu0 }
 0x67a   : > { %5313 = vmatprep.mubr.f32.mxu0 %v8148_v63  ;;  %v11510_v8 = vpop.xlane.xlu1 %3240  ;;  %v11512_v14 = vadd.f32 %v6379_v21, %v6378_v41  ;;  %v8150_v45 = vpop.eup %8149  ;;  %v5047_v50 = vadd.f32 %v8148_v63, %v8144_v44 }
 0x67b   : > { %3598 = vrot.lane.b32.xlu1 %v3565_v34, %s8626_s14  ;;  %v8152_v61 = vpop.eup %8151  ;;  %v11531_v48 = vpop.xlane.xlu0 %4181 }
 0x67c   : > { %5314 = vmatmul.mubr.f32.gmra.mrb[154].mxu0 %v8144_v44  ;;  %v6381_v5 = vpop.f32.mrb[74].mxu0  ;;  %v8154_v24 = vpop.eup %8153  ;;  %v5050_v31 = vadd.f32 %v8152_v61, %v8150_v45 }
 0x67d   : > { %5048 = vadd.xlane.f32.xlu0 %v5047_v50  ;;  %5318 = vmatprep.mubr.f32.mxu0 %v8152_v61  ;;  %v6382_v3 = vpop.f32.mrb[75].mxu0  ;;  %v8156_v57 = vpop.eup %8155 }
 0x67e   : > { %v11515_v38 = vpop.xlane.xlu1 %3243  ;;  %v11517_v28 = vadd.f32 %v6382_v3, %v6381_v5  ;;  %v5053_v53 = vadd.f32 %v8156_v57, %v8154_v24 }
 0x67f   : > { %v11541_v61 = vpop.xlane.xlu0 %4184 }
 0x680   : > { %5319 = vmatmul.mubr.f32.gmra.mrb[156].mxu0 %v8150_v45  ;;  %v6384_v25 = vpop.f32.mrb[76].mxu0 }
 0x681   : > { %5051 = vadd.xlane.f32.xlu0 %v5050_v31  ;;  %5323 = vmatprep.mubr.f32.mxu0 %v8156_v57  ;;  %v6385_v20 = vpop.f32.mrb[77].mxu0 }
 0x682   : > { %v3247_v55 = vpop.xlane.xlu1 %3246  ;;  %v6386_v13 = vadd.f32 %v6385_v20, %v6384_v25 }
 0x683   : > { %8157 = vrcp.f32 %v3247_v55 }
 0x684   : > { %5324 = vmatmul.mubr.f32.gmra.mrb[158].mxu0 %v8154_v24  ;;  %v6387_v62 = vpop.f32.mrb[78].mxu0 }
 0x685   : > { %5054 = vadd.xlane.f32.xlu0 %v5053_v53  ;;  %v6388_v39 = vpop.f32.mrb[79].mxu0 }
 0x686   : > { %v3250_v7 = vpop.xlane.xlu1 %3249  ;;  %v6389_v40 = vadd.f32 %v6388_v39, %v6387_v62  ;;  %v12391_v39 = vld [vmem:[#allocation72_spill] sm:$0xff] }
 0x687   : > { %8159 = vrcp.f32 %v3250_v7 }
 0x688   : > { %v6390_v32 = vpop.f32.mrb[80].mxu0 }
 0x689   : > { %v6391_v2 = vpop.f32.mrb[81].mxu0 }
 0x68a   : > { %v2395_v35 = vpop.xlane.xlu1 %2394  ;;  %v11519_v22 = vadd.f32 %v6391_v2, %v6390_v32 }
 0x68b   : > { %8161 = vrcp.f32 %v2395_v35 }
 0x68c   : > { %8163 = vrcp.f32 %v11488_v42  ;;  %v6393_v26 = vpop.f32.mrb[82].mxu0 }
 0x68d   : > { %v8158_v58 = vpop.eup %8157  ;;  %v6394_v29 = vpop.f32.mrb[83].mxu0 }
 0x68e   : > { %v2398_v9 = vpop.xlane.xlu1 %2397  ;;  %v11524_v59 = vmul.f32 %v8158_v58, %v6386_v13  ;;  %v11526_v60 = vadd.f32 %v6394_v29, %v6393_v26  ;;  %v12392_v58 = vld [vmem:[#allocation71_spill] sm:$0xff] }
 0x68f   : > { %8165 = vrcp.f32 %v2398_v9 }
 0x690   : > { %8167 = vrcp.f32 %v11502_v33  ;;  %v6396_v47 = vpop.f32.mrb[84].mxu0 }
 0x691   : > { %v8160_v27 = vpop.eup %8159  ;;  %v6397_v49 = vpop.f32.mrb[85].mxu0 }
 0x692   : > { %v2401_v30 = vpop.xlane.xlu1 %2400  ;;  %v11529_v44 = vmul.f32 %v8160_v27, %v6389_v40  ;;  %v11533_v42 = vadd.f32 %v6397_v49, %v6396_v47 }
 0x693   : > { %8169 = vrcp.f32 %v2401_v30 }
 0x694   : > { %8171 = vrcp.f32 %v11506_v56  ;;  %v6399_v63 = vpop.f32.mrb[86].mxu0 }
 0x695   : > { %v8162_v11 = vpop.eup %8161  ;;  %v6400_v34 = vpop.f32.mrb[87].mxu0 }
 0x696   : > { %v2404_v41 = vpop.xlane.xlu1 %2403  ;;  %v2602_v21 = vmul.f32 %v8162_v11, %v11366_v19  ;;  %v8164_v45 = vpop.eup %8163  ;;  %v11537_v33 = vadd.f32 %v6400_v34, %v6399_v63 }
 0x697   : > { %8173 = vrcp.f32 %v2404_v41  ;;  %v3564_v3 = vmul.f32 %v8164_v45, %v11494_v46 }
 0x698   : > { %2618 = vst.msk [vmem:[#allocation3] sm:$0xff] %vm1943_vm0, %v2602_v21  ;;  %8175 = vrcp.f32 %v11510_v8  ;;  %v6402_v5 = vpop.f32.mrb[88].mxu0 }
 0x699   : > { %v8166_v50 = vpop.eup %8165  ;;  %v6403_v24 = vpop.f32.mrb[89].mxu0 }
 0x69a   : > { %v2407_v56 = vpop.xlane.xlu1 %2406  ;;  %v2603_v31 = vmul.f32 %v8166_v50, %v11372_v12  ;;  %v8168_v57 = vpop.eup %8167  ;;  %v11545_v19 = vadd.f32 %v6403_v24, %v6402_v5 }
 0x69b   : > { %8177 = vrcp.f32 %v2407_v56  ;;  %3596 = vrot.lane.b32.xlu0 %v3564_v3, %s8626_s14  ;;  %v3566_v46 = vmul.f32 %v8168_v57, %v11504_v1  ;;  %v11552_v12 = vpop.xlane.xlu0 %4187 }
 0x69c   : > { %2619 = vst.msk [vmem:[#allocation3 + $0x10] sm:$0xff] %vm1943_vm0, %v2603_v31  ;;  %8179 = vrcp.f32 %v11515_v38  ;;  %v6405_v8 = vpop.f32.mrb[90].mxu0 }
 0x69d   : > { %v8170_v25 = vpop.eup %8169  ;;  %v6406_v55 = vpop.f32.mrb[91].mxu0 }
 0x69e   : > { %v2410_v20 = vpop.xlane.xlu1 %2409  ;;  %v2604_v13 = vmul.f32 %v8170_v25, %v11377_v6  ;;  %v8172_v53 = vpop.eup %8171  ;;  %v11554_v62 = vadd.f32 %v6406_v55, %v6405_v8 }
 0x69f   : > { %8181 = vrcp.f32 %v2410_v20  ;;  %2433 = vadd.xlane.f32.xlu1 %v12391_v39  ;;  %3600 = vrot.lane.b32.xlu0 %v3566_v46, %s8626_s14  ;;  %v3567_v1 = vmul.f32 %v8172_v53, %v11508_v23  ;;  %v11566_v9 = vpop.xlane.xlu0 %4190 }
 0x6a0   : > { %2620 = vst.msk [vmem:[#allocation3 + $0x20] sm:$0xff] %vm1943_vm0, %v2604_v13  ;;  %v6408_v7 = vpop.f32.mrb[92].mxu0  ;;  %8183 = vrcp.f32 %v4176_v43 }
 0x6a1   : > { %v8174_v38 = vpop.eup %8173  ;;  %v6409_v32 = vpop.f32.mrb[93].mxu0 }
 0x6a2   : > { %v2413_v40 = vpop.xlane.xlu1 %2412  ;;  %v2605_v6 = vmul.f32 %v8174_v38, %v11383_v4  ;;  %v8176_v35 = vpop.eup %8175  ;;  %v11561_v2 = vadd.f32 %v6409_v32, %v6408_v7 }
 0x6a3   : > { %8185 = vrcp.f32 %v2413_v40  ;;  %2436 = vadd.xlane.f32.xlu1 %v12392_v58  ;;  %3602 = vrot.lane.b32.xlu0 %v3567_v1, %s8626_s14  ;;  %v3568_v23 = vmul.f32 %v8176_v35, %v11512_v14  ;;  %v11576_v45 = vpop.xlane.xlu0 %4193  ;;  %v5474_v1 = vld [vmem:[#allocation10 + $0x8] sm:$0xff] }
 0x6a4   : > { %2621 = vst.msk [vmem:[#allocation3 + $0x30] sm:$0xff] %vm1943_vm0, %v2605_v6  ;;  %v6411_v43 = vpop.f32.mrb[94].mxu0  ;;  %v5476_v6 = vld [vmem:[#allocation10 + $0x18] sm:$0xff] }
 0x6a5   : > { %v8178_v26 = vpop.eup %8177  ;;  %v6412_v27 = vpop.f32.mrb[95].mxu0  ;;  %v7342_v58 = vpack.c.bf16 %v5476_v6, %v5474_v1 }
 0x6a6   : > { %v2422_v29 = vpop.xlane.xlu1 %2421  ;;  %v2606_v4 = vmul.f32 %v8178_v26, %v11391_v10  ;;  %v8180_v47 = vpop.eup %8179  ;;  %v11570_v30 = vadd.f32 %v6412_v27, %v6411_v43  ;;  %v5473_v26 = vld [vmem:[#allocation10] sm:$0xff]  ;;  %v5475_v43 = vld [vmem:[#allocation10 + $0x10] sm:$0xff] }
 0x6a7   : > { %8187 = vrcp.f32 %v2422_v29  ;;  %3604 = vrot.lane.b32.xlu0 %v3568_v23, %s8626_s14  ;;  %v3569_v34 = vmul.f32 %v8180_v47, %v11517_v28  ;;  %v11583_v28 = vpop.xlane.xlu0 %4196  ;;  %v7344_v23 = vpack.c.bf16 %v5475_v43, %v5473_v26  ;;  %7343 = vmatprep.subr.bf16.mxu1 %v7342_v58  ;;  %v5485_v58 = vld [vmem:[#allocation10 + $0x60] sm:$0xff] }
 0x6a8   : > { %2622 = vst.msk [vmem:[#allocation3 + $0x40] sm:$0xff] %vm1943_vm0, %v2606_v4  ;;  %v6510_v11 = vpop.f32.mrb[96].mxu0 }
 0x6a9   : > { %v8182_v49 = vpop.eup %8181  ;;  %v6511_v41 = vpop.f32.mrb[97].mxu0  ;;  %7345 = vmatpush1.bf16.msra.mxu1 %v7344_v23 }
 0x6aa   : > { %v3253_v63 = vpop.xlane.xlu1 %3252  ;;  %v2607_v21 = vmul.f32 %v8182_v49, %v11401_v18  ;;  %v6512_v10 = vadd.f32 %v6511_v41, %v6510_v11  ;;  %v8184_v14 = vpop.eup %8183  ;;  %v5480_v41 = vld [vmem:[#allocation10 + $0x38] sm:$0xff] }
 0x6ab   : > { %8189 = vrcp.f32 %v3253_v63  ;;  %3606 = vrot.lane.b32.xlu0 %v3569_v34, %s8626_s14  ;;  %v11592_v8 = vpop.xlane.xlu0 %4202  ;;  %v5478_v63 = vld [vmem:[#allocation10 + $0x28] sm:$0xff] }
 0x6ac   : > { %2623 = vst.msk [vmem:[#allocation3 + $0x50] sm:$0xff] %vm1943_vm0, %v2607_v21  ;;  %v4383_v5 = vmul.f32 %v8184_v14, %v6512_v10  ;;  %v7346_v34 = vpack.c.bf16 %v5480_v41, %v5478_v63  ;;  %v5477_v21 = vld [vmem:[#allocation10 + $0x20] sm:$0xff]  ;;  %v5479_v10 = vld [vmem:[#allocation10 + $0x30] sm:$0xff] }
 0x6ad   : > { %v8186_v50 = vpop.eup %8185 }
 0x6ae   : > { %v3256_v3 = vpop.xlane.xlu1 %3255  ;;  %v2608_v56 = vmul.f32 %v8186_v50, %v11411_v17  ;;  %4399 = vst.msk [vmem:[#allocation3 + $0x8] sm:$0xff] %vm1943_vm0, %v4383_v5  ;;  %v7348_v5 = vpack.c.bf16 %v5479_v10, %v5477_v21  ;;  %7347 = vmatprep.subr.bf16.mxu1 %v7346_v34  ;;  %v5491_v34 = vld [vmem:[#allocation10 + $0x90] sm:$0xff] }
 0x6af   : > { %8191 = vrcp.f32 %v3256_v3  ;;  %v11598_v39 = vpop.xlane.xlu0 %4205 }
 0x6b0   : > { %2624 = vst.msk [vmem:[#allocation3 + $0x60] sm:$0xff] %vm1943_vm0, %v2608_v56  ;;  %8193 = vrcp.f32 %v11522_v15  ;;  %7349 = vmatpush1.bf16.msra.mxu1 %v7348_v5 }
 0x6b1   : > { %v8188_v18 = vpop.eup %8187 }
 0x6b2   : > { %v3259_v24 = vpop.xlane.xlu1 %3258  ;;  %v2611_v31 = vmul.f32 %v8188_v18, %v11437_v52 }
 0x6b3   : > { %8195 = vrcp.f32 %v3259_v24  ;;  %v11609_v4 = vpop.xlane.xlu0 %4208 }
 0x6b4   : > { %2627 = vst.msk [vmem:[#allocation3 + $0x90] sm:$0xff] %vm1943_vm0, %v2611_v31  ;;  %8197 = vrcp.f32 %v11531_v48  ;;  %v5482_v31 = vld [vmem:[#allocation10 + $0x48] sm:$0xff] }
 0x6b5   : > { %v8190_v57 = vpop.eup %8189 }
 0x6b6   : > { %v3262_v17 = vpop.xlane.xlu1 %3261  ;;  %v11590_v25 = vmul.f32 %v8190_v57, %v11519_v22  ;;  %v5484_v57 = vld [vmem:[#allocation10 + $0x58] sm:$0xff] }
 0x6b7   : > { %8199 = vrcp.f32 %v3262_v17 }
 0x6b8   : > { %8201 = vrcp.f32 %v11541_v61  ;;  %v6513_v15 = vpop.f32.mrb[98].mxu0 }
 0x6b9   : > { %v8192_v20 = vpop.eup %8191  ;;  %v6514_v46 = vpop.f32.mrb[99].mxu0 }
 0x6ba   : > { %v3265_v55 = vpop.xlane.xlu1 %3264  ;;  %v11596_v52 = vmul.f32 %v8192_v20, %v11526_v60  ;;  %v8194_v13 = vpop.eup %8193  ;;  %v6515_v53 = vadd.f32 %v6514_v46, %v6513_v15  ;;  %v5481_v15 = vld [vmem:[#allocation10 + $0x40] sm:$0xff] }
 0x6bb   : > { %8203 = vrcp.f32 %v3265_v55  ;;  %v11617_v20 = vpop.xlane.xlu0 %4211  ;;  %v5483_v55 = vld [vmem:[#allocation10 + $0x50] sm:$0xff] }
 0x6bc   : > { %8205 = vrcp.f32 %v11552_v12  ;;  %v4384_v22 = vmul.f32 %v8194_v13, %v6515_v53  ;;  %v6516_v38 = vpop.f32.mrb[100].mxu0  ;;  %v7352_v53 = vpack.c.bf16 %v5483_v55, %v5481_v15 }
 0x6bd   : > { %v8196_v48 = vpop.eup %8195  ;;  %v6517_v61 = vpop.f32.mrb[101].mxu0 }
 0x6be   : > { %v3268_v7 = vpop.xlane.xlu1 %3267  ;;  %v11602_v40 = vmul.f32 %v8196_v48, %v11533_v42  ;;  %v8198_v32 = vpop.eup %8197  ;;  %4400 = vst.msk [vmem:[#allocation3 + $0x18] sm:$0xff] %vm1943_vm0, %v4384_v22  ;;  %v6518_v60 = vadd.f32 %v6517_v61, %v6516_v38  ;;  %v12393_v38 = vld [vmem:[#allocation82_spill] sm:$0xff] }
 0x6bf   : > { %8207 = vrcp.f32 %v3268_v7  ;;  %v11625_v6 = vpop.xlane.xlu0 %5009 }
 0x6c0   : > { %8209 = vrcp.f32 %v11566_v9  ;;  %v4385_v12 = vmul.f32 %v8198_v32, %v6518_v60  ;;  %v6519_v29 = vpop.f32.mrb[102].mxu0  ;;  %v5486_v32 = vld [vmem:[#allocation10 + $0x68] sm:$0xff]  ;;  %v5488_v60 = vld [vmem:[#allocation10 + $0x78] sm:$0xff] }
 0x6c1   : > { %v8200_v35 = vpop.eup %8199  ;;  %v6520_v47 = vpop.f32.mrb[103].mxu0 }
 0x6c2   : > { %v3271_v27 = vpop.xlane.xlu1 %3270  ;;  %v11607_v42 = vmul.f32 %v8200_v35, %v11537_v33  ;;  %v8202_v49 = vpop.eup %8201  ;;  %4401 = vst.msk [vmem:[#allocation3 + $0x28] sm:$0xff] %vm1943_vm0, %v4385_v12  ;;  %v6521_v11 = vadd.f32 %v6520_v47, %v6519_v29  ;;  %v7354_v35 = vpack.c.bf16 %v5488_v60, %v5486_v32  ;;  %v5497_v32 = vld [vmem:[#allocation10 + $0xc0] sm:$0xff] }
 0x6c3   : > { %8211 = vrcp.f32 %v3271_v27 }
 0x6c4   : > { %8213 = vrcp.f32 %v11576_v45  ;;  %v4386_v33 = vmul.f32 %v8202_v49, %v6521_v11  ;;  %v6522_v14 = vpop.f32.mrb[104].mxu0  ;;  %v7350_v45 = vpack.c.bf16 %v5484_v57, %v5482_v31  ;;  %v5490_v49 = vld [vmem:[#allocation10 + $0x88] sm:$0xff]  ;;  %v5492_v11 = vld [vmem:[#allocation10 + $0x98] sm:$0xff]  ;;  %v5493_v57 = vld [vmem:[#allocation10 + $0xa0] sm:$0xff] }
 0x6c5   : > { %v8204_v9 = vpop.eup %8203  ;;  %v6523_v56 = vpop.f32.mrb[105].mxu0  ;;  %v7358_v41 = vpack.c.bf16 %v5492_v11, %v5490_v49  ;;  %v5503_v49 = vld [vmem:[#allocation10 + $0xf0] sm:$0xff] }
 0x6c6   : > { %v3274_v50 = vpop.xlane.xlu1 %3273  ;;  %v11614_v3 = vmul.f32 %v8204_v9, %v11545_v19  ;;  %v8206_v18 = vpop.eup %8205  ;;  %4402 = vst.msk [vmem:[#allocation3 + $0x38] sm:$0xff] %vm1943_vm0, %v4386_v33  ;;  %v6524_v24 = vadd.f32 %v6523_v56, %v6522_v14  ;;  %7351 = vmatprep.subr.bf16.mxu1 %v7350_v45  ;;  %v5489_v9 = vld [vmem:[#allocation10 + $0x80] sm:$0xff] }
 0x6c7   : > { %8215 = vrcp.f32 %v3274_v50  ;;  %7353 = vmatpush1.bf16.msra.mxu1 %v7352_v53  ;;  %v7360_v33 = vpack.c.bf16 %v5491_v34, %v5489_v9  ;;  %v11635_v50 = vpop.xlane.xlu0 %5012  ;;  %v5498_v53 = vld [vmem:[#allocation10 + $0xc8] sm:$0xff] }
 0x6c8   : > { %v4387_v46 = vmul.f32 %v8206_v18, %v6524_v24  ;;  %v6525_v13 = vpop.f32.mrb[106].mxu0  ;;  %8217 = vrcp.f32 %v11583_v28  ;;  %7355 = vmatprep.subr.bf16.mxu1 %v7354_v35  ;;  %v5494_v18 = vld [vmem:[#allocation10 + $0xa8] sm:$0xff]  ;;  %v5496_v24 = vld [vmem:[#allocation10 + $0xb8] sm:$0xff] }
 0x6c9   : > { %v8208_v17 = vpop.eup %8207  ;;  %v6526_v22 = vpop.f32.mrb[107].mxu0  ;;  %v5506_v34 = vld [vmem:[#allocation10 + $0x108] sm:$0xff] }
 0x6ca   : > { %v4200_v19 = vpop.xlane.xlu1 %4199  ;;  %v11620_v48 = vmul.f32 %v8208_v17, %v11554_v62  ;;  %4214 = vadd.xlane.f32.xlu0 %v12393_v38  ;;  %v8210_v7 = vpop.eup %8209  ;;  %4403 = vst.msk [vmem:[#allocation3 + $0x48] sm:$0xff] %vm1943_vm0, %v4387_v46  ;;  %v6527_v61 = vadd.f32 %v6526_v22, %v6525_v13  ;;  %v5487_v62 = vld [vmem:[#allocation10 + $0x70] sm:$0xff]  ;;  %v5500_v22 = vld [vmem:[#allocation10 + $0xd8] sm:$0xff] }
 0x6cb   : > { %8219 = vrcp.f32 %v4200_v19  ;;  %v7356_v12 = vpack.c.bf16 %v5487_v62, %v5485_v58  ;;  %v5495_v17 = vld [vmem:[#allocation10 + $0xb0] sm:$0xff] }
 0x6cc   : > { %v4388_v26 = vmul.f32 %v8210_v7, %v6527_v61  ;;  %v6528_v28 = vpop.f32.mrb[108].mxu0  ;;  %v7364_v55 = vpack.c.bf16 %v5495_v17, %v5493_v57  ;;  %v11640_v7 = vpop.xlane.xlu0 %5015  ;;  %v7366_v61 = vpack.c.bf16 %v5500_v22, %v5498_v53  ;;  %v5510_v57 = vld [vmem:[#allocation10 + $0x128] sm:$0xff]  ;;  %v5512_v17 = vld [vmem:[#allocation10 + $0x138] sm:$0xff] }
 0x6cd   : > { %v8212_v1 = vpop.eup %8211  ;;  %v6529_v27 = vpop.f32.mrb[109].mxu0  ;;  %7357 = vmatpush1.bf16.msra.mxu1 %v7356_v12  ;;  %v5504_v12 = vld [vmem:[#allocation10 + $0xf8] sm:$0xff]  ;;  %v5514_v22 = vld [vmem:[#allocation10 + $0x148] sm:$0xff] }
 0x6ce   : > { %v2425_v43 = vpop.xlane.xlu1 %2424  ;;  %v11628_v29 = vmul.f32 %v8212_v1, %v11561_v2  ;;  %v8214_v23 = vpop.eup %8213  ;;  %4404 = vst.msk [vmem:[#allocation3 + $0x58] sm:$0xff] %vm1943_vm0, %v4388_v26  ;;  %v6530_v47 = vadd.f32 %v6529_v27, %v6528_v28  ;;  %7359 = vmatprep.subr.bf16.mxu1 %v7358_v41 }
 0x6cf   : > { %8221 = vrcp.f32 %v2425_v43  ;;  %v5502_v43 = vld [vmem:[#allocation10 + $0xe8] sm:$0xff] }
 0x6d0   : > { %8223 = vrcp.f32 %v11592_v8  ;;  %v4389_v21 = vmul.f32 %v8214_v23, %v6530_v47  ;;  %v6531_v10 = vpop.f32.mrb[110].mxu0  ;;  %v7362_v8 = vpack.c.bf16 %v5496_v24, %v5494_v18  ;;  %v7370_v23 = vpack.c.bf16 %v5504_v12, %v5502_v43  ;;  %v5501_v47 = vld [vmem:[#allocation10 + $0xe0] sm:$0xff]  ;;  %v11648_v41 = vpop.xlane.xlu0 %5018  ;;  %v5518_v43 = vld [vmem:[#allocation10 + $0x168] sm:$0xff]  ;;  %v5520_v12 = vld [vmem:[#allocation10 + $0x178] sm:$0xff] }
 0x6d1   : > { %v8216_v63 = vpop.eup %8215  ;;  %v6532_v5 = vpop.f32.mrb[111].mxu0  ;;  %7361 = vmatpush1.bf16.msra.mxu1 %v7360_v33 }
 0x6d2   : > { %v2428_v2 = vpop.xlane.xlu1 %2427  ;;  %v11633_v14 = vmul.f32 %v8216_v63, %v11570_v30  ;;  %4405 = vst.msk [vmem:[#allocation3 + $0x68] sm:$0xff] %vm1943_vm0, %v4389_v21  ;;  %v6533_v56 = vadd.f32 %v6532_v5, %v6531_v10  ;;  %v8218_v31 = vpop.eup %8217  ;;  %7363 = vmatprep.subr.bf16.mxu1 %v7362_v8  ;;  %v5508_v21 = vld [vmem:[#allocation10 + $0x118] sm:$0xff]  ;;  %v5505_v10 = vld [vmem:[#allocation10 + $0x100] sm:$0xff] }
 0x6d3   : > { %8225 = vrcp.f32 %v2428_v2  ;;  %v7374_v5 = vpack.c.bf16 %v5508_v21, %v5506_v34  ;;  %v5522_v34 = vld [vmem:[#allocation10 + $0x188] sm:$0xff]  ;;  %v5524_v21 = vld [vmem:[#allocation10 + $0x198] sm:$0xff] }
 0x6d4   : > { %8227 = vrcp.f32 %v11598_v39  ;;  %v4390_v45 = vmul.f32 %v8218_v31, %v6533_v56  ;;  %v6534_v30 = vpop.f32.mrb[112].mxu0  ;;  %v5499_v39 = vld [vmem:[#allocation10 + $0xd0] sm:$0xff] }
 0x6d5   : > { %v6535_v46 = vpop.f32.mrb[113].mxu0  ;;  %v8220_v13 = vpop.eup %8219  ;;  %7365 = vmatpush1.bf16.msra.mxu1 %v7364_v55  ;;  %v7368_v35 = vpack.c.bf16 %v5499_v39, %v5497_v32  ;;  %v5507_v56 = vld [vmem:[#allocation10 + $0x110] sm:$0xff] }
 0x6d6   : > { %v2431_v15 = vpop.xlane.xlu1 %2430  ;;  %4406 = vst.msk [vmem:[#allocation3 + $0x78] sm:$0xff] %vm1943_vm0, %v4390_v45  ;;  %v6536_v19 = vadd.f32 %v6535_v46, %v6534_v30  ;;  %7367 = vmatprep.subr.bf16.mxu1 %v7366_v61  ;;  %v5509_v45 = vld [vmem:[#allocation10 + $0x120] sm:$0xff]  ;;  %v5511_v55 = vld [vmem:[#allocation10 + $0x130] sm:$0xff] }
 0x6d7   : > { %8229 = vrcp.f32 %v2431_v15  ;;  %v7378_v15 = vpack.c.bf16 %v5512_v17, %v5510_v57  ;;  %v5513_v61 = vld [vmem:[#allocation10 + $0x140] sm:$0xff] }
 0x6d8   : > { %v4391_v60 = vmul.f32 %v8220_v13, %v6536_v19  ;;  %v6537_v1 = vpop.f32.mrb[114].mxu0  ;;  %8231 = vrcp.f32 %v11609_v4  ;;  %v7380_v13 = vpack.c.bf16 %v5511_v55, %v5509_v45  ;;  %v5527_v45 = vld [vmem:[#allocation10 + $0x1b0] sm:$0xff]  ;;  %v5530_v55 = vld [vmem:[#allocation10 + $0x1c8] sm:$0xff] }
 0x6d9   : > { %v8222_v38 = vpop.eup %8221  ;;  %v6538_v62 = vpop.f32.mrb[115].mxu0  ;;  %7369 = vmatpush1.bf16.msra.mxu1 %v7368_v35  ;;  %8233 = vrcp.f32 %v11617_v20 }
 0x6da   : > { %v2612_v58 = vmul.f32 %v8222_v38, %v11443_v36  ;;  %v8224_v26 = vpop.eup %8223  ;;  %4407 = vst.msk [vmem:[#allocation3 + $0x88] sm:$0xff] %vm1943_vm0, %v4391_v60  ;;  %v6539_v28 = vadd.f32 %v6538_v62, %v6537_v1  ;;  %v7372_v36 = vpack.c.bf16 %v5503_v49, %v5501_v47  ;;  %7371 = vmatprep.subr.bf16.mxu1 %v7370_v23  ;;  %v5516_v38 = vld [vmem:[#allocation10 + $0x158] sm:$0xff]  ;;  %v5515_v60 = vld [vmem:[#allocation10 + $0x150] sm:$0xff]  ;;  %8235 = vrcp.f32 %v11625_v6 }
 0x6db   : > { %v7382_v39 = vpack.c.bf16 %v5516_v38, %v5514_v22  ;;  %v7384_v35 = vpack.c.bf16 %v5515_v60, %v5513_v61  ;;  %v7386_v47 = vpack.c.bf16 %v5520_v12, %v5518_v43  ;;  %v5519_v49 = vld [vmem:[#allocation10 + $0x170] sm:$0xff]  ;;  %v5534_v38 = vld [vmem:[#allocation10 + $0x1e8] sm:$0xff]  ;;  %v5536_v61 = vld [vmem:[#allocation10 + $0x1f8] sm:$0xff]  ;;  %8237 = vrcp.f32 %v11648_v41 }
 0x6dc   : > { %2628 = vst.msk [vmem:[#allocation3 + $0xa0] sm:$0xff] %vm1943_vm0, %v2612_v58  ;;  %v4392_v11 = vmul.f32 %v8224_v26, %v6539_v28  ;;  %v6540_v63 = vpop.f32.mrb[116].mxu0  ;;  %v7402_v6 = vpack.c.bf16 %v5536_v61, %v5534_v38  ;;  %v5535_v60 = vld [vmem:[#allocation10 + $0x1f0] sm:$0xff]  ;;  %v12394_v12 = vld [vmem:[#allocation83_spill] sm:$0xff] }
 0x6dd   : > { %v8226_v27 = vpop.eup %8225  ;;  %v6541_v9 = vpop.f32.mrb[117].mxu0  ;;  %7373 = vmatpush1.bf16.msra.mxu1 %v7372_v36 }
 0x6de   : > { %v2613_v4 = vmul.f32 %v8226_v27, %v11447_v37  ;;  %v8228_v2 = vpop.eup %8227  ;;  %4408 = vst.msk [vmem:[#allocation3 + $0x98] sm:$0xff] %vm1943_vm0, %v4392_v11  ;;  %v6542_v33 = vadd.f32 %v6541_v9, %v6540_v63  ;;  %v7376_v37 = vpack.c.bf16 %v5507_v56, %v5505_v10  ;;  %7375 = vmatprep.subr.bf16.mxu1 %v7374_v5  ;;  %v5517_v27 = vld [vmem:[#allocation10 + $0x160] sm:$0xff]  ;;  %v5523_v5 = vld [vmem:[#allocation10 + $0x190] sm:$0xff] }
 0x6df   : > { %v7388_v63 = vpack.c.bf16 %v5519_v49, %v5517_v27  ;;  %v5521_v10 = vld [vmem:[#allocation10 + $0x180] sm:$0xff] }
 0x6e0   : > { %2629 = vst.msk [vmem:[#allocation3 + $0xb0] sm:$0xff] %vm1943_vm0, %v2613_v4  ;;  %3608 = vrot.lane.b32.xlu0 %v11524_v59, %s8626_s14  ;;  %v4393_v20 = vmul.f32 %v8228_v2, %v6542_v33  ;;  %v6543_v24 = vpop.f32.mrb[118].mxu0  ;;  %v11657_v59 = vpop.xlane.xlu0 %5021  ;;  %v7390_v33 = vpack.c.bf16 %v5524_v21, %v5522_v34  ;;  %v7392_v56 = vpack.c.bf16 %v5523_v5, %v5521_v10 }
 0x6e1   : > { %v8230_v18 = vpop.eup %8229  ;;  %v6544_v8 = vpop.f32.mrb[119].mxu0  ;;  %7377 = vmatpush1.bf16.msra.mxu1 %v7376_v37  ;;  %8239 = vrcp.f32 %v11657_v59 }
 0x6e2   : > { %v2614_v31 = vmul.f32 %v8230_v18, %v11450_v0  ;;  %4409 = vst.msk [vmem:[#allocation3 + $0xa8] sm:$0xff] %vm1943_vm0, %v4393_v20  ;;  %v6545_v30 = vadd.f32 %v6544_v8, %v6543_v24  ;;  %v8232_v46 = vpop.eup %8231  ;;  %7379 = vmatprep.subr.bf16.mxu1 %v7378_v15  ;;  %v5526_v24 = vld [vmem:[#allocation10 + $0x1a8] sm:$0xff]  ;;  %v5525_v8 = vld [vmem:[#allocation10 + $0x1a0] sm:$0xff]  ;;  %8241 = vrcp.f32 %v11635_v50 }
 0x6e3   : > { %v8234_v1 = vpop.eup %8233 }
 0x6e4   : > { %2630 = vst.msk [vmem:[#allocation3 + $0xc0] sm:$0xff] %vm1943_vm0, %v2614_v31  ;;  %v4394_v19 = vmul.f32 %v8232_v46, %v6545_v30  ;;  %v6546_v53 = vpop.f32.mrb[120].mxu0  ;;  %v11660_v26 = vpop.xlane.xlu0 %5024  ;;  %v5528_v31 = vld [vmem:[#allocation10 + $0x1b8] sm:$0xff]  ;;  %v7396_v30 = vpack.c.bf16 %v5527_v45, %v5525_v8 }
 0x6e5   : > { %v6547_v0 = vpop.f32.mrb[121].mxu0  ;;  %7381 = vmatpush1.bf16.msra.mxu1 %v7380_v13  ;;  %v7394_v17 = vpack.c.bf16 %v5528_v31, %v5526_v24  ;;  %v5532_v46 = vld [vmem:[#allocation10 + $0x1d8] sm:$0xff]  ;;  %v5529_v13 = vld [vmem:[#allocation10 + $0x1c0] sm:$0xff]  ;;  %8243 = vrcp.f32 %v11660_v26 }
 0x6e6   : > { %4410 = vst.msk [vmem:[#allocation3 + $0xb8] sm:$0xff] %vm1943_vm0, %v4394_v19  ;;  %v6548_v32 = vadd.f32 %v6547_v0, %v6546_v53  ;;  %7383 = vmatprep.subr.bf16.mxu1 %v7382_v39  ;;  %v7398_v19 = vpack.c.bf16 %v5532_v46, %v5530_v55  ;;  %v5531_v53 = vld [vmem:[#allocation10 + $0x1d0] sm:$0xff]  ;;  %8245 = vrcp.f32 %v11640_v7 }
 0x6e7   : > { %v7400_v0 = vpack.c.bf16 %v5531_v53, %v5529_v13 }
 0x6e8   : > { %v4395_v58 = vmul.f32 %v8234_v1, %v6548_v32  ;;  %v6549_v62 = vpop.f32.mrb[122].mxu0  ;;  %v11666_v4 = vpop.xlane.xlu0 %5027  ;;  %v5533_v32 = vld [vmem:[#allocation10 + $0x1e0] sm:$0xff] }
 0x6e9   : > { %v6550_v28 = vpop.f32.mrb[123].mxu0  ;;  %7385 = vmatpush1.bf16.msra.mxu1 %v7384_v35  ;;  %v7404_v35 = vpack.c.bf16 %v5535_v60, %v5533_v32  ;;  %8247 = vrcp.f32 %v11666_v4 }
 0x6ea   : > { %4411 = vst.msk [vmem:[#allocation3 + $0xc8] sm:$0xff] %vm1943_vm0, %v4395_v58  ;;  %v11663_v23 = vadd.f32 %v6550_v28, %v6549_v62  ;;  %7387 = vmatprep.subr.bf16.mxu1 %v7386_v47  ;;  %v8236_v62 = vpop.eup %8235 }
 0x6ec   : > { %v6552_v36 = vpop.f32.mrb[124].mxu0 }
 0x6ed   : > { %v3599_v11 = vpop.permute.xlu1 %3598  ;;  %v6553_v9 = vpop.f32.mrb[125].mxu0  ;;  %7389 = vmatpush1.bf16.msra.mxu1 %v7388_v63 }
 0x6ee   : > { %3646 = vst.msk [vmem:[#allocation3 + $0x10] sm:$0xff] %vm3644_vm2, %v3599_v11  ;;  %v11668_v2 = vadd.f32 %v6553_v9, %v6552_v36  ;;  %7391 = vmatprep.subr.bf16.mxu1 %v7390_v33  ;;  %v8238_v33 = vpop.eup %8237 }
 0x6ef   : > { %v8240_v24 = vpop.eup %8239 }
 0x6f0   : > { %v8242_v26 = vpop.eup %8241 }
 0x6f1   : > { %v6555_v18 = vpop.f32.mrb[126].mxu0  ;;  %7393 = vmatpush1.bf16.msra.mxu1 %v7392_v56 }
 0x6f2   : > { %v6556_v37 = vpop.f32.mrb[127].mxu0  ;;  %v11670_v20 = vpop.xlane.xlu0 %5030  ;;  %7395 = vmatprep.subr.bf16.mxu1 %v7394_v17 }
 0x6f3   : > { %v11672_v57 = vadd.f32 %v6556_v37, %v6555_v18 }
 0x6f5   : > { %7397 = vmatpush1.bf16.msra.mxu1 %v7396_v30  ;;  %v8244_v30 = vpop.eup %8243 }
 0x6f6   : > { %v11675_v15 = vpop.xlane.xlu0 %5033  ;;  %7399 = vmatprep.subr.bf16.mxu1 %v7398_v19  ;;  %v8246_v7 = vpop.eup %8245 }
 0x6f9   : > { %7401 = vmatpush1.bf16.msra.mxu1 %v7400_v0 }
 0x6fa   : > { %v11677_v22 = vpop.xlane.xlu0 %5036  ;;  %7403 = vmatprep.subr.bf16.mxu1 %v7402_v6 }
 0x6fc   : > { %v6654_v39 = vpop.f32.mrb[128].mxu0 }
 0x6fd   : > { %v6655_v1 = vpop.f32.mrb[129].mxu0  ;;  %7405 = vmatpush1.bf16.msra.mxu1 %v7404_v35 }
 0x6fe   : > { %v6656_v58 = vadd.f32 %v6655_v1, %v6654_v39  ;;  %v11679_v28 = vpop.xlane.xlu0 %5039 }
 0x6ff   : > { %4217 = vadd.xlane.f32.xlu0 %v12394_v12 }
 0x700   : > { %v5345_v43 = vmul.f32 %v8236_v62, %v6656_v58  ;;  %v6657_v27 = vpop.f32.mrb[130].mxu0 }
 0x701   : > { %v6658_v47 = vpop.f32.mrb[131].mxu0 }
 0x702   : > { %v6659_v49 = vadd.f32 %v6658_v47, %v6657_v27  ;;  %5377 = vrot.lane.b32.xlu1 %v5345_v43, %s8626_s14  ;;  %v11684_v11 = vpop.xlane.xlu0 %5042 }
 0x704   : > { %v6660_v63 = vpop.f32.mrb[132].mxu0  ;;  %v5346_v46 = vmul.f32 %v8242_v26, %v6659_v49 }
 0x705   : > { %v6661_v36 = vpop.f32.mrb[133].mxu0 }
 0x706   : > { %v6662_v9 = vadd.f32 %v6661_v36, %v6660_v63  ;;  %v11687_v34 = vpop.xlane.xlu0 %5045 }
 0x708   : > { %v6663_v21 = vpop.f32.mrb[134].mxu0  ;;  %v5347_v53 = vmul.f32 %v8246_v7, %v6662_v9 }
 0x709   : > { %v6664_v10 = vpop.f32.mrb[135].mxu0 }
 0x70a   : > { %v6665_v41 = vadd.f32 %v6664_v10, %v6663_v21  ;;  %v11691_v5 = vpop.xlane.xlu0 %5048 }
 0x70c   : > { %v5348_v56 = vmul.f32 %v8238_v33, %v6665_v41  ;;  %v6666_v18 = vpop.f32.mrb[136].mxu0 }
 0x70d   : > { %v6667_v37 = vpop.f32.mrb[137].mxu0 }
 0x70e   : > { %v6668_v59 = vadd.f32 %v6667_v37, %v6666_v18  ;;  %5383 = vrot.lane.b32.xlu1 %v5348_v56, %s8626_s14  ;;  %v11695_v31 = vpop.xlane.xlu0 %5051 }
 0x710   : > { %v5349_v50 = vmul.f32 %v8240_v24, %v6668_v59  ;;  %v6669_v8 = vpop.f32.mrb[138].mxu0 }
 0x711   : > { %v6670_v17 = vpop.f32.mrb[139].mxu0 }
 0x712   : > { %v6671_v45 = vadd.f32 %v6670_v17, %v6669_v8  ;;  %5385 = vrot.lane.b32.xlu1 %v5349_v50, %s8626_s14  ;;  %v11698_v55 = vpop.xlane.xlu0 %5054 }
 0x714   : > { %v5350_v13 = vmul.f32 %v8244_v30, %v6671_v45 }
 0x715   : > { %5379 = vrot.lane.b32.xlu0 %v5346_v46, %s8626_s14 }
 0x716   : > { %5387 = vrot.lane.b32.xlu1 %v5350_v13, %s8626_s14  ;;  %v3597_v19 = vpop.permute.xlu0 %3596 }
 0x717   : > { %3645 = vst.msk [vmem:[#allocation3] sm:$0xff] %vm3644_vm2, %v3597_v19 }
 0x719   : > { %5381 = vrot.lane.b32.xlu0 %v5347_v53, %s8626_s14 }
 0x71a   : > { %v3601_v0 = vpop.permute.xlu0 %3600 }
 0x71b   : > { %3647 = vst.msk [vmem:[#allocation3 + $0x20] sm:$0xff] %vm3644_vm2, %v3601_v0 }
 0x71d   : > { %3610 = vrot.lane.b32.xlu0 %v11529_v44, %s8626_s14  ;;  %v8248_v44 = vpop.eup %8247 }
 0x71e   : > { %v3603_v38 = vpop.permute.xlu0 %3602 }
 0x71f   : > { %3648 = vst.msk [vmem:[#allocation3 + $0x30] sm:$0xff] %vm3644_vm2, %v3603_v38 }
 0x722   : > { %v3605_v61 = vpop.permute.xlu0 %3604 }
 0x723   : > { %3649 = vst.msk [vmem:[#allocation3 + $0x40] sm:$0xff] %vm3644_vm2, %v3605_v61 }
 0x726   : > { %v3607_v32 = vpop.permute.xlu0 %3606 }
 0x727   : > { %3650 = vst.msk [vmem:[#allocation3 + $0x50] sm:$0xff] %vm3644_vm2, %v3607_v32 }
 0x72c   : > { %v2434_v39 = vpop.xlane.xlu1 %2433 }
 0x72d   : > { %8249 = vrcp.f32 %v2434_v39  ;;  %v6672_v6 = vpop.f32.mrb[140].mxu0 }
 0x72e   : > { %v6673_v60 = vpop.f32.mrb[141].mxu0  ;;  %8251 = vrcp.f32 %v11670_v20 }
 0x72f   : > { %v6674_v1 = vadd.f32 %v6673_v60, %v6672_v6 }
 0x730   : > { %v2437_v35 = vpop.xlane.xlu1 %2436 }
 0x731   : > { %8253 = vrcp.f32 %v2437_v35  ;;  %v5351_v58 = vmul.f32 %v8248_v44, %v6674_v1 }
 0x732   : > { %8255 = vrcp.f32 %v11675_v15  ;;  %v12395_v15 = vld [vmem:[#allocation84_spill] sm:$0xff] }
 0x733   : > { %5389 = vrot.lane.b32.xlu1 %v5351_v58, %s8626_s14  ;;  %8257 = vrcp.f32 %v11677_v22 }
 0x734   : > { %8259 = vrcp.f32 %v11679_v28 }
 0x735   : > { %8261 = vrcp.f32 %v11684_v11 }
 0x736   : > { %8263 = vrcp.f32 %v11687_v34 }
 0x737   : > { %v8250_v62 = vpop.eup %8249  ;;  %v6675_v4 = vpop.f32.mrb[142].mxu0  ;;  %8265 = vrcp.f32 %v11691_v5 }
 0x738   : > { %v2615_v43 = vmul.f32 %v8250_v62, %v11478_v51  ;;  %v6676_v12 = vpop.f32.mrb[143].mxu0  ;;  %v8252_v27 = vpop.eup %8251  ;;  %8267 = vrcp.f32 %v11695_v31 }
 0x739   : > { %v6677_v47 = vadd.f32 %v6676_v12, %v6675_v4  ;;  %8269 = vrcp.f32 %v11698_v55  ;;  %v12396_v4 = vld [vmem:[#allocation74_spill] sm:$0xff] }
 0x73a   : > { %2631 = vst.msk [vmem:[#allocation3 + $0xd0] sm:$0xff] %vm1943_vm0, %v2615_v43 }
 0x73b   : > { %v8254_v20 = vpop.eup %8253  ;;  %v5352_v49 = vmul.f32 %v8252_v27, %v6677_v47  ;;  %v6678_v63 = vpop.f32.mrb[144].mxu0 }
 0x73c   : > { %v2616_v36 = vmul.f32 %v8254_v20, %v11482_v16  ;;  %v6679_v9 = vpop.f32.mrb[145].mxu0  ;;  %4220 = vadd.xlane.f32.xlu0 %v12395_v15  ;;  %v8256_v51 = vpop.eup %8255  ;;  %v5447_v15 = vld [vmem:[#allocation3 + $0x30] sm:$0xff] }
 0x73d   : > { %v6680_v21 = vadd.f32 %v6679_v9, %v6678_v63  ;;  %5391 = vrot.lane.b32.xlu1 %v5352_v49, %s8626_s14  ;;  %v8258_v16 = vpop.eup %8257 }
 0x73e   : > { %2632 = vst.msk [vmem:[#allocation3 + $0xe0] sm:$0xff] %vm1943_vm0, %v2616_v36  ;;  %v8260_v59 = vpop.eup %8259  ;;  %v5445_v36 = vld [vmem:[#allocation3 + $0x20] sm:$0xff] }
 0x73f   : > { %v5353_v22 = vmul.f32 %v8256_v51, %v6680_v21  ;;  %v6681_v10 = vpop.f32.mrb[146].mxu0  ;;  %v8262_v26 = vpop.eup %8261  ;;  %v5449_v51 = vld [vmem:[#allocation3 + $0x40] sm:$0xff] }
 0x740   : > { %v6682_v41 = vpop.f32.mrb[147].mxu0  ;;  %v8264_v13 = vpop.eup %8263 }
 0x741   : > { %v6683_v33 = vadd.f32 %v6682_v41, %v6681_v10  ;;  %5393 = vrot.lane.b32.xlu1 %v5353_v22, %s8626_s14  ;;  %v8266_v0 = vpop.eup %8265  ;;  %v5451_v10 = vld [vmem:[#allocation3 + $0x50] sm:$0xff] }
 0x742   : > { %v8268_v39 = vpop.eup %8267 }
 0x743   : > { %v5354_v56 = vmul.f32 %v8258_v16, %v6683_v33  ;;  %v6684_v28 = vpop.f32.mrb[148].mxu0  ;;  %v8270_v55 = vpop.eup %8269 }
 0x744   : > { %v6685_v18 = vpop.f32.mrb[149].mxu0 }
 0x745   : > { %v6686_v37 = vadd.f32 %v6685_v18, %v6684_v28 }
 0x747   : > { %v5355_v24 = vmul.f32 %v8260_v59, %v6686_v37  ;;  %v6687_v50 = vpop.f32.mrb[150].mxu0 }
 0x748   : > { %v6688_v8 = vpop.f32.mrb[151].mxu0 }
 0x749   : > { %v6689_v17 = vadd.f32 %v6688_v8, %v6687_v50 }
 0x74b   : > { %v5356_v11 = vmul.f32 %v8262_v26, %v6689_v17  ;;  %v6690_v45 = vpop.f32.mrb[152].mxu0 }
 0x74c   : > { %v6691_v30 = vpop.f32.mrb[153].mxu0 }
 0x74d   : > { %v6692_v46 = vadd.f32 %v6691_v30, %v6690_v45 }
 0x74f   : > { %v5357_v7 = vmul.f32 %v8264_v13, %v6692_v46  ;;  %v6693_v19 = vpop.f32.mrb[154].mxu0 }
 0x750   : > { %v6694_v34 = vpop.f32.mrb[155].mxu0 }
 0x751   : > { %v6695_v53 = vadd.f32 %v6694_v34, %v6693_v19 }
 0x752   : > { %3612 = vrot.lane.b32.xlu0 %v11590_v25, %s8626_s14 }
 0x753   : > { %v5358_v5 = vmul.f32 %v8266_v0, %v6695_v53  ;;  %v6696_v38 = vpop.f32.mrb[156].mxu0 }
 0x754   : > { %v6697_v61 = vpop.f32.mrb[157].mxu0 }
 0x755   : > { %v6698_v32 = vadd.f32 %v6697_v61, %v6696_v38 }
 0x756   : > { %5395 = vrot.lane.b32.xlu0 %v5354_v56, %s8626_s14 }
 0x757   : > { %v5359_v31 = vmul.f32 %v8268_v39, %v6698_v32  ;;  %v4215_v6 = vpop.xlane.xlu0 %4214  ;;  %v6699_v60 = vpop.f32.mrb[158].mxu0 }
 0x758   : > { %8271 = vrcp.f32 %v4215_v6  ;;  %v6700_v1 = vpop.f32.mrb[159].mxu0 }
 0x759   : > { %v6701_v35 = vadd.f32 %v6700_v1, %v6699_v60 }
 0x75a   : > { %3614 = vrot.lane.b32.xlu0 %v11596_v52, %s8626_s14 }
 0x75b   : > { %v5360_v44 = vmul.f32 %v8270_v55, %v6701_v35  ;;  %v3609_v58 = vpop.permute.xlu0 %3608 }
 0x75c   : > { %3651 = vst.msk [vmem:[#allocation3 + $0x60] sm:$0xff] %vm3644_vm2, %v3609_v58 }
 0x75e   : > { %5397 = vrot.lane.b32.xlu0 %v5355_v24, %s8626_s14 }
 0x762   : > { %v8272_v25 = vpop.eup %8271  ;;  %3616 = vrot.lane.b32.xlu0 %v11602_v40, %s8626_s14 }
 0x763   : > { %v4396_v62 = vmul.f32 %v8272_v25, %v11663_v23  ;;  %v5453_v33 = vld [vmem:[#allocation3 + $0x60] sm:$0xff] }
 0x765   : > { %2439 = vadd.xlane.f32.xlu1 %v12396_v4  ;;  %4412 = vst.msk [vmem:[#allocation3 + $0xd8] sm:$0xff] %vm1943_vm0, %v4396_v62 }
 0x766   : > { %3618 = vrot.lane.b32.xlu0 %v11607_v42, %s8626_s14  ;;  %v5441_v42 = vld [vmem:[#allocation3] sm:$0xff] }
 0x76a   : > { %5401 = vrot.lane.b32.xlu0 %v5357_v7, %s8626_s14 }
 0x76e   : > { %3620 = vrot.lane.b32.xlu0 %v11614_v3, %s8626_s14 }
 0x772   : > { %5403 = vrot.lane.b32.xlu0 %v5358_v5, %s8626_s14 }
 0x774   : > { %v5378_v52 = vpop.permute.xlu1 %5377 }
 0x775   : > { %5425 = vst.msk [vmem:[#allocation3 + $0x8] sm:$0xff] %vm3644_vm2, %v5378_v52 }
 0x776   : > { %5405 = vrot.lane.b32.xlu0 %v5359_v31, %s8626_s14  ;;  %5399 = vrot.lane.b32.xlu1 %v5356_v11, %s8626_s14 }
 0x77a   : > { %5407 = vrot.lane.b32.xlu0 %v5360_v44, %s8626_s14  ;;  %3622 = vrot.lane.b32.xlu1 %v11620_v48, %s8626_s14 }
 0x77c   : > { %v5442_v40 = vld [vmem:[#allocation3 + $0x8] sm:$0xff] }
 0x77d   : > { %5613 = vmatprep.mubr.f32.mxu1 %v5442_v40 }
 0x77e   : > { %5614 = vmatmul.mubr.f32.vlgmr.msra.gmra.mrb[128].mxu1 %v5441_v42  ;;  %3624 = vrot.lane.b32.xlu1 %v11628_v29, %s8626_s14  ;;  %v5537_v42 = vld [vmem:[%s12397_s11] sm:$0x3]  ;;  %s8461_s11 = sshll.u32 %s8627_s6, 4  ;;  %s8462_s11 = int_to_ptr.vmem [resolvable:$false] %s8461_s11 }
 0x77f   : > { %s8463_s4 = scalar_lea.vmem %s8462_s11, 8192  ;;  %p8464_p5 = scmp.lt.s32.totalorder %s11861_s23, %s8462_s11 }
 0x780   : > { %v5384_v3 = vpop.permute.xlu1 %5383  ;;  %p8465_p2 = scmp.lt.s32.totalorder %s8463_s4, %s8457_s24 }
 0x781   : > { %5428 = vst.msk [vmem:[#allocation3 + $0x38] sm:$0xff] %vm3644_vm2, %v5384_v3  ;;  %v12398_v3 = vld [vmem:[#allocation39_spill] sm:$0xff] }
 0x782   : > { %3626 = vrot.lane.b32.xlu1 %v11633_v14, %s8626_s14  ;;  %v5443_v14 = vld [vmem:[#allocation3 + $0x10] sm:$0xff]  ;;  %s12404_s14 = sld [smem:[#allocation124_spill]]  ;;  %p8466_p7 = por %p8465_p2, %p8464_p5 }
 0x784   : > { %v5386_v23 = vpop.permute.xlu1 %5385  ;;  %p8467_p11 = pnand %p8466_p7, %p8460_p10 }
 0x785   : > { %5429 = vst.msk [vmem:[#allocation3 + $0x48] sm:$0xff] %vm3644_vm2, %v5386_v23  ;;  %v12399_v23 = vsub.s32 0, %v12398_v3 }
 0x788   : > { %v5388_v43 = vpop.permute.xlu1 %5387  ;;  %v5448_v9 = vld [vmem:[#allocation3 + $0x38] sm:$0xff]  ;;  %s12405_s22 = smov %s12404_s14  ;;  %s11867_s25 = scalar_lea.hbm %s12404_s14, %s6118_s3 }
 0x789   : > { %5430 = vst.msk [vmem:[#allocation3 + $0x58] sm:$0xff] %vm3644_vm2, %v5388_v43  ;;  %v11791_v43 = vrot.slane %v5537_v42, %v12399_v23 }
 0x78c   : > { %v4218_v48 = vpop.xlane.xlu0 %4217  ;;  %v5450_v21 = vld [vmem:[#allocation3 + $0x48] sm:$0xff] }
 0x78d   : > { %8273 = vrcp.f32 %v4218_v48  ;;  %v12400_v48 = vsub.s32 1, %v12398_v3 }
 0x790   : > { %v5380_v12 = vpop.permute.xlu0 %5379 }
 0x791   : > { %5426 = vst.msk [vmem:[#allocation3 + $0x18] sm:$0xff] %vm3644_vm2, %v5380_v12  ;;  %v11795_v12 = vrot.slane %v5537_v42, %v12400_v48 }
 0x794   : > { %v5382_v27 = vpop.permute.xlu0 %5381 }
 0x795   : > { %5427 = vst.msk [vmem:[#allocation3 + $0x28] sm:$0xff] %vm3644_vm2, %v5382_v27 }
 0x797   : > { %v8274_v29 = vpop.eup %8273 }
 0x798   : > { %v3611_v47 = vpop.permute.xlu0 %3610  ;;  %v5444_v20 = vld [vmem:[#allocation3 + $0x18] sm:$0xff]  ;;  %v4397_v49 = vmul.f32 %v8274_v29, %v11668_v2 }
 0x799   : > { %3652 = vst.msk [vmem:[#allocation3 + $0x70] sm:$0xff] %vm3644_vm2, %v3611_v47  ;;  %5619 = vmatprep.mubr.f32.mxu1 %v5444_v20  ;;  %v5452_v2 = vld [vmem:[#allocation3 + $0x58] sm:$0xff] }
 0x79a   : > { %5620 = vmatmul.mubr.f32.gmra.mrb[130].mxu1 %v5443_v14  ;;  %4413 = vst.msk [vmem:[#allocation3 + $0xe8] sm:$0xff] %vm1943_vm0, %v4397_v49 }
 0x79c   : > { %v5446_v63 = vld [vmem:[#allocation3 + $0x28] sm:$0xff] }
 0x79d   : > { %5625 = vmatprep.mubr.f32.mxu1 %v5446_v63 }
 0x79e   : > { %5626 = vmatmul.mubr.f32.gmra.mrb[132].mxu1 %v5445_v36 }
 0x79f   : > { %5631 = vmatprep.mubr.f32.mxu1 %v5448_v9 }
 0x7a0   : > { %v5455_v18 = vld [vmem:[#allocation3 + $0x70] sm:$0xff] }
 0x7a2   : > { %5632 = vmatmul.mubr.f32.gmra.mrb[134].mxu1 %v5447_v15 }
 0x7a3   : > { %5637 = vmatprep.mubr.f32.mxu1 %v5450_v21 }
 0x7a5   : > { %v5390_v22 = vpop.permute.xlu1 %5389 }
 0x7a6   : > { %5638 = vmatmul.mubr.f32.gmra.mrb[136].mxu1 %v5449_v51  ;;  %5431 = vst.msk [vmem:[#allocation3 + $0x68] sm:$0xff] %vm3644_vm2, %v5390_v22 }
 0x7a7   : > { %5643 = vmatprep.mubr.f32.mxu1 %v5452_v2 }
 0x7aa   : > { %5644 = vmatmul.mubr.f32.gmra.mrb[138].mxu1 %v5451_v10 }
 0x7ad   : > { %v5454_v41 = vld [vmem:[#allocation3 + $0x68] sm:$0xff] }
 0x7ae   : > { %5649 = vmatprep.mubr.f32.mxu1 %v5454_v41 }
 0x7af   : > { %v5392_v16 = vpop.permute.xlu1 %5391  ;;  %5650 = vmatmul.mubr.f32.gmra.mrb[140].mxu1 %v5453_v33 }
 0x7b0   : > { %5432 = vst.msk [vmem:[#allocation3 + $0x78] sm:$0xff] %vm3644_vm2, %v5392_v16 }
 0x7b3   : > { %v5394_v56 = vpop.permute.xlu1 %5393 }
 0x7b4   : > { %5433 = vst.msk [vmem:[#allocation3 + $0x88] sm:$0xff] %vm3644_vm2, %v5394_v56 }
 0x7b7   : > { %v5456_v28 = vld [vmem:[#allocation3 + $0x78] sm:$0xff] }
 0x7b8   : > { %5655 = vmatprep.mubr.f32.mxu1 %v5456_v28 }
 0x7b9   : > { %5656 = vmatmul.mubr.f32.gmra.mrb[142].mxu1 %v5455_v18 }
 0x7bb   : > { %v5458_v37 = vld [vmem:[#allocation3 + $0x88] sm:$0xff] }
 0x7bc   : > { %5661 = vmatprep.mubr.f32.mxu1 %v5458_v37 }
 0x7c9   : > { %v4221_v59 = vpop.xlane.xlu0 %4220 }
 0x7ca   : > { %8275 = vrcp.f32 %v4221_v59 }
 0x7cd   : > { %v3613_v24 = vpop.permute.xlu0 %3612 }
 0x7ce   : > { %3653 = vst.msk [vmem:[#allocation3 + $0x80] sm:$0xff] %vm3644_vm2, %v3613_v24 }
 0x7d1   : > { %v5396_v50 = vpop.permute.xlu0 %5395 }
 0x7d2   : > { %5434 = vst.msk [vmem:[#allocation3 + $0x98] sm:$0xff] %vm3644_vm2, %v5396_v50 }
 0x7d4   : > { %v8276_v8 = vpop.eup %8275 }
 0x7d5   : > { %v3615_v17 = vpop.permute.xlu0 %3614  ;;  %v5457_v26 = vld [vmem:[#allocation3 + $0x80] sm:$0xff]  ;;  %v4398_v11 = vmul.f32 %v8276_v8, %v11672_v57 }
 0x7d6   : > { %3654 = vst.msk [vmem:[#allocation3 + $0x90] sm:$0xff] %vm3644_vm2, %v3615_v17  ;;  %5662 = vmatmul.mubr.f32.gmra.mrb[144].mxu1 %v5457_v26 }
 0x7d7   : > { %4414 = vst.msk [vmem:[#allocation3 + $0xf8] sm:$0xff] %vm1943_vm0, %v4398_v11 }
 0x7d9   : > { %v5398_v45 = vpop.permute.xlu0 %5397  ;;  %v5460_v30 = vld [vmem:[#allocation3 + $0x98] sm:$0xff] }
 0x7da   : > { %5435 = vst.msk [vmem:[#allocation3 + $0xa8] sm:$0xff] %vm3644_vm2, %v5398_v45  ;;  %5667 = vmatprep.mubr.f32.mxu1 %v5460_v30 }
 0x7dd   : > { %v3617_v46 = vpop.permute.xlu0 %3616  ;;  %v5459_v13 = vld [vmem:[#allocation3 + $0x90] sm:$0xff] }
 0x7de   : > { %3655 = vst.msk [vmem:[#allocation3 + $0xa0] sm:$0xff] %vm3644_vm2, %v3617_v46  ;;  %5668 = vmatmul.mubr.f32.gmra.mrb[146].mxu1 %v5459_v13 }
 0x7e1   : > { %v3619_v7 = vpop.permute.xlu0 %3618  ;;  %v5462_v19 = vld [vmem:[#allocation3 + $0xa8] sm:$0xff] }
 0x7e2   : > { %3656 = vst.msk [vmem:[#allocation3 + $0xb0] sm:$0xff] %vm3644_vm2, %v3619_v7  ;;  %5673 = vmatprep.mubr.f32.mxu1 %v5462_v19 }
 0x7e5   : > { %v5402_v57 = vpop.permute.xlu0 %5401  ;;  %v5461_v34 = vld [vmem:[#allocation3 + $0xa0] sm:$0xff] }
 0x7e6   : > { %5437 = vst.msk [vmem:[#allocation3 + $0xc8] sm:$0xff] %vm3644_vm2, %v5402_v57  ;;  %5674 = vmatmul.mubr.f32.gmra.mrb[148].mxu1 %v5461_v34 }
 0x7e9   : > { %v3621_v53 = vpop.permute.xlu0 %3620  ;;  %v5463_v35 = vld [vmem:[#allocation3 + $0xb0] sm:$0xff] }
 0x7ea   : > { %3657 = vst.msk [vmem:[#allocation3 + $0xc0] sm:$0xff] %vm3644_vm2, %v3621_v53 }
 0x7ed   : > { %v5404_v0 = vpop.permute.xlu0 %5403  ;;  %v5466_v55 = vld [vmem:[#allocation3 + $0xc8] sm:$0xff] }
 0x7ee   : > { %5438 = vst.msk [vmem:[#allocation3 + $0xd8] sm:$0xff] %vm3644_vm2, %v5404_v0 }
 0x7f1   : > { %v5406_v5 = vpop.permute.xlu0 %5405  ;;  %v5465_v58 = vld [vmem:[#allocation3 + $0xc0] sm:$0xff] }
 0x7f2   : > { %5439 = vst.msk [vmem:[#allocation3 + $0xe8] sm:$0xff] %vm3644_vm2, %v5406_v5  ;;  %v2440_v38 = vpop.xlane.xlu1 %2439 }
 0x7f3   : > { %8277 = vrcp.f32 %v2440_v38 }
 0x7f5   : > { %v5408_v61 = vpop.permute.xlu0 %5407  ;;  %v5468_v25 = vld [vmem:[#allocation3 + $0xd8] sm:$0xff] }
 0x7f6   : > { %5440 = vst.msk [vmem:[#allocation3 + $0xf8] sm:$0xff] %vm3644_vm2, %v5408_v61  ;;  %v5400_v32 = vpop.permute.xlu1 %5399 }
 0x7f7   : > { %5436 = vst.msk [vmem:[#allocation3 + $0xb8] sm:$0xff] %vm3644_vm2, %v5400_v32 }
 0x7fa   : > { %v3623_v39 = vpop.permute.xlu1 %3622 }
 0x7fb   : > { %3658 = vst.msk [vmem:[#allocation3 + $0xd0] sm:$0xff] %vm3644_vm2, %v3623_v39 }
 0x7fd   : > { %v8278_v31 = vpop.eup %8277  ;;  %v5472_v52 = vld [vmem:[#allocation3 + $0xf8] sm:$0xff] }
 0x7fe   : > { %v3625_v6 = vpop.permute.xlu1 %3624  ;;  %v5464_v60 = vld [vmem:[#allocation3 + $0xb8] sm:$0xff]  ;;  %v2617_v1 = vmul.f32 %v8278_v31, %v11486_v54  ;;  %v5470_v54 = vld [vmem:[#allocation3 + $0xe8] sm:$0xff] }
 0x7ff   : > { %3659 = vst.msk [vmem:[#allocation3 + $0xe0] sm:$0xff] %vm3644_vm2, %v3625_v6  ;;  %5679 = vmatprep.mubr.f32.mxu1 %v5464_v60 }
 0x800   : > { %5680 = vmatmul.mubr.f32.gmra.mrb[150].mxu1 %v5463_v35  ;;  %2633 = vst.msk [vmem:[#allocation3 + $0xf0] sm:$0xff] %vm1943_vm0, %v2617_v1 }
 0x801   : > { %5685 = vmatprep.mubr.f32.mxu1 %v5466_v55 }
 0x802   : > { %v3627_v44 = vpop.permute.xlu1 %3626  ;;  %v5467_v62 = vld [vmem:[#allocation3 + $0xd0] sm:$0xff] }
 0x803   : > { %3660 = vst.msk [vmem:[#allocation3 + $0xf0] sm:$0xff] %vm3644_vm2, %v3627_v44 }
 0x804   : > { %5686 = vmatmul.mubr.f32.gmra.mrb[152].mxu1 %v5465_v58 }
 0x805   : > { %5691 = vmatprep.mubr.f32.mxu1 %v5468_v25 }
 0x806   : > { %v5469_v4 = vld [vmem:[#allocation3 + $0xe0] sm:$0xff] }
 0x808   : > { %5692 = vmatmul.mubr.f32.gmra.mrb[154].mxu1 %v5467_v62 }
 0x809   : > { %5697 = vmatprep.mubr.f32.mxu1 %v5470_v54 }
 0x80a   : > { %v5471_v40 = vld [vmem:[#allocation3 + $0xf0] sm:$0xff] }
 0x80c   : > { %5698 = vmatmul.mubr.f32.gmra.mrb[156].mxu1 %v5469_v4 }
 0x80d   : > { %5703 = vmatprep.mubr.f32.mxu1 %v5472_v52 }
 0x810   : > { %5704 = vmatmul.mubr.f32.gmra.mrb[158].mxu1 %v5471_v40 }
 0x851   : > { %v5615_v27 = vpop.f32.mrb[128].mxu1 }
 0x852   : > { %v5616_v29 = vadd.f32 %v5615_v27, %v11791_v43  ;;  %v5617_v47 = vpop.f32.mrb[129].mxu1 }
 0x853   : > { %v5618_v20 = vadd.f32 %v5617_v47, %v11795_v12 }
 0x854   : > { %5710 = vst [vmem:[%s9015_s27] sm:$0xff] %v5616_v29 }
 0x855   : > { %5711 = vst [vmem:[%s9015_s27 + $0x8] sm:$0xff] %v5618_v20 }
 0x86d   : > { %v5621_v49 = vpop.f32.mrb[130].mxu1 }
 0x86e   : > { %v5622_v14 = vadd.f32 %v5621_v49, %v11791_v43  ;;  %v5623_v63 = vpop.f32.mrb[131].mxu1 }
 0x86f   : > { %v5624_v36 = vadd.f32 %v5623_v63, %v11795_v12 }
 0x870   : > { %5712 = vst [vmem:[%s9015_s27 + $0x10] sm:$0xff] %v5622_v14 }
 0x871   : > { %5713 = vst [vmem:[%s9015_s27 + $0x18] sm:$0xff] %v5624_v36  ;;  %v5627_v9 = vpop.f32.mrb[132].mxu1 }
 0x872   : > { %v5628_v15 = vadd.f32 %v5627_v9, %v11791_v43  ;;  %v5629_v21 = vpop.f32.mrb[133].mxu1 }
 0x873   : > { %v5630_v51 = vadd.f32 %v5629_v21, %v11795_v12 }
 0x874   : > { %5714 = vst [vmem:[%s9015_s27 + $0x20] sm:$0xff] %v5628_v15 }
 0x875   : > { %5715 = vst [vmem:[%s9015_s27 + $0x28] sm:$0xff] %v5630_v51  ;;  %v5633_v22 = vpop.f32.mrb[134].mxu1 }
 0x876   : > { %v5634_v2 = vadd.f32 %v5633_v22, %v11791_v43  ;;  %v5635_v10 = vpop.f32.mrb[135].mxu1 }
 0x877   : > { %v5636_v41 = vadd.f32 %v5635_v10, %v11795_v12 }
 0x878   : > { %5716 = vst [vmem:[%s9015_s27 + $0x30] sm:$0xff] %v5634_v2 }
 0x879   : > { %5717 = vst [vmem:[%s9015_s27 + $0x38] sm:$0xff] %v5636_v41  ;;  %v5639_v33 = vpop.f32.mrb[136].mxu1 }
 0x87a   : > { %v5640_v16 = vadd.f32 %v5639_v33, %v11791_v43  ;;  %v5641_v56 = vpop.f32.mrb[137].mxu1 }
 0x87b   : > { %v5642_v28 = vadd.f32 %v5641_v56, %v11795_v12 }
 0x87c   : > { %5718 = vst [vmem:[%s9015_s27 + $0x40] sm:$0xff] %v5640_v16 }
 0x87d   : > { %5719 = vst [vmem:[%s9015_s27 + $0x48] sm:$0xff] %v5642_v28  ;;  %v5645_v18 = vpop.f32.mrb[138].mxu1 }
 0x87e   : > { %v5646_v37 = vadd.f32 %v5645_v18, %v11791_v43  ;;  %v5647_v59 = vpop.f32.mrb[139].mxu1 }
 0x87f   : > { %v5648_v24 = vadd.f32 %v5647_v59, %v11795_v12 }
 0x880   : > { %5720 = vst [vmem:[%s9015_s27 + $0x50] sm:$0xff] %v5646_v37 }
 0x881   : > { %5721 = vst [vmem:[%s9015_s27 + $0x58] sm:$0xff] %v5648_v24 }
 0x882   : > { %v5651_v50 = vpop.f32.mrb[140].mxu1 }
 0x883   : > { %v5652_v8 = vadd.f32 %v5651_v50, %v11791_v43  ;;  %v5653_v17 = vpop.f32.mrb[141].mxu1 }
 0x884   : > { %v5654_v26 = vadd.f32 %v5653_v17, %v11795_v12 }
 0x885   : > { %5722 = vst [vmem:[%s9015_s27 + $0x60] sm:$0xff] %v5652_v8 }
 0x886   : > { %5723 = vst [vmem:[%s9015_s27 + $0x68] sm:$0xff] %v5654_v26 }
 0x88c   : > { %v5657_v11 = vpop.f32.mrb[142].mxu1 }
 0x88d   : > { %v5658_v45 = vadd.f32 %v5657_v11, %v11791_v43  ;;  %v5659_v30 = vpop.f32.mrb[143].mxu1 }
 0x88e   : > { %v5660_v46 = vadd.f32 %v5659_v30, %v11795_v12 }
 0x88f   : > { %5724 = vst [vmem:[%s9015_s27 + $0x70] sm:$0xff] %v5658_v45 }
 0x890   : > { %5725 = vst [vmem:[%s9015_s27 + $0x78] sm:$0xff] %v5660_v46 }
 0x8a9   : > { %v5663_v13 = vpop.f32.mrb[144].mxu1 }
 0x8aa   : > { %v5664_v7 = vadd.f32 %v5663_v13, %v11791_v43  ;;  %v5665_v19 = vpop.f32.mrb[145].mxu1 }
 0x8ab   : > { %v5666_v57 = vadd.f32 %v5665_v19, %v11795_v12 }
 0x8ac   : > { %5726 = vst [vmem:[%s9015_s27 + $0x80] sm:$0xff] %v5664_v7 }
 0x8ad   : > { %5727 = vst [vmem:[%s9015_s27 + $0x88] sm:$0xff] %v5666_v57 }
 0x8b1   : > { %v5669_v34 = vpop.f32.mrb[146].mxu1 }
 0x8b2   : > { %v5670_v53 = vadd.f32 %v5669_v34, %v11791_v43  ;;  %v5671_v0 = vpop.f32.mrb[147].mxu1 }
 0x8b3   : > { %v5672_v5 = vadd.f32 %v5671_v0, %v11795_v12 }
 0x8b4   : > { %5728 = vst [vmem:[%s9015_s27 + $0x90] sm:$0xff] %v5670_v53 }
 0x8b5   : > { %5729 = vst [vmem:[%s9015_s27 + $0x98] sm:$0xff] %v5672_v5 }
 0x8b9   : > { %v5675_v38 = vpop.f32.mrb[148].mxu1 }
 0x8ba   : > { %v5676_v61 = vadd.f32 %v5675_v38, %v11791_v43  ;;  %v5677_v32 = vpop.f32.mrb[149].mxu1 }
 0x8bb   : > { %v5678_v39 = vadd.f32 %v5677_v32, %v11795_v12 }
 0x8bc   : > { %5730 = vst [vmem:[%s9015_s27 + $0xa0] sm:$0xff] %v5676_v61 }
 0x8bd   : > { %5731 = vst [vmem:[%s9015_s27 + $0xa8] sm:$0xff] %v5678_v39 }
 0x8d3   : > { %v5681_v31 = vpop.f32.mrb[150].mxu1 }
 0x8d4   : > { %v5682_v6 = vadd.f32 %v5681_v31, %v11791_v43  ;;  %v5683_v60 = vpop.f32.mrb[151].mxu1 }
 0x8d5   : > { %v5684_v1 = vadd.f32 %v5683_v60, %v11795_v12 }
 0x8d6   : > { %5732 = vst [vmem:[%s9015_s27 + $0xb0] sm:$0xff] %v5682_v6 }
 0x8d7   : > { %5733 = vst [vmem:[%s9015_s27 + $0xb8] sm:$0xff] %v5684_v1  ;;  %v5687_v35 = vpop.f32.mrb[152].mxu1 }
 0x8d8   : > { %v5688_v55 = vadd.f32 %v5687_v35, %v11791_v43  ;;  %v5689_v44 = vpop.f32.mrb[153].mxu1 }
 0x8d9   : > { %v5690_v58 = vadd.f32 %v5689_v44, %v11795_v12 }
 0x8da   : > { %5734 = vst [vmem:[%s9015_s27 + $0xc0] sm:$0xff] %v5688_v55 }
 0x8db   : > { %5735 = vst [vmem:[%s9015_s27 + $0xc8] sm:$0xff] %v5690_v58  ;;  %v5693_v25 = vpop.f32.mrb[154].mxu1 }
 0x8dc   : > { %v5694_v62 = vadd.f32 %v5693_v25, %v11791_v43  ;;  %v5695_v54 = vpop.f32.mrb[155].mxu1 }
 0x8dd   : > { %v5696_v4 = vadd.f32 %v5695_v54, %v11795_v12 }
 0x8de   : > { %5736 = vst [vmem:[%s9015_s27 + $0xd0] sm:$0xff] %v5694_v62 }
 0x8df   : > { %5737 = vst [vmem:[%s9015_s27 + $0xd8] sm:$0xff] %v5696_v4  ;;  %v5699_v52 = vpop.f32.mrb[156].mxu1 }
 0x8e0   : > { %v5700_v40 = vadd.f32 %v5699_v52, %v11791_v43  ;;  %v5701_v42 = vpop.f32.mrb[157].mxu1 }
 0x8e1   : > { %v5702_v3 = vadd.f32 %v5701_v42, %v11795_v12 }
 0x8e2   : > { %5738 = vst [vmem:[%s9015_s27 + $0xe0] sm:$0xff] %v5700_v40 }
 0x8e3   : > { %5739 = vst [vmem:[%s9015_s27 + $0xe8] sm:$0xff] %v5702_v3  ;;  %v5705_v23 = vpop.f32.mrb[158].mxu1 }
 0x8e4   : > { %v5706_v48 = vadd.f32 %v5705_v23, %v11791_v43  ;;  %v5707_v27 = vpop.f32.mrb[159].mxu1 }
 0x8e5   : > { %v5708_v29 = vadd.f32 %v5707_v27, %v11795_v12 }
 0x8e6   : > { %5740 = vst [vmem:[%s9015_s27 + $0xf0] sm:$0xff] %v5706_v48 }
 0x8e7   : > { %5741 = vst [vmem:[%s9015_s27 + $0xf8] sm:$0xff] %v5708_v29 }
 0x8e8   : > { %8470 = shalt.err (!%p8467_p11)
}
 0x8e9   : > { %s8471_s20 = scalar_lea.hbm %s11867_s25, 4096  ;;  %s8475_s30 = scalar_lea.hbm %s12405_s22, 16384 }
 0x8ea   : > { %p8472_p4 = scmp.ne.s32.totalorder %s11867_s25, %s8471_s20  ;;  %p8476_p0 = scmp.lt.u32.totalorder %s11867_s25, %s12405_s22 }
 0x8eb   : > { %p8477_p3 = scmp.lt.u32.totalorder %s8475_s30, %s8471_s20  ;;  %p8479_p12 = scmp.lt.u32.totalorder %s8471_s20, %s11867_s25 }
 0x8ec   : > { %p8473_p8 = pnand %p8472_p4, %p12406_p1 }
 0x8ed   : > { %p8478_p9 = por %p8477_p3, %p8476_p0 }
 0x8ee   : > { %p8474_p6 = pneg %p8473_p8 }
 0x8ef   : > { %p8480_p13 = por %p8479_p12, %p8478_p9 }
 0x8f1   : > { %p8481_p10 = pnand %p8480_p13, %p8474_p6 }
 0x8f3   : > { %8484 = shalt.err (!%p8481_p10)
}
 0x8f4   : > { %s8628_s3 = smov 256   ;;  %s8629_s28 = smov 16  }
 0x8f5   : > { %7422 = dma.vmem_to_hbm [thread:$0]  (%p12406_p1), %s11861_s23, 4096, %s11867_s25, %s11873_s2, %s8628_s3, %s8628_s3, %s8629_s28  }
 0x8f6 PF: > { %s12407_s5 = sld [smem:[#allocation19_spill]]  ;;  %s12408_s14 = sld [smem:[#allocation26_spill]] }
 0x8f7   : > { %p7452_p5 = scmp.ge.s32.totalorder %s8615_s18, 2 }
 0x8fc   : > { %s5774_s24 = sand.u32 1, %s12407_s5   ;;  %p12409_p2 = scmp.ne.s32.totalorder %s12408_s14, 0 }
 0x8fd   : > { %s5775_s6 = scalar_lea.sflag [#allocation6], %s5774_s24 }
 0x8fe   : > { %p7442_p7 = pnand %p7452_p5, %p12409_p2 }
 0x900   : > { %8558 = dma.done.wait (!%p7442_p7), %s5775_s6, 4096  }
 0x901   : > { %8560 = vsyncadd (!%p7442_p7), %s5775_s6, 4294963200  ;;  %s26_s18 = sadd.s32 1, %s8615_s18   ;;  %s12411_s27 = sld [smem:[#allocation20_spill]] }
 0x902   : > { %p11902_p11 = scmp.ge.s32.totalorder %s26_s18, 6   ;;  %s12412_s26 = sld [smem:[#allocation27_spill]] }
 0x903   : > { %s12413_s23 = sld [smem:[#allocation28_spill]]  ;;  %s12415_s28 = smov %s8571_s29 }
 0x904   : > { %s12416_s29 = smov %s8941_s1  ;;  %s12417_s30 = smov %s8579_s9 }
 0x905   : > { %s12418_s9 = smov %s8583_s10  ;;  %s12419_s10 = smov %s8931_s15 }
 0x906   : > { %s12420_s11 = smov %s8591_s12  ;;  %s12421_s12 = smov %s8595_s13 }
 0x907   : > { %s12422_s13 = smov %s8938_s0  ;;  %s12423_s14 = smov %s8607_s16 }
 0x908   : > { %s12424_s15 = smov %s8611_s17  ;;  %s12425_s16 = smov %s12412_s26 }
 0x909   : > { %s12426_s17 = smov %s12413_s23  ;;  %25 = sbr.rel (!%p11902_p11) target bundleno = 21 (0x15), region = 125 }
 0x910   :  { %5780 = vsyncpa [#allocation5], 1 }
 0x911   :  { %5782 = vsyncpa [#allocation5 + $0x1], 1 }
 0x912   :  { %5783 = vsyncpa [#allocation8], 1 }
 0x913   :  { %5784 = vsyncpa [#allocation11], 1 }
 0x914   :  { %5785 = vsyncpa [#allocation6], 1 }
 0x915   :  { %5787 = vsyncpa [#allocation6 + $0x1], 1 }

</bundles_post_ra>
